<compile_context>
chip_gen: v6e
topology: v6e:2x2x1
jax: 0.10.0
libtpu: 0.0.40
codegen_flags: <defaults>
</compile_context>

<pallas_src>
import jax
import jax.numpy as jnp
import numpy as np
from jax.experimental import pallas as pl
from jax.experimental.pallas import tpu as pltpu


# ----------------------------------------------------------------------------
# Generation-aware VMEM limit: ~3/4 of physical VMEM, clamped to [32, 96] MiB.
#  v5e/v6e (128 MiB) -> 96 MiB, v7x (64 MiB) -> 48 MiB, fallback -> 48 MiB.
# ----------------------------------------------------------------------------
def _vmem_limit_bytes():
    cap = 64 * 1024 * 1024  # conservative fallback (v7x-sized)
    try:
        info = pltpu.get_tpu_info()
        cap = int(getattr(info, "vmem_capacity_bytes", cap))
    except Exception:
        pass
    return int(max(32 * 1024 * 1024, min(cap * 3 // 4, 96 * 1024 * 1024)))


VMEM_LIMIT = _vmem_limit_bytes()
FC_TILE_B = 256  # FC-head batch tile (multiple of 8); full B when B <= 256


# ----------------------------------------------------------------------------
# Pallas kernel: fused  y = act(x @ w + b)   (bf16 MXU inputs, f32 epilogue)
# ----------------------------------------------------------------------------
def _make_matmul_kernel(act):
    def kernel(x_ref, w_ref, b_ref, o_ref):
        y = jnp.dot(x_ref[...], w_ref[...], preferred_element_type=jnp.float32)
        y = y + b_ref[...]                       # f32 bias
        if act == "leaky_relu":
            y = jnp.where(y > 0, y, 0.01 * y)    # torch.nn.LeakyReLU default slope
        elif act == "relu":
            y = jnp.maximum(y, 0.0)
        o_ref[...] = y.astype(o_ref.dtype)

    return kernel


def fused_matmul(x, w, b, act="none", out_dtype=jnp.float32, max_tm=512):
    """x: (M, K) bf16, w: (K, N) bf16, b: (N,) f32 -> (M, N) out_dtype.

    Rows are tiled with a cdiv grid (ragged last block is masked on store and
    never read back); max_tm is a multiple of 16 so full blocks store as
    unmasked bf16 sublane-packed rows.
    """
    M, K = x.shape
    K2, N = w.shape
    assert K == K2, (K, K2)
    tm = M if M <= max_tm else max_tm
    grid = (pl.cdiv(M, tm),)
    return pl.pallas_call(
        _make_matmul_kernel(act),
        out_shape=jax.ShapeDtypeStruct((M, N), out_dtype),
        grid=grid,
        in_specs=[
            pl.BlockSpec((tm, K), lambda i: (i, 0)),
            pl.BlockSpec((K, N), lambda i: (0, 0)),   # weights stay resident
            pl.BlockSpec((1, N), lambda i: (0, 0)),
        ],
        out_specs=pl.BlockSpec((tm, N), lambda i: (i, 0)),
        compiler_params=pltpu.CompilerParams(
            dimension_semantics=("parallel",),        # rows split across TCs on v7x
            vmem_limit_bytes=VMEM_LIMIT,
        ),
    )(x, w, b.reshape(1, N))


# ----------------------------------------------------------------------------
# Pallas kernel: fused FC head for BOTH branches, tiled over batch.
#   predictor: relu(hp@W1p+b) -> relu(@W2p+b) -> @W3p+b
#   target   : ht@W1t+b
# All four weight matrices (~7.4 MB bf16) stay resident in VMEM; hp/ht/outs are
# streamed per batch tile so large B pipelines and uses both v7x TensorCores.
# ----------------------------------------------------------------------------
def _fc_head_kernel(hp_ref, ht_ref, w1p_ref, b1p_ref, w2p_ref, b2p_ref,
                    w3p_ref, b3p_ref, w1t_ref, b1t_ref, pred_ref, targ_ref):
    bf = jnp.bfloat16
    x = jnp.dot(hp_ref[...], w1p_ref[...], preferred_element_type=jnp.float32)
    x = jnp.maximum(x + b1p_ref[...], 0.0).astype(bf)
    x = jnp.dot(x, w2p_ref[...], preferred_element_type=jnp.float32)
    x = jnp.maximum(x + b2p_ref[...], 0.0).astype(bf)
    x = jnp.dot(x, w3p_ref[...], preferred_element_type=jnp.float32) + b3p_ref[...]
    pred_ref[...] = x.astype(pred_ref.dtype)

    t = jnp.dot(ht_ref[...], w1t_ref[...], preferred_element_type=jnp.float32)
    targ_ref[...] = (t + b1t_ref[...]).astype(targ_ref.dtype)


def fc_head(hp, ht, p):
    B, K = hp.shape
    N = 512
    tb = B if B <= FC_TILE_B else FC_TILE_B
    grid = (pl.cdiv(B, tb),)

    def tiled(shape):
        return pl.BlockSpec(shape, lambda i: (i, 0))

    def resident(shape):
        return pl.BlockSpec(shape, lambda i, _nd=len(shape): (0,) * _nd)

    return pl.pallas_call(
        _fc_head_kernel,
        out_shape=(jax.ShapeDtypeStruct((B, N), jnp.float32),
                   jax.ShapeDtypeStruct((B, N), jnp.float32)),
        grid=grid,
        in_specs=[
            tiled((tb, K)), tiled((tb, K)),
            resident((K, N)), resident((1, N)),
            resident((N, N)), resident((1, N)),
            resident((N, N)), resident((1, N)),
            resident((K, N)), resident((1, N)),
        ],
        out_specs=(tiled((tb, N)), tiled((tb, N))),
        compiler_params=pltpu.CompilerParams(
            dimension_semantics=("parallel",),        # batch tiles across TCs
            vmem_limit_bytes=VMEM_LIMIT,
        ),
    )(hp, ht,
      p["fc1p_w"], p["fc1p_b"].reshape(1, N),
      p["fc2p_w"], p["fc2p_b"].reshape(1, N),
      p["fc3p_w"], p["fc3p_b"].reshape(1, N),
      p["fc1t_w"], p["fc1t_b"].reshape(1, N))


# ----------------------------------------------------------------------------
# XLA-glue im2col, NHWC, no transposes (feature order = (i, j, c))
# TODO(synk): fold the tap gather into the conv kernels (needs strided sublane
# loads along W which Mosaic does not lower cleanly).
# ----------------------------------------------------------------------------
def im2col_nhwc(x, kh, kw, stride):
    B, H, W, C = x.shape
    Ho = (H - kh) // stride + 1
    Wo = (W - kw) // stride + 1
    cols = []
    for i in range(kh):
        for j in range(kw):
            cols.append(x[:, i:i + stride * Ho:stride, j:j + stride * Wo:stride, :])
    cols = jnp.concatenate(cols, axis=-1)             # (B, Ho, Wo, kh*kw*C)
    return cols.reshape(B * Ho * Wo, kh * kw * C)


def conv_nhwc(x, w, b, kh, kw, stride, act, out_dtype=jnp.bfloat16,
              max_tm=512, row_pack=1):
    """Conv as im2col + fused matmul.  With row_pack=p, `p` adjacent spatial
    positions are packed into one lane-dense matmul row (the weight must have
    been pre-packed with _row_pack); the packing is row-major free on both
    sides of the matmul."""
    B, H, W, _ = x.shape
    Ho = (H - kh) // stride + 1
    Wo = (W - kw) // stride + 1
    cols = im2col_nhwc(x, kh, kw, stride)             # (B*Ho*Wo, kh*kw*Cin)
    if row_pack > 1:
        M, Kf = cols.shape
        assert M % row_pack == 0, (M, row_pack)
        cols = cols.reshape(M // row_pack, row_pack * Kf)   # row-major identical
    y = fused_matmul(cols, w, b, act=act, out_dtype=out_dtype, max_tm=max_tm)
    cout = w.shape[1] // row_pack
    return y.reshape(B, Ho, Wo, cout)                 # row-major identical


# ----------------------------------------------------------------------------
# Parameter init (orthogonal gain sqrt(2), zero bias — mirrors layer_init) and
# packing into the fused/bf16 layout used by the kernels.
# ----------------------------------------------------------------------------
def _orth(key, shape, scale=np.sqrt(2.0)):
    return jax.nn.initializers.orthogonal(scale=scale)(key, shape, jnp.float32)


def init_trunk_params(key):
    k = jax.random.split(key, 4)
    return {
        "c1_w": _orth(k[0], (8 * 8 * 1, 32)),    "c1_b": jnp.zeros((32,), jnp.float32),
        "c2_w": _orth(k[1], (4 * 4 * 32, 64)),   "c2_b": jnp.zeros((64,), jnp.float32),
        "c3_w": _orth(k[2], (3 * 3 * 64, 64)),   "c3_b": jnp.zeros((64,), jnp.float32),
        "fc1_w": _orth(k[3], (7 * 7 * 64, 512)), "fc1_b": jnp.zeros((512,), jnp.float32),
    }


def init_rnd_params(key):
    kp, kt, k2, k3 = jax.random.split(key, 4)
    predictor = init_trunk_params(kp)
    predictor["fc2_w"] = _orth(k2, (512, 512))
    predictor["fc2_b"] = jnp.zeros((512,), jnp.float32)
    predictor["fc3_w"] = _orth(k3, (512, 512))
    predictor["fc3_b"] = jnp.zeros((512,), jnp.float32)
    target = init_trunk_params(kt)
    return {"predictor": predictor, "target": target}


def _block_diag_conv_w(wp, wt, kh, kw, cin, cout):
    """Combine per-branch conv weights (kh*kw*cin, cout) into a block-diagonal
    (kh*kw*2*cin, 2*cout) matrix acting on the channel-concatenated activation
    [pred | targ]; output cols 0..cout-1 = predictor, cout..2*cout-1 = target."""
    wp4 = wp.reshape(kh * kw, cin, cout)
    wt4 = wt.reshape(kh * kw, cin, cout)
    z = jnp.zeros((kh * kw, cin, cout), dtype=wp.dtype)
    top = jnp.concatenate([wp4, z], axis=-1)
    bot = jnp.concatenate([z, wt4], axis=-1)
    w = jnp.concatenate([top, bot], axis=1)           # (kh*kw, 2*cin, 2*cout)
    return w.reshape(kh * kw * 2 * cin, 2 * cout)


def _row_pack(w, b, pack):
    """Block-diagonal replication so `pack` adjacent matmul rows are evaluated
    as one lane-dense row: (K, N) -> (pack*K, pack*N); bias tiled to pack*N."""
    K, N = w.shape
    wp = jnp.zeros((pack * K, pack * N), w.dtype)
    for r in range(pack):
        wp = wp.at[r * K:(r + 1) * K, r * N:(r + 1) * N].set(w)
    return wp, jnp.tile(b, pack)


def pack_params(raw):
    p, t = raw["predictor"], raw["target"]
    bf = jnp.bfloat16
    # conv1: shared input (C_in=1) -> concat along C_out (64 out channels), then
    # pack 2 spatial positions per matmul row -> lane-dense (128, 128) weight.
    c1_w = jnp.concatenate([p["c1_w"], t["c1_w"]], axis=1)        # (64, 64)
    c1_b = jnp.concatenate([p["c1_b"], t["c1_b"]])                # (64,)
    c1_w, c1_b = _row_pack(c1_w, c1_b, 2)                          # (128,128), (128,)
    return {
        "c1_w": c1_w.astype(bf), "c1_b": c1_b,
        # conv2/conv3: block-diagonal over channel-concatenated activations
        "c2_w": _block_diag_conv_w(p["c2_w"], t["c2_w"], 4, 4, 32, 64).astype(bf),  # (1024, 128)
        "c2_b": jnp.concatenate([p["c2_b"], t["c2_b"]]),
        "c3_w": _block_diag_conv_w(p["c3_w"], t["c3_w"], 3, 3, 64, 64).astype(bf),  # (1152, 128)
        "c3_b": jnp.concatenate([p["c3_b"], t["c3_b"]]),
        # FC head
        "fc1p_w": p["fc1_w"].astype(bf), "fc1p_b": p["fc1_b"],
        "fc2p_w": p["fc2_w"].astype(bf), "fc2p_b": p["fc2_b"],
        "fc3p_w": p["fc3_w"].astype(bf), "fc3p_b": p["fc3_b"],
        "fc1t_w": t["fc1_w"].astype(bf), "fc1t_b": t["fc1_b"],
    }


# ----------------------------------------------------------------------------
# Forward pass (== RNDModel.forward): returns (predict_feature, target_feature)
# ----------------------------------------------------------------------------
def rnd_forward(params, next_obs):
    B = next_obs.shape[0]
    # NCHW (B,1,84,84) -> NHWC (B,84,84,1); C_in=1 so this is a pure reshape.
    x = next_obs.reshape(B, 84, 84, 1).astype(jnp.bfloat16)

    # conv1 8x8/s4 -> (B,20,20,64); row_pack=2 makes lhs K=128 and store N=128.
    h = conv_nhwc(x, params["c1_w"], params["c1_b"], 8, 8, 4, "leaky_relu",
                  max_tm=1024, row_pack=2)
    # conv2 4x4/s2 -> (B,9,9,128); conv3 3x3/s1 -> (B,7,7,128) (both branches).
    h = conv_nhwc(h, params["c2_w"], params["c2_b"], 4, 4, 2, "leaky_relu",
                  max_tm=512)
    h = conv_nhwc(h, params["c3_w"], params["c3_b"], 3, 3, 1, "leaky_relu",
                  max_tm=512)

    # channels 0..63 = predictor trunk, 64..127 = target trunk; (h,w,c) flatten
    hp = h[..., :64].reshape(B, 7 * 7 * 64)
    ht = h[..., 64:].reshape(B, 7 * 7 * 64)

    predict_feature, target_feature = fc_head(hp, ht, params)
    return predict_feature, target_feature


# ----------------------------------------------------------------------------
if __name__ == "__main__":
    key = jax.random.PRNGKey(0)
    k_param, k_obs = jax.random.split(key)

    # Spatial size must be 84x84: the module hard-codes feature_output = 7*7*64.
    B = 2
    next_obs = jax.random.normal(k_obs, (B, 1, 84, 84), dtype=jnp.float32)

    params = pack_params(init_rnd_params(k_param))

    fwd = jax.jit(rnd_forward)
    predict_feature, target_feature = fwd(params, next_obs)
    jax.block_until_ready((predict_feature, target_feature))

    assert predict_feature.shape == (B, 512) and predict_feature.dtype == jnp.float32
    assert target_feature.shape == (B, 512) and target_feature.dtype == jnp.float32
    assert bool(jnp.all(jnp.isfinite(predict_feature)))
    assert bool(jnp.all(jnp.isfinite(target_feature)))
    print("KERNEL_OK")
</pallas_src>

<mosaic_0001>
module attributes {stable_mosaic.version = 11 : i64} {
  func.func @kernel(%arg0: i32, %arg1: memref<400x128xbf16, #tpu.memory_space<vmem>>, %arg2: memref<128x128xbf16, #tpu.memory_space<vmem>>, %arg3: memref<1x128xf32, #tpu.memory_space<vmem>>, %arg4: memref<400x128xbf16, #tpu.memory_space<vmem>>) attributes {dimension_semantics = [#tpu.dimension_semantics<parallel>], iteration_bounds = array<i64: 1>, scalar_prefetch = 0 : i64, scratch_operands = 0 : i64, tpu.core_type = #tpu.core_type<tc>, window_params = [{transform_indices = @transform_0, window_bounds = array<i64: 400, 128>}, {pipeline_mode = #tpu.pipeline_mode<synchronous>, transform_indices = @transform_1, window_bounds = array<i64: 128, 128>}, {pipeline_mode = #tpu.pipeline_mode<synchronous>, transform_indices = @transform_2, window_bounds = array<i64: 1, 128>}, {transform_indices = @transform_3, window_bounds = array<i64: 400, 128>}]} {
    %c0 = arith.constant 0 : index
    %c0_0 = arith.constant 0 : index
    %0 = vector.load %arg1[%c0, %c0_0] : memref<400x128xbf16, #tpu.memory_space<vmem>>, vector<400x128xbf16>
    %c0_1 = arith.constant 0 : index
    %c0_2 = arith.constant 0 : index
    %1 = vector.load %arg2[%c0_1, %c0_2] : memref<128x128xbf16, #tpu.memory_space<vmem>>, vector<128x128xbf16>
    %cst = arith.constant dense<0.000000e+00> : vector<400x128xf32>
    %2 = tpu.matmul %0, %1, %cst {dimension_numbers = #tpu.dot_dimension_numbers<[1], [0], [0], [1], [0, 0, 1, 1], [], []>} : vector<400x128xbf16>, vector<128x128xbf16>, vector<400x128xf32> -> vector<400x128xf32>
    %c0_3 = arith.constant 0 : index
    %c0_4 = arith.constant 0 : index
    %3 = vector.load %arg3[%c0_3, %c0_4] : memref<1x128xf32, #tpu.memory_space<vmem>>, vector<1x128xf32>
    %4 = vector.broadcast %3 : vector<1x128xf32> to vector<400x128xf32>
    %5 = arith.addf %2, %4 : vector<400x128xf32>
    %cst_5 = arith.constant 0.000000e+00 : f32
    %6 = vector.broadcast %cst_5 : f32 to vector<400x128xf32>
    %7 = arith.cmpf ogt, %5, %6 : vector<400x128xf32>
    %cst_6 = arith.constant 0.00999999977 : f32
    %8 = vector.broadcast %cst_6 : f32 to vector<400x128xf32>
    %9 = arith.mulf %8, %5 : vector<400x128xf32>
    %10 = arith.select %7, %5, %9 : vector<400x128xi1>, vector<400x128xf32>
    %11 = arith.truncf %10 : vector<400x128xf32> to vector<400x128xbf16>
    %c0_7 = arith.constant 0 : index
    %c0_8 = arith.constant 0 : index
    %12 = vector.load %arg4[%c0_7, %c0_8] : memref<400x128xbf16, #tpu.memory_space<vmem>>, vector<400x128xbf16>
    tpu.vector_store %arg4[%c0_7, %c0_8], %11 {strides = array<i32>} : memref<400x128xbf16, #tpu.memory_space<vmem>>, vector<400x128xbf16>,
    return
  }
  func.func @transform_0(%arg0: i32) -> (i32, i32) {
    %c0_i32 = arith.constant 0 : i32
    %c0_i32_0 = arith.constant 0 : i32
    return %arg0, %c0_i32 : i32, i32
  }
  func.func @transform_1(%arg0: i32) -> (i32, i32) {
    %c0_i32 = arith.constant 0 : i32
    %c0_i32_0 = arith.constant 0 : i32
    %c0_i32_1 = arith.constant 0 : i32
    return %c0_i32, %c0_i32_0 : i32, i32
  }
  func.func @transform_2(%arg0: i32) -> (i32, i32) {
    %c0_i32 = arith.constant 0 : i32
    %c0_i32_0 = arith.constant 0 : i32
    %c0_i32_1 = arith.constant 0 : i32
    return %c0_i32, %c0_i32_0 : i32, i32
  }
  func.func @transform_3(%arg0: i32) -> (i32, i32) {
    %c0_i32 = arith.constant 0 : i32
    %c0_i32_0 = arith.constant 0 : i32
    return %arg0, %c0_i32 : i32, i32
  }
}

module attributes {stable_mosaic.version = 11 : i64} {
  func.func @kernel(%arg0: i32, %arg1: memref<162x1024xbf16, #tpu.memory_space<vmem>>, %arg2: memref<1024x128xbf16, #tpu.memory_space<vmem>>, %arg3: memref<1x128xf32, #tpu.memory_space<vmem>>, %arg4: memref<162x128xbf16, #tpu.memory_space<vmem>>) attributes {dimension_semantics = [#tpu.dimension_semantics<parallel>], iteration_bounds = array<i64: 1>, scalar_prefetch = 0 : i64, scratch_operands = 0 : i64, tpu.core_type = #tpu.core_type<tc>, window_params = [{transform_indices = @transform_0, window_bounds = array<i64: 162, 1024>}, {pipeline_mode = #tpu.pipeline_mode<synchronous>, transform_indices = @transform_1, window_bounds = array<i64: 1024, 128>}, {pipeline_mode = #tpu.pipeline_mode<synchronous>, transform_indices = @transform_2, window_bounds = array<i64: 1, 128>}, {transform_indices = @transform_3, window_bounds = array<i64: 162, 128>}]} {
    %c0 = arith.constant 0 : index
    %c0_0 = arith.constant 0 : index
    %0 = vector.load %arg1[%c0, %c0_0] : memref<162x1024xbf16, #tpu.memory_space<vmem>>, vector<162x1024xbf16>
    %c0_1 = arith.constant 0 : index
    %c0_2 = arith.constant 0 : index
    %1 = vector.load %arg2[%c0_1, %c0_2] : memref<1024x128xbf16, #tpu.memory_space<vmem>>, vector<1024x128xbf16>
    %cst = arith.constant dense<0.000000e+00> : vector<162x128xf32>
    %2 = tpu.matmul %0, %1, %cst {dimension_numbers = #tpu.dot_dimension_numbers<[1], [0], [0], [1], [0, 0, 1, 1], [], []>} : vector<162x1024xbf16>, vector<1024x128xbf16>, vector<162x128xf32> -> vector<162x128xf32>
    %c0_3 = arith.constant 0 : index
    %c0_4 = arith.constant 0 : index
    %3 = vector.load %arg3[%c0_3, %c0_4] : memref<1x128xf32, #tpu.memory_space<vmem>>, vector<1x128xf32>
    %4 = vector.broadcast %3 : vector<1x128xf32> to vector<162x128xf32>
    %5 = arith.addf %2, %4 : vector<162x128xf32>
    %cst_5 = arith.constant 0.000000e+00 : f32
    %6 = vector.broadcast %cst_5 : f32 to vector<162x128xf32>
    %7 = arith.cmpf ogt, %5, %6 : vector<162x128xf32>
    %cst_6 = arith.constant 0.00999999977 : f32
    %8 = vector.broadcast %cst_6 : f32 to vector<162x128xf32>
    %9 = arith.mulf %8, %5 : vector<162x128xf32>
    %10 = arith.select %7, %5, %9 : vector<162x128xi1>, vector<162x128xf32>
    %11 = arith.truncf %10 : vector<162x128xf32> to vector<162x128xbf16>
    %c0_7 = arith.constant 0 : index
    %c0_8 = arith.constant 0 : index
    %12 = vector.load %arg4[%c0_7, %c0_8] : memref<162x128xbf16, #tpu.memory_space<vmem>>, vector<162x128xbf16>
    tpu.vector_store %arg4[%c0_7, %c0_8], %11 {strides = array<i32>} : memref<162x128xbf16, #tpu.memory_space<vmem>>, vector<162x128xbf16>,
    return
  }
  func.func @transform_0(%arg0: i32) -> (i32, i32) {
    %c0_i32 = arith.constant 0 : i32
    %c0_i32_0 = arith.constant 0 : i32
    return %arg0, %c0_i32 : i32, i32
  }
  func.func @transform_1(%arg0: i32) -> (i32, i32) {
    %c0_i32 = arith.constant 0 : i32
    %c0_i32_0 = arith.constant 0 : i32
    %c0_i32_1 = arith.constant 0 : i32
    return %c0_i32, %c0_i32_0 : i32, i32
  }
  func.func @transform_2(%arg0: i32) -> (i32, i32) {
    %c0_i32 = arith.constant 0 : i32
    %c0_i32_0 = arith.constant 0 : i32
    %c0_i32_1 = arith.constant 0 : i32
    return %c0_i32, %c0_i32_0 : i32, i32
  }
  func.func @transform_3(%arg0: i32) -> (i32, i32) {
    %c0_i32 = arith.constant 0 : i32
    %c0_i32_0 = arith.constant 0 : i32
    return %arg0, %c0_i32 : i32, i32
  }
}

module attributes {stable_mosaic.version = 11 : i64} {
  func.func @kernel(%arg0: i32, %arg1: memref<98x1152xbf16, #tpu.memory_space<vmem>>, %arg2: memref<1152x128xbf16, #tpu.memory_space<vmem>>, %arg3: memref<1x128xf32, #tpu.memory_space<vmem>>, %arg4: memref<98x128xbf16, #tpu.memory_space<vmem>>) attributes {dimension_semantics = [#tpu.dimension_semantics<parallel>], iteration_bounds = array<i64: 1>, scalar_prefetch = 0 : i64, scratch_operands = 0 : i64, tpu.core_type = #tpu.core_type<tc>, window_params = [{transform_indices = @transform_0, window_bounds = array<i64: 98, 1152>}, {pipeline_mode = #tpu.pipeline_mode<synchronous>, transform_indices = @transform_1, window_bounds = array<i64: 1152, 128>}, {pipeline_mode = #tpu.pipeline_mode<synchronous>, transform_indices = @transform_2, window_bounds = array<i64: 1, 128>}, {transform_indices = @transform_3, window_bounds = array<i64: 98, 128>}]} {
    %c0 = arith.constant 0 : index
    %c0_0 = arith.constant 0 : index
    %0 = vector.load %arg1[%c0, %c0_0] : memref<98x1152xbf16, #tpu.memory_space<vmem>>, vector<98x1152xbf16>
    %c0_1 = arith.constant 0 : index
    %c0_2 = arith.constant 0 : index
    %1 = vector.load %arg2[%c0_1, %c0_2] : memref<1152x128xbf16, #tpu.memory_space<vmem>>, vector<1152x128xbf16>
    %cst = arith.constant dense<0.000000e+00> : vector<98x128xf32>
    %2 = tpu.matmul %0, %1, %cst {dimension_numbers = #tpu.dot_dimension_numbers<[1], [0], [0], [1], [0, 0, 1, 1], [], []>} : vector<98x1152xbf16>, vector<1152x128xbf16>, vector<98x128xf32> -> vector<98x128xf32>
    %c0_3 = arith.constant 0 : index
    %c0_4 = arith.constant 0 : index
    %3 = vector.load %arg3[%c0_3, %c0_4] : memref<1x128xf32, #tpu.memory_space<vmem>>, vector<1x128xf32>
    %4 = vector.broadcast %3 : vector<1x128xf32> to vector<98x128xf32>
    %5 = arith.addf %2, %4 : vector<98x128xf32>
    %cst_5 = arith.constant 0.000000e+00 : f32
    %6 = vector.broadcast %cst_5 : f32 to vector<98x128xf32>
    %7 = arith.cmpf ogt, %5, %6 : vector<98x128xf32>
    %cst_6 = arith.constant 0.00999999977 : f32
    %8 = vector.broadcast %cst_6 : f32 to vector<98x128xf32>
    %9 = arith.mulf %8, %5 : vector<98x128xf32>
    %10 = arith.select %7, %5, %9 : vector<98x128xi1>, vector<98x128xf32>
    %11 = arith.truncf %10 : vector<98x128xf32> to vector<98x128xbf16>
    %c0_7 = arith.constant 0 : index
    %c0_8 = arith.constant 0 : index
    %12 = vector.load %arg4[%c0_7, %c0_8] : memref<98x128xbf16, #tpu.memory_space<vmem>>, vector<98x128xbf16>
    tpu.vector_store %arg4[%c0_7, %c0_8], %11 {strides = array<i32>} : memref<98x128xbf16, #tpu.memory_space<vmem>>, vector<98x128xbf16>,
    return
  }
  func.func @transform_0(%arg0: i32) -> (i32, i32) {
    %c0_i32 = arith.constant 0 : i32
    %c0_i32_0 = arith.constant 0 : i32
    return %arg0, %c0_i32 : i32, i32
  }
  func.func @transform_1(%arg0: i32) -> (i32, i32) {
    %c0_i32 = arith.constant 0 : i32
    %c0_i32_0 = arith.constant 0 : i32
    %c0_i32_1 = arith.constant 0 : i32
    return %c0_i32, %c0_i32_0 : i32, i32
  }
  func.func @transform_2(%arg0: i32) -> (i32, i32) {
    %c0_i32 = arith.constant 0 : i32
    %c0_i32_0 = arith.constant 0 : i32
    %c0_i32_1 = arith.constant 0 : i32
    return %c0_i32, %c0_i32_0 : i32, i32
  }
  func.func @transform_3(%arg0: i32) -> (i32, i32) {
    %c0_i32 = arith.constant 0 : i32
    %c0_i32_0 = arith.constant 0 : i32
    return %arg0, %c0_i32 : i32, i32
  }
}

module attributes {stable_mosaic.version = 11 : i64} {
  func.func @_fc_head_kernel(%arg0: i32, %arg1: memref<2x3136xbf16, #tpu.memory_space<vmem>>, %arg2: memref<2x3136xbf16, #tpu.memory_space<vmem>>, %arg3: memref<3136x512xbf16, #tpu.memory_space<vmem>>, %arg4: memref<1x512xf32, #tpu.memory_space<vmem>>, %arg5: memref<512x512xbf16, #tpu.memory_space<vmem>>, %arg6: memref<1x512xf32, #tpu.memory_space<vmem>>, %arg7: memref<512x512xbf16, #tpu.memory_space<vmem>>, %arg8: memref<1x512xf32, #tpu.memory_space<vmem>>, %arg9: memref<3136x512xbf16, #tpu.memory_space<vmem>>, %arg10: memref<1x512xf32, #tpu.memory_space<vmem>>, %arg11: memref<2x512xf32, #tpu.memory_space<vmem>>, %arg12: memref<2x512xf32, #tpu.memory_space<vmem>>) attributes {dimension_semantics = [#tpu.dimension_semantics<parallel>], iteration_bounds = array<i64: 1>, scalar_prefetch = 0 : i64, scratch_operands = 0 : i64, tpu.core_type = #tpu.core_type<tc>, window_params = [{transform_indices = @transform_0, window_bounds = array<i64: 2, 3136>}, {transform_indices = @transform_1, window_bounds = array<i64: 2, 3136>}, {pipeline_mode = #tpu.pipeline_mode<synchronous>, transform_indices = @transform_2, window_bounds = array<i64: 3136, 512>}, {pipeline_mode = #tpu.pipeline_mode<synchronous>, transform_indices = @transform_3, window_bounds = array<i64: 1, 512>}, {pipeline_mode = #tpu.pipeline_mode<synchronous>, transform_indices = @transform_4, window_bounds = array<i64: 512, 512>}, {pipeline_mode = #tpu.pipeline_mode<synchronous>, transform_indices = @transform_5, window_bounds = array<i64: 1, 512>}, {pipeline_mode = #tpu.pipeline_mode<synchronous>, transform_indices = @transform_6, window_bounds = array<i64: 512, 512>}, {pipeline_mode = #tpu.pipeline_mode<synchronous>, transform_indices = @transform_7, window_bounds = array<i64: 1, 512>}, {pipeline_mode = #tpu.pipeline_mode<synchronous>, transform_indices = @transform_8, window_bounds = array<i64: 3136, 512>}, {pipeline_mode = #tpu.pipeline_mode<synchronous>, transform_indices = @transform_9, window_bounds = array<i64: 1, 512>}, {transform_indices = @transform_10, window_bounds = array<i64: 2, 512>}, {transform_indices = @transform_11, window_bounds = array<i64: 2, 512>}]} {
    %c0 = arith.constant 0 : index
    %c0_0 = arith.constant 0 : index
    %0 = vector.load %arg1[%c0, %c0_0] : memref<2x3136xbf16, #tpu.memory_space<vmem>>, vector<2x3136xbf16>
    %c0_1 = arith.constant 0 : index
    %c0_2 = arith.constant 0 : index
    %1 = vector.load %arg3[%c0_1, %c0_2] : memref<3136x512xbf16, #tpu.memory_space<vmem>>, vector<3136x512xbf16>
    %cst = arith.constant dense<0.000000e+00> : vector<2x512xf32>
    %2 = tpu.matmul %0, %1, %cst {dimension_numbers = #tpu.dot_dimension_numbers<[1], [0], [0], [1], [0, 0, 1, 1], [], []>} : vector<2x3136xbf16>, vector<3136x512xbf16>, vector<2x512xf32> -> vector<2x512xf32>
    %c0_3 = arith.constant 0 : index
    %c0_4 = arith.constant 0 : index
    %3 = vector.load %arg4[%c0_3, %c0_4] : memref<1x512xf32, #tpu.memory_space<vmem>>, vector<1x512xf32>
    %4 = vector.broadcast %3 : vector<1x512xf32> to vector<2x512xf32>
    %5 = arith.addf %2, %4 : vector<2x512xf32>
    %cst_5 = arith.constant 0.000000e+00 : f32
    %6 = vector.broadcast %cst_5 : f32 to vector<2x512xf32>
    %7 = arith.maximumf %5, %6 : vector<2x512xf32>
    %8 = arith.truncf %7 : vector<2x512xf32> to vector<2x512xbf16>
    %c0_6 = arith.constant 0 : index
    %c0_7 = arith.constant 0 : index
    %9 = vector.load %arg5[%c0_6, %c0_7] : memref<512x512xbf16, #tpu.memory_space<vmem>>, vector<512x512xbf16>
    %cst_8 = arith.constant dense<0.000000e+00> : vector<2x512xf32>
    %10 = tpu.matmul %8, %9, %cst_8 {dimension_numbers = #tpu.dot_dimension_numbers<[1], [0], [0], [1], [0, 0, 1, 1], [], []>} : vector<2x512xbf16>, vector<512x512xbf16>, vector<2x512xf32> -> vector<2x512xf32>
    %c0_9 = arith.constant 0 : index
    %c0_10 = arith.constant 0 : index
    %11 = vector.load %arg6[%c0_9, %c0_10] : memref<1x512xf32, #tpu.memory_space<vmem>>, vector<1x512xf32>
    %12 = vector.broadcast %11 : vector<1x512xf32> to vector<2x512xf32>
    %13 = arith.addf %10, %12 : vector<2x512xf32>
    %cst_11 = arith.constant 0.000000e+00 : f32
    %14 = vector.broadcast %cst_11 : f32 to vector<2x512xf32>
    %15 = arith.maximumf %13, %14 : vector<2x512xf32>
    %16 = arith.truncf %15 : vector<2x512xf32> to vector<2x512xbf16>
    %c0_12 = arith.constant 0 : index
    %c0_13 = arith.constant 0 : index
    %17 = vector.load %arg7[%c0_12, %c0_13] : memref<512x512xbf16, #tpu.memory_space<vmem>>, vector<512x512xbf16>
    %cst_14 = arith.constant dense<0.000000e+00> : vector<2x512xf32>
    %18 = tpu.matmul %16, %17, %cst_14 {dimension_numbers = #tpu.dot_dimension_numbers<[1], [0], [0], [1], [0, 0, 1, 1], [], []>} : vector<2x512xbf16>, vector<512x512xbf16>, vector<2x512xf32> -> vector<2x512xf32>
    %c0_15 = arith.constant 0 : index
    %c0_16 = arith.constant 0 : index
    %19 = vector.load %arg8[%c0_15, %c0_16] : memref<1x512xf32, #tpu.memory_space<vmem>>, vector<1x512xf32>
    %20 = vector.broadcast %19 : vector<1x512xf32> to vector<2x512xf32>
    %21 = arith.addf %18, %20 : vector<2x512xf32>
    %c0_17 = arith.constant 0 : index
    %c0_18 = arith.constant 0 : index
    %22 = vector.load %arg11[%c0_17, %c0_18] : memref<2x512xf32, #tpu.memory_space<vmem>>, vector<2x512xf32>
    tpu.vector_store %arg11[%c0_17, %c0_18], %21 {strides = array<i32>} : memref<2x512xf32, #tpu.memory_space<vmem>>, vector<2x512xf32>,
    %c0_19 = arith.constant 0 : index
    %c0_20 = arith.constant 0 : index
    %23 = vector.load %arg2[%c0_19, %c0_20] : memref<2x3136xbf16, #tpu.memory_space<vmem>>, vector<2x3136xbf16>
    %c0_21 = arith.constant 0 : index
    %c0_22 = arith.constant 0 : index
    %24 = vector.load %arg9[%c0_21, %c0_22] : memref<3136x512xbf16, #tpu.memory_space<vmem>>, vector<3136x512xbf16>
    %cst_23 = arith.constant dense<0.000000e+00> : vector<2x512xf32>
    %25 = tpu.matmul %23, %24, %cst_23 {dimension_numbers = #tpu.dot_dimension_numbers<[1], [0], [0], [1], [0, 0, 1, 1], [], []>} : vector<2x3136xbf16>, vector<3136x512xbf16>, vector<2x512xf32> -> vector<2x512xf32>
    %c0_24 = arith.constant 0 : index
    %c0_25 = arith.constant 0 : index
    %26 = vector.load %arg10[%c0_24, %c0_25] : memref<1x512xf32, #tpu.memory_space<vmem>>, vector<1x512xf32>
    %27 = vector.broadcast %26 : vector<1x512xf32> to vector<2x512xf32>
    %28 = arith.addf %25, %27 : vector<2x512xf32>
    %c0_26 = arith.constant 0 : index
    %c0_27 = arith.constant 0 : index
    %29 = vector.load %arg12[%c0_26, %c0_27] : memref<2x512xf32, #tpu.memory_space<vmem>>, vector<2x512xf32>
    tpu.vector_store %arg12[%c0_26, %c0_27], %28 {strides = array<i32>} : memref<2x512xf32, #tpu.memory_space<vmem>>, vector<2x512xf32>,
    return
  }
  func.func @transform_0(%arg0: i32) -> (i32, i32) {
    %c0_i32 = arith.constant 0 : i32
    %c0_i32_0 = arith.constant 0 : i32
    return %arg0, %c0_i32 : i32, i32
  }
  func.func @transform_1(%arg0: i32) -> (i32, i32) {
    %c0_i32 = arith.constant 0 : i32
    %c0_i32_0 = arith.constant 0 : i32
    return %arg0, %c0_i32 : i32, i32
  }
  func.func @transform_2(%arg0: i32) -> (i32, i32) {
    %c0_i32 = arith.constant 0 : i32
    %c0_i32_0 = arith.constant 0 : i32
    %c0_i32_1 = arith.constant 0 : i32
    return %c0_i32, %c0_i32_0 : i32, i32
  }
  func.func @transform_3(%arg0: i32) -> (i32, i32) {
    %c0_i32 = arith.constant 0 : i32
    %c0_i32_0 = arith.constant 0 : i32
    %c0_i32_1 = arith.constant 0 : i32
    return %c0_i32, %c0_i32_0 : i32, i32
  }
  func.func @transform_4(%arg0: i32) -> (i32, i32) {
    %c0_i32 = arith.constant 0 : i32
    %c0_i32_0 = arith.constant 0 : i32
    %c0_i32_1 = arith.constant 0 : i32
    return %c0_i32, %c0_i32_0 : i32, i32
  }
  func.func @transform_5(%arg0: i32) -> (i32, i32) {
    %c0_i32 = arith.constant 0 : i32
    %c0_i32_0 = arith.constant 0 : i32
    %c0_i32_1 = arith.constant 0 : i32
    return %c0_i32, %c0_i32_0 : i32, i32
  }
  func.func @transform_6(%arg0: i32) -> (i32, i32) {
    %c0_i32 = arith.constant 0 : i32
    %c0_i32_0 = arith.constant 0 : i32
    %c0_i32_1 = arith.constant 0 : i32
    return %c0_i32, %c0_i32_0 : i32, i32
  }
  func.func @transform_7(%arg0: i32) -> (i32, i32) {
    %c0_i32 = arith.constant 0 : i32
    %c0_i32_0 = arith.constant 0 : i32
    %c0_i32_1 = arith.constant 0 : i32
    return %c0_i32, %c0_i32_0 : i32, i32
  }
  func.func @transform_8(%arg0: i32) -> (i32, i32) {
    %c0_i32 = arith.constant 0 : i32
    %c0_i32_0 = arith.constant 0 : i32
    %c0_i32_1 = arith.constant 0 : i32
    return %c0_i32, %c0_i32_0 : i32, i32
  }
  func.func @transform_9(%arg0: i32) -> (i32, i32) {
    %c0_i32 = arith.constant 0 : i32
    %c0_i32_0 = arith.constant 0 : i32
    %c0_i32_1 = arith.constant 0 : i32
    return %c0_i32, %c0_i32_0 : i32, i32
  }
  func.func @transform_10(%arg0: i32) -> (i32, i32) {
    %c0_i32 = arith.constant 0 : i32
    %c0_i32_0 = arith.constant 0 : i32
    return %arg0, %c0_i32 : i32, i32
  }
  func.func @transform_11(%arg0: i32) -> (i32, i32) {
    %c0_i32 = arith.constant 0 : i32
    %c0_i32_0 = arith.constant 0 : i32
    return %arg0, %c0_i32 : i32, i32
  }
}

</mosaic_0001>

<bundles_post_ra>
// kernel: rnd_forward.4
= control target key start
LH: loop header
LB: loop body
LE: loop exit
PB: predicated region body
PF: predicated region fallthrough
CT: control target
= control target key end

     0   :  { %v1406_v0 = vmov 0.0   ;;  %vm1407_vm0 = vmmov 0   ;;  %s1723_s1 = inlined_call_operand.vmem [shape: bf16[128,128], index: 1, kind: input, shape index: {}]   ;;  %s1724_s0 = inlined_call_operand.vmem [shape: bf16[400,128], index: 0, kind: input, shape index: {}]   ;;  %s1725_s2 = inlined_call_operand.vmem [shape: f32[1,128], index: 2, kind: input, shape index: {}]   ;;  %s1726_s3 = inlined_call_operand.vmem [shape: bf16[400,128], index: 3, kind: output, shape index: {}]  }
   0x1   :  { %1239 = vmatprep.subr.bf16.mxu0 %v1406_v0  ;;  %v1373_v1 = vld [vmem:[%s1723_s1 + $0x38] sm:$0xff]   ;;  %1355 = vmatprep.subr.bf16.mxu1 %v1406_v0  ;;  %v1374_v2 = vld [vmem:[%s1723_s1 + $0x30] sm:$0xff]   ;;  %v1375_v3 = vld [vmem:[%s1723_s1 + $0x28] sm:$0xff]  }
   0x2   :  { %1255 = vmatprep.mubr.msk.bf16.mxu0 %vm1407_vm0, %v1406_v0  ;;  %1307 = vmatprep.mubr.msk.bf16.mxu1 %vm1407_vm0, %v1406_v0  ;;  %v1376_v4 = vld [vmem:[%s1723_s1 + $0x20] sm:$0xff]   ;;  %v1377_v5 = vld [vmem:[%s1723_s1 + $0x18] sm:$0xff]   ;;  %v1378_v6 = vld [vmem:[%s1723_s1 + $0x10] sm:$0xff]  }
   0x3   :  { %1240 = vmatpush3.bf16.msra.mxu0 %v1373_v1  ;;  %1363 = vmatpush3.bf16.msra.mxu1 %v1373_v1  ;;  %v1379_v7 = vld [vmem:[%s1723_s1 + $0x8] sm:$0xff]   ;;  %v1380_v8 = vld [vmem:[%s1723_s1] sm:$0xff]   ;;  %v1384_v12 = vld [vmem:[%s1724_s0 + $0x70] sm:$0xff]  }
   0x4   :  { %1241 = vmatprep.subr.bf16.mxu0 %v1406_v0  ;;  %1356 = vmatprep.subr.bf16.mxu1 %v1406_v0  ;;  %v1381_v9 = vld [vmem:[%s1724_s0] sm:$0xff]   ;;  %v1382_v10 = vld [vmem:[%s1724_s0 + $0x68] sm:$0xff]   ;;  %v1385_v13 = vld [vmem:[%s1724_s0 + $0x10] sm:$0xff]  }
   0x5   :  { %v1383_v11 = vld [vmem:[%s1724_s0 + $0x8] sm:$0xff]   ;;  %v1386_v14 = vld [vmem:[%s1724_s0 + $0x78] sm:$0xff]   ;;  %v1388_v16 = vld [vmem:[%s1724_s0 + $0x80] sm:$0xff]  }
   0x6   :  { %v1387_v15 = vld [vmem:[%s1724_s0 + $0x18] sm:$0xff]   ;;  %v1389_v17 = vld [vmem:[%s1724_s0 + $0x20] sm:$0xff]   ;;  %v1390_v18 = vld [vmem:[%s1724_s0 + $0x88] sm:$0xff]  }
   0x7   :  { %1242 = vmatpush3.bf16.msra.mxu0 %v1374_v2  ;;  %1364 = vmatpush3.bf16.msra.mxu1 %v1374_v2  ;;  %v1391_v19 = vld [vmem:[%s1724_s0 + $0x28] sm:$0xff]   ;;  %v1392_v20 = vld [vmem:[%s1724_s0 + $0x90] sm:$0xff]   ;;  %v1394_v22 = vld [vmem:[%s1724_s0 + $0x98] sm:$0xff]  }
   0x8   :  { %1243 = vmatprep.subr.bf16.mxu0 %v1406_v0  ;;  %1357 = vmatprep.subr.bf16.mxu1 %v1406_v0  ;;  %v1393_v21 = vld [vmem:[%s1724_s0 + $0x30] sm:$0xff]   ;;  %v1395_v23 = vld [vmem:[%s1724_s0 + $0x38] sm:$0xff]   ;;  %v1396_v24 = vld [vmem:[%s1724_s0 + $0xa0] sm:$0xff]  }
   0x9   :  { %v1397_v25 = vld [vmem:[%s1724_s0 + $0x40] sm:$0xff]   ;;  %v1398_v26 = vld [vmem:[%s1724_s0 + $0xa8] sm:$0xff]   ;;  %v1400_v28 = vld [vmem:[%s1724_s0 + $0xb0] sm:$0xff]  }
   0xa   :  { %v1399_v27 = vld [vmem:[%s1724_s0 + $0x48] sm:$0xff]   ;;  %v1401_v29 = vld [vmem:[%s1724_s0 + $0x50] sm:$0xff]   ;;  %v1402_v30 = vld [vmem:[%s1724_s0 + $0xb8] sm:$0xff]  }
   0xb   :  { %1244 = vmatpush3.bf16.msra.mxu0 %v1375_v3  ;;  %1365 = vmatpush3.bf16.msra.mxu1 %v1375_v3  ;;  %v1403_v31 = vld [vmem:[%s1724_s0 + $0x58] sm:$0xff]   ;;  %v1404_v32 = vld [vmem:[%s1724_s0 + $0xc0] sm:$0xff]  }
   0xc   :  { %1245 = vmatprep.subr.bf16.mxu0 %v1406_v0  ;;  %1358 = vmatprep.subr.bf16.mxu1 %v1406_v0  ;;  %v1405_v33 = vld [vmem:[%s1724_s0 + $0x60] sm:$0xff]  }
   0xd   :  { %v1596_v34 = vld [vmem:[%s1725_s2] ss:$0 sm:$0xff] }
   0xf   :  { %1246 = vmatpush3.bf16.msra.mxu0 %v1376_v4  ;;  %1366 = vmatpush3.bf16.msra.mxu1 %v1376_v4 }
  0x10   :  { %1247 = vmatprep.subr.bf16.mxu0 %v1406_v0  ;;  %1359 = vmatprep.subr.bf16.mxu1 %v1406_v0 }
  0x13   :  { %1248 = vmatpush3.bf16.msra.mxu0 %v1377_v5  ;;  %1367 = vmatpush3.bf16.msra.mxu1 %v1377_v5 }
  0x14   :  { %1249 = vmatprep.subr.bf16.mxu0 %v1406_v0  ;;  %1360 = vmatprep.subr.bf16.mxu1 %v1406_v0 }
  0x17   :  { %1250 = vmatpush3.bf16.msra.mxu0 %v1378_v6  ;;  %1368 = vmatpush3.bf16.msra.mxu1 %v1378_v6 }
  0x18   :  { %1251 = vmatprep.subr.bf16.mxu0 %v1406_v0  ;;  %1361 = vmatprep.subr.bf16.mxu1 %v1406_v0 }
  0x1b   :  { %1252 = vmatpush3.bf16.msra.mxu0 %v1379_v7  ;;  %1369 = vmatpush3.bf16.msra.mxu1 %v1379_v7 }
  0x1c   :  { %1253 = vmatprep.subr.bf16.mxu0 %v1406_v0  ;;  %1362 = vmatprep.subr.bf16.mxu1 %v1406_v0 }
  0x1f   :  { %1254 = vmatpush3.bf16.msra.mxu0 %v1380_v8  ;;  %1370 = vmatpush3.bf16.msra.mxu1 %v1380_v8 }
  0x22   :  { %1256 = vmatmul.mubr.bf16.vlgmr.msra.gmra.mxu0 %v1381_v9  ;;  %1308 = vmatmul.mubr.bf16.vlgmr.msra.gmra.mxu1 %v1382_v10 }
  0x23   :  { %1259 = vmatprep.mubr.msk.bf16.mxu0 %vm1407_vm0, %v1406_v0  ;;  %1311 = vmatprep.mubr.msk.bf16.mxu1 %vm1407_vm0, %v1406_v0 }
  0x2a   :  { %1260 = vmatmul.mubr.bf16.gmra.mxu0 %v1383_v11  ;;  %1312 = vmatmul.mubr.bf16.gmra.mxu1 %v1384_v12 }
  0x2b   :  { %1263 = vmatprep.mubr.msk.bf16.mxu0 %vm1407_vm0, %v1406_v0  ;;  %1315 = vmatprep.mubr.msk.bf16.mxu1 %vm1407_vm0, %v1406_v0 }
  0x32   :  { %1264 = vmatmul.mubr.bf16.gmra.mxu0 %v1385_v13  ;;  %1316 = vmatmul.mubr.bf16.gmra.mxu1 %v1386_v14 }
  0x33   :  { %1267 = vmatprep.mubr.msk.bf16.mxu0 %vm1407_vm0, %v1406_v0  ;;  %1319 = vmatprep.mubr.msk.bf16.mxu1 %vm1407_vm0, %v1406_v0 }
  0x3a   :  { %1268 = vmatmul.mubr.bf16.gmra.mxu0 %v1387_v15  ;;  %1320 = vmatmul.mubr.bf16.gmra.mxu1 %v1388_v16 }
  0x3b   :  { %1271 = vmatprep.mubr.msk.bf16.mxu0 %vm1407_vm0, %v1406_v0  ;;  %1323 = vmatprep.mubr.msk.bf16.mxu1 %vm1407_vm0, %v1406_v0 }
  0x42   :  { %1272 = vmatmul.mubr.bf16.gmra.mxu0 %v1389_v17  ;;  %1324 = vmatmul.mubr.bf16.gmra.mxu1 %v1390_v18 }
  0x43   :  { %1275 = vmatprep.mubr.msk.bf16.mxu0 %vm1407_vm0, %v1406_v0  ;;  %1327 = vmatprep.mubr.msk.bf16.mxu1 %vm1407_vm0, %v1406_v0 }
  0x4a   :  { %1276 = vmatmul.mubr.bf16.gmra.mxu0 %v1391_v19  ;;  %1328 = vmatmul.mubr.bf16.gmra.mxu1 %v1392_v20 }
  0x4b   :  { %1279 = vmatprep.mubr.msk.bf16.mxu0 %vm1407_vm0, %v1406_v0  ;;  %1331 = vmatprep.mubr.msk.bf16.mxu1 %vm1407_vm0, %v1406_v0 }
  0x52   :  { %1280 = vmatmul.mubr.bf16.gmra.mxu0 %v1393_v21  ;;  %1332 = vmatmul.mubr.bf16.gmra.mxu1 %v1394_v22 }
  0x53   :  { %1283 = vmatprep.mubr.msk.bf16.mxu0 %vm1407_vm0, %v1406_v0  ;;  %1335 = vmatprep.mubr.msk.bf16.mxu1 %vm1407_vm0, %v1406_v0 }
  0x5a   :  { %1284 = vmatmul.mubr.bf16.gmra.mxu0 %v1395_v23  ;;  %1336 = vmatmul.mubr.bf16.gmra.mxu1 %v1396_v24 }
  0x5b   :  { %1287 = vmatprep.mubr.msk.bf16.mxu0 %vm1407_vm0, %v1406_v0  ;;  %1339 = vmatprep.mubr.msk.bf16.mxu1 %vm1407_vm0, %v1406_v0 }
  0x62   :  { %1288 = vmatmul.mubr.bf16.gmra.mxu0 %v1397_v25  ;;  %1340 = vmatmul.mubr.bf16.gmra.mxu1 %v1398_v26 }
  0x63   :  { %1291 = vmatprep.mubr.msk.bf16.mxu0 %vm1407_vm0, %v1406_v0  ;;  %1343 = vmatprep.mubr.msk.bf16.mxu1 %vm1407_vm0, %v1406_v0 }
  0x6a   :  { %1292 = vmatmul.mubr.bf16.gmra.mxu0 %v1399_v27  ;;  %1344 = vmatmul.mubr.bf16.gmra.mxu1 %v1400_v28 }
  0x6b   :  { %1295 = vmatprep.mubr.msk.bf16.mxu0 %vm1407_vm0, %v1406_v0  ;;  %1347 = vmatprep.mubr.msk.bf16.mxu1 %vm1407_vm0, %v1406_v0 }
  0x72   :  { %1296 = vmatmul.mubr.bf16.gmra.mxu0 %v1401_v29  ;;  %1348 = vmatmul.mubr.bf16.gmra.mxu1 %v1402_v30 }
  0x73   :  { %1299 = vmatprep.mubr.msk.bf16.mxu0 %vm1407_vm0, %v1406_v0  ;;  %1351 = vmatprep.mubr.msk.bf16.mxu1 %vm1407_vm0, %v1406_v0 }
  0x7a   :  { %1300 = vmatmul.mubr.bf16.gmra.mxu0 %v1403_v31  ;;  %1352 = vmatmul.mubr.bf16.gmra.mxu1 %v1404_v32 }
  0x7b   :  { %1303 = vmatprep.mubr.msk.bf16.mxu0 %vm1407_vm0, %v1406_v0 }
  0x82   :  { %1304 = vmatmul.mubr.bf16.gmra.mxu0 %v1405_v33 }
  0xe2   :  { %v320_v35 = vpop.f32.mrf.mxu0  ;;  %v424_v36 = vpop.f32.mrf.mxu1 }
  0xe3   :  { %v321_v37 = vadd.f32 %v1596_v34, %v320_v35  ;;  %v425_v38 = vadd.f32 %v1596_v34, %v424_v36 }
  0xe4   :  { %v1257_v39 = vpop.f32.mrf.mxu0  ;;  %v1309_v40 = vpop.f32.mrf.mxu1 }
  0xe5   :  { %vm545_vm1 = vcmp.gt.f32.partialorder %v425_v38, 0.0  ;;  %v595_v41 = vmul.f32 0.01, %v425_v38  ;;  %v569_v42 = vmul.f32 0.01, %v321_v37  ;;  %vm519_vm2 = vcmp.gt.f32.partialorder %v321_v37, 0.0 }
  0xe6   :  { %v323_v43 = vpop.f32.mrf.mxu0  ;;  %v427_v44 = vpop.f32.mrf.mxu1 }
  0xe7   :  { %v324_v45 = vadd.f32 %v1596_v34, %v323_v43  ;;  %v428_v46 = vadd.f32 %v1596_v34, %v427_v44  ;;  %v645_v47 = vsel %vm545_vm1, %v425_v38, %v595_v41  ;;  %v619_v52 = vsel %vm519_vm2, %v321_v37, %v569_v42 }
  0xe8   :  { %v1258_v48 = vpop.f32.mrf.mxu0  ;;  %v1310_v49 = vpop.f32.mrf.mxu1 }
  0xe9   :  { %vm520_vm3 = vcmp.gt.f32.partialorder %v324_v45, 0.0  ;;  %v570_v50 = vmul.f32 0.01, %v324_v45  ;;  %vm546_vm4 = vcmp.gt.f32.partialorder %v428_v46, 0.0  ;;  %v596_v51 = vmul.f32 0.01, %v428_v46 }
  0xea   :  { %v328_v53 = vpop.f32.mrf.mxu0  ;;  %v432_v54 = vpop.f32.mrf.mxu1 }
  0xeb   :  { %v620_v55 = vsel %vm520_vm3, %v324_v45, %v570_v50  ;;  %v646_v56 = vsel %vm546_vm4, %v428_v46, %v596_v51  ;;  %v329_v57 = vadd.f32 %v1596_v34, %v328_v53  ;;  %v433_v58 = vadd.f32 %v1596_v34, %v432_v54 }
  0xec   :  { %v1060_v59 = vpack.c.bf16 %v620_v55, %v619_v52  ;;  %v1125_v60 = vpack.c.bf16 %v646_v56, %v645_v47  ;;  %v1261_v61 = vpop.f32.mrf.mxu0  ;;  %v1313_v62 = vpop.f32.mrf.mxu1 }
  0xed   :  { %vm547_vm5 = vcmp.gt.f32.partialorder %v433_v58, 0.0  ;;  %v597_v63 = vmul.f32 0.01, %v433_v58  ;;  %v571_v0 = vmul.f32 0.01, %v329_v57  ;;  %vm521_vm6 = vcmp.gt.f32.partialorder %v329_v57, 0.0 }
  0xee   :  { %1061 = vst [vmem:[%s1726_s3] sm:$0xff] %v1060_v59   ;;  %1194 = vst [vmem:[%s1726_s3 + $0x68] sm:$0xff] %v1125_v60   ;;  %v331_v1 = vpop.f32.mrf.mxu0  ;;  %v435_v2 = vpop.f32.mrf.mxu1 }
  0xef   :  { %v332_v3 = vadd.f32 %v1596_v34, %v331_v1  ;;  %v436_v4 = vadd.f32 %v1596_v34, %v435_v2  ;;  %v647_v5 = vsel %vm547_vm5, %v433_v58, %v597_v63  ;;  %v621_v10 = vsel %vm521_vm6, %v329_v57, %v571_v0 }
  0xf0   :  { %v1262_v6 = vpop.f32.mrf.mxu0  ;;  %v1314_v7 = vpop.f32.mrf.mxu1 }
  0xf1   :  { %vm522_vm7 = vcmp.gt.f32.partialorder %v332_v3, 0.0  ;;  %v572_v8 = vmul.f32 0.01, %v332_v3  ;;  %vm548_vm8 = vcmp.gt.f32.partialorder %v436_v4, 0.0  ;;  %v598_v9 = vmul.f32 0.01, %v436_v4 }
  0xf2   :  { %v336_v11 = vpop.f32.mrf.mxu0  ;;  %v440_v12 = vpop.f32.mrf.mxu1 }
  0xf3   :  { %v622_v13 = vsel %vm522_vm7, %v332_v3, %v572_v8  ;;  %v648_v14 = vsel %vm548_vm8, %v436_v4, %v598_v9  ;;  %v337_v15 = vadd.f32 %v1596_v34, %v336_v11  ;;  %v441_v16 = vadd.f32 %v1596_v34, %v440_v12 }
  0xf4   :  { %v1065_v17 = vpack.c.bf16 %v622_v13, %v621_v10  ;;  %v1130_v18 = vpack.c.bf16 %v648_v14, %v647_v5  ;;  %v1265_v19 = vpop.f32.mrf.mxu0  ;;  %v1317_v20 = vpop.f32.mrf.mxu1 }
  0xf5   :  { %vm549_vm9 = vcmp.gt.f32.partialorder %v441_v16, 0.0  ;;  %v599_v21 = vmul.f32 0.01, %v441_v16  ;;  %v573_v22 = vmul.f32 0.01, %v337_v15  ;;  %vm523_vm10 = vcmp.gt.f32.partialorder %v337_v15, 0.0 }
  0xf6   :  { %1182 = vst [vmem:[%s1726_s3 + $0x8] sm:$0xff] %v1065_v17   ;;  %1195 = vst [vmem:[%s1726_s3 + $0x70] sm:$0xff] %v1130_v18   ;;  %v339_v23 = vpop.f32.mrf.mxu0  ;;  %v443_v24 = vpop.f32.mrf.mxu1 }
  0xf7   :  { %v340_v25 = vadd.f32 %v1596_v34, %v339_v23  ;;  %v444_v26 = vadd.f32 %v1596_v34, %v443_v24  ;;  %v649_v27 = vsel %vm549_vm9, %v441_v16, %v599_v21  ;;  %v623_v32 = vsel %vm523_vm10, %v337_v15, %v573_v22 }
  0xf8   :  { %v1266_v28 = vpop.f32.mrf.mxu0  ;;  %v1318_v29 = vpop.f32.mrf.mxu1 }
  0xf9   :  { %vm524_vm11 = vcmp.gt.f32.partialorder %v340_v25, 0.0  ;;  %v574_v30 = vmul.f32 0.01, %v340_v25  ;;  %vm550_vm12 = vcmp.gt.f32.partialorder %v444_v26, 0.0  ;;  %v600_v31 = vmul.f32 0.01, %v444_v26 }
  0xfa   :  { %v344_v33 = vpop.f32.mrf.mxu0  ;;  %v448_v35 = vpop.f32.mrf.mxu1 }
  0xfb   :  { %v624_v36 = vsel %vm524_vm11, %v340_v25, %v574_v30  ;;  %v650_v37 = vsel %vm550_vm12, %v444_v26, %v600_v31  ;;  %v345_v38 = vadd.f32 %v1596_v34, %v344_v33  ;;  %v449_v39 = vadd.f32 %v1596_v34, %v448_v35 }
  0xfc   :  { %v1070_v40 = vpack.c.bf16 %v624_v36, %v623_v32  ;;  %v1135_v41 = vpack.c.bf16 %v650_v37, %v649_v27  ;;  %v1269_v42 = vpop.f32.mrf.mxu0  ;;  %v1321_v43 = vpop.f32.mrf.mxu1 }
  0xfd   :  { %vm551_vm13 = vcmp.gt.f32.partialorder %v449_v39, 0.0  ;;  %v601_v44 = vmul.f32 0.01, %v449_v39  ;;  %v575_v45 = vmul.f32 0.01, %v345_v38  ;;  %vm525_vm14 = vcmp.gt.f32.partialorder %v345_v38, 0.0 }
  0xfe   :  { %1183 = vst [vmem:[%s1726_s3 + $0x10] sm:$0xff] %v1070_v40   ;;  %1196 = vst [vmem:[%s1726_s3 + $0x78] sm:$0xff] %v1135_v41   ;;  %v347_v46 = vpop.f32.mrf.mxu0  ;;  %v451_v47 = vpop.f32.mrf.mxu1 }
  0xff   :  { %v348_v48 = vadd.f32 %v1596_v34, %v347_v46  ;;  %v452_v49 = vadd.f32 %v1596_v34, %v451_v47  ;;  %v651_v50 = vsel %vm551_vm13, %v449_v39, %v601_v44  ;;  %v625_v55 = vsel %vm525_vm14, %v345_v38, %v575_v45 }
 0x100   :  { %v1270_v51 = vpop.f32.mrf.mxu0  ;;  %v1322_v52 = vpop.f32.mrf.mxu1 }
 0x101   :  { %vm526_vm15 = vcmp.gt.f32.partialorder %v348_v48, 0.0  ;;  %v576_v53 = vmul.f32 0.01, %v348_v48  ;;  %vm552_vm0 = vcmp.gt.f32.partialorder %v452_v49, 0.0  ;;  %v602_v54 = vmul.f32 0.01, %v452_v49 }
 0x102   :  { %v352_v56 = vpop.f32.mrf.mxu0  ;;  %v456_v57 = vpop.f32.mrf.mxu1 }
 0x103   :  { %v626_v58 = vsel %vm526_vm15, %v348_v48, %v576_v53  ;;  %v652_v59 = vsel %vm552_vm0, %v452_v49, %v602_v54  ;;  %v353_v60 = vadd.f32 %v1596_v34, %v352_v56  ;;  %v457_v61 = vadd.f32 %v1596_v34, %v456_v57 }
 0x104   :  { %v1075_v62 = vpack.c.bf16 %v626_v58, %v625_v55  ;;  %v1140_v63 = vpack.c.bf16 %v652_v59, %v651_v50  ;;  %v1273_v0 = vpop.f32.mrf.mxu0  ;;  %v1325_v1 = vpop.f32.mrf.mxu1 }
 0x105   :  { %vm553_vm1 = vcmp.gt.f32.partialorder %v457_v61, 0.0  ;;  %v603_v2 = vmul.f32 0.01, %v457_v61  ;;  %v577_v3 = vmul.f32 0.01, %v353_v60  ;;  %vm527_vm2 = vcmp.gt.f32.partialorder %v353_v60, 0.0 }
 0x106   :  { %1184 = vst [vmem:[%s1726_s3 + $0x18] sm:$0xff] %v1075_v62   ;;  %1197 = vst [vmem:[%s1726_s3 + $0x80] sm:$0xff] %v1140_v63   ;;  %v355_v4 = vpop.f32.mrf.mxu0  ;;  %v459_v5 = vpop.f32.mrf.mxu1 }
 0x107   :  { %v356_v6 = vadd.f32 %v1596_v34, %v355_v4  ;;  %v460_v7 = vadd.f32 %v1596_v34, %v459_v5  ;;  %v653_v8 = vsel %vm553_vm1, %v457_v61, %v603_v2  ;;  %v627_v13 = vsel %vm527_vm2, %v353_v60, %v577_v3 }
 0x108   :  { %v1274_v9 = vpop.f32.mrf.mxu0  ;;  %v1326_v10 = vpop.f32.mrf.mxu1 }
 0x109   :  { %vm528_vm3 = vcmp.gt.f32.partialorder %v356_v6, 0.0  ;;  %v578_v11 = vmul.f32 0.01, %v356_v6  ;;  %vm554_vm4 = vcmp.gt.f32.partialorder %v460_v7, 0.0  ;;  %v604_v12 = vmul.f32 0.01, %v460_v7 }
 0x10a   :  { %v360_v14 = vpop.f32.mrf.mxu0  ;;  %v464_v15 = vpop.f32.mrf.mxu1 }
 0x10b   :  { %v628_v16 = vsel %vm528_vm3, %v356_v6, %v578_v11  ;;  %v654_v17 = vsel %vm554_vm4, %v460_v7, %v604_v12  ;;  %v361_v18 = vadd.f32 %v1596_v34, %v360_v14  ;;  %v465_v19 = vadd.f32 %v1596_v34, %v464_v15 }
 0x10c   :  { %v1080_v20 = vpack.c.bf16 %v628_v16, %v627_v13  ;;  %v1145_v21 = vpack.c.bf16 %v654_v17, %v653_v8  ;;  %v1277_v22 = vpop.f32.mrf.mxu0  ;;  %v1329_v23 = vpop.f32.mrf.mxu1 }
 0x10d   :  { %vm555_vm5 = vcmp.gt.f32.partialorder %v465_v19, 0.0  ;;  %v605_v24 = vmul.f32 0.01, %v465_v19  ;;  %v579_v25 = vmul.f32 0.01, %v361_v18  ;;  %vm529_vm6 = vcmp.gt.f32.partialorder %v361_v18, 0.0 }
 0x10e   :  { %1185 = vst [vmem:[%s1726_s3 + $0x20] sm:$0xff] %v1080_v20   ;;  %1198 = vst [vmem:[%s1726_s3 + $0x88] sm:$0xff] %v1145_v21   ;;  %v363_v26 = vpop.f32.mrf.mxu0  ;;  %v467_v27 = vpop.f32.mrf.mxu1 }
 0x10f   :  { %v364_v28 = vadd.f32 %v1596_v34, %v363_v26  ;;  %v468_v29 = vadd.f32 %v1596_v34, %v467_v27  ;;  %v655_v30 = vsel %vm555_vm5, %v465_v19, %v605_v24  ;;  %v629_v36 = vsel %vm529_vm6, %v361_v18, %v579_v25 }
 0x110   :  { %v1278_v31 = vpop.f32.mrf.mxu0  ;;  %v1330_v32 = vpop.f32.mrf.mxu1 }
 0x111   :  { %vm530_vm7 = vcmp.gt.f32.partialorder %v364_v28, 0.0  ;;  %v580_v33 = vmul.f32 0.01, %v364_v28  ;;  %vm556_vm8 = vcmp.gt.f32.partialorder %v468_v29, 0.0  ;;  %v606_v35 = vmul.f32 0.01, %v468_v29 }
 0x112   :  { %v368_v37 = vpop.f32.mrf.mxu0  ;;  %v472_v38 = vpop.f32.mrf.mxu1 }
 0x113   :  { %v630_v39 = vsel %vm530_vm7, %v364_v28, %v580_v33  ;;  %v656_v40 = vsel %vm556_vm8, %v468_v29, %v606_v35  ;;  %v369_v41 = vadd.f32 %v1596_v34, %v368_v37  ;;  %v473_v42 = vadd.f32 %v1596_v34, %v472_v38 }
 0x114   :  { %v1085_v43 = vpack.c.bf16 %v630_v39, %v629_v36  ;;  %v1150_v44 = vpack.c.bf16 %v656_v40, %v655_v30  ;;  %v1281_v45 = vpop.f32.mrf.mxu0  ;;  %v1333_v46 = vpop.f32.mrf.mxu1 }
 0x115   :  { %vm557_vm9 = vcmp.gt.f32.partialorder %v473_v42, 0.0  ;;  %v607_v47 = vmul.f32 0.01, %v473_v42  ;;  %v581_v48 = vmul.f32 0.01, %v369_v41  ;;  %vm531_vm10 = vcmp.gt.f32.partialorder %v369_v41, 0.0 }
 0x116   :  { %1186 = vst [vmem:[%s1726_s3 + $0x28] sm:$0xff] %v1085_v43   ;;  %1199 = vst [vmem:[%s1726_s3 + $0x90] sm:$0xff] %v1150_v44   ;;  %v371_v49 = vpop.f32.mrf.mxu0  ;;  %v475_v50 = vpop.f32.mrf.mxu1 }
 0x117   :  { %v372_v51 = vadd.f32 %v1596_v34, %v371_v49  ;;  %v476_v52 = vadd.f32 %v1596_v34, %v475_v50  ;;  %v657_v53 = vsel %vm557_vm9, %v473_v42, %v607_v47  ;;  %v631_v58 = vsel %vm531_vm10, %v369_v41, %v581_v48 }
 0x118   :  { %v1282_v54 = vpop.f32.mrf.mxu0  ;;  %v1334_v55 = vpop.f32.mrf.mxu1 }
 0x119   :  { %vm532_vm11 = vcmp.gt.f32.partialorder %v372_v51, 0.0  ;;  %v582_v56 = vmul.f32 0.01, %v372_v51  ;;  %vm558_vm12 = vcmp.gt.f32.partialorder %v476_v52, 0.0  ;;  %v608_v57 = vmul.f32 0.01, %v476_v52 }
 0x11a   :  { %v376_v59 = vpop.f32.mrf.mxu0  ;;  %v480_v60 = vpop.f32.mrf.mxu1 }
 0x11b   :  { %v632_v61 = vsel %vm532_vm11, %v372_v51, %v582_v56  ;;  %v658_v62 = vsel %vm558_vm12, %v476_v52, %v608_v57  ;;  %v377_v63 = vadd.f32 %v1596_v34, %v376_v59  ;;  %v481_v0 = vadd.f32 %v1596_v34, %v480_v60 }
 0x11c   :  { %v1090_v1 = vpack.c.bf16 %v632_v61, %v631_v58  ;;  %v1155_v2 = vpack.c.bf16 %v658_v62, %v657_v53  ;;  %v1285_v3 = vpop.f32.mrf.mxu0  ;;  %v1337_v4 = vpop.f32.mrf.mxu1 }
 0x11d   :  { %vm559_vm13 = vcmp.gt.f32.partialorder %v481_v0, 0.0  ;;  %v609_v5 = vmul.f32 0.01, %v481_v0  ;;  %v583_v6 = vmul.f32 0.01, %v377_v63  ;;  %vm533_vm14 = vcmp.gt.f32.partialorder %v377_v63, 0.0 }
 0x11e   :  { %1187 = vst [vmem:[%s1726_s3 + $0x30] sm:$0xff] %v1090_v1   ;;  %1200 = vst [vmem:[%s1726_s3 + $0x98] sm:$0xff] %v1155_v2   ;;  %v379_v7 = vpop.f32.mrf.mxu0  ;;  %v483_v8 = vpop.f32.mrf.mxu1 }
 0x11f   :  { %v380_v9 = vadd.f32 %v1596_v34, %v379_v7  ;;  %v484_v10 = vadd.f32 %v1596_v34, %v483_v8  ;;  %v659_v11 = vsel %vm559_vm13, %v481_v0, %v609_v5  ;;  %v633_v16 = vsel %vm533_vm14, %v377_v63, %v583_v6 }
 0x120   :  { %v1286_v12 = vpop.f32.mrf.mxu0  ;;  %v1338_v13 = vpop.f32.mrf.mxu1 }
 0x121   :  { %vm534_vm15 = vcmp.gt.f32.partialorder %v380_v9, 0.0  ;;  %v584_v14 = vmul.f32 0.01, %v380_v9  ;;  %vm560_vm0 = vcmp.gt.f32.partialorder %v484_v10, 0.0  ;;  %v610_v15 = vmul.f32 0.01, %v484_v10 }
 0x122   :  { %v384_v17 = vpop.f32.mrf.mxu0  ;;  %v488_v18 = vpop.f32.mrf.mxu1 }
 0x123   :  { %v634_v19 = vsel %vm534_vm15, %v380_v9, %v584_v14  ;;  %v660_v20 = vsel %vm560_vm0, %v484_v10, %v610_v15  ;;  %v385_v21 = vadd.f32 %v1596_v34, %v384_v17  ;;  %v489_v22 = vadd.f32 %v1596_v34, %v488_v18 }
 0x124   :  { %v1095_v23 = vpack.c.bf16 %v634_v19, %v633_v16  ;;  %v1160_v24 = vpack.c.bf16 %v660_v20, %v659_v11  ;;  %v1289_v25 = vpop.f32.mrf.mxu0  ;;  %v1341_v26 = vpop.f32.mrf.mxu1 }
 0x125   :  { %vm561_vm1 = vcmp.gt.f32.partialorder %v489_v22, 0.0  ;;  %v611_v27 = vmul.f32 0.01, %v489_v22  ;;  %v585_v28 = vmul.f32 0.01, %v385_v21  ;;  %vm535_vm2 = vcmp.gt.f32.partialorder %v385_v21, 0.0 }
 0x126   :  { %1188 = vst [vmem:[%s1726_s3 + $0x38] sm:$0xff] %v1095_v23   ;;  %1201 = vst [vmem:[%s1726_s3 + $0xa0] sm:$0xff] %v1160_v24   ;;  %v387_v29 = vpop.f32.mrf.mxu0  ;;  %v491_v30 = vpop.f32.mrf.mxu1 }
 0x127   :  { %v388_v31 = vadd.f32 %v1596_v34, %v387_v29  ;;  %v492_v32 = vadd.f32 %v1596_v34, %v491_v30  ;;  %v661_v33 = vsel %vm561_vm1, %v489_v22, %v611_v27  ;;  %v635_v39 = vsel %vm535_vm2, %v385_v21, %v585_v28 }
 0x128   :  { %v1290_v35 = vpop.f32.mrf.mxu0  ;;  %v1342_v36 = vpop.f32.mrf.mxu1 }
 0x129   :  { %vm536_vm3 = vcmp.gt.f32.partialorder %v388_v31, 0.0  ;;  %v586_v37 = vmul.f32 0.01, %v388_v31  ;;  %vm562_vm4 = vcmp.gt.f32.partialorder %v492_v32, 0.0  ;;  %v612_v38 = vmul.f32 0.01, %v492_v32 }
 0x12a   :  { %v392_v40 = vpop.f32.mrf.mxu0  ;;  %v496_v41 = vpop.f32.mrf.mxu1 }
 0x12b   :  { %v636_v42 = vsel %vm536_vm3, %v388_v31, %v586_v37  ;;  %v662_v43 = vsel %vm562_vm4, %v492_v32, %v612_v38  ;;  %v393_v44 = vadd.f32 %v1596_v34, %v392_v40  ;;  %v497_v45 = vadd.f32 %v1596_v34, %v496_v41 }
 0x12c   :  { %v1100_v46 = vpack.c.bf16 %v636_v42, %v635_v39  ;;  %v1165_v47 = vpack.c.bf16 %v662_v43, %v661_v33  ;;  %v1293_v48 = vpop.f32.mrf.mxu0  ;;  %v1345_v49 = vpop.f32.mrf.mxu1 }
 0x12d   :  { %vm563_vm5 = vcmp.gt.f32.partialorder %v497_v45, 0.0  ;;  %v613_v50 = vmul.f32 0.01, %v497_v45  ;;  %v587_v51 = vmul.f32 0.01, %v393_v44  ;;  %vm537_vm6 = vcmp.gt.f32.partialorder %v393_v44, 0.0 }
 0x12e   :  { %1189 = vst [vmem:[%s1726_s3 + $0x40] sm:$0xff] %v1100_v46   ;;  %1202 = vst [vmem:[%s1726_s3 + $0xa8] sm:$0xff] %v1165_v47   ;;  %v395_v52 = vpop.f32.mrf.mxu0  ;;  %v499_v53 = vpop.f32.mrf.mxu1 }
 0x12f   :  { %v396_v54 = vadd.f32 %v1596_v34, %v395_v52  ;;  %v500_v55 = vadd.f32 %v1596_v34, %v499_v53  ;;  %v663_v56 = vsel %vm563_vm5, %v497_v45, %v613_v50  ;;  %v637_v61 = vsel %vm537_vm6, %v393_v44, %v587_v51 }
 0x130   :  { %v1294_v57 = vpop.f32.mrf.mxu0  ;;  %v1346_v58 = vpop.f32.mrf.mxu1 }
 0x131   :  { %vm538_vm7 = vcmp.gt.f32.partialorder %v396_v54, 0.0  ;;  %v588_v59 = vmul.f32 0.01, %v396_v54  ;;  %vm564_vm8 = vcmp.gt.f32.partialorder %v500_v55, 0.0  ;;  %v614_v60 = vmul.f32 0.01, %v500_v55 }
 0x132   :  { %v400_v62 = vpop.f32.mrf.mxu0  ;;  %v504_v63 = vpop.f32.mrf.mxu1 }
 0x133   :  { %v638_v0 = vsel %vm538_vm7, %v396_v54, %v588_v59  ;;  %v664_v1 = vsel %vm564_vm8, %v500_v55, %v614_v60  ;;  %v401_v2 = vadd.f32 %v1596_v34, %v400_v62  ;;  %v505_v3 = vadd.f32 %v1596_v34, %v504_v63 }
 0x134   :  { %v1105_v4 = vpack.c.bf16 %v638_v0, %v637_v61  ;;  %v1170_v5 = vpack.c.bf16 %v664_v1, %v663_v56  ;;  %v1297_v6 = vpop.f32.mrf.mxu0  ;;  %v1349_v7 = vpop.f32.mrf.mxu1 }
 0x135   :  { %vm565_vm9 = vcmp.gt.f32.partialorder %v505_v3, 0.0  ;;  %v615_v8 = vmul.f32 0.01, %v505_v3  ;;  %v589_v9 = vmul.f32 0.01, %v401_v2  ;;  %vm539_vm10 = vcmp.gt.f32.partialorder %v401_v2, 0.0 }
 0x136   :  { %1190 = vst [vmem:[%s1726_s3 + $0x48] sm:$0xff] %v1105_v4   ;;  %1203 = vst [vmem:[%s1726_s3 + $0xb0] sm:$0xff] %v1170_v5   ;;  %v403_v10 = vpop.f32.mrf.mxu0  ;;  %v507_v11 = vpop.f32.mrf.mxu1 }
 0x137   :  { %v404_v12 = vadd.f32 %v1596_v34, %v403_v10  ;;  %v508_v13 = vadd.f32 %v1596_v34, %v507_v11  ;;  %v665_v14 = vsel %vm565_vm9, %v505_v3, %v615_v8  ;;  %v639_v19 = vsel %vm539_vm10, %v401_v2, %v589_v9 }
 0x138   :  { %v1298_v15 = vpop.f32.mrf.mxu0  ;;  %v1350_v16 = vpop.f32.mrf.mxu1 }
 0x139   :  { %vm540_vm11 = vcmp.gt.f32.partialorder %v404_v12, 0.0  ;;  %v590_v17 = vmul.f32 0.01, %v404_v12  ;;  %vm566_vm12 = vcmp.gt.f32.partialorder %v508_v13, 0.0  ;;  %v616_v18 = vmul.f32 0.01, %v508_v13 }
 0x13a   :  { %v408_v20 = vpop.f32.mrf.mxu0  ;;  %v512_v21 = vpop.f32.mrf.mxu1 }
 0x13b   :  { %v640_v22 = vsel %vm540_vm11, %v404_v12, %v590_v17  ;;  %v666_v23 = vsel %vm566_vm12, %v508_v13, %v616_v18  ;;  %v409_v24 = vadd.f32 %v1596_v34, %v408_v20  ;;  %v513_v25 = vadd.f32 %v1596_v34, %v512_v21 }
 0x13c   :  { %v1110_v26 = vpack.c.bf16 %v640_v22, %v639_v19  ;;  %v1175_v27 = vpack.c.bf16 %v666_v23, %v665_v14  ;;  %v1301_v28 = vpop.f32.mrf.mxu0  ;;  %v1353_v29 = vpop.f32.mrf.mxu1 }
 0x13d   :  { %vm567_vm13 = vcmp.gt.f32.partialorder %v513_v25, 0.0  ;;  %v617_v30 = vmul.f32 0.01, %v513_v25  ;;  %v591_v33 = vmul.f32 0.01, %v409_v24  ;;  %vm541_vm14 = vcmp.gt.f32.partialorder %v409_v24, 0.0 }
 0x13e   :  { %1191 = vst [vmem:[%s1726_s3 + $0x50] sm:$0xff] %v1110_v26   ;;  %1204 = vst [vmem:[%s1726_s3 + $0xb8] sm:$0xff] %v1175_v27   ;;  %v411_v31 = vpop.f32.mrf.mxu0  ;;  %v515_v32 = vpop.f32.mrf.mxu1 }
 0x13f   :  { %v412_v35 = vadd.f32 %v1596_v34, %v411_v31  ;;  %v516_v36 = vadd.f32 %v1596_v34, %v515_v32  ;;  %v667_v37 = vsel %vm567_vm13, %v513_v25, %v617_v30  ;;  %v641_v43 = vsel %vm541_vm14, %v409_v24, %v591_v33 }
 0x140   :  { %v1302_v38 = vpop.f32.mrf.mxu0  ;;  %v1354_v39 = vpop.f32.mrf.mxu1 }
 0x141   :  { %vm542_vm15 = vcmp.gt.f32.partialorder %v412_v35, 0.0  ;;  %v592_v40 = vmul.f32 0.01, %v412_v35  ;;  %vm568_vm0 = vcmp.gt.f32.partialorder %v516_v36, 0.0  ;;  %v618_v41 = vmul.f32 0.01, %v516_v36 }
 0x142   :  { %v416_v42 = vpop.f32.mrf.mxu0 }
 0x143   :  { %v642_v44 = vsel %vm542_vm15, %v412_v35, %v592_v40  ;;  %v668_v45 = vsel %vm568_vm0, %v516_v36, %v618_v41  ;;  %v417_v46 = vadd.f32 %v1596_v34, %v416_v42 }
 0x144   :  { %v1115_v47 = vpack.c.bf16 %v642_v44, %v641_v43  ;;  %v1180_v48 = vpack.c.bf16 %v668_v45, %v667_v37  ;;  %v1305_v49 = vpop.f32.mrf.mxu0 }
 0x145   :  { %v593_v51 = vmul.f32 0.01, %v417_v46  ;;  %vm543_vm1 = vcmp.gt.f32.partialorder %v417_v46, 0.0 }
 0x146   :  { %1192 = vst [vmem:[%s1726_s3 + $0x58] sm:$0xff] %v1115_v47   ;;  %1205 = vst [vmem:[%s1726_s3 + $0xc0] sm:$0xff] %v1180_v48   ;;  %v419_v50 = vpop.f32.mrf.mxu0 }
 0x147   :  { %v420_v52 = vadd.f32 %v1596_v34, %v419_v50  ;;  %v643_v55 = vsel %vm543_vm1, %v417_v46, %v593_v51 }
 0x148   :  { %v1306_v53 = vpop.f32.mrf.mxu0 }
 0x149   :  { %vm544_vm2 = vcmp.gt.f32.partialorder %v420_v52, 0.0  ;;  %v594_v54 = vmul.f32 0.01, %v420_v52 }
 0x14b   :  { %v644_v56 = vsel %vm544_vm2, %v420_v52, %v594_v54 }
 0x14c   :  { %v1120_v57 = vpack.c.bf16 %v644_v56, %v643_v55 }
 0x14e   :  { %1193 = vst [vmem:[%s1726_s3 + $0x60] sm:$0xff] %v1120_v57  }

// kernel: rnd_forward.5
= control target key start
LH: loop header
LB: loop body
LE: loop exit
PB: predicated region body
PF: predicated region fallthrough
CT: control target
= control target key end

     0   :  { %s2939_s1 = inlined_call_operand.vmem [shape: bf16[1024,128], index: 1, kind: input, shape index: {}]   ;;  %s2940_s0 = inlined_call_operand.vmem [shape: bf16[162,1024], index: 0, kind: input, shape index: {}]   ;;  %s2941_s2 = inlined_call_operand.vmem [shape: f32[1,128], index: 2, kind: input, shape index: {}]   ;;  %s2942_s3 = inlined_call_operand.vmem [shape: bf16[162,128], index: 3, kind: output, shape index: {}]  }
   0x1   :  { %v2281_v0 = vld [vmem:[%s2939_s1 + $0x78] sm:$0xff]   ;;  %v2285_v4 = vld [vmem:[%s2939_s1 + $0x70] sm:$0xff]   ;;  %v2289_v8 = vld [vmem:[%s2939_s1 + $0x68] sm:$0xff]  }
   0x2   :  { %v2282_v1 = vld [vmem:[%s2939_s1 + $0xf8] sm:$0xff]   ;;  %1953 = vmatprep.subr.bf16.mxu0 %v2281_v0  ;;  %v2286_v5 = vld [vmem:[%s2939_s1 + $0xf0] sm:$0xff]   ;;  %v2290_v9 = vld [vmem:[%s2939_s1 + $0xe8] sm:$0xff]  }
   0x3   :  { %v2283_v2 = vld [vmem:[%s2939_s1 + $0x38] sm:$0xff]   ;;  %2035 = vmatprep.subr.bf16.mxu1 %v2282_v1  ;;  %v2287_v6 = vld [vmem:[%s2939_s1 + $0x30] sm:$0xff]   ;;  %v2291_v10 = vld [vmem:[%s2939_s1 + $0x28] sm:$0xff]  }
   0x4   :  { %v2284_v3 = vld [vmem:[%s2939_s1 + $0xb8] sm:$0xff]   ;;  %1954 = vmatpush3.bf16.msra.mxu0 %v2283_v2  ;;  %v2288_v7 = vld [vmem:[%s2939_s1 + $0xb0] sm:$0xff]   ;;  %v2292_v11 = vld [vmem:[%s2939_s1 + $0xa8] sm:$0xff]  }
   0x5   :  { %2036 = vmatpush3.bf16.msra.mxu1 %v2284_v3  ;;  %1955 = vmatprep.subr.bf16.mxu0 %v2285_v4  ;;  %v2293_v12 = vld [vmem:[%s2939_s1 + $0x60] sm:$0xff]   ;;  %v2297_v16 = vld [vmem:[%s2939_s1 + $0x58] sm:$0xff]   ;;  %v2301_v20 = vld [vmem:[%s2939_s1 + $0x50] sm:$0xff]  }
   0x6   :  { %2037 = vmatprep.subr.bf16.mxu1 %v2286_v5  ;;  %v2294_v13 = vld [vmem:[%s2939_s1 + $0xe0] sm:$0xff]   ;;  %v2298_v17 = vld [vmem:[%s2939_s1 + $0xd8] sm:$0xff]   ;;  %v2302_v21 = vld [vmem:[%s2939_s1 + $0xd0] sm:$0xff]  }
   0x7   :  { %v2295_v14 = vld [vmem:[%s2939_s1 + $0x20] sm:$0xff]   ;;  %v2299_v18 = vld [vmem:[%s2939_s1 + $0x18] sm:$0xff]   ;;  %v2303_v22 = vld [vmem:[%s2939_s1 + $0x10] sm:$0xff]  }
   0x8   :  { %1956 = vmatpush3.bf16.msra.mxu0 %v2287_v6  ;;  %v2296_v15 = vld [vmem:[%s2939_s1 + $0xa0] sm:$0xff]   ;;  %v2300_v19 = vld [vmem:[%s2939_s1 + $0x98] sm:$0xff]   ;;  %v2304_v23 = vld [vmem:[%s2939_s1 + $0x90] sm:$0xff]  }
   0x9   :  { %2038 = vmatpush3.bf16.msra.mxu1 %v2288_v7  ;;  %1957 = vmatprep.subr.bf16.mxu0 %v2289_v8  ;;  %v2305_v24 = vld [vmem:[%s2939_s1 + $0x48] sm:$0xff]   ;;  %v2309_v28 = vld [vmem:[%s2939_s1 + $0x40] sm:$0xff]   ;;  %v2313_v40 = vld [vmem:[%s2939_s1 + $0x178] sm:$0xff]  }
   0xa   :  { %2039 = vmatprep.subr.bf16.mxu1 %v2290_v9  ;;  %v2306_v25 = vld [vmem:[%s2939_s1 + $0xc8] sm:$0xff]   ;;  %v2310_v29 = vld [vmem:[%s2939_s1 + $0xc0] sm:$0xff]   ;;  %v2314_v41 = vld [vmem:[%s2939_s1 + $0x138] sm:$0xff]  }
   0xb   :  { %v2307_v26 = vld [vmem:[%s2939_s1 + $0x8] sm:$0xff]   ;;  %v2311_v30 = vld [vmem:[%s2939_s1] sm:$0xff]   ;;  %v2315_v42 = vld [vmem:[%s2939_s1 + $0x1f8] sm:$0xff]  }
   0xc   :  { %1958 = vmatpush3.bf16.msra.mxu0 %v2291_v10  ;;  %v2308_v27 = vld [vmem:[%s2939_s1 + $0x88] sm:$0xff]   ;;  %v2312_v31 = vld [vmem:[%s2939_s1 + $0x80] sm:$0xff]   ;;  %v2316_v43 = vld [vmem:[%s2939_s1 + $0x1b8] sm:$0xff]  }
   0xd   :  { %2040 = vmatpush3.bf16.msra.mxu1 %v2292_v11  ;;  %1959 = vmatprep.subr.bf16.mxu0 %v2293_v12  ;;  %v15_v32 = vld [vmem:[%s2940_s0] sm:$0xff]  ;;  %v16_v34 = vld [vmem:[%s2940_s0 + $0x8] sm:$0xff]  ;;  %v2317_v50 = vld [vmem:[%s2939_s1 + $0x170] sm:$0xff]  }
   0xe   :  { %2041 = vmatprep.subr.bf16.mxu1 %v2294_v13  ;;  %v19_v33 = vld [vmem:[%s2940_s0 + $0x20] sm:$0xff]  ;;  %v20_v37 = vld [vmem:[%s2940_s0 + $0x28] sm:$0xff]  ;;  %v2318_v52 = vld [vmem:[%s2939_s1 + $0x130] sm:$0xff]  }
   0xf   :  { %v1700_v35 = vcombine.low %v15_v32, %v19_v33  ;;  %v1701_v36 = vcombine.high %v15_v32, %v19_v33  ;;  %v1702_v38 = vcombine.low %v16_v34, %v20_v37  ;;  %v1703_v39 = vcombine.high %v16_v34, %v20_v37  ;;  %v23_v44 = vld [vmem:[%s2940_s0 + $0x40] sm:$0xff]  ;;  %v24_v47 = vld [vmem:[%s2940_s0 + $0x48] sm:$0xff]  ;;  %v2319_v54 = vld [vmem:[%s2939_s1 + $0x1f0] sm:$0xff]  }
  0x10   :  { %1960 = vmatpush3.bf16.msra.mxu0 %v2295_v14  ;;  %v27_v45 = vld [vmem:[%s2940_s0 + $0x60] sm:$0xff]  ;;  %v28_v48 = vld [vmem:[%s2940_s0 + $0x68] sm:$0xff]  ;;  %v2320_v55 = vld [vmem:[%s2939_s1 + $0x1b0] sm:$0xff]  }
  0x11   :  { %2042 = vmatpush3.bf16.msra.mxu1 %v2296_v15  ;;  %1961 = vmatprep.subr.bf16.mxu0 %v2297_v16  ;;  %v1709_v46 = vcombine.high %v23_v44, %v27_v45  ;;  %v1711_v49 = vcombine.high %v24_v47, %v28_v48  ;;  %v1708_v51 = vcombine.low %v23_v44, %v27_v45  ;;  %v31_v56 = vld [vmem:[%s2940_s0 + $0x80] sm:$0xff]  ;;  %v32_v58 = vld [vmem:[%s2940_s0 + $0x88] sm:$0xff]  ;;  %v2334_v32 = vld [vmem:[%s2939_s1 + $0x110] sm:$0xff]  }
  0x12   :  { %2043 = vmatprep.subr.bf16.mxu1 %v2298_v17  ;;  %1078 = vmatprep.mubr.bf16.mxu0 %v1701_v36  ;;  %v1710_v53 = vcombine.low %v24_v47, %v28_v48  ;;  %v35_v57 = vld [vmem:[%s2940_s0 + $0xa0] sm:$0xff]  ;;  %v36_v59 = vld [vmem:[%s2940_s0 + $0xa8] sm:$0xff]  ;;  %v2336_v37 = vld [vmem:[%s2939_s1 + $0x190] sm:$0xff]  }
  0x13   :  { %1198 = vmatprep.mubr.bf16.mxu1 %v1703_v39  ;;  %v1717_v60 = vcombine.high %v31_v56, %v35_v57  ;;  %v1719_v61 = vcombine.high %v32_v58, %v36_v59  ;;  %v2321_v62 = vld [vmem:[%s2939_s1 + $0x168] sm:$0xff]   ;;  %v39_v63 = vld [vmem:[%s2940_s0 + $0xc0] sm:$0xff]  ;;  %v1716_v4 = vcombine.low %v31_v56, %v35_v57  ;;  %v1718_v6 = vcombine.low %v32_v58, %v36_v59 }
  0x14   :  { %1962 = vmatpush3.bf16.msra.mxu0 %v2299_v18  ;;  %v43_v0 = vld [vmem:[%s2940_s0 + $0xe0] sm:$0xff]  ;;  %v40_v1 = vld [vmem:[%s2940_s0 + $0xc8] sm:$0xff] }
  0x15   :  { %2044 = vmatpush3.bf16.msra.mxu1 %v2300_v19  ;;  %1963 = vmatprep.subr.bf16.mxu0 %v2301_v20  ;;  %v44_v2 = vld [vmem:[%s2940_s0 + $0xe8] sm:$0xff]  ;;  %v1725_v7 = vcombine.high %v39_v63, %v43_v0  ;;  %v2325_v10 = vld [vmem:[%s2939_s1 + $0x160] sm:$0xff]   ;;  %v1724_v18 = vcombine.low %v39_v63, %v43_v0  ;;  %v2329_v19 = vld [vmem:[%s2939_s1 + $0x158] sm:$0xff]  }
  0x16   :  { %2045 = vmatprep.subr.bf16.mxu1 %v2302_v21  ;;  %v2322_v3 = vld [vmem:[%s2939_s1 + $0x128] sm:$0xff]   ;;  %v1727_v9 = vcombine.high %v40_v1, %v44_v2  ;;  %v47_v11 = vld [vmem:[%s2940_s0 + $0x100] sm:$0xff]  ;;  %v1726_v20 = vcombine.low %v40_v1, %v44_v2 }
  0x17   :  { %v2323_v5 = vld [vmem:[%s2939_s1 + $0x1e8] sm:$0xff]   ;;  %v2326_v12 = vld [vmem:[%s2939_s1 + $0x120] sm:$0xff]  }
  0x18   :  { %1964 = vmatpush3.bf16.msra.mxu0 %v2303_v22  ;;  %v2324_v8 = vld [vmem:[%s2939_s1 + $0x1a8] sm:$0xff]   ;;  %v2327_v13 = vld [vmem:[%s2939_s1 + $0x1e0] sm:$0xff]   ;;  %v2330_v22 = vld [vmem:[%s2939_s1 + $0x118] sm:$0xff]  }
  0x19   :  { %2046 = vmatpush3.bf16.msra.mxu1 %v2304_v23  ;;  %1965 = vmatprep.subr.bf16.mxu0 %v2305_v24  ;;  %v51_v14 = vld [vmem:[%s2940_s0 + $0x120] sm:$0xff]  ;;  %v48_v16 = vld [vmem:[%s2940_s0 + $0x108] sm:$0xff]  ;;  %v2331_v24 = vld [vmem:[%s2939_s1 + $0x1d8] sm:$0xff]  }
  0x1a   :  { %2047 = vmatprep.subr.bf16.mxu1 %v2306_v25  ;;  %v2328_v15 = vld [vmem:[%s2939_s1 + $0x1a0] sm:$0xff]   ;;  %v52_v17 = vld [vmem:[%s2940_s0 + $0x128] sm:$0xff]  ;;  %v1733_v21 = vcombine.high %v47_v11, %v51_v14 }
  0x1b   :  { %v1735_v23 = vcombine.high %v48_v16, %v52_v17  ;;  %v55_v25 = vld [vmem:[%s2940_s0 + $0x140] sm:$0xff]  ;;  %v1734_v33 = vcombine.low %v48_v16, %v52_v17  ;;  %v2339_v44 = vld [vmem:[%s2939_s1 + $0x1c8] sm:$0xff]  }
  0x1c   :  { %1966 = vmatpush3.bf16.msra.mxu0 %v2307_v26  ;;  %v59_v26 = vld [vmem:[%s2940_s0 + $0x160] sm:$0xff]  ;;  %v2340_v45 = vld [vmem:[%s2939_s1 + $0x188] sm:$0xff]  }
  0x1d   :  { %2048 = vmatpush3.bf16.msra.mxu1 %v2308_v27  ;;  %1967 = vmatprep.subr.bf16.mxu0 %v2309_v28  ;;  %v2332_v27 = vld [vmem:[%s2939_s1 + $0x198] sm:$0xff]   ;;  %v56_v28 = vld [vmem:[%s2940_s0 + $0x148] sm:$0xff]  ;;  %v1741_v34 = vcombine.high %v55_v25, %v59_v26  ;;  %v67_v39 = vld [vmem:[%s2940_s0 + $0x1a0] sm:$0xff] }
  0x1e   :  { %2049 = vmatprep.subr.bf16.mxu1 %v2310_v29  ;;  %v60_v29 = vld [vmem:[%s2940_s0 + $0x168] sm:$0xff]  ;;  %v83_v63 = vld [vmem:[%s2940_s0 + $0x220] sm:$0xff] }
  0x1f   :  { %v1743_v36 = vcombine.high %v56_v28, %v60_v29  ;;  %v1742_v47 = vcombine.low %v56_v28, %v60_v29  ;;  %v72_v56 = vld [vmem:[%s2940_s0 + $0x1c8] sm:$0xff]  ;;  %v25_v28 = vld [vmem:[%s2940_s0 + $0x50] sm:$0xff] }
  0x20   :  { %1968 = vmatpush3.bf16.msra.mxu0 %v2311_v30  ;;  %v2333_v30 = vld [vmem:[%s2939_s1 + $0x150] sm:$0xff]   ;;  %v76_v57 = vld [vmem:[%s2940_s0 + $0x1e8] sm:$0xff] }
  0x21   :  { %2050 = vmatpush3.bf16.msra.mxu1 %v2312_v31  ;;  %2117 = vmatprep.subr.bf16.mxu0 %v2313_v40  ;;  %v1732_v31 = vcombine.low %v47_v11, %v51_v14  ;;  %v2337_v40 = vld [vmem:[%s2939_s1 + $0x148] sm:$0xff]   ;;  %v95_v14 = vld [vmem:[%s2940_s0 + $0x280] sm:$0x11]  ;;  %v29_v29 = vld [vmem:[%s2940_s0 + $0x70] sm:$0xff] }
  0x22   :  { %2199 = vmatprep.subr.bf16.mxu1 %v2315_v42  ;;  %v68_v42 = vld [vmem:[%s2940_s0 + $0x1a8] sm:$0xff] }
  0x23   :  { %1079 = vmatmul.mubr.bf16.vlgmr.msra.gmra.mxu0 %v1700_v35  ;;  %v2335_v35 = vld [vmem:[%s2939_s1 + $0x1d0] sm:$0xff]   ;;  %v80_v0 = vld [vmem:[%s2940_s0 + $0x208] sm:$0xff] }
  0x24   :  { %1199 = vmatmul.mubr.bf16.vlgmr.msra.gmra.mxu1 %v1702_v38  ;;  %2118 = vmatpush3.bf16.msra.mxu0 %v2314_v41  ;;  %v63_v38 = vld [vmem:[%s2940_s0 + $0x180] sm:$0xff]  ;;  %v64_v41 = vld [vmem:[%s2940_s0 + $0x188] sm:$0xff] }
  0x25   :  { %2200 = vmatpush3.bf16.msra.mxu1 %v2316_v43  ;;  %1086 = vmatprep.mubr.bf16.mxu0 %v1709_v46  ;;  %v2338_v43 = vld [vmem:[%s2939_s1 + $0x108] sm:$0xff]   ;;  %v1740_v46 = vcombine.low %v55_v25, %v59_v26  ;;  %v1749_v48 = vcombine.high %v63_v38, %v67_v39  ;;  %v1748_v58 = vcombine.low %v63_v38, %v67_v39  ;;  %v34_v38 = vld [vmem:[%s2940_s0 + $0x98] sm:$0xff] }
  0x26   :  { %1206 = vmatprep.mubr.bf16.mxu1 %v1711_v49  ;;  %2119 = vmatprep.subr.bf16.mxu0 %v2317_v50  ;;  %v1751_v49 = vcombine.high %v64_v41, %v68_v42  ;;  %v2341_v50 = vld [vmem:[%s2939_s1 + $0x140] sm:$0xff]   ;;  %v1750_v59 = vcombine.low %v64_v41, %v68_v42  ;;  %v84_v1 = vld [vmem:[%s2940_s0 + $0x228] sm:$0xff]  ;;  %v38_v39 = vld [vmem:[%s2940_s0 + $0xb8] sm:$0xff] }
  0x27   :  { %2201 = vmatprep.subr.bf16.mxu1 %v2319_v54  ;;  %v71_v54 = vld [vmem:[%s2940_s0 + $0x1c0] sm:$0xff]  ;;  %v1766_v11 = vcombine.low %v80_v0, %v84_v1 }
  0x28   :  { %2120 = vmatpush3.bf16.msra.mxu0 %v2318_v52  ;;  %v2345_v52 = vld [vmem:[%s2939_s1 + $0x1c0] sm:$0xff]  }
  0x29   :  { %2202 = vmatpush3.bf16.msra.mxu1 %v2320_v55  ;;  %2121 = vmatprep.subr.bf16.mxu0 %v2321_v62  ;;  %v75_v55 = vld [vmem:[%s2940_s0 + $0x1e0] sm:$0xff] }
  0x2a   :  { %2203 = vmatprep.subr.bf16.mxu1 %v2323_v5  ;;  %v79_v62 = vld [vmem:[%s2940_s0 + $0x200] sm:$0xff]  ;;  %v1756_v2 = vcombine.low %v71_v54, %v75_v55  ;;  %v1767_v5 = vcombine.high %v80_v0, %v84_v1 }
  0x2b   :  { %1087 = vmatmul.mubr.bf16.gmra.mxu0 %v1708_v51  ;;  %v2342_v51 = vld [vmem:[%s2939_s1 + $0x100] sm:$0xff]  }
  0x2c   :  { %1207 = vmatmul.mubr.bf16.gmra.mxu1 %v1710_v53  ;;  %1094 = vmatprep.mubr.bf16.mxu0 %v1717_v60  ;;  %v2348_v53 = vld [vmem:[%s2939_s1 + $0x180] sm:$0xff]   ;;  %v1757_v60 = vcombine.high %v71_v54, %v75_v55  ;;  %v50_v54 = vld [vmem:[%s2940_s0 + $0x118] sm:$0xff] }
  0x2d   :  { %1214 = vmatprep.mubr.bf16.mxu1 %v1719_v61  ;;  %2122 = vmatpush3.bf16.msra.mxu0 %v2322_v3  ;;  %v1759_v61 = vcombine.high %v72_v56, %v76_v57  ;;  %v1758_v3 = vcombine.low %v72_v56, %v76_v57  ;;  %v54_v55 = vld [vmem:[%s2940_s0 + $0x138] sm:$0xff] }
  0x2e   :  { %2204 = vmatpush3.bf16.msra.mxu1 %v2324_v8  ;;  %2123 = vmatprep.subr.bf16.mxu0 %v2325_v10  ;;  %v88_v8 = vld [vmem:[%s2940_s0 + $0x248] sm:$0xff]  ;;  %v1764_v10 = vcombine.low %v79_v62, %v83_v63  ;;  %v1738_v1 = vcombine.low %v50_v54, %v54_v55 }
  0x2f   :  { %2205 = vmatprep.subr.bf16.mxu1 %v2327_v13 }
  0x31   :  { %2124 = vmatpush3.bf16.msra.mxu0 %v2326_v12 }
  0x32   :  { %2206 = vmatpush3.bf16.msra.mxu1 %v2328_v15  ;;  %2125 = vmatprep.subr.bf16.mxu0 %v2329_v19  ;;  %v96_v15 = vld [vmem:[%s2940_s0 + $0x288] sm:$0x11] }
  0x33   :  { %1095 = vmatmul.mubr.bf16.gmra.mxu0 %v1716_v4  ;;  %2207 = vmatprep.subr.bf16.mxu1 %v2331_v24  ;;  %v1765_v4 = vcombine.high %v79_v62, %v83_v63  ;;  %v1783_v19 = vcombine.high %v96_v15, %v96_v15  ;;  %v1780_v24 = vcombine.low %v95_v14, %v95_v14  ;;  %v58_v62 = vld [vmem:[%s2940_s0 + $0x158] sm:$0xff] }
  0x34   :  { %1215 = vmatmul.mubr.bf16.gmra.mxu1 %v1718_v6  ;;  %1102 = vmatprep.mubr.bf16.mxu0 %v1725_v7  ;;  %v87_v6 = vld [vmem:[%s2940_s0 + $0x240] sm:$0xff]  ;;  %v1782_v25 = vcombine.low %v96_v15, %v96_v15  ;;  %v62_v63 = vld [vmem:[%s2940_s0 + $0x178] sm:$0xff] }
  0x35   :  { %1222 = vmatprep.mubr.bf16.mxu1 %v1727_v9  ;;  %2126 = vmatpush3.bf16.msra.mxu0 %v2330_v22  ;;  %v91_v7 = vld [vmem:[%s2940_s0 + $0x260] sm:$0xff]  ;;  %v92_v9 = vld [vmem:[%s2940_s0 + $0x268] sm:$0xff]  ;;  %v18_v22 = vld [vmem:[%s2940_s0 + $0x18] sm:$0xff] }
  0x36   :  { %2208 = vmatpush3.bf16.msra.mxu1 %v2332_v27  ;;  %2127 = vmatprep.subr.bf16.mxu0 %v2333_v30  ;;  %v1773_v12 = vcombine.high %v87_v6, %v91_v7  ;;  %v1775_v13 = vcombine.high %v88_v8, %v92_v9  ;;  %v1772_v16 = vcombine.low %v87_v6, %v91_v7  ;;  %v26_v30 = vld [vmem:[%s2940_s0 + $0x58] sm:$0xff] }
  0x37   :  { %2209 = vmatprep.subr.bf16.mxu1 %v2335_v35  ;;  %v1774_v17 = vcombine.low %v88_v8, %v92_v9  ;;  %v66_v6 = vld [vmem:[%s2940_s0 + $0x198] sm:$0xff]  ;;  %v1746_v9 = vcombine.low %v58_v62, %v62_v63 }
  0x38   :  { %v70_v7 = vld [vmem:[%s2940_s0 + $0x1b8] sm:$0xff] }
  0x39   :  { %2128 = vmatpush3.bf16.msra.mxu0 %v2334_v32  ;;  %v78_v15 = vld [vmem:[%s2940_s0 + $0x1f8] sm:$0xff] }
  0x3a   :  { %2210 = vmatpush3.bf16.msra.mxu1 %v2336_v37  ;;  %2129 = vmatprep.subr.bf16.mxu0 %v2337_v40  ;;  %v37_v37 = vld [vmem:[%s2940_s0 + $0xb0] sm:$0xff]  ;;  %v1712_v40 = vcombine.low %v25_v28, %v29_v29 }
  0x3b   :  { %1103 = vmatmul.mubr.bf16.gmra.mxu0 %v1724_v18  ;;  %2211 = vmatprep.subr.bf16.mxu1 %v2339_v44  ;;  %v1781_v18 = vcombine.high %v95_v14, %v95_v14  ;;  %v41_v44 = vld [vmem:[%s2940_s0 + $0xd0] sm:$0xff]  ;;  %v74_v14 = vld [vmem:[%s2940_s0 + $0x1d8] sm:$0xff] }
  0x3c   :  { %1223 = vmatmul.mubr.bf16.gmra.mxu1 %v1726_v20  ;;  %1110 = vmatprep.mubr.bf16.mxu0 %v1733_v21  ;;  %v17_v20 = vld [vmem:[%s2940_s0 + $0x10] sm:$0xff] }
  0x3d   :  { %1230 = vmatprep.mubr.bf16.mxu1 %v1735_v23  ;;  %2130 = vmatpush3.bf16.msra.mxu0 %v2338_v43  ;;  %v21_v21 = vld [vmem:[%s2940_s0 + $0x30] sm:$0xff]  ;;  %v22_v23 = vld [vmem:[%s2940_s0 + $0x38] sm:$0xff]  ;;  %v1723_v43 = vcombine.high %v34_v38, %v38_v39 }
  0x3e   :  { %2212 = vmatpush3.bf16.msra.mxu1 %v2340_v45  ;;  %2131 = vmatprep.subr.bf16.mxu0 %v2341_v50  ;;  %v1705_v26 = vcombine.high %v17_v20, %v21_v21  ;;  %v1707_v27 = vcombine.high %v18_v22, %v22_v23  ;;  %v1704_v32 = vcombine.low %v17_v20, %v21_v21  ;;  %v45_v45 = vld [vmem:[%s2940_s0 + $0xf0] sm:$0xff] }
  0x3f   :  { %2213 = vmatprep.subr.bf16.mxu1 %v2345_v52  ;;  %v1729_v50 = vcombine.high %v41_v44, %v45_v45  ;;  %v49_v52 = vld [vmem:[%s2940_s0 + $0x110] sm:$0xff]  ;;  %v1728_v56 = vcombine.low %v41_v44, %v45_v45 }
  0x40   :  { %v81_v20 = vld [vmem:[%s2940_s0 + $0x210] sm:$0xff] }
  0x41   :  { %2132 = vmatpush3.bf16.msra.mxu0 %v2342_v51  ;;  %v85_v21 = vld [vmem:[%s2940_s0 + $0x230] sm:$0xff] }
  0x42   :  { %2214 = vmatpush3.bf16.msra.mxu1 %v2348_v53  ;;  %v53_v53 = vld [vmem:[%s2940_s0 + $0x130] sm:$0xff] }
  0x43   :  { %1111 = vmatmul.mubr.bf16.gmra.mxu0 %v1732_v31  ;;  %v30_v31 = vld [vmem:[%s2940_s0 + $0x78] sm:$0xff]  ;;  %v1736_v0 = vcombine.low %v49_v52, %v53_v53 }
  0x44   :  { %1231 = vmatmul.mubr.bf16.gmra.mxu1 %v1734_v33  ;;  %1118 = vmatprep.mubr.bf16.mxu0 %v1741_v34  ;;  %v1706_v33 = vcombine.low %v18_v22, %v22_v23  ;;  %v1713_v34 = vcombine.high %v25_v28, %v29_v29  ;;  %v1715_v35 = vcombine.high %v26_v30, %v30_v31  ;;  %v82_v22 = vld [vmem:[%s2940_s0 + $0x218] sm:$0xff]  ;;  %v89_v28 = vld [vmem:[%s2940_s0 + $0x250] sm:$0xff] }
  0x45   :  { %1238 = vmatprep.mubr.bf16.mxu1 %v1743_v36  ;;  %v33_v36 = vld [vmem:[%s2940_s0 + $0x90] sm:$0xff]  ;;  %v1714_v41 = vcombine.low %v26_v30, %v30_v31  ;;  %v86_v23 = vld [vmem:[%s2940_s0 + $0x238] sm:$0xff] }
  0x46   :  { %v1721_v42 = vcombine.high %v33_v36, %v37_v37  ;;  %v93_v29 = vld [vmem:[%s2940_s0 + $0x270] sm:$0xff]  ;;  %v90_v30 = vld [vmem:[%s2940_s0 + $0x258] sm:$0xff] }
  0x47   :  { %v94_v31 = vld [vmem:[%s2940_s0 + $0x278] sm:$0xff] }
  0x4b   :  { %1119 = vmatmul.mubr.bf16.gmra.mxu0 %v1740_v46  ;;  %v42_v46 = vld [vmem:[%s2940_s0 + $0xd8] sm:$0xff] }
  0x4c   :  { %1239 = vmatmul.mubr.bf16.gmra.mxu1 %v1742_v47  ;;  %1126 = vmatprep.mubr.bf16.mxu0 %v1749_v48  ;;  %v46_v47 = vld [vmem:[%s2940_s0 + $0xf8] sm:$0xff]  ;;  %v1720_v48 = vcombine.low %v33_v36, %v37_v37  ;;  %v97_v36 = vld [vmem:[%s2940_s0 + $0x290] sm:$0x11] }
  0x4d   :  { %1246 = vmatprep.mubr.bf16.mxu1 %v1751_v49  ;;  %v1722_v49 = vcombine.low %v34_v38, %v38_v39  ;;  %v1731_v51 = vcombine.high %v42_v46, %v46_v47  ;;  %v1730_v57 = vcombine.low %v42_v46, %v46_v47  ;;  %v98_v37 = vld [vmem:[%s2940_s0 + $0x298] sm:$0x11]  ;;  %v1776_v38 = vcombine.low %v89_v28, %v93_v29  ;;  %v2820_v46 = vld [vmem:[%s2941_s2] ss:$0 sm:$0xff] }
  0x4e   :  { %v1778_v39 = vcombine.low %v90_v30, %v94_v31 }
  0x53   :  { %1127 = vmatmul.mubr.bf16.gmra.mxu0 %v1748_v58  ;;  %v1737_v58 = vcombine.high %v49_v52, %v53_v53 }
  0x54   :  { %1247 = vmatmul.mubr.bf16.gmra.mxu1 %v1750_v59  ;;  %1134 = vmatprep.mubr.bf16.mxu0 %v1757_v60  ;;  %v1739_v59 = vcombine.high %v50_v54, %v54_v55  ;;  %v57_v60 = vld [vmem:[%s2940_s0 + $0x150] sm:$0xff] }
  0x55   :  { %1254 = vmatprep.mubr.bf16.mxu1 %v1759_v61  ;;  %v61_v61 = vld [vmem:[%s2940_s0 + $0x170] sm:$0xff] }
  0x56   :  { %v1744_v8 = vcombine.low %v57_v60, %v61_v61 }
  0x5b   :  { %1135 = vmatmul.mubr.bf16.gmra.mxu0 %v1756_v2  ;;  %v1745_v2 = vcombine.high %v57_v60, %v61_v61 }
  0x5c   :  { %1255 = vmatmul.mubr.bf16.gmra.mxu1 %v1758_v3  ;;  %1142 = vmatprep.mubr.bf16.mxu0 %v1765_v4  ;;  %v1747_v3 = vcombine.high %v58_v62, %v62_v63  ;;  %v65_v4 = vld [vmem:[%s2940_s0 + $0x190] sm:$0xff] }
  0x5d   :  { %1262 = vmatprep.mubr.bf16.mxu1 %v1767_v5  ;;  %v69_v5 = vld [vmem:[%s2940_s0 + $0x1b0] sm:$0xff] }
  0x63   :  { %1143 = vmatmul.mubr.bf16.gmra.mxu0 %v1764_v10  ;;  %v1753_v10 = vcombine.high %v65_v4, %v69_v5 }
  0x64   :  { %1263 = vmatmul.mubr.bf16.gmra.mxu1 %v1766_v11  ;;  %1150 = vmatprep.mubr.bf16.mxu0 %v1773_v12  ;;  %v1755_v11 = vcombine.high %v66_v6, %v70_v7  ;;  %v73_v12 = vld [vmem:[%s2940_s0 + $0x1d0] sm:$0xff] }
  0x65   :  { %1270 = vmatprep.mubr.bf16.mxu1 %v1775_v13  ;;  %v77_v13 = vld [vmem:[%s2940_s0 + $0x1f0] sm:$0xff] }
  0x6b   :  { %1151 = vmatmul.mubr.bf16.gmra.mxu0 %v1772_v16  ;;  %v1752_v16 = vcombine.low %v65_v4, %v69_v5 }
  0x6c   :  { %1271 = vmatmul.mubr.bf16.gmra.mxu1 %v1774_v17  ;;  %1158 = vmatprep.mubr.bf16.mxu0 %v1781_v18  ;;  %v1754_v17 = vcombine.low %v66_v6, %v70_v7  ;;  %v1761_v18 = vcombine.high %v73_v12, %v77_v13 }
  0x6d   :  { %1278 = vmatprep.mubr.bf16.mxu1 %v1783_v19  ;;  %v1763_v19 = vcombine.high %v74_v14, %v78_v15 }
  0x73   :  { %1159 = vmatmul.mubr.bf16.gmra.mxu0 %v1780_v24  ;;  %v1760_v24 = vcombine.low %v73_v12, %v77_v13 }
  0x74   :  { %1279 = vmatmul.mubr.bf16.gmra.mxu1 %v1782_v25  ;;  %1318 = vmatprep.mubr.bf16.mxu0 %v1705_v26  ;;  %v1762_v25 = vcombine.low %v74_v14, %v78_v15  ;;  %v1769_v26 = vcombine.high %v81_v20, %v85_v21 }
  0x75   :  { %1438 = vmatprep.mubr.bf16.mxu1 %v1707_v27  ;;  %v1771_v27 = vcombine.high %v82_v22, %v86_v23 }
  0x7b   :  { %1319 = vmatmul.mubr.bf16.vlgmr.msra.gmra.mxu0 %v1704_v32  ;;  %v1768_v32 = vcombine.low %v81_v20, %v85_v21 }
  0x7c   :  { %1439 = vmatmul.mubr.bf16.vlgmr.msra.gmra.mxu1 %v1706_v33  ;;  %1326 = vmatprep.mubr.bf16.mxu0 %v1713_v34  ;;  %v1770_v33 = vcombine.low %v82_v22, %v86_v23  ;;  %v1777_v34 = vcombine.high %v89_v28, %v93_v29 }
  0x7d   :  { %1446 = vmatprep.mubr.bf16.mxu1 %v1715_v35  ;;  %v1779_v35 = vcombine.high %v90_v30, %v94_v31 }
  0x83   :  { %1327 = vmatmul.mubr.bf16.gmra.mxu0 %v1712_v40  ;;  %v1785_v40 = vcombine.high %v97_v36, %v97_v36 }
  0x84   :  { %1447 = vmatmul.mubr.bf16.gmra.mxu1 %v1714_v41  ;;  %1334 = vmatprep.mubr.bf16.mxu0 %v1721_v42  ;;  %v1787_v41 = vcombine.high %v98_v37, %v98_v37  ;;  %v1784_v42 = vcombine.low %v97_v36, %v97_v36 }
  0x85   :  { %1454 = vmatprep.mubr.bf16.mxu1 %v1723_v43  ;;  %v1786_v43 = vcombine.low %v98_v37, %v98_v37 }
  0x8b   :  { %1335 = vmatmul.mubr.bf16.gmra.mxu0 %v1720_v48 }
  0x8c   :  { %1455 = vmatmul.mubr.bf16.gmra.mxu1 %v1722_v49  ;;  %1342 = vmatprep.mubr.bf16.mxu0 %v1729_v50 }
  0x8d   :  { %1462 = vmatprep.mubr.bf16.mxu1 %v1731_v51 }
  0x93   :  { %1343 = vmatmul.mubr.bf16.gmra.mxu0 %v1728_v56 }
  0x94   :  { %1463 = vmatmul.mubr.bf16.gmra.mxu1 %v1730_v57  ;;  %1350 = vmatprep.mubr.bf16.mxu0 %v1737_v58 }
  0x95   :  { %1470 = vmatprep.mubr.bf16.mxu1 %v1739_v59 }
  0x9b   :  { %1351 = vmatmul.mubr.bf16.gmra.mxu0 %v1736_v0 }
  0x9c   :  { %1471 = vmatmul.mubr.bf16.gmra.mxu1 %v1738_v1  ;;  %1358 = vmatprep.mubr.bf16.mxu0 %v1745_v2 }
  0x9d   :  { %1478 = vmatprep.mubr.bf16.mxu1 %v1747_v3 }
  0xa3   :  { %1359 = vmatmul.mubr.bf16.gmra.mxu0 %v1744_v8 }
  0xa4   :  { %1479 = vmatmul.mubr.bf16.gmra.mxu1 %v1746_v9  ;;  %1366 = vmatprep.mubr.bf16.mxu0 %v1753_v10 }
  0xa5   :  { %1486 = vmatprep.mubr.bf16.mxu1 %v1755_v11 }
  0xab   :  { %1367 = vmatmul.mubr.bf16.gmra.mxu0 %v1752_v16 }
  0xac   :  { %1487 = vmatmul.mubr.bf16.gmra.mxu1 %v1754_v17  ;;  %1374 = vmatprep.mubr.bf16.mxu0 %v1761_v18 }
  0xad   :  { %1494 = vmatprep.mubr.bf16.mxu1 %v1763_v19 }
  0xb3   :  { %1375 = vmatmul.mubr.bf16.gmra.mxu0 %v1760_v24 }
  0xb4   :  { %1495 = vmatmul.mubr.bf16.gmra.mxu1 %v1762_v25  ;;  %1382 = vmatprep.mubr.bf16.mxu0 %v1769_v26 }
  0xb5   :  { %1502 = vmatprep.mubr.bf16.mxu1 %v1771_v27 }
  0xbb   :  { %1383 = vmatmul.mubr.bf16.gmra.mxu0 %v1768_v32 }
  0xbc   :  { %1503 = vmatmul.mubr.bf16.gmra.mxu1 %v1770_v33  ;;  %1390 = vmatprep.mubr.bf16.mxu0 %v1777_v34 }
  0xbd   :  { %1510 = vmatprep.mubr.bf16.mxu1 %v1779_v35 }
  0xc3   :  { %1391 = vmatmul.mubr.bf16.gmra.mxu0 %v1776_v38 }
  0xc4   :  { %1511 = vmatmul.mubr.bf16.gmra.mxu1 %v1778_v39  ;;  %1398 = vmatprep.mubr.bf16.mxu0 %v1785_v40 }
  0xc5   :  { %1518 = vmatprep.mubr.bf16.mxu1 %v1787_v41 }
  0xcb   :  { %1399 = vmatmul.mubr.bf16.gmra.mxu0 %v1784_v42 }
  0xcc   :  { %1519 = vmatmul.mubr.bf16.gmra.mxu1 %v1786_v43 }
  0xe3   :  { %v1969_v44 = vpop.f32.mrf.mxu0 }
  0xe4   :  { %v2051_v45 = vpop.f32.mrf.mxu1 }
  0xe5   :  { %v1970_v47 = vpop.f32.mrf.mxu0 }
  0xe6   :  { %v1971_v48 = vadd.f32 %v1970_v47, %v1969_v44  ;;  %v2052_v49 = vpop.f32.mrf.mxu1 }
  0xe7   :  { %v2053_v50 = vadd.f32 %v2052_v49, %v2051_v45  ;;  %v1972_v51 = vpop.f32.mrf.mxu0 }
  0xe8   :  { %v1081_v52 = vadd.f32 %v1971_v48, %v2820_v46  ;;  %v2054_v53 = vpop.f32.mrf.mxu1 }
  0xe9   :  { %v1973_v54 = vpop.f32.mrf.mxu0 }
  0xea   :  { %v2823_v55 = vadd.f32 %v2053_v50, %v1081_v52  ;;  %v1974_v56 = vadd.f32 %v1973_v54, %v1972_v51  ;;  %v2055_v57 = vpop.f32.mrf.mxu1 }
  0xeb   :  { %v2056_v58 = vadd.f32 %v2055_v57, %v2054_v53  ;;  %v1975_v59 = vpop.f32.mrf.mxu0 }
  0xec   :  { %v1084_v60 = vadd.f32 %v1974_v56, %v2820_v46  ;;  %v2057_v61 = vpop.f32.mrf.mxu1 }
  0xed   :  { %v1976_v62 = vpop.f32.mrf.mxu0 }
  0xee   :  { %v2826_v63 = vadd.f32 %v2056_v58, %v1084_v60  ;;  %v1977_v0 = vadd.f32 %v1976_v62, %v1975_v59  ;;  %v2058_v1 = vpop.f32.mrf.mxu1 }
  0xef   :  { %v2059_v2 = vadd.f32 %v2058_v1, %v2057_v61  ;;  %v1978_v3 = vpop.f32.mrf.mxu0 }
  0xf0   :  { %v1089_v4 = vadd.f32 %v1977_v0, %v2820_v46  ;;  %v2060_v5 = vpop.f32.mrf.mxu1 }
  0xf1   :  { %v1979_v6 = vpop.f32.mrf.mxu0 }
  0xf2   :  { %v2829_v7 = vadd.f32 %v2059_v2, %v1089_v4  ;;  %v1980_v8 = vadd.f32 %v1979_v6, %v1978_v3  ;;  %v2061_v9 = vpop.f32.mrf.mxu1 }
  0xf3   :  { %v2062_v10 = vadd.f32 %v2061_v9, %v2060_v5  ;;  %v1981_v11 = vpop.f32.mrf.mxu0 }
  0xf4   :  { %v1092_v12 = vadd.f32 %v1980_v8, %v2820_v46  ;;  %v2063_v13 = vpop.f32.mrf.mxu1 }
  0xf5   :  { %v1982_v14 = vpop.f32.mrf.mxu0 }
  0xf6   :  { %v2832_v15 = vadd.f32 %v2062_v10, %v1092_v12  ;;  %v1983_v16 = vadd.f32 %v1982_v14, %v1981_v11  ;;  %v2064_v17 = vpop.f32.mrf.mxu1 }
  0xf7   :  { %v2065_v18 = vadd.f32 %v2064_v17, %v2063_v13  ;;  %v1984_v19 = vpop.f32.mrf.mxu0 }
  0xf8   :  { %v1097_v20 = vadd.f32 %v1983_v16, %v2820_v46  ;;  %v2066_v21 = vpop.f32.mrf.mxu1 }
  0xf9   :  { %v1985_v22 = vpop.f32.mrf.mxu0 }
  0xfa   :  { %v2835_v23 = vadd.f32 %v2065_v18, %v1097_v20  ;;  %v1986_v24 = vadd.f32 %v1985_v22, %v1984_v19  ;;  %v2067_v25 = vpop.f32.mrf.mxu1 }
  0xfb   :  { %v2068_v26 = vadd.f32 %v2067_v25, %v2066_v21  ;;  %v1987_v27 = vpop.f32.mrf.mxu0 }
  0xfc   :  { %v1100_v28 = vadd.f32 %v1986_v24, %v2820_v46  ;;  %v2069_v29 = vpop.f32.mrf.mxu1 }
  0xfd   :  { %v1988_v30 = vpop.f32.mrf.mxu0 }
  0xfe   :  { %v2838_v31 = vadd.f32 %v2068_v26, %v1100_v28  ;;  %v1989_v32 = vadd.f32 %v1988_v30, %v1987_v27  ;;  %v2070_v33 = vpop.f32.mrf.mxu1 }
  0xff   :  { %v2071_v34 = vadd.f32 %v2070_v33, %v2069_v29  ;;  %v1990_v35 = vpop.f32.mrf.mxu0 }
 0x100   :  { %v1105_v36 = vadd.f32 %v1989_v32, %v2820_v46  ;;  %v2072_v37 = vpop.f32.mrf.mxu1 }
 0x101   :  { %v1991_v38 = vpop.f32.mrf.mxu0 }
 0x102   :  { %v2841_v39 = vadd.f32 %v2071_v34, %v1105_v36  ;;  %v1992_v40 = vadd.f32 %v1991_v38, %v1990_v35  ;;  %v2073_v41 = vpop.f32.mrf.mxu1 }
 0x103   :  { %v2074_v42 = vadd.f32 %v2073_v41, %v2072_v37  ;;  %v1993_v43 = vpop.f32.mrf.mxu0 }
 0x104   :  { %v1108_v44 = vadd.f32 %v1992_v40, %v2820_v46  ;;  %v2075_v45 = vpop.f32.mrf.mxu1 }
 0x105   :  { %v1994_v47 = vpop.f32.mrf.mxu0 }
 0x106   :  { %v2844_v48 = vadd.f32 %v2074_v42, %v1108_v44  ;;  %v1995_v49 = vadd.f32 %v1994_v47, %v1993_v43  ;;  %v2076_v50 = vpop.f32.mrf.mxu1 }
 0x107   :  { %v2077_v51 = vadd.f32 %v2076_v50, %v2075_v45  ;;  %v1996_v52 = vpop.f32.mrf.mxu0 }
 0x108   :  { %v1113_v53 = vadd.f32 %v1995_v49, %v2820_v46  ;;  %v2078_v54 = vpop.f32.mrf.mxu1 }
 0x109   :  { %v1997_v56 = vpop.f32.mrf.mxu0 }
 0x10a   :  { %v2847_v57 = vadd.f32 %v2077_v51, %v1113_v53  ;;  %v1998_v58 = vadd.f32 %v1997_v56, %v1996_v52  ;;  %v2079_v59 = vpop.f32.mrf.mxu1 }
 0x10b   :  { %v2080_v60 = vadd.f32 %v2079_v59, %v2078_v54  ;;  %v1999_v61 = vpop.f32.mrf.mxu0 }
 0x10c   :  { %v1116_v62 = vadd.f32 %v1998_v58, %v2820_v46  ;;  %v2081_v0 = vpop.f32.mrf.mxu1 }
 0x10d   :  { %v2000_v1 = vpop.f32.mrf.mxu0 }
 0x10e   :  { %v2850_v2 = vadd.f32 %v2080_v60, %v1116_v62  ;;  %v2001_v3 = vadd.f32 %v2000_v1, %v1999_v61  ;;  %v2082_v4 = vpop.f32.mrf.mxu1 }
 0x10f   :  { %v2083_v5 = vadd.f32 %v2082_v4, %v2081_v0  ;;  %v2002_v6 = vpop.f32.mrf.mxu0 }
 0x110   :  { %v1121_v8 = vadd.f32 %v2001_v3, %v2820_v46  ;;  %v2084_v9 = vpop.f32.mrf.mxu1 }
 0x111   :  { %v2003_v10 = vpop.f32.mrf.mxu0 }
 0x112   :  { %v2853_v11 = vadd.f32 %v2083_v5, %v1121_v8  ;;  %v2004_v12 = vadd.f32 %v2003_v10, %v2002_v6  ;;  %v2085_v13 = vpop.f32.mrf.mxu1 }
 0x113   :  { %v2086_v14 = vadd.f32 %v2085_v13, %v2084_v9  ;;  %v2005_v16 = vpop.f32.mrf.mxu0 }
 0x114   :  { %v1124_v17 = vadd.f32 %v2004_v12, %v2820_v46  ;;  %v2087_v18 = vpop.f32.mrf.mxu1 }
 0x115   :  { %v2006_v19 = vpop.f32.mrf.mxu0 }
 0x116   :  { %v2856_v20 = vadd.f32 %v2086_v14, %v1124_v17  ;;  %v2007_v21 = vadd.f32 %v2006_v19, %v2005_v16  ;;  %v2088_v22 = vpop.f32.mrf.mxu1 }
 0x117   :  { %v2089_v24 = vadd.f32 %v2088_v22, %v2087_v18  ;;  %v2008_v25 = vpop.f32.mrf.mxu0 }
 0x118   :  { %v1129_v26 = vadd.f32 %v2007_v21, %v2820_v46  ;;  %v2090_v27 = vpop.f32.mrf.mxu1 }
 0x119   :  { %v2009_v28 = vpop.f32.mrf.mxu0 }
 0x11a   :  { %v2859_v29 = vadd.f32 %v2089_v24, %v1129_v26  ;;  %v2010_v30 = vadd.f32 %v2009_v28, %v2008_v25  ;;  %v2091_v32 = vpop.f32.mrf.mxu1 }
 0x11b   :  { %v2092_v33 = vadd.f32 %v2091_v32, %v2090_v27  ;;  %v2011_v34 = vpop.f32.mrf.mxu0 }
 0x11c   :  { %v1132_v35 = vadd.f32 %v2010_v30, %v2820_v46  ;;  %v2093_v36 = vpop.f32.mrf.mxu1 }
 0x11d   :  { %v2012_v37 = vpop.f32.mrf.mxu0 }
 0x11e   :  { %v2862_v38 = vadd.f32 %v2092_v33, %v1132_v35  ;;  %v2013_v40 = vadd.f32 %v2012_v37, %v2011_v34  ;;  %v2094_v41 = vpop.f32.mrf.mxu1 }
 0x11f   :  { %v2095_v42 = vadd.f32 %v2094_v41, %v2093_v36  ;;  %v2014_v43 = vpop.f32.mrf.mxu0 }
 0x120   :  { %v1137_v44 = vadd.f32 %v2013_v40, %v2820_v46  ;;  %v2096_v45 = vpop.f32.mrf.mxu1 }
 0x121   :  { %v2015_v47 = vpop.f32.mrf.mxu0 }
 0x122   :  { %v2865_v49 = vadd.f32 %v2095_v42, %v1137_v44  ;;  %v2016_v50 = vadd.f32 %v2015_v47, %v2014_v43  ;;  %v2097_v51 = vpop.f32.mrf.mxu1 }
 0x123   :  { %v2098_v52 = vadd.f32 %v2097_v51, %v2096_v45  ;;  %v2017_v53 = vpop.f32.mrf.mxu0 }
 0x124   :  { %v1140_v54 = vadd.f32 %v2016_v50, %v2820_v46  ;;  %v2099_v56 = vpop.f32.mrf.mxu1 }
 0x125   :  { %v2018_v58 = vpop.f32.mrf.mxu0 }
 0x126   :  { %v2868_v59 = vadd.f32 %v2098_v52, %v1140_v54  ;;  %v2019_v60 = vadd.f32 %v2018_v58, %v2017_v53  ;;  %v2100_v61 = vpop.f32.mrf.mxu1 }
 0x127   :  { %v2101_v62 = vadd.f32 %v2100_v61, %v2099_v56  ;;  %v2020_v0 = vpop.f32.mrf.mxu0 }
 0x128   :  { %v1145_v1 = vadd.f32 %v2019_v60, %v2820_v46  ;;  %v2102_v3 = vpop.f32.mrf.mxu1 }
 0x129   :  { %v2021_v4 = vpop.f32.mrf.mxu0 }
 0x12a   :  { %v2871_v5 = vadd.f32 %v2101_v62, %v1145_v1  ;;  %v2022_v6 = vadd.f32 %v2021_v4, %v2020_v0  ;;  %v2103_v8 = vpop.f32.mrf.mxu1 }
 0x12b   :  { %v2104_v9 = vadd.f32 %v2103_v8, %v2102_v3  ;;  %v2023_v10 = vpop.f32.mrf.mxu0 }
 0x12c   :  { %v1148_v12 = vadd.f32 %v2022_v6, %v2820_v46  ;;  %v2105_v13 = vpop.f32.mrf.mxu1 }
 0x12d   :  { %v2024_v14 = vpop.f32.mrf.mxu0 }
 0x12e   :  { %v2874_v16 = vadd.f32 %v2104_v9, %v1148_v12  ;;  %v2025_v17 = vadd.f32 %v2024_v14, %v2023_v10  ;;  %v2106_v18 = vpop.f32.mrf.mxu1 }
 0x12f   :  { %v2107_v19 = vadd.f32 %v2106_v18, %v2105_v13  ;;  %v2026_v21 = vpop.f32.mrf.mxu0 }
 0x130   :  { %v1153_v22 = vadd.f32 %v2025_v17, %v2820_v46  ;;  %v2108_v24 = vpop.f32.mrf.mxu1 }
 0x131   :  { %v2027_v25 = vpop.f32.mrf.mxu0 }
 0x132   :  { %v2877_v26 = vadd.f32 %v2107_v19, %v1153_v22  ;;  %v2028_v27 = vadd.f32 %v2027_v25, %v2026_v21  ;;  %v2109_v28 = vpop.f32.mrf.mxu1 }
 0x133   :  { %v2110_v30 = vadd.f32 %v2109_v28, %v2108_v24  ;;  %v2029_v32 = vpop.f32.mrf.mxu0 }
 0x134   :  { %v1156_v33 = vadd.f32 %v2028_v27, %v2820_v46  ;;  %v2111_v34 = vpop.f32.mrf.mxu1 }
 0x135   :  { %v2030_v35 = vpop.f32.mrf.mxu0 }
 0x136   :  { %v2880_v36 = vadd.f32 %v2110_v30, %v1156_v33  ;;  %v2031_v37 = vadd.f32 %v2030_v35, %v2029_v32  ;;  %v2112_v40 = vpop.f32.mrf.mxu1 }
 0x137   :  { %v2113_v41 = vadd.f32 %v2112_v40, %v2111_v34  ;;  %v2032_v42 = vpop.f32.mrf.mxu0 }
 0x138   :  { %v1161_v43 = vadd.f32 %v2031_v37, %v2820_v46  ;;  %v2114_v44 = vpop.f32.mrf.mxu1 }
 0x139   :  { %v2033_v45 = vpop.f32.mrf.mxu0 }
 0x13a   :  { %v2883_v47 = vadd.f32 %v2113_v41, %v1161_v43  ;;  %v2115_v50 = vpop.f32.mrf.mxu1 }
 0x13b   :  { %v2133_v51 = vpop.f32.mrf.mxu0 }
 0x13c   :  { %v2215_v52 = vpop.f32.mrf.mxu1 }
 0x13d   :  { %v2134_v53 = vpop.f32.mrf.mxu0 }
 0x13e   :  { %v2135_v54 = vadd.f32 %v2134_v53, %v2133_v51  ;;  %v2216_v56 = vpop.f32.mrf.mxu1 }
 0x13f   :  { %v2136_v58 = vpop.f32.mrf.mxu0  ;;  %v2217_v61 = vadd.f32 %v2216_v56, %v2215_v52 }
 0x140   :  { %v1321_v60 = vadd.f32 %v2135_v54, %v2823_v55  ;;  %v2218_v62 = vpop.f32.mrf.mxu1 }
 0x141   :  { %v2137_v0 = vpop.f32.mrf.mxu0 }
 0x142   :  { %v1441_v1 = vadd.f32 %v2217_v61, %v1321_v60  ;;  %v2138_v3 = vadd.f32 %v2137_v0, %v2136_v58  ;;  %v2219_v4 = vpop.f32.mrf.mxu1 }
 0x143   :  { %v2139_v46 = vpop.f32.mrf.mxu0  ;;  %v2220_v8 = vadd.f32 %v2219_v4, %v2218_v62 }
 0x144   :  { %v1324_v6 = vadd.f32 %v2138_v3, %v2826_v63  ;;  %v2221_v9 = vpop.f32.mrf.mxu1  ;;  %v1547_v12 = vmul.f32 0.01, %v1441_v1  ;;  %vm1526_vm0 = vcmp.gt.f32.partialorder %v1441_v1, 0.0 }
 0x145   :  { %v2140_v10 = vpop.f32.mrf.mxu0 }
 0x146   :  { %v1444_v13 = vadd.f32 %v2220_v8, %v1324_v6  ;;  %v2141_v14 = vadd.f32 %v2140_v10, %v2139_v46  ;;  %v2222_v17 = vpop.f32.mrf.mxu1  ;;  %v1568_v25 = vsel %vm1526_vm0, %v1441_v1, %v1547_v12 }
 0x147   :  { %v2142_v18 = vpop.f32.mrf.mxu0  ;;  %v2223_v21 = vadd.f32 %v2222_v17, %v2221_v9 }
 0x148   :  { %vm1527_vm1 = vcmp.gt.f32.partialorder %v1444_v13, 0.0  ;;  %v1548_v55 = vmul.f32 0.01, %v1444_v13  ;;  %v1329_v19 = vadd.f32 %v2141_v14, %v2829_v7  ;;  %v2224_v22 = vpop.f32.mrf.mxu1 }
 0x149   :  { %v2143_v24 = vpop.f32.mrf.mxu0 }
 0x14a   :  { %v1569_v27 = vsel %vm1527_vm1, %v1444_v13, %v1548_v55  ;;  %v1449_v28 = vadd.f32 %v2223_v21, %v1329_v19  ;;  %v2144_v63 = vadd.f32 %v2143_v24, %v2142_v18  ;;  %v2225_v30 = vpop.f32.mrf.mxu1 }
 0x14b   :  { %v1897_v32 = vpack.c.bf16 %v1569_v27, %v1568_v25  ;;  %v2145_v33 = vpop.f32.mrf.mxu0  ;;  %v2226_v35 = vadd.f32 %v2225_v30, %v2224_v22 }
 0x14c   :  { %v1332_v34 = vadd.f32 %v2144_v63, %v2832_v15  ;;  %v2227_v37 = vpop.f32.mrf.mxu1  ;;  %v1549_v7 = vmul.f32 0.01, %v1449_v28  ;;  %vm1528_vm2 = vcmp.gt.f32.partialorder %v1449_v28, 0.0 }
 0x14d   :  { %1898 = vst [vmem:[%s2942_s3] sm:$0xff] %v1897_v32   ;;  %v2146_v40 = vpop.f32.mrf.mxu0 }
 0x14e   :  { %v1452_v41 = vadd.f32 %v2226_v35, %v1332_v34  ;;  %v2147_v42 = vadd.f32 %v2146_v40, %v2145_v33  ;;  %v2228_v43 = vpop.f32.mrf.mxu1  ;;  %v1570_v53 = vsel %vm1528_vm2, %v1449_v28, %v1549_v7 }
 0x14f   :  { %v2148_v44 = vpop.f32.mrf.mxu0  ;;  %v2229_v51 = vadd.f32 %v2228_v43, %v2227_v37 }
 0x150   :  { %vm1529_vm3 = vcmp.gt.f32.partialorder %v1452_v41, 0.0  ;;  %v1550_v45 = vmul.f32 0.01, %v1452_v41  ;;  %v1337_v50 = vadd.f32 %v2147_v42, %v2835_v23  ;;  %v2230_v52 = vpop.f32.mrf.mxu1 }
 0x151   :  { %v2149_v15 = vpop.f32.mrf.mxu0 }
 0x152   :  { %v1571_v54 = vsel %vm1529_vm3, %v1452_v41, %v1550_v45  ;;  %v1457_v56 = vadd.f32 %v2229_v51, %v1337_v50  ;;  %v2150_v58 = vadd.f32 %v2149_v15, %v2148_v44  ;;  %v2231_v60 = vpop.f32.mrf.mxu1 }
 0x153   :  { %v1902_v61 = vpack.c.bf16 %v1571_v54, %v1570_v53  ;;  %v2151_v62 = vpop.f32.mrf.mxu0  ;;  %v2232_v1 = vadd.f32 %v2231_v60, %v2230_v52 }
 0x154   :  { %v1340_v0 = vadd.f32 %v2150_v58, %v2838_v31  ;;  %v2233_v3 = vpop.f32.mrf.mxu1  ;;  %v1551_v23 = vmul.f32 0.01, %v1457_v56  ;;  %vm1530_vm4 = vcmp.gt.f32.partialorder %v1457_v56, 0.0 }
 0x155   :  { %1944 = vst [vmem:[%s2942_s3 + $0x8] sm:$0xff] %v1902_v61   ;;  %v2152_v4 = vpop.f32.mrf.mxu0 }
 0x156   :  { %v1460_v46 = vadd.f32 %v2232_v1, %v1340_v0  ;;  %v2153_v6 = vadd.f32 %v2152_v4, %v2151_v62  ;;  %v2234_v8 = vpop.f32.mrf.mxu1  ;;  %v1572_v17 = vsel %vm1530_vm4, %v1457_v56, %v1551_v23 }
 0x157   :  { %v2154_v9 = vpop.f32.mrf.mxu0  ;;  %v2235_v13 = vadd.f32 %v2234_v8, %v2233_v3 }
 0x158   :  { %vm1531_vm5 = vcmp.gt.f32.partialorder %v1460_v46, 0.0  ;;  %v1552_v10 = vmul.f32 0.01, %v1460_v46  ;;  %v1345_v12 = vadd.f32 %v2153_v6, %v2841_v39  ;;  %v2236_v14 = vpop.f32.mrf.mxu1 }
 0x159   :  { %v2155_v31 = vpop.f32.mrf.mxu0 }
 0x15a   :  { %v1573_v18 = vsel %vm1531_vm5, %v1460_v46, %v1552_v10  ;;  %v1465_v55 = vadd.f32 %v2235_v13, %v1345_v12  ;;  %v2156_v19 = vadd.f32 %v2155_v31, %v2154_v9  ;;  %v2237_v21 = vpop.f32.mrf.mxu1 }
 0x15b   :  { %v1907_v22 = vpack.c.bf16 %v1573_v18, %v1572_v17  ;;  %v2157_v24 = vpop.f32.mrf.mxu0  ;;  %v2238_v27 = vadd.f32 %v2237_v21, %v2236_v14 }
 0x15c   :  { %v1348_v25 = vadd.f32 %v2156_v19, %v2844_v48  ;;  %v2239_v28 = vpop.f32.mrf.mxu1  ;;  %v1553_v39 = vmul.f32 0.01, %v1465_v55  ;;  %vm1532_vm6 = vcmp.gt.f32.partialorder %v1465_v55, 0.0 }
 0x15d   :  { %1945 = vst [vmem:[%s2942_s3 + $0x10] sm:$0xff] %v1907_v22   ;;  %v2158_v63 = vpop.f32.mrf.mxu0 }
 0x15e   :  { %v1468_v30 = vadd.f32 %v2238_v27, %v1348_v25  ;;  %v2159_v32 = vadd.f32 %v2158_v63, %v2157_v24  ;;  %v2240_v33 = vpop.f32.mrf.mxu1  ;;  %v1574_v41 = vsel %vm1532_vm6, %v1465_v55, %v1553_v39 }
 0x15f   :  { %v2160_v34 = vpop.f32.mrf.mxu0  ;;  %v2241_v40 = vadd.f32 %v2240_v33, %v2239_v28 }
 0x160   :  { %vm1533_vm7 = vcmp.gt.f32.partialorder %v1468_v30, 0.0  ;;  %v1554_v35 = vmul.f32 0.01, %v1468_v30  ;;  %v1353_v37 = vadd.f32 %v2159_v32, %v2847_v57  ;;  %v2242_v7 = vpop.f32.mrf.mxu1 }
 0x161   :  { %v2161_v48 = vpop.f32.mrf.mxu0 }
 0x162   :  { %v1575_v42 = vsel %vm1533_vm7, %v1468_v30, %v1554_v35  ;;  %v1473_v43 = vadd.f32 %v2241_v40, %v1353_v37  ;;  %v2162_v44 = vadd.f32 %v2161_v48, %v2160_v34  ;;  %v2243_v45 = vpop.f32.mrf.mxu1 }
 0x163   :  { %v1912_v50 = vpack.c.bf16 %v1575_v42, %v1574_v41  ;;  %v2163_v51 = vpop.f32.mrf.mxu0  ;;  %v2244_v15 = vadd.f32 %v2243_v45, %v2242_v7 }
 0x164   :  { %v1356_v52 = vadd.f32 %v2162_v44, %v2850_v2  ;;  %v2245_v53 = vpop.f32.mrf.mxu1  ;;  %v1555_v57 = vmul.f32 0.01, %v1473_v43  ;;  %vm1534_vm8 = vcmp.gt.f32.partialorder %v1473_v43, 0.0 }
 0x165   :  { %1946 = vst [vmem:[%s2942_s3 + $0x18] sm:$0xff] %v1912_v50   ;;  %v2164_v54 = vpop.f32.mrf.mxu0 }
 0x166   :  { %v1476_v56 = vadd.f32 %v2244_v15, %v1356_v52  ;;  %v2165_v58 = vadd.f32 %v2164_v54, %v2163_v51  ;;  %v2246_v60 = vpop.f32.mrf.mxu1  ;;  %v1576_v4 = vsel %vm1534_vm8, %v1473_v43, %v1555_v57 }
 0x167   :  { %v2166_v61 = vpop.f32.mrf.mxu0  ;;  %v2247_v1 = vadd.f32 %v2246_v60, %v2245_v53 }
 0x168   :  { %vm1535_vm9 = vcmp.gt.f32.partialorder %v1476_v56, 0.0  ;;  %v1556_v62 = vmul.f32 0.01, %v1476_v56  ;;  %v1361_v0 = vadd.f32 %v2165_v58, %v2853_v11  ;;  %v2248_v3 = vpop.f32.mrf.mxu1 }
 0x169   :  { %v2167_v2 = vpop.f32.mrf.mxu0 }
 0x16a   :  { %v1577_v23 = vsel %vm1535_vm9, %v1476_v56, %v1556_v62  ;;  %v1481_v46 = vadd.f32 %v2247_v1, %v1361_v0  ;;  %v2168_v6 = vadd.f32 %v2167_v2, %v2166_v61  ;;  %v2249_v8 = vpop.f32.mrf.mxu1 }
 0x16b   :  { %v1917_v9 = vpack.c.bf16 %v1577_v23, %v1576_v4  ;;  %v2169_v10 = vpop.f32.mrf.mxu0  ;;  %v2250_v13 = vadd.f32 %v2249_v8, %v2248_v3 }
 0x16c   :  { %v1364_v12 = vadd.f32 %v2168_v6, %v2856_v20  ;;  %v2251_v14 = vpop.f32.mrf.mxu1  ;;  %v1557_v11 = vmul.f32 0.01, %v1481_v46  ;;  %vm1536_vm10 = vcmp.gt.f32.partialorder %v1481_v46, 0.0 }
 0x16d   :  { %1947 = vst [vmem:[%s2942_s3 + $0x20] sm:$0xff] %v1917_v9   ;;  %v2170_v31 = vpop.f32.mrf.mxu0 }
 0x16e   :  { %v1484_v17 = vadd.f32 %v2250_v13, %v1364_v12  ;;  %v2171_v18 = vadd.f32 %v2170_v31, %v2169_v10  ;;  %v2252_v55 = vpop.f32.mrf.mxu1  ;;  %v1578_v27 = vsel %vm1536_vm10, %v1481_v46, %v1557_v11 }
 0x16f   :  { %v2172_v19 = vpop.f32.mrf.mxu0  ;;  %v2253_v24 = vadd.f32 %v2252_v55, %v2251_v14 }
 0x170   :  { %vm1537_vm11 = vcmp.gt.f32.partialorder %v1484_v17, 0.0  ;;  %v1558_v21 = vmul.f32 0.01, %v1484_v17  ;;  %v1369_v22 = vadd.f32 %v2171_v18, %v2859_v29  ;;  %v2254_v25 = vpop.f32.mrf.mxu1 }
 0x171   :  { %v2173_v20 = vpop.f32.mrf.mxu0 }
 0x172   :  { %v1579_v28 = vsel %vm1537_vm11, %v1484_v17, %v1558_v21  ;;  %v1489_v63 = vadd.f32 %v2253_v24, %v1369_v22  ;;  %v2174_v39 = vadd.f32 %v2173_v20, %v2172_v19  ;;  %v2255_v30 = vpop.f32.mrf.mxu1 }
 0x173   :  { %v1922_v32 = vpack.c.bf16 %v1579_v28, %v1578_v27  ;;  %v2175_v33 = vpop.f32.mrf.mxu0  ;;  %v2256_v35 = vadd.f32 %v2255_v30, %v2254_v25 }
 0x174   :  { %v1372_v34 = vadd.f32 %v2174_v39, %v2862_v38  ;;  %v2257_v37 = vpop.f32.mrf.mxu1  ;;  %v1559_v29 = vmul.f32 0.01, %v1489_v63  ;;  %vm1538_vm12 = vcmp.gt.f32.partialorder %v1489_v63, 0.0 }
 0x175   :  { %1948 = vst [vmem:[%s2942_s3 + $0x28] sm:$0xff] %v1922_v32   ;;  %v2176_v40 = vpop.f32.mrf.mxu0 }
 0x176   :  { %v1492_v7 = vadd.f32 %v2256_v35, %v1372_v34  ;;  %v2177_v48 = vadd.f32 %v2176_v40, %v2175_v33  ;;  %v2258_v41 = vpop.f32.mrf.mxu1  ;;  %v1580_v51 = vsel %vm1538_vm12, %v1489_v63, %v1559_v29 }
 0x177   :  { %v2178_v42 = vpop.f32.mrf.mxu0  ;;  %v2259_v45 = vadd.f32 %v2258_v41, %v2257_v37 }
 0x178   :  { %vm1539_vm13 = vcmp.gt.f32.partialorder %v1492_v7, 0.0  ;;  %v1560_v43 = vmul.f32 0.01, %v1492_v7  ;;  %v1377_v44 = vadd.f32 %v2177_v48, %v2865_v49  ;;  %v2260_v50 = vpop.f32.mrf.mxu1 }
 0x179   :  { %v2179_v38 = vpop.f32.mrf.mxu0 }
 0x17a   :  { %v1581_v52 = vsel %vm1539_vm13, %v1492_v7, %v1560_v43  ;;  %v1497_v15 = vadd.f32 %v2259_v45, %v1377_v44  ;;  %v2180_v53 = vadd.f32 %v2179_v38, %v2178_v42  ;;  %v2261_v54 = vpop.f32.mrf.mxu1 }
 0x17b   :  { %v1927_v57 = vpack.c.bf16 %v1581_v52, %v1580_v51  ;;  %v2181_v56 = vpop.f32.mrf.mxu0  ;;  %v2262_v60 = vadd.f32 %v2261_v54, %v2260_v50 }
 0x17c   :  { %v1380_v58 = vadd.f32 %v2180_v53, %v2868_v59  ;;  %v2263_v61 = vpop.f32.mrf.mxu1  ;;  %v1561_v49 = vmul.f32 0.01, %v1497_v15  ;;  %vm1540_vm14 = vcmp.gt.f32.partialorder %v1497_v15, 0.0 }
 0x17d   :  { %1949 = vst [vmem:[%s2942_s3 + $0x30] sm:$0xff] %v1927_v57   ;;  %v2182_v62 = vpop.f32.mrf.mxu0 }
 0x17e   :  { %v1500_v0 = vadd.f32 %v2262_v60, %v1380_v58  ;;  %v2183_v1 = vadd.f32 %v2182_v62, %v2181_v56  ;;  %v2264_v3 = vpop.f32.mrf.mxu1  ;;  %v1582_v8 = vsel %vm1540_vm14, %v1497_v15, %v1561_v49 }
 0x17f   :  { %v2184_v2 = vpop.f32.mrf.mxu0  ;;  %v2265_v46 = vadd.f32 %v2264_v3, %v2263_v61 }
 0x180   :  { %vm1541_vm15 = vcmp.gt.f32.partialorder %v1500_v0, 0.0  ;;  %v1562_v4 = vmul.f32 0.01, %v1500_v0  ;;  %v1385_v23 = vadd.f32 %v2183_v1, %v2871_v5  ;;  %v2266_v6 = vpop.f32.mrf.mxu1 }
 0x181   :  { %v2185_v59 = vpop.f32.mrf.mxu0 }
 0x182   :  { %v1583_v9 = vsel %vm1541_vm15, %v1500_v0, %v1562_v4  ;;  %v1505_v10 = vadd.f32 %v2265_v46, %v1385_v23  ;;  %v2186_v12 = vadd.f32 %v2185_v59, %v2184_v2  ;;  %v2267_v13 = vpop.f32.mrf.mxu1 }
 0x183   :  { %v1932_v14 = vpack.c.bf16 %v1583_v9, %v1582_v8  ;;  %v2187_v31 = vpop.f32.mrf.mxu0  ;;  %v2268_v17 = vadd.f32 %v2267_v13, %v2266_v6 }
 0x184   :  { %v1388_v11 = vadd.f32 %v2186_v12, %v2874_v16  ;;  %v2269_v18 = vpop.f32.mrf.mxu1  ;;  %v1563_v5 = vmul.f32 0.01, %v1505_v10  ;;  %vm1542_vm0 = vcmp.gt.f32.partialorder %v1505_v10, 0.0 }
 0x185   :  { %1950 = vst [vmem:[%s2942_s3 + $0x38] sm:$0xff] %v1932_v14   ;;  %v2188_v55 = vpop.f32.mrf.mxu0 }
 0x186   :  { %v1508_v19 = vadd.f32 %v2268_v17, %v1388_v11  ;;  %v2189_v21 = vadd.f32 %v2188_v55, %v2187_v31  ;;  %v2270_v22 = vpop.f32.mrf.mxu1  ;;  %v1584_v63 = vsel %vm1542_vm0, %v1505_v10, %v1563_v5 }
 0x187   :  { %v2190_v24 = vpop.f32.mrf.mxu0  ;;  %v2271_v27 = vadd.f32 %v2270_v22, %v2269_v18 }
 0x188   :  { %vm1543_vm1 = vcmp.gt.f32.partialorder %v1508_v19, 0.0  ;;  %v1564_v25 = vmul.f32 0.01, %v1508_v19  ;;  %v1393_v20 = vadd.f32 %v2189_v21, %v2877_v26  ;;  %v2272_v28 = vpop.f32.mrf.mxu1 }
 0x189   :  { %v2191_v16 = vpop.f32.mrf.mxu0 }
 0x18a   :  { %v1585_v39 = vsel %vm1543_vm1, %v1508_v19, %v1564_v25  ;;  %v1513_v30 = vadd.f32 %v2271_v27, %v1393_v20  ;;  %v2192_v32 = vadd.f32 %v2191_v16, %v2190_v24  ;;  %v2273_v33 = vpop.f32.mrf.mxu1 }
 0x18b   :  { %v1937_v34 = vpack.c.bf16 %v1585_v39, %v1584_v63  ;;  %v2193_v35 = vpop.f32.mrf.mxu0  ;;  %v2274_v40 = vadd.f32 %v2273_v33, %v2272_v28 }
 0x18c   :  { %v1396_v37 = vadd.f32 %v2192_v32, %v2880_v36  ;;  %v2275_v29 = vpop.f32.mrf.mxu1  ;;  %v1565_v26 = vmul.f32 0.01, %v1513_v30  ;;  %vm1544_vm2 = vcmp.gt.f32.partialorder %v1513_v30, 0.0 }
 0x18d   :  { %1951 = vst [vmem:[%s2942_s3 + $0x40] sm:$0xff] %v1937_v34   ;;  %v2194_v7 = vpop.f32.mrf.mxu0 }
 0x18e   :  { %v1516_v48 = vadd.f32 %v2274_v40, %v1396_v37  ;;  %v2195_v41 = vadd.f32 %v2194_v7, %v2193_v35  ;;  %v2276_v42 = vpop.f32.mrf.mxu1  ;;  %v1586_v51 = vsel %vm1544_vm2, %v1513_v30, %v1565_v26 }
 0x18f   :  { %v2196_v43 = vpop.f32.mrf.mxu0  ;;  %v2277_v50 = vadd.f32 %v2276_v42, %v2275_v29 }
 0x190   :  { %vm1545_vm3 = vcmp.gt.f32.partialorder %v1516_v48, 0.0  ;;  %v1566_v44 = vmul.f32 0.01, %v1516_v48  ;;  %v1401_v45 = vadd.f32 %v2195_v41, %v2883_v47  ;;  %v2278_v38 = vpop.f32.mrf.mxu1 }
 0x191   :  { %v2197_v36 = vpop.f32.mrf.mxu0 }
 0x192   :  { %v1587_v52 = vsel %vm1545_vm3, %v1516_v48, %v1566_v44  ;;  %v1521_v15 = vadd.f32 %v2277_v50, %v1401_v45  ;;  %v2279_v53 = vpop.f32.mrf.mxu1 }
 0x193   :  { %v1942_v54 = vpack.c.bf16 %v1587_v52, %v1586_v51 }
 0x194   :  { %vm1546_vm4 = vcmp.gt.f32.partialorder %v1521_v15, 0.0  ;;  %v1567_v57 = vmul.f32 0.01, %v1521_v15 }
 0x195   :  { %1952 = vst [vmem:[%s2942_s3 + $0x48] sm:$0xff] %v1942_v54  }
 0x196   :  { %v1588_v56 = vsel %vm1546_vm4, %v1521_v15, %v1567_v57 }
 0x197   :  { %v1893_v58 = vpack.c.bf16 %v1588_v56, %v1588_v56 }
 0x199   :  { %1694 = vst [vmem:[%s2942_s3 + $0x50] sm:$0x1] %v1893_v58 }

// kernel: rnd_forward.6
= control target key start
LH: loop header
LB: loop body
LE: loop exit
PB: predicated region body
PF: predicated region fallthrough
CT: control target
= control target key end

     0   :  { %vm2186_vm0 = vmmov 0   ;;  %s2832_s1 = inlined_call_operand.vmem [shape: bf16[1152,128], index: 1, kind: input, shape index: {}]   ;;  %s2833_s0 = inlined_call_operand.vmem [shape: bf16[98,1152], index: 0, kind: input, shape index: {}]   ;;  %s2834_s2 = inlined_call_operand.vmem [shape: f32[1,128], index: 2, kind: input, shape index: {}]   ;;  %s2835_s3 = inlined_call_operand.vmem [shape: bf16[98,128], index: 3, kind: output, shape index: {}]  }
   0x1   :  { %v2026_v0 = vld [vmem:[%s2832_s1 + $0x78] sm:$0xff]   ;;  %v2028_v2 = vld [vmem:[%s2832_s1 + $0x70] sm:$0xff]   ;;  %v2030_v4 = vld [vmem:[%s2832_s1 + $0x68] sm:$0xff]  }
   0x2   :  { %v2027_v1 = vld [vmem:[%s2832_s1 + $0x38] sm:$0xff]   ;;  %2008 = vmatprep.subr.bf16.mxu1 %v2026_v0  ;;  %1717 = vmatprep.subr.bf16.mxu0 %v2026_v0  ;;  %v2029_v3 = vld [vmem:[%s2832_s1 + $0x30] sm:$0xff]   ;;  %v2031_v5 = vld [vmem:[%s2832_s1 + $0x28] sm:$0xff]  }
   0x3   :  { %2016 = vmatpush3.bf16.msra.mxu1 %v2027_v1  ;;  %1718 = vmatpush3.bf16.msra.mxu0 %v2027_v1  ;;  %v2032_v6 = vld [vmem:[%s2832_s1 + $0x60] sm:$0xff]   ;;  %v2034_v8 = vld [vmem:[%s2832_s1 + $0x58] sm:$0xff]   ;;  %v2036_v10 = vld [vmem:[%s2832_s1 + $0x50] sm:$0xff]  }
   0x4   :  { %2009 = vmatprep.subr.bf16.mxu1 %v2028_v2  ;;  %1719 = vmatprep.subr.bf16.mxu0 %v2028_v2  ;;  %v2033_v7 = vld [vmem:[%s2832_s1 + $0x20] sm:$0xff]   ;;  %v2035_v9 = vld [vmem:[%s2832_s1 + $0x18] sm:$0xff]   ;;  %v2037_v13 = vld [vmem:[%s2832_s1 + $0x10] sm:$0xff]  }
   0x5   :  { %v2044_v11 = vld [vmem:[%s2833_s0 + $0x124] ss:$36 sps:$4 sm:$0xff]   ;;  %v2048_v20 = vld [vmem:[%s2832_s1 + $0xf8] sm:$0xff]   ;;  %v2052_v24 = vld [vmem:[%s2832_s1 + $0xf0] sm:$0xff]  }
   0x6   :  { %v2047_v12 = vld [vmem:[%s2833_s0 + $0x4] ss:$36 sps:$4 sm:$0xff]   ;;  %1035 = vmatprep.mubr.bf16.mxu1 %v2044_v11  ;;  %v2050_v21 = vld [vmem:[%s2832_s1 + $0x178] sm:$0xff]   ;;  %v2054_v25 = vld [vmem:[%s2832_s1 + $0x170] sm:$0xff]  }
   0x7   :  { %2017 = vmatpush3.bf16.msra.mxu1 %v2029_v3  ;;  %1720 = vmatpush3.bf16.msra.mxu0 %v2029_v3  ;;  %v2038_v14 = vld [vmem:[%s2832_s1 + $0x48] sm:$0xff]   ;;  %v2040_v16 = vld [vmem:[%s2832_s1 + $0x40] sm:$0xff]   ;;  %v2049_v22 = vld [vmem:[%s2832_s1 + $0xb8] sm:$0xff]  }
   0x8   :  { %2010 = vmatprep.subr.bf16.mxu1 %v2030_v4  ;;  %1721 = vmatprep.subr.bf16.mxu0 %v2030_v4  ;;  %v2039_v15 = vld [vmem:[%s2832_s1 + $0x8] sm:$0xff]   ;;  %v2041_v17 = vld [vmem:[%s2832_s1] sm:$0xff]   ;;  %v2051_v23 = vld [vmem:[%s2832_s1 + $0x138] sm:$0xff]  }
   0x9   :  { %1003 = vmatprep.mubr.bf16.mxu0 %v2047_v12  ;;  %v2042_v18 = vld [vmem:[%s2833_s0 + $0x120] ss:$36 sps:$4 sm:$0xff]   ;;  %v2056_v26 = vld [vmem:[%s2833_s0 + $0x4c] ss:$36 sps:$4 sm:$0xff]   ;;  %v2070_v39 = vld [vmem:[%s2833_s0 + $0x94] ss:$36 sps:$4 sm:$0xff]  }
   0xa   :  { %v2045_v19 = vld [vmem:[%s2833_s0] ss:$36 sps:$4 sm:$0xff]   ;;  %v2053_v27 = vld [vmem:[%s2832_s1 + $0xb0] sm:$0xff]   ;;  %v2058_v30 = vld [vmem:[%s2832_s1 + $0xe8] sm:$0xff]  }
   0xb   :  { %2018 = vmatpush3.bf16.msra.mxu1 %v2031_v5  ;;  %1722 = vmatpush3.bf16.msra.mxu0 %v2031_v5  ;;  %v2062_v28 = vld [vmem:[%s2833_s0 + $0x16c] ss:$36 sps:$4 sm:$0xff]   ;;  %v2066_v36 = vld [vmem:[%s2832_s1 + $0xe0] sm:$0xff]   ;;  %v2072_v43 = vld [vmem:[%s2832_s1 + $0xd8] sm:$0xff]  }
   0xc   :  { %2011 = vmatprep.subr.bf16.mxu1 %v2032_v6  ;;  %1723 = vmatprep.subr.bf16.mxu0 %v2032_v6  ;;  %v2055_v29 = vld [vmem:[%s2832_s1 + $0x130] sm:$0xff]   ;;  %v2059_v31 = vld [vmem:[%s2833_s0 + $0x48] ss:$36 sps:$4 sm:$0xff]   ;;  %v2068_v37 = vld [vmem:[%s2832_s1 + $0x160] sm:$0xff]  }
   0xd   :  { %v2061_v32 = vld [vmem:[%s2832_s1 + $0x168] sm:$0xff]   ;;  %v2067_v38 = vld [vmem:[%s2832_s1 + $0xa0] sm:$0xff]   ;;  %v75_v40 = vld [vmem:[%s2833_s0 + $0x1b0] sm:$0x11] }
   0xe   :  { %v2060_v33 = vld [vmem:[%s2832_s1 + $0xa8] sm:$0xff]   ;;  %v2069_v41 = vld [vmem:[%s2832_s1 + $0x120] sm:$0xff]   ;;  %v1576_v42 = vcombine.high %v75_v40, %v75_v40  ;;  %v2073_v44 = vld [vmem:[%s2833_s0 + $0x90] ss:$36 sps:$4 sm:$0xff]   ;;  %v1575_v48 = vcombine.low %v75_v40, %v75_v40 }
   0xf   :  { %2019 = vmatpush3.bf16.msra.mxu1 %v2033_v7  ;;  %1724 = vmatpush3.bf16.msra.mxu0 %v2033_v7  ;;  %v2065_v34 = vld [vmem:[%s2833_s0 + $0x168] ss:$36 sps:$4 sm:$0xff]   ;;  %v2075_v45 = vld [vmem:[%s2832_s1 + $0x158] sm:$0xff]   ;;  %v2079_v49 = vld [vmem:[%s2832_s1 + $0xd0] sm:$0xff]   ;;  %v2185_v7 = vmov 0.0  }
  0x10   :  { %2012 = vmatprep.subr.bf16.mxu1 %v2034_v8  ;;  %1725 = vmatprep.subr.bf16.mxu0 %v2034_v8  ;;  %v2064_v35 = vld [vmem:[%s2832_s1 + $0x128] sm:$0xff]   ;;  %v2074_v46 = vld [vmem:[%s2832_s1 + $0x98] sm:$0xff]   ;;  %v2081_v50 = vld [vmem:[%s2832_s1 + $0x150] sm:$0xff]  }
  0x11   :  { %v2077_v47 = vld [vmem:[%s2832_s1 + $0x118] sm:$0xff]   ;;  %v2080_v51 = vld [vmem:[%s2832_s1 + $0x90] sm:$0xff]   ;;  %v2085_v54 = vld [vmem:[%s2832_s1 + $0xc8] sm:$0xff]  }
  0x12   :  { %v2083_v52 = vld [vmem:[%s2833_s0 + $0xdc] ss:$36 sps:$4 sm:$0xff]   ;;  %v2082_v53 = vld [vmem:[%s2832_s1 + $0x110] sm:$0xff]   ;;  %v2088_v56 = vld [vmem:[%s2832_s1 + $0x148] sm:$0xff]  }
  0x13   :  { %2020 = vmatpush3.bf16.msra.mxu1 %v2035_v9  ;;  %1726 = vmatpush3.bf16.msra.mxu0 %v2035_v9  ;;  %v2086_v55 = vld [vmem:[%s2833_s0 + $0xd8] ss:$36 sps:$4 sm:$0xff]   ;;  %v2087_v57 = vld [vmem:[%s2832_s1 + $0x88] sm:$0xff]   ;;  %v2090_v59 = vld [vmem:[%s2832_s1 + $0xc0] sm:$0xff]  }
  0x14   :  { %2013 = vmatprep.subr.bf16.mxu1 %v2036_v10  ;;  %1727 = vmatprep.subr.bf16.mxu0 %v2036_v10  ;;  %v2089_v58 = vld [vmem:[%s2832_s1 + $0x108] sm:$0xff]   ;;  %v2092_v60 = vld [vmem:[%s2832_s1 + $0x140] sm:$0xff]   ;;  %v2099_v63 = vld [vmem:[%s2833_s0 + $0x14] ss:$36 sps:$4 sm:$0xff]  }
  0x15   :  { %v2096_v61 = vld [vmem:[%s2833_s0 + $0xc] ss:$36 sps:$4 sm:$0xff]   ;;  %v2091_v62 = vld [vmem:[%s2832_s1 + $0x80] sm:$0xff]   ;;  %v2100_v3 = vld [vmem:[%s2832_s1 + $0x1f8] sm:$0xff]  }
  0x16   :  { %v2093_v0 = vld [vmem:[%s2832_s1 + $0x100] sm:$0xff]   ;;  %v2094_v1 = vld [vmem:[%s2833_s0 + $0x8] ss:$36 sps:$4 sm:$0xff]   ;;  %v2097_v2 = vld [vmem:[%s2833_s0 + $0x10] ss:$36 sps:$4 sm:$0xff]  }
  0x17   :  { %2021 = vmatpush3.bf16.msra.mxu1 %v2037_v13  ;;  %1728 = vmatpush3.bf16.msra.mxu0 %v2037_v13  ;;  %v2101_v4 = vld [vmem:[%s2832_s1 + $0x1b8] sm:$0xff]   ;;  %v2104_v6 = vld [vmem:[%s2832_s1 + $0x1f0] sm:$0xff]   ;;  %v2111_v11 = vld [vmem:[%s2832_s1 + $0x1e8] sm:$0xff]  }
  0x18   :  { %2014 = vmatprep.subr.bf16.mxu1 %v2038_v14  ;;  %1729 = vmatprep.subr.bf16.mxu0 %v2038_v14  ;;  %v2102_v5 = vld [vmem:[%s2833_s0 + $0x54] ss:$36 sps:$4 sm:$0xff]   ;;  %v2107_v9 = vld [vmem:[%s2833_s0 + $0x5c] ss:$36 sps:$4 sm:$0xff]  }
  0x19   :  { %v2105_v8 = vld [vmem:[%s2832_s1 + $0x238] sm:$0xff]   ;;  %v2109_v10 = vld [vmem:[%s2832_s1 + $0x1b0] sm:$0xff]  }
  0x1a   :  { %v2112_v12 = vld [vmem:[%s2832_s1 + $0x230] sm:$0xff]   ;;  %v2110_v14 = vld [vmem:[%s2833_s0 + $0x58] ss:$36 sps:$4 sm:$0xff]  }
  0x1b   :  { %2022 = vmatpush3.bf16.msra.mxu1 %v2039_v15  ;;  %1730 = vmatpush3.bf16.msra.mxu0 %v2039_v15  ;;  %v2106_v13 = vld [vmem:[%s2833_s0 + $0x50] ss:$36 sps:$4 sm:$0xff]   ;;  %v2113_v15 = vld [vmem:[%s2833_s0 + $0x9c] ss:$36 sps:$4 sm:$0xff]  }
  0x1c   :  { %2015 = vmatprep.subr.bf16.mxu1 %v2040_v16  ;;  %1731 = vmatprep.subr.bf16.mxu0 %v2040_v16  ;;  %v2115_v16 = vld [vmem:[%s2832_s1 + $0x1a8] sm:$0xff]   ;;  %v2141_v40 = vld [vmem:[%s2833_s0 + $0x174] ss:$36 sps:$4 sm:$0xff]  }
  0x1f   :  { %2023 = vmatpush3.bf16.msra.mxu1 %v2041_v17  ;;  %1732 = vmatpush3.bf16.msra.mxu0 %v2041_v17  ;;  %v2117_v17 = vld [vmem:[%s2833_s0 + $0xa4] ss:$36 sps:$4 sm:$0xff]  }
  0x20   :  { %1775 = vmatprep.subr.bf16.mxu1 %v2048_v20  ;;  %1833 = vmatprep.subr.bf16.mxu0 %v2050_v21  ;;  %v2122_v20 = vld [vmem:[%s2832_s1 + $0x1a0] sm:$0xff]   ;;  %v2116_v21 = vld [vmem:[%s2833_s0 + $0x98] ss:$36 sps:$4 sm:$0xff]  }
  0x22   :  { %1036 = vmatmul.mubr.bf16.vlgmr.msra.gmra.mxu1 %v2042_v18  ;;  %1004 = vmatmul.mubr.bf16.vlgmr.msra.gmra.mxu0 %v2045_v19  ;;  %v2120_v18 = vld [vmem:[%s2832_s1 + $0x1e0] sm:$0xff]   ;;  %v2121_v19 = vld [vmem:[%s2832_s1 + $0x228] sm:$0xff]  }
  0x23   :  { %1776 = vmatpush3.bf16.msra.mxu1 %v2049_v22  ;;  %1834 = vmatpush3.bf16.msra.mxu0 %v2051_v23  ;;  %v2119_v22 = vld [vmem:[%s2833_s0 + $0xa0] ss:$36 sps:$4 sm:$0xff]  }
  0x24   :  { %1777 = vmatprep.subr.bf16.mxu1 %v2052_v24  ;;  %1835 = vmatprep.subr.bf16.mxu0 %v2054_v25  ;;  %v2123_v23 = vld [vmem:[%s2833_s0 + $0xe4] ss:$36 sps:$4 sm:$0xff]   ;;  %v2126_v24 = vld [vmem:[%s2833_s0 + $0xec] ss:$36 sps:$4 sm:$0xff]   ;;  %v2129_v25 = vld [vmem:[%s2832_s1 + $0x1d8] sm:$0xff]  }
  0x25   :  { %1011 = vmatprep.mubr.bf16.mxu0 %v2056_v26  ;;  %1043 = vmatprep.mubr.bf16.mxu1 %v2062_v28  ;;  %v2130_v26 = vld [vmem:[%s2832_s1 + $0x220] sm:$0xff]  }
  0x26   :  { %v2125_v28 = vld [vmem:[%s2833_s0 + $0xe0] ss:$36 sps:$4 sm:$0xff]  }
  0x27   :  { %1778 = vmatpush3.bf16.msra.mxu1 %v2053_v27  ;;  %1836 = vmatpush3.bf16.msra.mxu0 %v2055_v29  ;;  %v2131_v27 = vld [vmem:[%s2832_s1 + $0x198] sm:$0xff]   ;;  %v2128_v29 = vld [vmem:[%s2833_s0 + $0xe8] ss:$36 sps:$4 sm:$0xff]  }
  0x28   :  { %1779 = vmatprep.subr.bf16.mxu1 %v2058_v30  ;;  %1837 = vmatprep.subr.bf16.mxu0 %v2061_v32  ;;  %v2138_v30 = vld [vmem:[%s2832_s1 + $0x1d0] sm:$0xff]  }
  0x29   :  { %v2140_v32 = vld [vmem:[%s2832_s1 + $0x190] sm:$0xff]  }
  0x2a   :  { %1012 = vmatmul.mubr.bf16.gmra.mxu0 %v2059_v31  ;;  %1044 = vmatmul.mubr.bf16.gmra.mxu1 %v2065_v34  ;;  %v2139_v31 = vld [vmem:[%s2832_s1 + $0x218] sm:$0xff]  }
  0x2b   :  { %1780 = vmatpush3.bf16.msra.mxu1 %v2060_v33  ;;  %1838 = vmatpush3.bf16.msra.mxu0 %v2064_v35  ;;  %v2132_v33 = vld [vmem:[%s2833_s0 + $0x12c] ss:$36 sps:$4 sm:$0xff]   ;;  %v2135_v34 = vld [vmem:[%s2833_s0 + $0x134] ss:$36 sps:$4 sm:$0xff]  }
  0x2c   :  { %1781 = vmatprep.subr.bf16.mxu1 %v2066_v36  ;;  %1839 = vmatprep.subr.bf16.mxu0 %v2068_v37  ;;  %v2147_v35 = vld [vmem:[%s2832_s1 + $0x1c8] sm:$0xff]   ;;  %v2148_v36 = vld [vmem:[%s2832_s1 + $0x210] sm:$0xff]  }
  0x2d   :  { %1019 = vmatprep.mubr.bf16.mxu0 %v2070_v39  ;;  %1051 = vmatprep.mubr.bf16.mxu1 %v1576_v42  ;;  %v2134_v37 = vld [vmem:[%s2833_s0 + $0x128] ss:$36 sps:$4 sm:$0xff]  }
  0x2e   :  { %v2149_v39 = vld [vmem:[%s2832_s1 + $0x188] sm:$0xff]  }
  0x2f   :  { %1782 = vmatpush3.bf16.msra.mxu1 %v2067_v38  ;;  %1840 = vmatpush3.bf16.msra.mxu0 %v2069_v41  ;;  %v2137_v38 = vld [vmem:[%s2833_s0 + $0x130] ss:$36 sps:$4 sm:$0xff]   ;;  %v2154_v41 = vld [vmem:[%s2832_s1 + $0x1c0] sm:$0xff]   ;;  %v2155_v42 = vld [vmem:[%s2832_s1 + $0x208] sm:$0xff]  }
  0x30   :  { %1783 = vmatprep.subr.bf16.mxu1 %v2072_v43  ;;  %1841 = vmatprep.subr.bf16.mxu0 %v2075_v45  ;;  %v2144_v43 = vld [vmem:[%s2833_s0 + $0x17c] ss:$36 sps:$4 sm:$0xff]  }
  0x31   :  { %v2157_v45 = vld [vmem:[%s2832_s1 + $0x200] sm:$0xff]  }
  0x32   :  { %1020 = vmatmul.mubr.bf16.gmra.mxu0 %v2073_v44  ;;  %1052 = vmatmul.mubr.bf16.gmra.mxu1 %v1575_v48  ;;  %v2156_v44 = vld [vmem:[%s2832_s1 + $0x180] sm:$0xff]   ;;  %v2143_v48 = vld [vmem:[%s2833_s0 + $0x170] ss:$36 sps:$4 sm:$0xff]  }
  0x33   :  { %1784 = vmatpush3.bf16.msra.mxu1 %v2074_v46  ;;  %1842 = vmatpush3.bf16.msra.mxu0 %v2077_v47  ;;  %v76_v46 = vld [vmem:[%s2833_s0 + $0x1b8] sm:$0x11]  ;;  %v77_v47 = vld [vmem:[%s2833_s0 + $0x1c0] sm:$0x11] }
  0x34   :  { %1785 = vmatprep.subr.bf16.mxu1 %v2079_v49  ;;  %1843 = vmatprep.subr.bf16.mxu0 %v2081_v50  ;;  %v2146_v49 = vld [vmem:[%s2833_s0 + $0x178] ss:$36 sps:$4 sm:$0xff]   ;;  %v1578_v50 = vcombine.high %v76_v46, %v76_v46 }
  0x35   :  { %1027 = vmatprep.mubr.bf16.mxu0 %v2083_v52  ;;  %1091 = vmatprep.mubr.bf16.mxu1 %v2096_v61  ;;  %v1577_v52 = vcombine.low %v76_v46, %v76_v46  ;;  %v2168_v61 = vld [vmem:[%s2833_s0 + $0xa8] ss:$36 sps:$4 sm:$0xff]  }
  0x37   :  { %1786 = vmatpush3.bf16.msra.mxu1 %v2080_v51  ;;  %1844 = vmatpush3.bf16.msra.mxu0 %v2082_v53  ;;  %v1580_v51 = vcombine.high %v77_v47, %v77_v47  ;;  %v1579_v53 = vcombine.low %v77_v47, %v77_v47 }
  0x38   :  { %1787 = vmatprep.subr.bf16.mxu1 %v2085_v54  ;;  %1845 = vmatprep.subr.bf16.mxu0 %v2088_v56  ;;  %v2160_v54 = vld [vmem:[%s2833_s0 + $0x1c] ss:$36 sps:$4 sm:$0xff]  }
  0x39   :  { %v2161_v56 = vld [vmem:[%s2833_s0 + $0x20] ss:$36 sps:$4 sm:$0xff]  }
  0x3a   :  { %1028 = vmatmul.mubr.bf16.gmra.mxu0 %v2086_v55  ;;  %v2158_v55 = vld [vmem:[%s2833_s0 + $0x18] ss:$36 sps:$4 sm:$0xff]  }
  0x3b   :  { %1788 = vmatpush3.bf16.msra.mxu1 %v2087_v57  ;;  %1846 = vmatpush3.bf16.msra.mxu0 %v2089_v58  ;;  %v2162_v57 = vld [vmem:[%s2833_s0 + $0x64] ss:$36 sps:$4 sm:$0xff]  }
  0x3c   :  { %1789 = vmatprep.subr.bf16.mxu1 %v2090_v59  ;;  %1847 = vmatprep.subr.bf16.mxu0 %v2092_v60  ;;  %v2164_v58 = vld [vmem:[%s2833_s0 + $0x60] ss:$36 sps:$4 sm:$0xff]   ;;  %v2165_v59 = vld [vmem:[%s2833_s0 + $0x68] ss:$36 sps:$4 sm:$0xff]  }
  0x3d   :  { %1179 = vmatprep.mubr.bf16.mxu0 %v2099_v63  ;;  %v2166_v60 = vld [vmem:[%s2833_s0 + $0xac] ss:$36 sps:$4 sm:$0xff]   ;;  %v2170_v63 = vld [vmem:[%s2833_s0 + $0xf4] ss:$36 sps:$4 sm:$0xff]  }
  0x3f   :  { %1790 = vmatpush3.bf16.msra.mxu1 %v2091_v62  ;;  %1848 = vmatpush3.bf16.msra.mxu0 %v2093_v0  ;;  %v2169_v62 = vld [vmem:[%s2833_s0 + $0xb0] ss:$36 sps:$4 sm:$0xff]  }
  0x40   :  { %1891 = vmatprep.subr.bf16.mxu1 %v2100_v3  ;;  %1964 = vmatprep.subr.bf16.mxu0 %v2185_v7  ;;  %v2172_v0 = vld [vmem:[%s2833_s0 + $0xf0] ss:$36 sps:$4 sm:$0xff]   ;;  %v2176_v3 = vld [vmem:[%s2833_s0 + $0x138] ss:$36 sps:$4 sm:$0xff]  }
  0x42   :  { %1092 = vmatmul.mubr.bf16.vlgmr.msra.gmra.mxu1 %v2094_v1  ;;  %1180 = vmatmul.mubr.bf16.vlgmr.msra.gmra.mxu0 %v2097_v2  ;;  %v2173_v1 = vld [vmem:[%s2833_s0 + $0xf8] ss:$36 sps:$4 sm:$0xff]  }
  0x43   :  { %1892 = vmatpush3.bf16.msra.mxu1 %v2101_v4  ;;  %1099 = vmatprep.mubr.bf16.mxu1 %v2102_v5  ;;  %v2174_v2 = vld [vmem:[%s2833_s0 + $0x13c] ss:$36 sps:$4 sm:$0xff]   ;;  %v2178_v5 = vld [vmem:[%s2833_s0 + $0x184] ss:$36 sps:$4 sm:$0xff]  }
  0x44   :  { %1893 = vmatprep.subr.bf16.mxu1 %v2104_v6  ;;  %1965 = vmatpush3.bf16.msra.mxu0 %v2105_v8  ;;  %v2177_v4 = vld [vmem:[%s2833_s0 + $0x140] ss:$36 sps:$4 sm:$0xff]   ;;  %v78_v6 = vld [vmem:[%s2833_s0 + $0x1c8] sm:$0x11] }
  0x45   :  { %1187 = vmatprep.mubr.bf16.mxu0 %v2107_v9  ;;  %1966 = vmatprep.subr.bf16.mxu0 %v2185_v7  ;;  %v2180_v8 = vld [vmem:[%s2833_s0 + $0x180] ss:$36 sps:$4 sm:$0xff]   ;;  %v2181_v9 = vld [vmem:[%s2833_s0 + $0x188] ss:$36 sps:$4 sm:$0xff]  }
  0x47   :  { %1894 = vmatpush3.bf16.msra.mxu1 %v2109_v10  ;;  %v1582_v10 = vcombine.high %v78_v6, %v78_v6 }
  0x48   :  { %1895 = vmatprep.subr.bf16.mxu1 %v2111_v11  ;;  %1967 = vmatpush3.bf16.msra.mxu0 %v2112_v12  ;;  %v1581_v11 = vcombine.low %v78_v6, %v78_v6  ;;  %v2184_v12 = vld [vmem:[%s2833_s0 + $0x1d0] ss:$0 sps:$4 sm:$0x11]  }
  0x49   :  { %1968 = vmatprep.subr.bf16.mxu0 %v2185_v7 }
  0x4a   :  { %1100 = vmatmul.mubr.bf16.gmra.mxu1 %v2106_v13  ;;  %1188 = vmatmul.mubr.bf16.gmra.mxu0 %v2110_v14 }
  0x4b   :  { %1107 = vmatprep.mubr.bf16.mxu1 %v2113_v15  ;;  %1896 = vmatpush3.bf16.msra.mxu1 %v2115_v16 }
  0x4c   :  { %1195 = vmatprep.mubr.bf16.mxu0 %v2117_v17  ;;  %1897 = vmatprep.subr.bf16.mxu1 %v2120_v18 }
  0x4d   :  { %1969 = vmatpush3.bf16.msra.mxu0 %v2121_v19 }
  0x4e   :  { %1970 = vmatprep.subr.bf16.mxu0 %v2185_v7 }
  0x4f   :  { %1898 = vmatpush3.bf16.msra.mxu1 %v2122_v20 }
  0x50   :  { %1899 = vmatprep.subr.bf16.mxu1 %v2129_v25 }
  0x51   :  { %1971 = vmatpush3.bf16.msra.mxu0 %v2130_v26 }
  0x52   :  { %1108 = vmatmul.mubr.bf16.gmra.mxu1 %v2116_v21  ;;  %1196 = vmatmul.mubr.bf16.gmra.mxu0 %v2119_v22 }
  0x53   :  { %1115 = vmatprep.mubr.bf16.mxu1 %v2123_v23  ;;  %1203 = vmatprep.mubr.bf16.mxu0 %v2126_v24 }
  0x54   :  { %1900 = vmatpush3.bf16.msra.mxu1 %v2131_v27  ;;  %1972 = vmatprep.subr.bf16.mxu0 %v2185_v7 }
  0x55   :  { %1901 = vmatprep.subr.bf16.mxu1 %v2138_v30  ;;  %1973 = vmatpush3.bf16.msra.mxu0 %v2139_v31 }
  0x56   :  { %1974 = vmatprep.subr.bf16.mxu0 %v2185_v7 }
  0x58   :  { %1902 = vmatpush3.bf16.msra.mxu1 %v2140_v32 }
  0x59   :  { %1903 = vmatprep.subr.bf16.mxu1 %v2147_v35  ;;  %1975 = vmatpush3.bf16.msra.mxu0 %v2148_v36 }
  0x5a   :  { %1116 = vmatmul.mubr.bf16.gmra.mxu1 %v2125_v28  ;;  %1204 = vmatmul.mubr.bf16.gmra.mxu0 %v2128_v29 }
  0x5b   :  { %1123 = vmatprep.mubr.bf16.mxu1 %v2132_v33  ;;  %1211 = vmatprep.mubr.bf16.mxu0 %v2135_v34 }
  0x5c   :  { %1904 = vmatpush3.bf16.msra.mxu1 %v2149_v39  ;;  %1976 = vmatprep.subr.bf16.mxu0 %v2185_v7 }
  0x5d   :  { %1905 = vmatprep.subr.bf16.mxu1 %v2154_v41  ;;  %1977 = vmatpush3.bf16.msra.mxu0 %v2155_v42 }
  0x5e   :  { %1978 = vmatprep.subr.bf16.mxu0 %v2185_v7 }
  0x60   :  { %1906 = vmatpush3.bf16.msra.mxu1 %v2156_v44 }
  0x61   :  { %1979 = vmatpush3.bf16.msra.mxu0 %v2157_v45 }
  0x62   :  { %1124 = vmatmul.mubr.bf16.gmra.mxu1 %v2134_v37  ;;  %1212 = vmatmul.mubr.bf16.gmra.mxu0 %v2137_v38 }
  0x63   :  { %1131 = vmatprep.mubr.bf16.mxu1 %v2141_v40  ;;  %1219 = vmatprep.mubr.bf16.mxu0 %v2144_v43 }
  0x6a   :  { %1132 = vmatmul.mubr.bf16.gmra.mxu1 %v2143_v48  ;;  %1220 = vmatmul.mubr.bf16.gmra.mxu0 %v2146_v49 }
  0x6b   :  { %1139 = vmatprep.mubr.bf16.mxu1 %v1578_v50  ;;  %1227 = vmatprep.mubr.bf16.mxu0 %v1580_v51 }
  0x72   :  { %1140 = vmatmul.mubr.bf16.gmra.mxu1 %v1577_v52  ;;  %1228 = vmatmul.mubr.bf16.gmra.mxu0 %v1579_v53 }
  0x73   :  { %1267 = vmatprep.mubr.bf16.mxu1 %v2160_v54  ;;  %1980 = vmatprep.mubr.msk.bf16.mxu0 %vm2186_vm0, %v2185_v7 }
  0x7a   :  { %1268 = vmatmul.mubr.bf16.vlgmr.msra.gmra.mxu1 %v2158_v55  ;;  %1981 = vmatmul.mubr.bf16.vlgmr.msra.gmra.mxu0 %v2161_v56 }
  0x7b   :  { %1275 = vmatprep.mubr.bf16.mxu1 %v2162_v57  ;;  %1984 = vmatprep.mubr.msk.bf16.mxu0 %vm2186_vm0, %v2185_v7 }
  0x82   :  { %1276 = vmatmul.mubr.bf16.gmra.mxu1 %v2164_v58  ;;  %1985 = vmatmul.mubr.bf16.gmra.mxu0 %v2165_v59 }
  0x83   :  { %1283 = vmatprep.mubr.bf16.mxu1 %v2166_v60  ;;  %1988 = vmatprep.mubr.msk.bf16.mxu0 %vm2186_vm0, %v2185_v7 }
  0x8a   :  { %1284 = vmatmul.mubr.bf16.gmra.mxu1 %v2168_v61  ;;  %1989 = vmatmul.mubr.bf16.gmra.mxu0 %v2169_v62 }
  0x8b   :  { %1291 = vmatprep.mubr.bf16.mxu1 %v2170_v63  ;;  %1992 = vmatprep.mubr.msk.bf16.mxu0 %vm2186_vm0, %v2185_v7 }
  0x92   :  { %1292 = vmatmul.mubr.bf16.gmra.mxu1 %v2172_v0  ;;  %1993 = vmatmul.mubr.bf16.gmra.mxu0 %v2173_v1 }
  0x93   :  { %1299 = vmatprep.mubr.bf16.mxu1 %v2174_v2  ;;  %1996 = vmatprep.mubr.msk.bf16.mxu0 %vm2186_vm0, %v2185_v7 }
  0x9a   :  { %1300 = vmatmul.mubr.bf16.gmra.mxu1 %v2176_v3  ;;  %1997 = vmatmul.mubr.bf16.gmra.mxu0 %v2177_v4 }
  0x9b   :  { %1307 = vmatprep.mubr.bf16.mxu1 %v2178_v5  ;;  %2000 = vmatprep.mubr.msk.bf16.mxu0 %vm2186_vm0, %v2185_v7 }
  0xa2   :  { %1308 = vmatmul.mubr.bf16.gmra.mxu1 %v2180_v8  ;;  %2001 = vmatmul.mubr.bf16.gmra.mxu0 %v2181_v9 }
  0xa3   :  { %1315 = vmatprep.mubr.bf16.mxu1 %v1582_v10  ;;  %2004 = vmatprep.mubr.msk.bf16.mxu0 %vm2186_vm0, %v2185_v7 }
  0xaa   :  { %1316 = vmatmul.mubr.bf16.gmra.mxu1 %v1581_v11  ;;  %2005 = vmatmul.mubr.bf16.gmra.mxu0 %v2184_v12 }
  0xe2   :  { %v1757_v13 = vpop.f32.mrf.mxu1  ;;  %v1733_v14 = vpop.f32.mrf.mxu0 }
  0xe4   :  { %v1758_v15 = vpop.f32.mrf.mxu1  ;;  %v1734_v16 = vpop.f32.mrf.mxu0 }
  0xe5   :  { %v2622_v17 = vadd.f32 %v1758_v15, %v1757_v13  ;;  %v2624_v18 = vadd.f32 %v1734_v16, %v1733_v14 }
  0xe6   :  { %v1760_v19 = vpop.f32.mrf.mxu1  ;;  %v1736_v20 = vpop.f32.mrf.mxu0 }
  0xe8   :  { %v1761_v21 = vpop.f32.mrf.mxu1  ;;  %v1737_v22 = vpop.f32.mrf.mxu0 }
  0xe9   :  { %v2626_v7 = vadd.f32 %v1761_v21, %v1760_v19  ;;  %v2628_v23 = vadd.f32 %v1737_v22, %v1736_v20 }
  0xea   :  { %v1739_v24 = vpop.f32.mrf.mxu0  ;;  %v1763_v25 = vpop.f32.mrf.mxu1 }
  0xec   :  { %v1740_v26 = vpop.f32.mrf.mxu0  ;;  %v1764_v27 = vpop.f32.mrf.mxu1 }
  0xed   :  { %v2630_v28 = vadd.f32 %v1740_v26, %v1739_v24  ;;  %v2632_v29 = vadd.f32 %v1764_v27, %v1763_v25 }
  0xee   :  { %v1742_v30 = vpop.f32.mrf.mxu0  ;;  %v1766_v31 = vpop.f32.mrf.mxu1 }
  0xef   :  { %2836 = vst [vmem:[#allocation2_spill] sm:$0xff] %v2632_v29 }
  0xf0   :  { %v1743_v32 = vpop.f32.mrf.mxu0  ;;  %v1767_v33 = vpop.f32.mrf.mxu1 }
  0xf1   :  { %v2634_v34 = vadd.f32 %v1743_v32, %v1742_v30  ;;  %v2636_v35 = vadd.f32 %v1767_v33, %v1766_v31 }
  0xf2   :  { %v1745_v36 = vpop.f32.mrf.mxu0  ;;  %v1769_v37 = vpop.f32.mrf.mxu1 }
  0xf3   :  { %2837 = vst [vmem:[#allocation3_spill] sm:$0xff] %v2636_v35 }
  0xf4   :  { %v1746_v38 = vpop.f32.mrf.mxu0  ;;  %v1770_v39 = vpop.f32.mrf.mxu1 }
  0xf5   :  { %v2638_v40 = vadd.f32 %v1746_v38, %v1745_v36  ;;  %v2640_v41 = vadd.f32 %v1770_v39, %v1769_v37 }
  0xf6   :  { %v1748_v42 = vpop.f32.mrf.mxu0  ;;  %v1772_v43 = vpop.f32.mrf.mxu1 }
  0xf7   :  { %2838 = vst [vmem:[#allocation4_spill] sm:$0xff] %v2640_v41 }
  0xf8   :  { %v1749_v44 = vpop.f32.mrf.mxu0  ;;  %v1773_v45 = vpop.f32.mrf.mxu1 }
  0xf9   :  { %v2642_v46 = vadd.f32 %v1749_v44, %v1748_v42 }
  0xfa   :  { %v1751_v47 = vpop.f32.mrf.mxu0 }
  0xfc   :  { %v1752_v48 = vpop.f32.mrf.mxu0 }
  0xfd   :  { %v2644_v49 = vadd.f32 %v1752_v48, %v1751_v47 }
  0xfe   :  { %v1754_v50 = vpop.f32.mrf.mxu0 }
 0x100   :  { %v1755_v51 = vpop.f32.mrf.mxu0 }
 0x101   :  { %v2646_v52 = vadd.f32 %v1755_v51, %v1754_v50 }
 0x102   :  { %v1791_v53 = vpop.f32.mrf.mxu1  ;;  %v1849_v54 = vpop.f32.mrf.mxu0 }
 0x104   :  { %v1792_v55 = vpop.f32.mrf.mxu1  ;;  %v1850_v56 = vpop.f32.mrf.mxu0 }
 0x105   :  { %v1793_v35 = vadd.f32 %v1792_v55, %v1791_v53 }
 0x106   :  { %v1794_v57 = vpop.f32.mrf.mxu1  ;;  %v2648_v58 = vpop.f32.mrf.mxu0 }
 0x108   :  { %v1795_v59 = vpop.f32.mrf.mxu1  ;;  %v2650_v60 = vpop.f32.mrf.mxu0 }
 0x10a   :  { %v1797_v61 = vpop.f32.mrf.mxu1  ;;  %v2652_v62 = vpop.f32.mrf.mxu0 }
 0x10c   :  { %v1798_v63 = vpop.f32.mrf.mxu1  ;;  %v2654_v0 = vpop.f32.mrf.mxu0 }
 0x10e   :  { %v2656_v1 = vpop.f32.mrf.mxu1  ;;  %v2658_v2 = vpop.f32.mrf.mxu0 }
 0x110   :  { %v2660_v3 = vpop.f32.mrf.mxu1  ;;  %v2662_v4 = vpop.f32.mrf.mxu0 }
 0x112   :  { %v2664_v5 = vpop.f32.mrf.mxu1  ;;  %v2666_v6 = vpop.f32.mrf.mxu0 }
 0x114   :  { %v2668_v8 = vpop.f32.mrf.mxu1  ;;  %v2670_v9 = vpop.f32.mrf.mxu0 }
 0x116   :  { %v2672_v10 = vpop.f32.mrf.mxu1  ;;  %v2674_v11 = vpop.f32.mrf.mxu0 }
 0x118   :  { %v2676_v12 = vpop.f32.mrf.mxu1  ;;  %v2678_v13 = vpop.f32.mrf.mxu0 }
 0x11a   :  { %v2680_v14 = vpop.f32.mrf.mxu1  ;;  %v2682_v15 = vpop.f32.mrf.mxu0 }
 0x11c   :  { %v2684_v16 = vpop.f32.mrf.mxu1  ;;  %v2686_v19 = vpop.f32.mrf.mxu0 }
 0x11e   :  { %v2688_v20 = vpop.f32.mrf.mxu1  ;;  %v2690_v21 = vpop.f32.mrf.mxu0 }
 0x120   :  { %v2692_v22 = vpop.f32.mrf.mxu1  ;;  %v2694_v24 = vpop.f32.mrf.mxu0 }
 0x122   :  { %v2696_v25 = vpop.f32.mrf.mxu1  ;;  %v2698_v26 = vpop.f32.mrf.mxu0 }
 0x124   :  { %v2700_v27 = vpop.f32.mrf.mxu1  ;;  %v2702_v30 = vpop.f32.mrf.mxu0 }
 0x126   :  { %v2704_v31 = vpop.f32.mrf.mxu1  ;;  %v2706_v32 = vpop.f32.mrf.mxu0 }
 0x127   :  { %2839 = vst [vmem:[#allocation5_spill] sm:$0xff] %v2706_v32 }
 0x128   :  { %v2708_v33 = vpop.f32.mrf.mxu1  ;;  %v2710_v36 = vpop.f32.mrf.mxu0 }
 0x129   :  { %2840 = vst [vmem:[#allocation6_spill] sm:$0xff] %v2710_v36 }
 0x12a   :  { %v2712_v37 = vpop.f32.mrf.mxu1  ;;  %v2714_v38 = vpop.f32.mrf.mxu0 }
 0x12b   :  { %2841 = vst [vmem:[#allocation7_spill] sm:$0xff] %v2712_v37  ;;  %2842 = vst [vmem:[#allocation8_spill] sm:$0xff] %v2714_v38  ;;  %v1799_v37 = vadd.f32 %v1798_v63, %v1797_v61 }
 0x12c   :  { %v2716_v39 = vpop.f32.mrf.mxu1  ;;  %v2718_v42 = vpop.f32.mrf.mxu0 }
 0x12d   :  { %2843 = vst [vmem:[#allocation9_spill] sm:$0xff] %v2716_v39  ;;  %2844 = vst [vmem:[#allocation10_spill] sm:$0xff] %v2718_v42  ;;  %v2739_v42 = vld [vmem:[%s2834_s2] ss:$0 sm:$0xff] }
 0x12e   :  { %v2720_v43 = vpop.f32.mrf.mxu1  ;;  %v2722_v44 = vpop.f32.mrf.mxu0 }
 0x12f   :  { %2845 = vst [vmem:[#allocation11_spill] sm:$0xff] %v2720_v43  ;;  %2846 = vst [vmem:[#allocation12_spill] sm:$0xff] %v2722_v44 }
 0x130   :  { %v2724_v45 = vpop.f32.mrf.mxu1  ;;  %v2726_v47 = vpop.f32.mrf.mxu0 }
 0x131   :  { %2847 = vst [vmem:[#allocation13_spill] sm:$0xff] %v2724_v45  ;;  %2848 = vst [vmem:[#allocation14_spill] sm:$0xff] %v2726_v47  ;;  %v1006_v45 = vadd.f32 %v2624_v18, %v2739_v42  ;;  %v1796_v47 = vadd.f32 %v1795_v59, %v1794_v57 }
 0x132   :  { %v2728_v48 = vpop.f32.mrf.mxu1  ;;  %v2730_v50 = vpop.f32.mrf.mxu0 }
 0x133   :  { %2849 = vst [vmem:[#allocation15_spill] sm:$0xff] %v2728_v48  ;;  %2850 = vst [vmem:[#allocation16_spill] sm:$0xff] %v2730_v50  ;;  %v1094_v36 = vadd.f32 %v1793_v35, %v1006_v45  ;;  %v1851_v50 = vadd.f32 %v1850_v56, %v1849_v54  ;;  %v1014_v35 = vadd.f32 %v2630_v28, %v2739_v42 }
 0x134   :  { %v2732_v51 = vpop.f32.mrf.mxu1  ;;  %v2734_v41 = vpop.f32.mrf.mxu0 }
 0x135   :  { %2851 = vst [vmem:[#allocation17_spill] sm:$0xff] %v2732_v51  ;;  %2852 = vst [vmem:[#allocation18_spill] sm:$0xff] %v2734_v41  ;;  %v1009_v51 = vadd.f32 %v2628_v23, %v2739_v42  ;;  %v1182_v39 = vadd.f32 %v1851_v50, %v1094_v36  ;;  %v1802_v23 = vadd.f32 %v2660_v3, %v2656_v1 }
 0x136   :  { %v1830_v43 = vpop.f32.mrf.mxu1  ;;  %v1888_v44 = vpop.f32.mrf.mxu0  ;;  %v1102_v45 = vadd.f32 %v1799_v37, %v1014_v35  ;;  %v1805_v36 = vadd.f32 %v2668_v8, %v2664_v5  ;;  %v1863_v8 = vadd.f32 %v2670_v9, %v2666_v6  ;;  %v1811_v6 = vadd.f32 %v2684_v16, %v2680_v14 }
 0x137   :  { %v1097_v55 = vadd.f32 %v1796_v47, %v1009_v51  ;;  %v1854_v44 = vadd.f32 %v2650_v60, %v2648_v58  ;;  %v1017_v58 = vadd.f32 %v2634_v34, %v2739_v42 }
 0x138   :  { %v1831_v38 = vpop.f32.mrf.mxu1  ;;  %v1889_v48 = vpop.f32.mrf.mxu0 }
 0x139   :  { %v1185_v56 = vadd.f32 %v1854_v44, %v1097_v55  ;;  %v1105_v28 = vadd.f32 %v1802_v23, %v1017_v58 }
 0x13a   :  { %v1907_v41 = vpop.f32.mrf.mxu1  ;;  %v1357_v53 = vpop.f32.mrf.mxu0 }
 0x13c   :  { %v1908_v32 = vpop.f32.mrf.mxu1  ;;  %v1982_v29 = vpop.f32.mrf.mxu0 }
 0x13d   :  { %v1909_v43 = vadd.f32 %v1908_v32, %v1907_v41  ;;  %v1857_v29 = vadd.f32 %v2654_v0, %v2652_v62  ;;  %v1022_v62 = vadd.f32 %v2638_v40, %v2739_v42  ;;  %v1860_v0 = vadd.f32 %v2662_v4, %v2658_v2 }
 0x13e   :  { %v1910_v18 = vpop.f32.mrf.mxu1  ;;  %v1360_v57 = vpop.f32.mrf.mxu0  ;;  %v1025_v4 = vadd.f32 %v2642_v46, %v2739_v42  ;;  %v1030_v46 = vadd.f32 %v2644_v49, %v2739_v42 }
 0x13f   :  { %v1270_v54 = vadd.f32 %v1909_v43, %v1182_v39  ;;  %v1190_v3 = vadd.f32 %v1857_v29, %v1102_v45  ;;  %v1193_v55 = vadd.f32 %v1860_v0, %v1105_v28  ;;  %v1110_v5 = vadd.f32 %v1805_v36, %v1022_v62 }
 0x140   :  { %v1911_v59 = vpop.f32.mrf.mxu1  ;;  %v1983_v38 = vpop.f32.mrf.mxu0  ;;  %v1808_v43 = vadd.f32 %v2676_v12, %v2672_v10  ;;  %v1869_v28 = vadd.f32 %v2686_v19, %v2682_v15  ;;  %v1814_v36 = vadd.f32 %v2692_v22, %v2688_v20  ;;  %v1817_v15 = vadd.f32 %v2700_v27, %v2696_v25 }
 0x141   :  { %v1358_v41 = vadd.f32 %v1357_v53, %v1270_v54  ;;  %v1912_v61 = vadd.f32 %v1911_v59, %v1910_v18  ;;  %v1198_v12 = vadd.f32 %v1863_v8, %v1110_v5 }
 0x142   :  { %v1913_v60 = vpop.f32.mrf.mxu1  ;;  %v1365_v63 = vpop.f32.mrf.mxu0  ;;  %v1113_v38 = vadd.f32 %v1808_v43, %v1025_v4 }
 0x143   :  { %v1273_v32 = vadd.f32 %v1912_v61, %v1185_v56  ;;  %v1424_v47 = vmul.f32 0.01, %v1358_v41  ;;  %vm1411_vm1 = vcmp.gt.f32.partialorder %v1358_v41, 0.0  ;;  %v1866_v61 = vadd.f32 %v2678_v13, %v2674_v11 }
 0x144   :  { %v1914_v39 = vpop.f32.mrf.mxu1  ;;  %v1986_v1 = vpop.f32.mrf.mxu0  ;;  %v1033_v13 = vadd.f32 %v2646_v52, %v2739_v42  ;;  %v1038_v52 = vadd.f32 %v2622_v17, %v2739_v42 }
 0x145   :  { %v1361_v37 = vadd.f32 %v1360_v57, %v1273_v32  ;;  %v1915_v48 = vadd.f32 %v1914_v39, %v1913_v60  ;;  %v1437_v40 = vsel %vm1411_vm1, %v1358_v41, %v1424_v47  ;;  %v1118_v32 = vadd.f32 %v1811_v6, %v1030_v46  ;;  %v2853_v6 = vld [vmem:[#allocation7_spill] sm:$0xff]  ;;  %v2857_v46 = vld [vmem:[#allocation6_spill] sm:$0xff] }
 0x146   :  { %v1916_v34 = vpop.f32.mrf.mxu1  ;;  %v1368_v50 = vpop.f32.mrf.mxu0 }
 0x147   :  { %vm1412_vm2 = vcmp.gt.f32.partialorder %v1361_v37, 0.0  ;;  %v1425_v51 = vmul.f32 0.01, %v1361_v37  ;;  %v1278_v53 = vadd.f32 %v1915_v48, %v1190_v3  ;;  %v1206_v22 = vadd.f32 %v1869_v28, %v1118_v32  ;;  %v2858_v28 = vld [vmem:[#allocation8_spill] sm:$0xff] }
 0x148   :  { %v1917_v44 = vpop.f32.mrf.mxu1  ;;  %v1987_v18 = vpop.f32.mrf.mxu0 }
 0x149   :  { %v1438_v57 = vsel %vm1412_vm2, %v1361_v37, %v1425_v51  ;;  %v1366_v35 = vadd.f32 %v1365_v63, %v1278_v53  ;;  %v1918_v2 = vadd.f32 %v1917_v44, %v1916_v34  ;;  %v1201_v63 = vadd.f32 %v1866_v61, %v1113_v38 }
 0x14a   :  { %v1685_v54 = vpack.c.bf16 %v1438_v57, %v1437_v40  ;;  %v1919_v56 = vpop.f32.mrf.mxu1  ;;  %v1373_v23 = vpop.f32.mrf.mxu0  ;;  %v1121_v34 = vadd.f32 %v1814_v36, %v1033_v13  ;;  %v1126_v44 = vadd.f32 %v1817_v15, %v1038_v52  ;;  %v1875_v18 = vadd.f32 %v2702_v30, %v2698_v26  ;;  %v2859_v36 = vld [vmem:[#allocation10_spill] sm:$0xff] }
 0x14b   :  { %v1281_v59 = vadd.f32 %v1918_v2, %v1193_v55  ;;  %v1426_v45 = vmul.f32 0.01, %v1366_v35  ;;  %vm1413_vm3 = vcmp.gt.f32.partialorder %v1366_v35, 0.0  ;;  %v1872_v55 = vadd.f32 %v2694_v24, %v2690_v21 }
 0x14c   :  { %1686 = vst [vmem:[%s2835_s3] sm:$0xff] %v1685_v54   ;;  %v1920_v9 = vpop.f32.mrf.mxu1  ;;  %v1990_v10 = vpop.f32.mrf.mxu0  ;;  %v1820_v40 = vadd.f32 %v2708_v33, %v2704_v31  ;;  %v1041_v24 = vadd.f32 %v2626_v7, %v2739_v42  ;;  %v1214_v33 = vadd.f32 %v1875_v18, %v1126_v44  ;;  %v2855_v7 = vld [vmem:[#allocation2_spill] sm:$0xff]  ;;  %v2865_v44 = vld [vmem:[#allocation4_spill] sm:$0xff] }
 0x14d   :  { %v1369_v29 = vadd.f32 %v1368_v50, %v1281_v59  ;;  %v1921_v41 = vadd.f32 %v1920_v9, %v1919_v56  ;;  %v1439_v49 = vsel %vm1413_vm3, %v1366_v35, %v1426_v45  ;;  %v1209_v43 = vadd.f32 %v1872_v55, %v1121_v34  ;;  %v2854_v9 = vld [vmem:[#allocation9_spill] sm:$0xff] }
 0x14e   :  { %v1922_v58 = vpop.f32.mrf.mxu1  ;;  %v1376_v60 = vpop.f32.mrf.mxu0  ;;  %v1129_v38 = vadd.f32 %v1820_v40, %v1041_v24  ;;  %v1823_v26 = vadd.f32 %v2854_v9, %v2853_v6  ;;  %v1054_v18 = vadd.f32 %v2865_v44, %v2739_v42  ;;  %v2866_v40 = vld [vmem:[#allocation12_spill] sm:$0xff] }
 0x14f   :  { %vm1414_vm4 = vcmp.gt.f32.partialorder %v1369_v29, 0.0  ;;  %v1427_v14 = vmul.f32 0.01, %v1369_v29  ;;  %v1286_v16 = vadd.f32 %v1921_v41, %v1198_v12  ;;  %v2856_v41 = vld [vmem:[#allocation5_spill] sm:$0xff] }
 0x150   :  { %v1923_v39 = vpop.f32.mrf.mxu1  ;;  %v1991_v1 = vpop.f32.mrf.mxu0  ;;  %v1878_v61 = vadd.f32 %v2857_v46, %v2856_v41 }
 0x151   :  { %v1440_v3 = vsel %vm1414_vm4, %v1369_v29, %v1427_v14  ;;  %v1374_v47 = vadd.f32 %v1373_v23, %v1286_v16  ;;  %v1924_v11 = vadd.f32 %v1923_v39, %v1922_v58  ;;  %v1046_v29 = vadd.f32 %v2855_v7, %v2739_v42  ;;  %v2860_v1 = vld [vmem:[#allocation11_spill] sm:$0xff] }
 0x152   :  { %v1690_v37 = vpack.c.bf16 %v1440_v3, %v1439_v49  ;;  %v1925_v48 = vpop.f32.mrf.mxu1  ;;  %v1381_v62 = vpop.f32.mrf.mxu0  ;;  %v1881_v39 = vadd.f32 %v2859_v36, %v2858_v28  ;;  %v2861_v49 = vld [vmem:[#allocation13_spill] sm:$0xff] }
 0x153   :  { %v1289_v0 = vadd.f32 %v1924_v11, %v1201_v63  ;;  %v1428_v50 = vmul.f32 0.01, %v1374_v47  ;;  %vm1415_vm5 = vcmp.gt.f32.partialorder %v1374_v47, 0.0  ;;  %v1217_v63 = vadd.f32 %v1878_v61, %v1129_v38 }
 0x154   :  { %1712 = vst [vmem:[%s2835_s3 + $0x8] sm:$0xff] %v1690_v37   ;;  %v1926_v19 = vpop.f32.mrf.mxu1  ;;  %v1994_v20 = vpop.f32.mrf.mxu0  ;;  %v1134_v32 = vadd.f32 %v1823_v26, %v1046_v29  ;;  %v1826_v3 = vadd.f32 %v2861_v49, %v2860_v1 }
 0x155   :  { %v1377_v51 = vadd.f32 %v1376_v60, %v1289_v0  ;;  %v1927_v53 = vadd.f32 %v1926_v19, %v1925_v48  ;;  %v1441_v17 = vsel %vm1415_vm5, %v1374_v47, %v1428_v50  ;;  %v2862_v0 = vld [vmem:[#allocation3_spill] sm:$0xff] }
 0x156   :  { %v1928_v5 = vpop.f32.mrf.mxu1  ;;  %v1384_v8 = vpop.f32.mrf.mxu0  ;;  %v1049_v34 = vadd.f32 %v2862_v0, %v2739_v42 }
 0x157   :  { %vm1416_vm6 = vcmp.gt.f32.partialorder %v1377_v51, 0.0  ;;  %v1429_v25 = vmul.f32 0.01, %v1377_v51  ;;  %v1294_v27 = vadd.f32 %v1927_v53, %v1206_v22  ;;  %v2864_v53 = vld [vmem:[#allocation17_spill] sm:$0xff] }
 0x158   :  { %v1929_v57 = vpop.f32.mrf.mxu1  ;;  %v1995_v35 = vpop.f32.mrf.mxu0  ;;  %v1137_v50 = vadd.f32 %v1826_v3, %v1049_v34 }
 0x159   :  { %v1442_v2 = vsel %vm1416_vm6, %v1377_v51, %v1429_v25  ;;  %v1382_v4 = vadd.f32 %v1381_v62, %v1294_v27  ;;  %v1930_v21 = vadd.f32 %v1929_v57, %v1928_v5  ;;  %v2863_v51 = vld [vmem:[#allocation15_spill] sm:$0xff]  ;;  %v2867_v57 = vld [vmem:[#allocation14_spill] sm:$0xff] }
 0x15a   :  { %v1695_v54 = vpack.c.bf16 %v1442_v2, %v1441_v17  ;;  %v1931_v56 = vpop.f32.mrf.mxu1  ;;  %v1389_v23 = vpop.f32.mrf.mxu0  ;;  %v1829_v52 = vadd.f32 %v2864_v53, %v2863_v51  ;;  %v1884_v35 = vadd.f32 %v2867_v57, %v2866_v40 }
 0x15b   :  { %v1297_v59 = vadd.f32 %v1930_v21, %v1209_v43  ;;  %v1430_v10 = vmul.f32 0.01, %v1382_v4  ;;  %vm1417_vm7 = vcmp.gt.f32.partialorder %v1382_v4, 0.0 }
 0x15c   :  { %1713 = vst [vmem:[%s2835_s3 + $0x10] sm:$0xff] %v1695_v54   ;;  %v1932_v30 = vpop.f32.mrf.mxu1  ;;  %v1998_v31 = vpop.f32.mrf.mxu0  ;;  %v1225_v24 = vadd.f32 %v1884_v35, %v1137_v50  ;;  %v1142_v54 = vadd.f32 %v1829_v52, %v1054_v18 }
 0x15d   :  { %v1385_v12 = vadd.f32 %v1384_v8, %v1297_v59  ;;  %v1933_v45 = vadd.f32 %v1932_v30, %v1931_v56  ;;  %v1443_v13 = vsel %vm1417_vm7, %v1382_v4, %v1430_v10  ;;  %v1222_v8 = vadd.f32 %v1881_v39, %v1134_v32  ;;  %v2868_v56 = vld [vmem:[#allocation16_spill] sm:$0xff] }
 0x15e   :  { %v1934_v58 = vpop.f32.mrf.mxu1  ;;  %v1392_v60 = vpop.f32.mrf.mxu0 }
 0x15f   :  { %vm1418_vm8 = vcmp.gt.f32.partialorder %v1385_v12, 0.0  ;;  %v1431_v14 = vmul.f32 0.01, %v1385_v12  ;;  %v1302_v16 = vadd.f32 %v1933_v45, %v1214_v33 }
 0x160   :  { %v1935_v47 = vpop.f32.mrf.mxu1  ;;  %v1999_v11 = vpop.f32.mrf.mxu0 }
 0x161   :  { %v1444_v37 = vsel %vm1418_vm8, %v1385_v12, %v1431_v14  ;;  %v1390_v48 = vadd.f32 %v1389_v23, %v1302_v16  ;;  %v1936_v62 = vadd.f32 %v1935_v47, %v1934_v58  ;;  %v2869_v23 = vld [vmem:[#allocation18_spill] sm:$0xff] }
 0x162   :  { %v1700_v15 = vpack.c.bf16 %v1444_v37, %v1443_v13  ;;  %v1937_v19 = vpop.f32.mrf.mxu1  ;;  %v1397_v20 = vpop.f32.mrf.mxu0  ;;  %v1887_v59 = vadd.f32 %v2869_v23, %v2868_v56 }
 0x163   :  { %v1305_v22 = vadd.f32 %v1936_v62, %v1217_v63  ;;  %v1432_v25 = vmul.f32 0.01, %v1390_v48  ;;  %vm1419_vm9 = vcmp.gt.f32.partialorder %v1390_v48, 0.0 }
 0x164   :  { %1714 = vst [vmem:[%s2835_s3 + $0x18] sm:$0xff] %v1700_v15   ;;  %v1938_v55 = vpop.f32.mrf.mxu1  ;;  %v2002_v5 = vpop.f32.mrf.mxu0  ;;  %v1230_v29 = vadd.f32 %v1887_v59, %v1142_v54 }
 0x165   :  { %v1393_v27 = vadd.f32 %v1392_v60, %v1305_v22  ;;  %v1939_v43 = vadd.f32 %v1938_v55, %v1937_v19  ;;  %v1445_v9 = vsel %vm1419_vm9, %v1390_v48, %v1432_v25 }
 0x166   :  { %v1940_v17 = vpop.f32.mrf.mxu1  ;;  %v1400_v2 = vpop.f32.mrf.mxu0 }
 0x167   :  { %vm1420_vm10 = vcmp.gt.f32.partialorder %v1393_v27, 0.0  ;;  %v1433_v4 = vmul.f32 0.01, %v1393_v27  ;;  %v1310_v21 = vadd.f32 %v1939_v43, %v1222_v8 }
 0x168   :  { %v1941_v38 = vpop.f32.mrf.mxu1  ;;  %v2003_v6 = vpop.f32.mrf.mxu0 }
 0x169   :  { %v1446_v26 = vsel %vm1420_vm10, %v1393_v27, %v1433_v4  ;;  %v1398_v30 = vadd.f32 %v1397_v20, %v1310_v21  ;;  %v1942_v42 = vadd.f32 %v1941_v38, %v1940_v17 }
 0x16a   :  { %v1705_v31 = vpack.c.bf16 %v1446_v26, %v1445_v9  ;;  %v1943_v33 = vpop.f32.mrf.mxu1  ;;  %v1405_v10 = vpop.f32.mrf.mxu0 }
 0x16b   :  { %v1313_v12 = vadd.f32 %v1942_v42, %v1225_v24  ;;  %v1434_v41 = vmul.f32 0.01, %v1398_v30  ;;  %vm1421_vm11 = vcmp.gt.f32.partialorder %v1398_v30, 0.0 }
 0x16c   :  { %1715 = vst [vmem:[%s2835_s3 + $0x20] sm:$0xff] %v1705_v31   ;;  %v1944_v45 = vpop.f32.mrf.mxu1  ;;  %v2006_v7 = vpop.f32.mrf.mxu0 }
 0x16d   :  { %v1401_v46 = vadd.f32 %v1400_v2, %v1313_v12  ;;  %v1945_v61 = vadd.f32 %v1944_v45, %v1943_v33  ;;  %v1447_v28 = vsel %vm1421_vm11, %v1398_v30, %v1434_v41 }
 0x16e   :  { %v1946_v58 = vpop.f32.mrf.mxu1  ;;  %v1408_v60 = vpop.f32.mrf.mxu0 }
 0x16f   :  { %vm1422_vm12 = vcmp.gt.f32.partialorder %v1401_v46, 0.0  ;;  %v1435_v14 = vmul.f32 0.01, %v1401_v46  ;;  %v1318_v16 = vadd.f32 %v1945_v61, %v1230_v29 }
 0x170   :  { %v1947_v63 = vpop.f32.mrf.mxu1  ;;  %v2007_v32 = vpop.f32.mrf.mxu0 }
 0x171   :  { %v1448_v36 = vsel %vm1422_vm12, %v1401_v46, %v1435_v14  ;;  %v1406_v39 = vadd.f32 %v1405_v10, %v1318_v16 }
 0x172   :  { %v1710_v1 = vpack.c.bf16 %v1448_v36, %v1447_v28 }
 0x173   :  { %vm1423_vm13 = vcmp.gt.f32.partialorder %v1406_v39, 0.0  ;;  %v1436_v49 = vmul.f32 0.01, %v1406_v39 }
 0x174   :  { %1716 = vst [vmem:[%s2835_s3 + $0x28] sm:$0xff] %v1710_v1  }
 0x175   :  { %v1449_v3 = vsel %vm1423_vm13, %v1406_v39, %v1436_v49 }
 0x176   :  { %v1681_v47 = vpack.c.bf16 %v1449_v3, %v1449_v3 }
 0x178   :  { %1515 = vst [vmem:[%s2835_s3 + $0x30] sm:$0x1] %v1681_v47 }

// kernel: rnd_forward.7
= control target key start
LH: loop header
LB: loop body
LE: loop exit
PB: predicated region body
PF: predicated region fallthrough
CT: control target
= control target key end

     0   :  { %17 = vsyncpa [#allocation3], 0  ;;  %v830_v36 = vlaneseq  ;;  %v18638_v37 = vmov 1966171168   ;;  %vm4959_vm0 = vcmask 523264   ;;  %s24834_s0 = inlined_call_operand.vmem [shape: bf16[2,3136], index: 0, kind: input, shape index: {}]   ;;  %s24835_s1 = inlined_call_operand.vmem [shape: bf16[2,3136], index: 1, kind: input, shape index: {}]   ;;  %s24836_s2 = inlined_call_operand.vmem [shape: bf16[3136,512], index: 2, kind: input, shape index: {}]   ;;  %s24837_s3 = inlined_call_operand.vmem [shape: f32[1,512], index: 3, kind: input, shape index: {}]   ;;  %s24838_s4 = inlined_call_operand.vmem [shape: bf16[512,512], index: 4, kind: input, shape index: {}]   ;;  %s24839_s5 = inlined_call_operand.vmem [shape: f32[1,512], index: 5, kind: input, shape index: {}]   ;;  %s24840_s6 = inlined_call_operand.vmem [shape: bf16[512,512], index: 6, kind: input, shape index: {}]   ;;  %s24841_s7 = inlined_call_operand.vmem [shape: f32[1,512], index: 7, kind: input, shape index: {}]   ;;  %s24842_s8 = inlined_call_operand.vmem [shape: bf16[3136,512], index: 8, kind: input, shape index: {}]   ;;  %s24843_s9 = inlined_call_operand.vmem [shape: f32[1,512], index: 9, kind: input, shape index: {}]   ;;  %s24844_s10 = inlined_call_operand.hbm [shape: f32[2,512], index: 10, kind: output, shape index: {0}]   ;;  %s24845_s11 = inlined_call_operand.hbm [shape: f32[2,512], index: 11, kind: output, shape index: {1}]  }
   0x1   :  { %v15850_v0 = vld [vmem:[%s24836_s2 + $0xe4] ss:$16 sps:$4 sm:$0xff]   ;;  %v15854_v2 = vld [vmem:[%s24836_s2 + $0xe0] ss:$16 sps:$4 sm:$0xff]   ;;  %v856_v38 = vunpack.c.l.s4 %v18638_v37 }
   0x2   :  { %v15852_v1 = vld [vmem:[%s24836_s2 + $0x2e4] ss:$16 sps:$4 sm:$0xff]   ;;  %4963 = vmatprep.subr.bf16.mxu0 %v15850_v0  ;;  %v15855_v3 = vld [vmem:[%s24836_s2 + $0x2e0] ss:$16 sps:$4 sm:$0xff]   ;;  %v18820_v42 = vshrl.u32 %v830_v36, 7 }
   0x3   :  { %5004 = vmatprep.subr.bf16.mxu1 %v15852_v1  ;;  %v15856_v4 = vld [vmem:[%s24836_s2 + $0xc4] ss:$16 sps:$4 sm:$0xff]   ;;  %4964 = vmatpush1.bf16.msra.mxu0 %v15854_v2  ;;  %v15860_v6 = vld [vmem:[%s24836_s2 + $0xc0] ss:$16 sps:$4 sm:$0xff]   ;;  %v857_v43 = vunpack.c.0.s8 %v856_v38 }
   0x4   :  { %5005 = vmatpush1.bf16.msra.mxu1 %v15855_v3  ;;  %v15858_v5 = vld [vmem:[%s24836_s2 + $0x2c4] ss:$16 sps:$4 sm:$0xff]   ;;  %4965 = vmatprep.subr.bf16.mxu0 %v15856_v4  ;;  %v15861_v7 = vld [vmem:[%s24836_s2 + $0x2c0] ss:$16 sps:$4 sm:$0xff]  }
   0x5   :  { %5006 = vmatprep.subr.bf16.mxu1 %v15858_v5  ;;  %v15862_v8 = vld [vmem:[%s24836_s2 + $0xa4] ss:$16 sps:$4 sm:$0xff]   ;;  %v15866_v10 = vld [vmem:[%s24836_s2 + $0xa0] ss:$16 sps:$4 sm:$0xff]   ;;  %v18838_v49 = vsub.s32 %v857_v43, %v18820_v42 }
   0x6   :  { %v15864_v9 = vld [vmem:[%s24836_s2 + $0x2a4] ss:$16 sps:$4 sm:$0xff]   ;;  %v15867_v11 = vld [vmem:[%s24836_s2 + $0x2a0] ss:$16 sps:$4 sm:$0xff]  }
   0x7   :  { %4966 = vmatpush1.bf16.msra.mxu0 %v15860_v6  ;;  %v15868_v12 = vld [vmem:[%s24836_s2 + $0x84] ss:$16 sps:$4 sm:$0xff]   ;;  %v15872_v14 = vld [vmem:[%s24836_s2 + $0x80] ss:$16 sps:$4 sm:$0xff]  }
   0x8   :  { %5007 = vmatpush1.bf16.msra.mxu1 %v15861_v7  ;;  %4967 = vmatprep.subr.bf16.mxu0 %v15862_v8  ;;  %v15870_v13 = vld [vmem:[%s24836_s2 + $0x284] ss:$16 sps:$4 sm:$0xff]   ;;  %v15873_v15 = vld [vmem:[%s24836_s2 + $0x280] ss:$16 sps:$4 sm:$0xff]  }
   0x9   :  { %5008 = vmatprep.subr.bf16.mxu1 %v15864_v9  ;;  %v15874_v16 = vld [vmem:[%s24836_s2 + $0x64] ss:$16 sps:$4 sm:$0xff]   ;;  %v15878_v18 = vld [vmem:[%s24836_s2 + $0x60] ss:$16 sps:$4 sm:$0xff]  }
   0xa   :  { %v15876_v17 = vld [vmem:[%s24836_s2 + $0x264] ss:$16 sps:$4 sm:$0xff]   ;;  %v15879_v19 = vld [vmem:[%s24836_s2 + $0x260] ss:$16 sps:$4 sm:$0xff]  }
   0xb   :  { %4968 = vmatpush1.bf16.msra.mxu0 %v15866_v10  ;;  %v15880_v20 = vld [vmem:[%s24836_s2 + $0x44] ss:$16 sps:$4 sm:$0xff]   ;;  %v15884_v22 = vld [vmem:[%s24836_s2 + $0x40] ss:$16 sps:$4 sm:$0xff]  }
   0xc   :  { %5009 = vmatpush1.bf16.msra.mxu1 %v15867_v11  ;;  %4969 = vmatprep.subr.bf16.mxu0 %v15868_v12  ;;  %v15882_v21 = vld [vmem:[%s24836_s2 + $0x244] ss:$16 sps:$4 sm:$0xff]   ;;  %v15885_v23 = vld [vmem:[%s24836_s2 + $0x240] ss:$16 sps:$4 sm:$0xff]  }
   0xd   :  { %5010 = vmatprep.subr.bf16.mxu1 %v15870_v13  ;;  %v15886_v24 = vld [vmem:[%s24836_s2 + $0x24] ss:$16 sps:$4 sm:$0xff]   ;;  %v15890_v26 = vld [vmem:[%s24836_s2 + $0x20] ss:$16 sps:$4 sm:$0xff]  }
   0xe   :  { %v15888_v25 = vld [vmem:[%s24836_s2 + $0x224] ss:$16 sps:$4 sm:$0xff]   ;;  %v15891_v27 = vld [vmem:[%s24836_s2 + $0x220] ss:$16 sps:$4 sm:$0xff]  }
   0xf   :  { %4970 = vmatpush1.bf16.msra.mxu0 %v15872_v14  ;;  %v15892_v28 = vld [vmem:[%s24836_s2 + $0x4] ss:$16 sps:$4 sm:$0xff]   ;;  %v15896_v30 = vld [vmem:[%s24836_s2] ss:$16 sps:$4 sm:$0xff]  }
  0x10   :  { %5011 = vmatpush1.bf16.msra.mxu1 %v15873_v15  ;;  %4971 = vmatprep.subr.bf16.mxu0 %v15874_v16  ;;  %v15894_v29 = vld [vmem:[%s24836_s2 + $0x204] ss:$16 sps:$4 sm:$0xff]   ;;  %v15897_v31 = vld [vmem:[%s24836_s2 + $0x200] ss:$16 sps:$4 sm:$0xff]  }
  0x11   :  { %5012 = vmatprep.subr.bf16.mxu1 %v15876_v17  ;;  %v15898_v32 = vld [vmem:[%s24836_s2 + $0x1e4] ss:$16 sps:$4 sm:$0xff]   ;;  %v15902_v34 = vld [vmem:[%s24836_s2 + $0x1e0] ss:$16 sps:$4 sm:$0xff]  }
  0x12   :  { %v15900_v33 = vld [vmem:[%s24836_s2 + $0x3e4] ss:$16 sps:$4 sm:$0xff]   ;;  %v15903_v35 = vld [vmem:[%s24836_s2 + $0x3e0] ss:$16 sps:$4 sm:$0xff]  }
  0x13   :  { %4972 = vmatpush1.bf16.msra.mxu0 %v15878_v18  ;;  %v15904_v39 = vld [vmem:[%s24836_s2 + $0x1c4] ss:$16 sps:$4 sm:$0xff]   ;;  %v15908_v41 = vld [vmem:[%s24836_s2 + $0x1c0] ss:$16 sps:$4 sm:$0xff]  }
  0x14   :  { %5013 = vmatpush1.bf16.msra.mxu1 %v15879_v19  ;;  %4973 = vmatprep.subr.bf16.mxu0 %v15880_v20  ;;  %v15906_v40 = vld [vmem:[%s24836_s2 + $0x3c4] ss:$16 sps:$4 sm:$0xff]   ;;  %v15909_v44 = vld [vmem:[%s24836_s2 + $0x3c0] ss:$16 sps:$4 sm:$0xff]  }
  0x15   :  { %5014 = vmatprep.subr.bf16.mxu1 %v15882_v21  ;;  %v15910_v45 = vld [vmem:[%s24836_s2 + $0x1a4] ss:$16 sps:$4 sm:$0xff]   ;;  %v15914_v47 = vld [vmem:[%s24836_s2 + $0x1a0] ss:$16 sps:$4 sm:$0xff]  }
  0x16   :  { %v15912_v46 = vld [vmem:[%s24836_s2 + $0x3a4] ss:$16 sps:$4 sm:$0xff]   ;;  %v15915_v48 = vld [vmem:[%s24836_s2 + $0x3a0] ss:$16 sps:$4 sm:$0xff]  }
  0x17   :  { %4974 = vmatpush1.bf16.msra.mxu0 %v15884_v22  ;;  %v15916_v50 = vld [vmem:[%s24836_s2 + $0x184] ss:$16 sps:$4 sm:$0xff]   ;;  %v15920_v53 = vld [vmem:[%s24836_s2 + $0x180] ss:$16 sps:$4 sm:$0xff]  }
  0x18   :  { %5015 = vmatpush1.bf16.msra.mxu1 %v15885_v23  ;;  %4975 = vmatprep.subr.bf16.mxu0 %v15886_v24  ;;  %v15918_v51 = vld [vmem:[%s24836_s2 + $0x384] ss:$16 sps:$4 sm:$0xff]   ;;  %v15921_v55 = vld [vmem:[%s24836_s2 + $0x380] ss:$16 sps:$4 sm:$0xff]  }
  0x19   :  { %5016 = vmatprep.subr.bf16.mxu1 %v15888_v25  ;;  %v40_v52 = vld [vmem:[%s24834_s0] sm:$0xff] }
  0x1a   :  { %v861_v54 = vrot.slane %v40_v52, %v18838_v49  ;;  %v15922_v56 = vld [vmem:[%s24836_s2 + $0x164] ss:$16 sps:$4 sm:$0xff]   ;;  %v15926_v59 = vld [vmem:[%s24836_s2 + $0x160] ss:$16 sps:$4 sm:$0xff]   ;;  %v854_v1 = vcombine.high %v40_v52, %v40_v52 }
  0x1b   :  { %4976 = vmatpush1.bf16.msra.mxu0 %v15890_v26  ;;  %v15924_v57 = vld [vmem:[%s24836_s2 + $0x364] ss:$16 sps:$4 sm:$0xff]   ;;  %v15927_v61 = vld [vmem:[%s24836_s2 + $0x360] ss:$16 sps:$4 sm:$0xff]  }
  0x1c   :  { %5017 = vmatpush1.bf16.msra.mxu1 %v15891_v27  ;;  %4977 = vmatprep.subr.bf16.mxu0 %v15892_v28  ;;  %v869_v58 = vcombine.high %v861_v54, %v861_v54  ;;  %v15928_v62 = vld [vmem:[%s24836_s2 + $0x144] ss:$16 sps:$4 sm:$0xff]   ;;  %v15932_v2 = vld [vmem:[%s24836_s2 + $0x140] ss:$16 sps:$4 sm:$0xff]   ;;  %v18896_v6 = vrot.slane %v854_v1, %v18838_v49  ;;  %v18916_v13 = vrot.slane %v861_v54, %v18838_v49 }
  0x1d   :  { %5018 = vmatprep.subr.bf16.mxu1 %v15894_v29  ;;  %v15930_v63 = vld [vmem:[%s24836_s2 + $0x344] ss:$16 sps:$4 sm:$0xff]   ;;  %v15933_v3 = vld [vmem:[%s24836_s2 + $0x340] ss:$16 sps:$4 sm:$0xff]  }
  0x1e   :  { %v18866_v60 = vrot.slane %v869_v58, %v18838_v49  ;;  %v15934_v4 = vld [vmem:[%s24836_s2 + $0x124] ss:$16 sps:$4 sm:$0xff]   ;;  %v15938_v7 = vld [vmem:[%s24836_s2 + $0x120] ss:$16 sps:$4 sm:$0xff]   ;;  %v870_v11 = vcombine.high %v18896_v6, %v18896_v6  ;;  %v18932_v18 = vcombine.high %v18916_v13, %v18916_v13 }
  0x1f   :  { %4978 = vmatpush1.bf16.msra.mxu0 %v15896_v30  ;;  %v15936_v5 = vld [vmem:[%s24836_s2 + $0x324] ss:$16 sps:$4 sm:$0xff]   ;;  %v15939_v8 = vld [vmem:[%s24836_s2 + $0x320] ss:$16 sps:$4 sm:$0xff]  }
  0x20   :  { %5019 = vmatpush1.bf16.msra.mxu1 %v15897_v31  ;;  %4979 = vmatprep.subr.bf16.mxu0 %v15898_v32  ;;  %v18879_v0 = vcombine.high %v18866_v60, %v18866_v60  ;;  %v15940_v9 = vld [vmem:[%s24836_s2 + $0x104] ss:$16 sps:$4 sm:$0xff]   ;;  %v15944_v12 = vld [vmem:[%s24836_s2 + $0x100] ss:$16 sps:$4 sm:$0xff]   ;;  %v18928_v17 = vrot.slane %v870_v11, %v18838_v49 }
  0x21   :  { %5020 = vmatprep.subr.bf16.mxu1 %v15900_v33  ;;  %4995 = vmatprep.mubr.bf16.mxu0 %v18866_v60  ;;  %v15942_v10 = vld [vmem:[%s24836_s2 + $0x304] ss:$16 sps:$4 sm:$0xff]   ;;  %v15945_v14 = vld [vmem:[%s24836_s2 + $0x300] ss:$16 sps:$4 sm:$0xff]  }
  0x22   :  { %5036 = vmatprep.mubr.bf16.mxu1 %v18879_v0  ;;  %v15948_v15 = vld [vmem:[%s24836_s2 + $0x4e4] ss:$16 sps:$4 sm:$0xff]   ;;  %v15946_v19 = vld [vmem:[%s24836_s2 + $0x4e0] ss:$16 sps:$4 sm:$0xff]   ;;  %v18948_v23 = vcombine.high %v18928_v17, %v18928_v17 }
  0x23   :  { %4980 = vmatpush2.bf16.msra.mxu0 %v15902_v34  ;;  %v15951_v16 = vld [vmem:[%s24836_s2 + $0x6e4] ss:$16 sps:$4 sm:$0xff]   ;;  %v15949_v20 = vld [vmem:[%s24836_s2 + $0x6e0] ss:$16 sps:$4 sm:$0xff]  }
  0x24   :  { %5021 = vmatpush2.bf16.msra.mxu1 %v15903_v35  ;;  %4981 = vmatprep.subr.bf16.mxu0 %v15904_v39  ;;  %v15954_v21 = vld [vmem:[%s24836_s2 + $0x4c4] ss:$16 sps:$4 sm:$0xff]   ;;  %v15952_v24 = vld [vmem:[%s24836_s2 + $0x4c0] ss:$16 sps:$4 sm:$0xff]  }
  0x25   :  { %5022 = vmatprep.subr.bf16.mxu1 %v15906_v40  ;;  %v15957_v22 = vld [vmem:[%s24836_s2 + $0x6c4] ss:$16 sps:$4 sm:$0xff]   ;;  %v15955_v25 = vld [vmem:[%s24836_s2 + $0x6c0] ss:$16 sps:$4 sm:$0xff]  }
  0x26   :  { %v15960_v26 = vld [vmem:[%s24836_s2 + $0x4a4] ss:$16 sps:$4 sm:$0xff]   ;;  %v15958_v28 = vld [vmem:[%s24836_s2 + $0x4a0] ss:$16 sps:$4 sm:$0xff]  }
  0x27   :  { %4982 = vmatpush2.bf16.msra.mxu0 %v15908_v41  ;;  %v15963_v27 = vld [vmem:[%s24836_s2 + $0x6a4] ss:$16 sps:$4 sm:$0xff]   ;;  %v15961_v29 = vld [vmem:[%s24836_s2 + $0x6a0] ss:$16 sps:$4 sm:$0xff]  }
  0x28   :  { %5023 = vmatpush2.bf16.msra.mxu1 %v15909_v44  ;;  %4983 = vmatprep.subr.bf16.mxu0 %v15910_v45  ;;  %v15966_v30 = vld [vmem:[%s24836_s2 + $0x484] ss:$16 sps:$4 sm:$0xff]   ;;  %v15964_v32 = vld [vmem:[%s24836_s2 + $0x480] ss:$16 sps:$4 sm:$0xff]  }
  0x29   :  { %5024 = vmatprep.subr.bf16.mxu1 %v15912_v46  ;;  %v15969_v31 = vld [vmem:[%s24836_s2 + $0x684] ss:$16 sps:$4 sm:$0xff]   ;;  %v15967_v33 = vld [vmem:[%s24836_s2 + $0x680] ss:$16 sps:$4 sm:$0xff]  }
  0x2a   :  { %v15972_v34 = vld [vmem:[%s24836_s2 + $0x464] ss:$16 sps:$4 sm:$0xff]   ;;  %v15970_v36 = vld [vmem:[%s24836_s2 + $0x460] ss:$16 sps:$4 sm:$0xff]  }
  0x2b   :  { %4984 = vmatpush2.bf16.msra.mxu0 %v15914_v47  ;;  %v15975_v35 = vld [vmem:[%s24836_s2 + $0x664] ss:$16 sps:$4 sm:$0xff]   ;;  %v15973_v37 = vld [vmem:[%s24836_s2 + $0x660] ss:$16 sps:$4 sm:$0xff]  }
  0x2c   :  { %5025 = vmatpush2.bf16.msra.mxu1 %v15915_v48  ;;  %4985 = vmatprep.subr.bf16.mxu0 %v15916_v50  ;;  %v15978_v38 = vld [vmem:[%s24836_s2 + $0x444] ss:$16 sps:$4 sm:$0xff]   ;;  %v15976_v40 = vld [vmem:[%s24836_s2 + $0x440] ss:$16 sps:$4 sm:$0xff]  }
  0x2d   :  { %5026 = vmatprep.subr.bf16.mxu1 %v15918_v51  ;;  %v15981_v39 = vld [vmem:[%s24836_s2 + $0x644] ss:$16 sps:$4 sm:$0xff]   ;;  %v15979_v41 = vld [vmem:[%s24836_s2 + $0x640] ss:$16 sps:$4 sm:$0xff]  }
  0x2e   :  { %v15984_v43 = vld [vmem:[%s24836_s2 + $0x424] ss:$16 sps:$4 sm:$0xff]   ;;  %v15982_v45 = vld [vmem:[%s24836_s2 + $0x420] ss:$16 sps:$4 sm:$0xff]  }
  0x2f   :  { %4986 = vmatpush2.bf16.msra.mxu0 %v15920_v53  ;;  %v15987_v44 = vld [vmem:[%s24836_s2 + $0x624] ss:$16 sps:$4 sm:$0xff]   ;;  %v15985_v46 = vld [vmem:[%s24836_s2 + $0x620] ss:$16 sps:$4 sm:$0xff]  }
  0x30   :  { %5027 = vmatpush2.bf16.msra.mxu1 %v15921_v55  ;;  %4987 = vmatprep.subr.bf16.mxu0 %v15922_v56  ;;  %v15990_v47 = vld [vmem:[%s24836_s2 + $0x404] ss:$16 sps:$4 sm:$0xff]   ;;  %v15988_v50 = vld [vmem:[%s24836_s2 + $0x400] ss:$16 sps:$4 sm:$0xff]  }
  0x31   :  { %5028 = vmatprep.subr.bf16.mxu1 %v15924_v57  ;;  %v15993_v48 = vld [vmem:[%s24836_s2 + $0x604] ss:$16 sps:$4 sm:$0xff]   ;;  %v15991_v51 = vld [vmem:[%s24836_s2 + $0x600] ss:$16 sps:$4 sm:$0xff]  }
  0x32   :  { %v15996_v52 = vld [vmem:[%s24836_s2 + $0x5e4] ss:$16 sps:$4 sm:$0xff]   ;;  %v15994_v54 = vld [vmem:[%s24836_s2 + $0x5e0] ss:$16 sps:$4 sm:$0xff]  }
  0x33   :  { %4988 = vmatpush2.bf16.msra.mxu0 %v15926_v59  ;;  %v15999_v53 = vld [vmem:[%s24836_s2 + $0x7e4] ss:$16 sps:$4 sm:$0xff]   ;;  %v15997_v55 = vld [vmem:[%s24836_s2 + $0x7e0] ss:$16 sps:$4 sm:$0xff]  }
  0x34   :  { %5029 = vmatpush2.bf16.msra.mxu1 %v15927_v61  ;;  %4989 = vmatprep.subr.bf16.mxu0 %v15928_v62  ;;  %v16002_v56 = vld [vmem:[%s24836_s2 + $0x5c4] ss:$16 sps:$4 sm:$0xff]   ;;  %v16000_v58 = vld [vmem:[%s24836_s2 + $0x5c0] ss:$16 sps:$4 sm:$0xff]  }
  0x35   :  { %5030 = vmatprep.subr.bf16.mxu1 %v15930_v63  ;;  %v16005_v57 = vld [vmem:[%s24836_s2 + $0x7c4] ss:$16 sps:$4 sm:$0xff]   ;;  %v16003_v59 = vld [vmem:[%s24836_s2 + $0x7c0] ss:$16 sps:$4 sm:$0xff]  }
  0x36   :  { %v16008_v61 = vld [vmem:[%s24836_s2 + $0x5a4] ss:$16 sps:$4 sm:$0xff]   ;;  %v16006_v63 = vld [vmem:[%s24836_s2 + $0x5a0] ss:$16 sps:$4 sm:$0xff]  }
  0x37   :  { %4990 = vmatpush2.bf16.msra.mxu0 %v15932_v2  ;;  %v16011_v62 = vld [vmem:[%s24836_s2 + $0x7a4] ss:$16 sps:$4 sm:$0xff]   ;;  %v16009_v1 = vld [vmem:[%s24836_s2 + $0x7a0] ss:$16 sps:$4 sm:$0xff]  }
  0x38   :  { %5031 = vmatpush2.bf16.msra.mxu1 %v15933_v3  ;;  %4991 = vmatprep.subr.bf16.mxu0 %v15934_v4  ;;  %v16014_v2 = vld [vmem:[%s24836_s2 + $0x584] ss:$16 sps:$4 sm:$0xff]   ;;  %v16012_v4 = vld [vmem:[%s24836_s2 + $0x580] ss:$16 sps:$4 sm:$0xff]  }
  0x39   :  { %5032 = vmatprep.subr.bf16.mxu1 %v15936_v5  ;;  %v16017_v3 = vld [vmem:[%s24836_s2 + $0x784] ss:$16 sps:$4 sm:$0xff]   ;;  %v16015_v5 = vld [vmem:[%s24836_s2 + $0x780] ss:$16 sps:$4 sm:$0xff]  }
  0x3a   :  { %v16026_v11 = vld [vmem:[%s24836_s2 + $0x544] ss:$16 sps:$4 sm:$0xff]  }
  0x3b   :  { %4992 = vmatpush2.bf16.msra.mxu0 %v15938_v7  ;;  %v16020_v7 = vld [vmem:[%s24836_s2 + $0x564] ss:$16 sps:$4 sm:$0xff]  }
  0x3c   :  { %5033 = vmatpush2.bf16.msra.mxu1 %v15939_v8  ;;  %4993 = vmatprep.subr.bf16.mxu0 %v15940_v9  ;;  %v16023_v8 = vld [vmem:[%s24836_s2 + $0x764] ss:$16 sps:$4 sm:$0xff]   ;;  %v16018_v9 = vld [vmem:[%s24836_s2 + $0x560] ss:$16 sps:$4 sm:$0xff]  }
  0x3d   :  { %5034 = vmatprep.subr.bf16.mxu1 %v15942_v10  ;;  %v16021_v10 = vld [vmem:[%s24836_s2 + $0x760] ss:$16 sps:$4 sm:$0xff]  }
  0x3f   :  { %4994 = vmatpush2.bf16.msra.mxu0 %v15944_v12  ;;  %v16029_v12 = vld [vmem:[%s24836_s2 + $0x744] ss:$16 sps:$4 sm:$0xff]  }
  0x40   :  { %5035 = vmatpush2.bf16.msra.mxu1 %v15945_v14  ;;  %5045 = vmatprep.subr.bf16.mxu0 %v15948_v15  ;;  %v16024_v14 = vld [vmem:[%s24836_s2 + $0x540] ss:$16 sps:$4 sm:$0xff]  }
  0x41   :  { %5086 = vmatprep.subr.bf16.mxu1 %v15951_v16  ;;  %v16027_v15 = vld [vmem:[%s24836_s2 + $0x740] ss:$16 sps:$4 sm:$0xff]   ;;  %v16032_v16 = vld [vmem:[%s24836_s2 + $0x524] ss:$16 sps:$4 sm:$0xff]  }
  0x42   :  { %4996 = vmatmul.mubr.bf16.vlgmr.msra.gmra.mxu0 %v18916_v13 }
  0x43   :  { %5037 = vmatmul.mubr.bf16.vlgmr.msra.gmra.mxu1 %v18932_v18  ;;  %5046 = vmatpush1.bf16.msra.mxu0 %v15946_v19  ;;  %v16035_v19 = vld [vmem:[%s24836_s2 + $0x724] ss:$16 sps:$4 sm:$0xff]  }
  0x44   :  { %5087 = vmatpush1.bf16.msra.mxu1 %v15949_v20  ;;  %5047 = vmatprep.subr.bf16.mxu0 %v15954_v21  ;;  %v16030_v20 = vld [vmem:[%s24836_s2 + $0x520] ss:$16 sps:$4 sm:$0xff]  }
  0x45   :  { %5088 = vmatprep.subr.bf16.mxu1 %v15957_v22  ;;  %5077 = vmatprep.mubr.bf16.mxu0 %v18928_v17  ;;  %v16033_v21 = vld [vmem:[%s24836_s2 + $0x720] ss:$16 sps:$4 sm:$0xff]   ;;  %v16038_v22 = vld [vmem:[%s24836_s2 + $0x504] ss:$16 sps:$4 sm:$0xff]  }
  0x46   :  { %5118 = vmatprep.mubr.bf16.mxu1 %v18948_v23 }
  0x47   :  { %5048 = vmatpush1.bf16.msra.mxu0 %v15952_v24  ;;  %v16041_v24 = vld [vmem:[%s24836_s2 + $0x704] ss:$16 sps:$4 sm:$0xff]  }
  0x48   :  { %5089 = vmatpush1.bf16.msra.mxu1 %v15955_v25  ;;  %5049 = vmatprep.subr.bf16.mxu0 %v15960_v26  ;;  %v16036_v25 = vld [vmem:[%s24836_s2 + $0x500] ss:$16 sps:$4 sm:$0xff]   ;;  %v19127_v26 = vrot.slane %v18896_v6, %v18838_v49 }
  0x49   :  { %5090 = vmatprep.subr.bf16.mxu1 %v15963_v27  ;;  %v16039_v27 = vld [vmem:[%s24836_s2 + $0x700] ss:$16 sps:$4 sm:$0xff]  }
  0x4a   :  { %v19140_v6 = vcombine.high %v19127_v26, %v19127_v26 }
  0x4b   :  { %5050 = vmatpush1.bf16.msra.mxu0 %v15958_v28  ;;  %v16045_v28 = vld [vmem:[%s24836_s2 + $0x8e4] ss:$16 sps:$4 sm:$0xff]  }
  0x4c   :  { %5091 = vmatpush1.bf16.msra.mxu1 %v15961_v29  ;;  %5051 = vmatprep.subr.bf16.mxu0 %v15966_v30  ;;  %v16048_v29 = vld [vmem:[%s24836_s2 + $0xae4] ss:$16 sps:$4 sm:$0xff]   ;;  %v16043_v30 = vld [vmem:[%s24836_s2 + $0x8e0] ss:$16 sps:$4 sm:$0xff]  }
  0x4d   :  { %5092 = vmatprep.subr.bf16.mxu1 %v15969_v31  ;;  %v16046_v31 = vld [vmem:[%s24836_s2 + $0xae0] ss:$16 sps:$4 sm:$0xff]  }
  0x4f   :  { %5052 = vmatpush1.bf16.msra.mxu0 %v15964_v32  ;;  %v19151_v32 = vld [vmem:[%s24834_s0 + $0x8] sm:$0xff] }
  0x50   :  { %5093 = vmatpush1.bf16.msra.mxu1 %v15967_v33  ;;  %5053 = vmatprep.subr.bf16.mxu0 %v15972_v34  ;;  %v16051_v33 = vld [vmem:[%s24836_s2 + $0x8c4] ss:$16 sps:$4 sm:$0xff]  }
  0x51   :  { %5094 = vmatprep.subr.bf16.mxu1 %v15975_v35  ;;  %v16054_v34 = vld [vmem:[%s24836_s2 + $0xac4] ss:$16 sps:$4 sm:$0xff]   ;;  %v19161_v35 = vrot.slane %v19151_v32, %v18838_v49 }
  0x53   :  { %5054 = vmatpush1.bf16.msra.mxu0 %v15970_v36  ;;  %v918_v36 = vcombine.high %v19161_v35, %v19161_v35 }
  0x54   :  { %5095 = vmatpush1.bf16.msra.mxu1 %v15973_v37  ;;  %5055 = vmatprep.subr.bf16.mxu0 %v15978_v38  ;;  %v16049_v37 = vld [vmem:[%s24836_s2 + $0x8c0] ss:$16 sps:$4 sm:$0xff]  }
  0x55   :  { %5096 = vmatprep.subr.bf16.mxu1 %v15981_v39  ;;  %v16052_v38 = vld [vmem:[%s24836_s2 + $0xac0] ss:$16 sps:$4 sm:$0xff]   ;;  %v16057_v39 = vld [vmem:[%s24836_s2 + $0x8a4] ss:$16 sps:$4 sm:$0xff]  }
  0x57   :  { %5056 = vmatpush1.bf16.msra.mxu0 %v15976_v40  ;;  %v16060_v40 = vld [vmem:[%s24836_s2 + $0xaa4] ss:$16 sps:$4 sm:$0xff]  }
  0x58   :  { %5097 = vmatpush1.bf16.msra.mxu1 %v15979_v41  ;;  %5057 = vmatprep.subr.bf16.mxu0 %v15984_v43  ;;  %v19180_v41 = vrot.slane %v918_v36, %v18838_v49  ;;  %v16121_v36 = vld [vmem:[%s24836_s2 + $0x940] ss:$16 sps:$4 sm:$0xff]  }
  0x59   :  { %5098 = vmatprep.subr.bf16.mxu1 %v15987_v44  ;;  %v16055_v44 = vld [vmem:[%s24836_s2 + $0x8a0] ss:$16 sps:$4 sm:$0xff]  }
  0x5a   :  { %v19185_v43 = vcombine.high %v19180_v41, %v19180_v41 }
  0x5b   :  { %5058 = vmatpush1.bf16.msra.mxu0 %v15982_v45  ;;  %v16058_v45 = vld [vmem:[%s24836_s2 + $0xaa0] ss:$16 sps:$4 sm:$0xff]  }
  0x5c   :  { %5099 = vmatpush1.bf16.msra.mxu1 %v15985_v46  ;;  %5059 = vmatprep.subr.bf16.mxu0 %v15990_v47  ;;  %v16063_v46 = vld [vmem:[%s24836_s2 + $0x884] ss:$16 sps:$4 sm:$0xff]  }
  0x5d   :  { %5100 = vmatprep.subr.bf16.mxu1 %v15993_v48  ;;  %v16066_v47 = vld [vmem:[%s24836_s2 + $0xa84] ss:$16 sps:$4 sm:$0xff]   ;;  %v16061_v48 = vld [vmem:[%s24836_s2 + $0x880] ss:$16 sps:$4 sm:$0xff]  }
  0x5f   :  { %5060 = vmatpush1.bf16.msra.mxu0 %v15988_v50  ;;  %v16064_v50 = vld [vmem:[%s24836_s2 + $0xa80] ss:$16 sps:$4 sm:$0xff]  }
  0x60   :  { %5101 = vmatpush1.bf16.msra.mxu1 %v15991_v51  ;;  %5061 = vmatprep.subr.bf16.mxu0 %v15996_v52  ;;  %v16069_v51 = vld [vmem:[%s24836_s2 + $0x864] ss:$16 sps:$4 sm:$0xff]  }
  0x61   :  { %5102 = vmatprep.subr.bf16.mxu1 %v15999_v53  ;;  %v16072_v52 = vld [vmem:[%s24836_s2 + $0xa64] ss:$16 sps:$4 sm:$0xff]   ;;  %v16067_v53 = vld [vmem:[%s24836_s2 + $0x860] ss:$16 sps:$4 sm:$0xff]  }
  0x63   :  { %5062 = vmatpush2.bf16.msra.mxu0 %v15994_v54  ;;  %v16070_v54 = vld [vmem:[%s24836_s2 + $0xa60] ss:$16 sps:$4 sm:$0xff]  }
  0x64   :  { %5103 = vmatpush2.bf16.msra.mxu1 %v15997_v55  ;;  %5063 = vmatprep.subr.bf16.mxu0 %v16002_v56  ;;  %v16075_v55 = vld [vmem:[%s24836_s2 + $0x844] ss:$16 sps:$4 sm:$0xff]  }
  0x65   :  { %5104 = vmatprep.subr.bf16.mxu1 %v16005_v57  ;;  %v16078_v56 = vld [vmem:[%s24836_s2 + $0xa44] ss:$16 sps:$4 sm:$0xff]   ;;  %v16073_v57 = vld [vmem:[%s24836_s2 + $0x840] ss:$16 sps:$4 sm:$0xff]  }
  0x67   :  { %5064 = vmatpush2.bf16.msra.mxu0 %v16000_v58  ;;  %v16076_v58 = vld [vmem:[%s24836_s2 + $0xa40] ss:$16 sps:$4 sm:$0xff]  }
  0x68   :  { %5105 = vmatpush2.bf16.msra.mxu1 %v16003_v59  ;;  %5065 = vmatprep.subr.bf16.mxu0 %v16008_v61  ;;  %v16081_v59 = vld [vmem:[%s24836_s2 + $0x824] ss:$16 sps:$4 sm:$0xff]  }
  0x69   :  { %5106 = vmatprep.subr.bf16.mxu1 %v16011_v62  ;;  %v16084_v61 = vld [vmem:[%s24836_s2 + $0xa24] ss:$16 sps:$4 sm:$0xff]   ;;  %v16079_v62 = vld [vmem:[%s24836_s2 + $0x820] ss:$16 sps:$4 sm:$0xff]  }
  0x6b   :  { %5066 = vmatpush2.bf16.msra.mxu0 %v16006_v63  ;;  %v16082_v63 = vld [vmem:[%s24836_s2 + $0xa20] ss:$16 sps:$4 sm:$0xff]  }
  0x6c   :  { %5107 = vmatpush2.bf16.msra.mxu1 %v16009_v1  ;;  %5067 = vmatprep.subr.bf16.mxu0 %v16014_v2  ;;  %v16087_v1 = vld [vmem:[%s24836_s2 + $0x804] ss:$16 sps:$4 sm:$0xff]  }
  0x6d   :  { %5108 = vmatprep.subr.bf16.mxu1 %v16017_v3  ;;  %v16090_v2 = vld [vmem:[%s24836_s2 + $0xa04] ss:$16 sps:$4 sm:$0xff]   ;;  %v16085_v3 = vld [vmem:[%s24836_s2 + $0x800] ss:$16 sps:$4 sm:$0xff]  }
  0x6f   :  { %5068 = vmatpush2.bf16.msra.mxu0 %v16012_v4  ;;  %v16088_v4 = vld [vmem:[%s24836_s2 + $0xa00] ss:$16 sps:$4 sm:$0xff]  }
  0x70   :  { %5109 = vmatpush2.bf16.msra.mxu1 %v16015_v5  ;;  %5069 = vmatprep.subr.bf16.mxu0 %v16020_v7  ;;  %v16093_v5 = vld [vmem:[%s24836_s2 + $0x9e4] ss:$16 sps:$4 sm:$0xff]  }
  0x71   :  { %5110 = vmatprep.subr.bf16.mxu1 %v16023_v8  ;;  %v16096_v7 = vld [vmem:[%s24836_s2 + $0xbe4] ss:$16 sps:$4 sm:$0xff]   ;;  %v16091_v8 = vld [vmem:[%s24836_s2 + $0x9e0] ss:$16 sps:$4 sm:$0xff]  }
  0x73   :  { %5070 = vmatpush2.bf16.msra.mxu0 %v16018_v9  ;;  %v16094_v9 = vld [vmem:[%s24836_s2 + $0xbe0] ss:$16 sps:$4 sm:$0xff]  }
  0x74   :  { %5111 = vmatpush2.bf16.msra.mxu1 %v16021_v10  ;;  %5071 = vmatprep.subr.bf16.mxu0 %v16026_v11  ;;  %v16099_v10 = vld [vmem:[%s24836_s2 + $0x9c4] ss:$16 sps:$4 sm:$0xff]  }
  0x75   :  { %5112 = vmatprep.subr.bf16.mxu1 %v16029_v12  ;;  %v16102_v11 = vld [vmem:[%s24836_s2 + $0xbc4] ss:$16 sps:$4 sm:$0xff]   ;;  %v16097_v12 = vld [vmem:[%s24836_s2 + $0x9c0] ss:$16 sps:$4 sm:$0xff]  }
  0x77   :  { %5072 = vmatpush2.bf16.msra.mxu0 %v16024_v14  ;;  %v16100_v14 = vld [vmem:[%s24836_s2 + $0xbc0] ss:$16 sps:$4 sm:$0xff]  }
  0x78   :  { %5113 = vmatpush2.bf16.msra.mxu1 %v16027_v15  ;;  %5073 = vmatprep.subr.bf16.mxu0 %v16032_v16  ;;  %v16105_v15 = vld [vmem:[%s24836_s2 + $0x9a4] ss:$16 sps:$4 sm:$0xff]  }
  0x79   :  { %5114 = vmatprep.subr.bf16.mxu1 %v16035_v19  ;;  %v16108_v16 = vld [vmem:[%s24836_s2 + $0xba4] ss:$16 sps:$4 sm:$0xff]   ;;  %v16103_v19 = vld [vmem:[%s24836_s2 + $0x9a0] ss:$16 sps:$4 sm:$0xff]  }
  0x7b   :  { %5074 = vmatpush2.bf16.msra.mxu0 %v16030_v20  ;;  %v16106_v20 = vld [vmem:[%s24836_s2 + $0xba0] ss:$16 sps:$4 sm:$0xff]  }
  0x7c   :  { %5115 = vmatpush2.bf16.msra.mxu1 %v16033_v21  ;;  %5075 = vmatprep.subr.bf16.mxu0 %v16038_v22  ;;  %v16111_v21 = vld [vmem:[%s24836_s2 + $0x984] ss:$16 sps:$4 sm:$0xff]  }
  0x7d   :  { %5116 = vmatprep.subr.bf16.mxu1 %v16041_v24  ;;  %v16114_v22 = vld [vmem:[%s24836_s2 + $0xb84] ss:$16 sps:$4 sm:$0xff]   ;;  %v16109_v24 = vld [vmem:[%s24836_s2 + $0x980] ss:$16 sps:$4 sm:$0xff]  }
  0x7f   :  { %5076 = vmatpush2.bf16.msra.mxu0 %v16036_v25  ;;  %v16112_v25 = vld [vmem:[%s24836_s2 + $0xb80] ss:$16 sps:$4 sm:$0xff]  }
  0x80   :  { %5117 = vmatpush2.bf16.msra.mxu1 %v16039_v27  ;;  %5127 = vmatprep.subr.bf16.mxu0 %v16045_v28  ;;  %v16117_v27 = vld [vmem:[%s24836_s2 + $0x964] ss:$16 sps:$4 sm:$0xff]  }
  0x81   :  { %5168 = vmatprep.subr.bf16.mxu1 %v16048_v29  ;;  %v16120_v28 = vld [vmem:[%s24836_s2 + $0xb64] ss:$16 sps:$4 sm:$0xff]   ;;  %v16115_v29 = vld [vmem:[%s24836_s2 + $0x960] ss:$16 sps:$4 sm:$0xff]  }
  0x82   :  { %5078 = vmatmul.mubr.bf16.vlgmr.msra.gmra.mxu0 %v19127_v26 }
  0x83   :  { %5119 = vmatmul.mubr.bf16.vlgmr.msra.gmra.mxu1 %v19140_v6  ;;  %5128 = vmatpush1.bf16.msra.mxu0 %v16043_v30  ;;  %v16118_v30 = vld [vmem:[%s24836_s2 + $0xb60] ss:$16 sps:$4 sm:$0xff]  }
  0x84   :  { %5169 = vmatpush1.bf16.msra.mxu1 %v16046_v31  ;;  %5129 = vmatprep.subr.bf16.mxu0 %v16051_v33  ;;  %v16123_v31 = vld [vmem:[%s24836_s2 + $0x944] ss:$16 sps:$4 sm:$0xff]  }
  0x85   :  { %5170 = vmatprep.subr.bf16.mxu1 %v16054_v34  ;;  %5159 = vmatprep.mubr.bf16.mxu0 %v19180_v41  ;;  %v16126_v33 = vld [vmem:[%s24836_s2 + $0xb44] ss:$16 sps:$4 sm:$0xff]   ;;  %v903_v34 = vcombine.high %v19151_v32, %v19151_v32 }
  0x86   :  { %5200 = vmatprep.mubr.bf16.mxu1 %v19185_v43  ;;  %v16132_v32 = vld [vmem:[%s24836_s2 + $0xb24] ss:$16 sps:$4 sm:$0xff]  }
  0x87   :  { %5130 = vmatpush1.bf16.msra.mxu0 %v16049_v37  ;;  %v16124_v37 = vld [vmem:[%s24836_s2 + $0xb40] ss:$16 sps:$4 sm:$0xff]  }
  0x88   :  { %5171 = vmatpush1.bf16.msra.mxu1 %v16052_v38  ;;  %5131 = vmatprep.subr.bf16.mxu0 %v16057_v39  ;;  %v16129_v38 = vld [vmem:[%s24836_s2 + $0x924] ss:$16 sps:$4 sm:$0xff]   ;;  %v19335_v39 = vrot.slane %v903_v34, %v18838_v49  ;;  %v16190_v34 = vld [vmem:[%s24836_s2 + $0xfe0] ss:$16 sps:$4 sm:$0xff]  }
  0x89   :  { %5172 = vmatprep.subr.bf16.mxu1 %v16060_v40  ;;  %v16127_v40 = vld [vmem:[%s24836_s2 + $0x920] ss:$16 sps:$4 sm:$0xff]  }
  0x8b   :  { %5132 = vmatpush1.bf16.msra.mxu0 %v16055_v44  ;;  %v16130_v44 = vld [vmem:[%s24836_s2 + $0xb20] ss:$16 sps:$4 sm:$0xff]  }
  0x8c   :  { %5173 = vmatpush1.bf16.msra.mxu1 %v16058_v45  ;;  %5133 = vmatprep.subr.bf16.mxu0 %v16063_v46  ;;  %v16135_v45 = vld [vmem:[%s24836_s2 + $0x904] ss:$16 sps:$4 sm:$0xff]  }
  0x8d   :  { %5174 = vmatprep.subr.bf16.mxu1 %v16066_v47  ;;  %v16138_v46 = vld [vmem:[%s24836_s2 + $0xb04] ss:$16 sps:$4 sm:$0xff]   ;;  %v919_v47 = vcombine.high %v19335_v39, %v19335_v39 }
  0x8f   :  { %5134 = vmatpush1.bf16.msra.mxu0 %v16061_v48  ;;  %v16133_v48 = vld [vmem:[%s24836_s2 + $0x900] ss:$16 sps:$4 sm:$0xff]  }
  0x90   :  { %5175 = vmatpush1.bf16.msra.mxu1 %v16064_v50  ;;  %5135 = vmatprep.subr.bf16.mxu0 %v16069_v51  ;;  %v19356_v50 = vrot.slane %v19161_v35, %v18838_v49  ;;  %v16136_v51 = vld [vmem:[%s24836_s2 + $0xb00] ss:$16 sps:$4 sm:$0xff]  }
  0x91   :  { %5176 = vmatprep.subr.bf16.mxu1 %v16072_v52  ;;  %v16141_v52 = vld [vmem:[%s24836_s2 + $0xce4] ss:$16 sps:$4 sm:$0xff]  }
  0x92   :  { %v19372_v35 = vcombine.high %v19356_v50, %v19356_v50 }
  0x93   :  { %5136 = vmatpush1.bf16.msra.mxu0 %v16067_v53  ;;  %v16144_v53 = vld [vmem:[%s24836_s2 + $0xee4] ss:$16 sps:$4 sm:$0xff]  }
  0x94   :  { %5177 = vmatpush1.bf16.msra.mxu1 %v16070_v54  ;;  %5137 = vmatprep.subr.bf16.mxu0 %v16075_v55  ;;  %v19368_v54 = vrot.slane %v919_v47, %v18838_v49  ;;  %v16139_v55 = vld [vmem:[%s24836_s2 + $0xce0] ss:$16 sps:$4 sm:$0xff]   ;;  %v16207_v47 = vld [vmem:[%s24836_s2 + $0xd84] ss:$16 sps:$4 sm:$0xff]  }
  0x95   :  { %5178 = vmatprep.subr.bf16.mxu1 %v16078_v56  ;;  %v16142_v56 = vld [vmem:[%s24836_s2 + $0xee0] ss:$16 sps:$4 sm:$0xff]  }
  0x97   :  { %5138 = vmatpush1.bf16.msra.mxu0 %v16073_v57  ;;  %v16147_v57 = vld [vmem:[%s24836_s2 + $0xcc4] ss:$16 sps:$4 sm:$0xff]  }
  0x98   :  { %5179 = vmatpush1.bf16.msra.mxu1 %v16076_v58  ;;  %5139 = vmatprep.subr.bf16.mxu0 %v16081_v59  ;;  %v16150_v58 = vld [vmem:[%s24836_s2 + $0xec4] ss:$16 sps:$4 sm:$0xff]   ;;  %v19388_v59 = vcombine.high %v19368_v54, %v19368_v54 }
  0x99   :  { %5180 = vmatprep.subr.bf16.mxu1 %v16084_v61  ;;  %v16145_v61 = vld [vmem:[%s24836_s2 + $0xcc0] ss:$16 sps:$4 sm:$0xff]  }
  0x9b   :  { %5140 = vmatpush1.bf16.msra.mxu0 %v16079_v62  ;;  %v16148_v62 = vld [vmem:[%s24836_s2 + $0xec0] ss:$16 sps:$4 sm:$0xff]  }
  0x9c   :  { %5181 = vmatpush1.bf16.msra.mxu1 %v16082_v63  ;;  %5141 = vmatprep.subr.bf16.mxu0 %v16087_v1  ;;  %v16153_v63 = vld [vmem:[%s24836_s2 + $0xca4] ss:$16 sps:$4 sm:$0xff]  }
  0x9d   :  { %5182 = vmatprep.subr.bf16.mxu1 %v16090_v2  ;;  %v16156_v1 = vld [vmem:[%s24836_s2 + $0xea4] ss:$16 sps:$4 sm:$0xff]   ;;  %v16151_v2 = vld [vmem:[%s24836_s2 + $0xca0] ss:$16 sps:$4 sm:$0xff]  }
  0x9f   :  { %5142 = vmatpush1.bf16.msra.mxu0 %v16085_v3  ;;  %v16154_v3 = vld [vmem:[%s24836_s2 + $0xea0] ss:$16 sps:$4 sm:$0xff]  }
  0xa0   :  { %5183 = vmatpush1.bf16.msra.mxu1 %v16088_v4  ;;  %5143 = vmatprep.subr.bf16.mxu0 %v16093_v5  ;;  %v16159_v4 = vld [vmem:[%s24836_s2 + $0xc84] ss:$16 sps:$4 sm:$0xff]  }
  0xa1   :  { %5184 = vmatprep.subr.bf16.mxu1 %v16096_v7  ;;  %v16162_v5 = vld [vmem:[%s24836_s2 + $0xe84] ss:$16 sps:$4 sm:$0xff]   ;;  %v16157_v7 = vld [vmem:[%s24836_s2 + $0xc80] ss:$16 sps:$4 sm:$0xff]  }
  0xa3   :  { %5144 = vmatpush2.bf16.msra.mxu0 %v16091_v8  ;;  %v16160_v8 = vld [vmem:[%s24836_s2 + $0xe80] ss:$16 sps:$4 sm:$0xff]  }
  0xa4   :  { %5185 = vmatpush2.bf16.msra.mxu1 %v16094_v9  ;;  %5145 = vmatprep.subr.bf16.mxu0 %v16099_v10  ;;  %v16165_v9 = vld [vmem:[%s24836_s2 + $0xc64] ss:$16 sps:$4 sm:$0xff]  }
  0xa5   :  { %5186 = vmatprep.subr.bf16.mxu1 %v16102_v11  ;;  %v16168_v10 = vld [vmem:[%s24836_s2 + $0xe64] ss:$16 sps:$4 sm:$0xff]   ;;  %v16163_v11 = vld [vmem:[%s24836_s2 + $0xc60] ss:$16 sps:$4 sm:$0xff]  }
  0xa7   :  { %5146 = vmatpush2.bf16.msra.mxu0 %v16097_v12  ;;  %v16166_v12 = vld [vmem:[%s24836_s2 + $0xe60] ss:$16 sps:$4 sm:$0xff]  }
  0xa8   :  { %5187 = vmatpush2.bf16.msra.mxu1 %v16100_v14  ;;  %5147 = vmatprep.subr.bf16.mxu0 %v16105_v15  ;;  %v16171_v14 = vld [vmem:[%s24836_s2 + $0xc44] ss:$16 sps:$4 sm:$0xff]  }
  0xa9   :  { %5188 = vmatprep.subr.bf16.mxu1 %v16108_v16  ;;  %v16174_v15 = vld [vmem:[%s24836_s2 + $0xe44] ss:$16 sps:$4 sm:$0xff]   ;;  %v16169_v16 = vld [vmem:[%s24836_s2 + $0xc40] ss:$16 sps:$4 sm:$0xff]  }
  0xab   :  { %5148 = vmatpush2.bf16.msra.mxu0 %v16103_v19  ;;  %v16172_v19 = vld [vmem:[%s24836_s2 + $0xe40] ss:$16 sps:$4 sm:$0xff]  }
  0xac   :  { %5189 = vmatpush2.bf16.msra.mxu1 %v16106_v20  ;;  %5149 = vmatprep.subr.bf16.mxu0 %v16111_v21  ;;  %v16177_v20 = vld [vmem:[%s24836_s2 + $0xc24] ss:$16 sps:$4 sm:$0xff]  }
  0xad   :  { %5190 = vmatprep.subr.bf16.mxu1 %v16114_v22  ;;  %v16180_v21 = vld [vmem:[%s24836_s2 + $0xe24] ss:$16 sps:$4 sm:$0xff]   ;;  %v16175_v22 = vld [vmem:[%s24836_s2 + $0xc20] ss:$16 sps:$4 sm:$0xff]  }
  0xaf   :  { %5150 = vmatpush2.bf16.msra.mxu0 %v16109_v24  ;;  %v16178_v24 = vld [vmem:[%s24836_s2 + $0xe20] ss:$16 sps:$4 sm:$0xff]  }
  0xb0   :  { %5191 = vmatpush2.bf16.msra.mxu1 %v16112_v25  ;;  %5151 = vmatprep.subr.bf16.mxu0 %v16117_v27  ;;  %v16183_v25 = vld [vmem:[%s24836_s2 + $0xc04] ss:$16 sps:$4 sm:$0xff]  }
  0xb1   :  { %5192 = vmatprep.subr.bf16.mxu1 %v16120_v28  ;;  %v16186_v27 = vld [vmem:[%s24836_s2 + $0xe04] ss:$16 sps:$4 sm:$0xff]   ;;  %v16181_v28 = vld [vmem:[%s24836_s2 + $0xc00] ss:$16 sps:$4 sm:$0xff]  }
  0xb3   :  { %5152 = vmatpush2.bf16.msra.mxu0 %v16115_v29  ;;  %v16184_v29 = vld [vmem:[%s24836_s2 + $0xe00] ss:$16 sps:$4 sm:$0xff]  }
  0xb4   :  { %5193 = vmatpush2.bf16.msra.mxu1 %v16118_v30  ;;  %5153 = vmatprep.subr.bf16.mxu0 %v16123_v31  ;;  %v16189_v30 = vld [vmem:[%s24836_s2 + $0xde4] ss:$16 sps:$4 sm:$0xff]  }
  0xb5   :  { %5194 = vmatprep.subr.bf16.mxu1 %v16126_v33  ;;  %v16192_v31 = vld [vmem:[%s24836_s2 + $0xfe4] ss:$16 sps:$4 sm:$0xff]   ;;  %v16187_v33 = vld [vmem:[%s24836_s2 + $0xde0] ss:$16 sps:$4 sm:$0xff]  }
  0xb7   :  { %5154 = vmatpush2.bf16.msra.mxu0 %v16121_v36  ;;  %v16195_v36 = vld [vmem:[%s24836_s2 + $0xdc4] ss:$16 sps:$4 sm:$0xff]  }
  0xb8   :  { %5195 = vmatpush2.bf16.msra.mxu1 %v16124_v37  ;;  %5155 = vmatprep.subr.bf16.mxu0 %v16129_v38  ;;  %v16198_v37 = vld [vmem:[%s24836_s2 + $0xfc4] ss:$16 sps:$4 sm:$0xff]   ;;  %v16193_v38 = vld [vmem:[%s24836_s2 + $0xdc0] ss:$16 sps:$4 sm:$0xff]  }
  0xb9   :  { %5196 = vmatprep.subr.bf16.mxu1 %v16132_v32  ;;  %v16196_v32 = vld [vmem:[%s24836_s2 + $0xfc0] ss:$16 sps:$4 sm:$0xff]  }
  0xbb   :  { %5156 = vmatpush2.bf16.msra.mxu0 %v16127_v40  ;;  %v16201_v40 = vld [vmem:[%s24836_s2 + $0xda4] ss:$16 sps:$4 sm:$0xff]  }
  0xbc   :  { %5197 = vmatpush2.bf16.msra.mxu1 %v16130_v44  ;;  %5157 = vmatprep.subr.bf16.mxu0 %v16135_v45  ;;  %v16204_v44 = vld [vmem:[%s24836_s2 + $0xfa4] ss:$16 sps:$4 sm:$0xff]   ;;  %v16199_v45 = vld [vmem:[%s24836_s2 + $0xda0] ss:$16 sps:$4 sm:$0xff]  }
  0xbd   :  { %5198 = vmatprep.subr.bf16.mxu1 %v16138_v46  ;;  %v16202_v46 = vld [vmem:[%s24836_s2 + $0xfa0] ss:$16 sps:$4 sm:$0xff]  }
  0xbf   :  { %5158 = vmatpush2.bf16.msra.mxu0 %v16133_v48  ;;  %v16210_v48 = vld [vmem:[%s24836_s2 + $0xf84] ss:$16 sps:$4 sm:$0xff]  }
  0xc0   :  { %5199 = vmatpush2.bf16.msra.mxu1 %v16136_v51  ;;  %5209 = vmatprep.subr.bf16.mxu0 %v16141_v52  ;;  %v16205_v51 = vld [vmem:[%s24836_s2 + $0xd80] ss:$16 sps:$4 sm:$0xff]  }
  0xc1   :  { %5250 = vmatprep.subr.bf16.mxu1 %v16144_v53  ;;  %v16208_v52 = vld [vmem:[%s24836_s2 + $0xf80] ss:$16 sps:$4 sm:$0xff]   ;;  %v16213_v53 = vld [vmem:[%s24836_s2 + $0xd64] ss:$16 sps:$4 sm:$0xff]  }
  0xc2   :  { %5160 = vmatmul.mubr.bf16.vlgmr.msra.gmra.mxu0 %v19356_v50 }
  0xc3   :  { %5201 = vmatmul.mubr.bf16.vlgmr.msra.gmra.mxu1 %v19372_v35  ;;  %5210 = vmatpush1.bf16.msra.mxu0 %v16139_v55  ;;  %v16216_v55 = vld [vmem:[%s24836_s2 + $0xf64] ss:$16 sps:$4 sm:$0xff]  }
  0xc4   :  { %5251 = vmatpush1.bf16.msra.mxu1 %v16142_v56  ;;  %5211 = vmatprep.subr.bf16.mxu0 %v16147_v57  ;;  %v16211_v56 = vld [vmem:[%s24836_s2 + $0xd60] ss:$16 sps:$4 sm:$0xff]  }
  0xc5   :  { %5252 = vmatprep.subr.bf16.mxu1 %v16150_v58  ;;  %5241 = vmatprep.mubr.bf16.mxu0 %v19368_v54  ;;  %v16214_v57 = vld [vmem:[%s24836_s2 + $0xf60] ss:$16 sps:$4 sm:$0xff]   ;;  %v16219_v58 = vld [vmem:[%s24836_s2 + $0xd44] ss:$16 sps:$4 sm:$0xff]  }
  0xc6   :  { %5282 = vmatprep.mubr.bf16.mxu1 %v19388_v59 }
  0xc7   :  { %5212 = vmatpush1.bf16.msra.mxu0 %v16145_v61  ;;  %v16222_v61 = vld [vmem:[%s24836_s2 + $0xf44] ss:$16 sps:$4 sm:$0xff]  }
  0xc8   :  { %5253 = vmatpush1.bf16.msra.mxu1 %v16148_v62  ;;  %5213 = vmatprep.subr.bf16.mxu0 %v16153_v63  ;;  %v16217_v62 = vld [vmem:[%s24836_s2 + $0xd40] ss:$16 sps:$4 sm:$0xff]  }
  0xc9   :  { %5254 = vmatprep.subr.bf16.mxu1 %v16156_v1  ;;  %v16220_v63 = vld [vmem:[%s24836_s2 + $0xf40] ss:$16 sps:$4 sm:$0xff]  }
  0xca   :  { %v19547_v1 = vld [vmem:[%s24834_s0 + $0x10] sm:$0xff] }
  0xcb   :  { %5214 = vmatpush1.bf16.msra.mxu0 %v16151_v2  ;;  %v16225_v2 = vld [vmem:[%s24836_s2 + $0xd24] ss:$16 sps:$4 sm:$0xff]  }
  0xcc   :  { %5255 = vmatpush1.bf16.msra.mxu1 %v16154_v3  ;;  %5215 = vmatprep.subr.bf16.mxu0 %v16159_v4  ;;  %v16228_v3 = vld [vmem:[%s24836_s2 + $0xf24] ss:$16 sps:$4 sm:$0xff]   ;;  %v19557_v4 = vrot.slane %v19547_v1, %v18838_v49 }
  0xcd   :  { %5256 = vmatprep.subr.bf16.mxu1 %v16162_v5  ;;  %v16223_v5 = vld [vmem:[%s24836_s2 + $0xd20] ss:$16 sps:$4 sm:$0xff]  }
  0xcf   :  { %5216 = vmatpush1.bf16.msra.mxu0 %v16157_v7  ;;  %v16226_v7 = vld [vmem:[%s24836_s2 + $0xf20] ss:$16 sps:$4 sm:$0xff]  }
  0xd0   :  { %5257 = vmatpush1.bf16.msra.mxu1 %v16160_v8  ;;  %5217 = vmatprep.subr.bf16.mxu0 %v16165_v9  ;;  %v16231_v8 = vld [vmem:[%s24836_s2 + $0xd04] ss:$16 sps:$4 sm:$0xff]  }
  0xd1   :  { %5258 = vmatprep.subr.bf16.mxu1 %v16168_v10  ;;  %v16234_v9 = vld [vmem:[%s24836_s2 + $0xf04] ss:$16 sps:$4 sm:$0xff]   ;;  %v16229_v10 = vld [vmem:[%s24836_s2 + $0xd00] ss:$16 sps:$4 sm:$0xff]  }
  0xd3   :  { %5218 = vmatpush1.bf16.msra.mxu0 %v16163_v11  ;;  %v967_v11 = vcombine.high %v19557_v4, %v19557_v4 }
  0xd4   :  { %5259 = vmatpush1.bf16.msra.mxu1 %v16166_v12  ;;  %5219 = vmatprep.subr.bf16.mxu0 %v16171_v14  ;;  %v16232_v12 = vld [vmem:[%s24836_s2 + $0xf00] ss:$16 sps:$4 sm:$0xff]  }
  0xd5   :  { %5260 = vmatprep.subr.bf16.mxu1 %v16174_v15  ;;  %v828_v14 = vld [vmem:[%s24837_s3] sm:$0xf]  ;;  %v19584_v15 = vrot.slane %v19335_v39, %v18838_v49  ;;  %v19599_v39 = vrot.slane %v967_v11, %v18838_v49 }
  0xd6   :  { %v16269_v11 = vld [vmem:[%s24836_s2 + $0x1240] ss:$16 sps:$4 sm:$0xff]  }
  0xd7   :  { %5220 = vmatpush1.bf16.msra.mxu0 %v16169_v16  ;;  %v19587_v16 = vsub.s32 0, %v18820_v42 }
  0xd8   :  { %5261 = vmatpush1.bf16.msra.mxu1 %v16172_v19  ;;  %5221 = vmatprep.subr.bf16.mxu0 %v16177_v20  ;;  %v16238_v19 = vld [vmem:[%s24836_s2 + $0x10e4] ss:$16 sps:$4 sm:$0xff]  }
  0xd9   :  { %5262 = vmatprep.subr.bf16.mxu1 %v16180_v21  ;;  %v16241_v20 = vld [vmem:[%s24836_s2 + $0x12e4] ss:$16 sps:$4 sm:$0xff]   ;;  %v19596_v21 = vsub.s32 1, %v18820_v42 }
  0xdb   :  { %5222 = vmatpush1.bf16.msra.mxu0 %v16175_v22  ;;  %v19603_v22 = vcombine.high %v19584_v15, %v19584_v15 }
  0xdc   :  { %5263 = vmatpush1.bf16.msra.mxu1 %v16178_v24  ;;  %5223 = vmatprep.subr.bf16.mxu0 %v16183_v25  ;;  %v16236_v24 = vld [vmem:[%s24836_s2 + $0x10e0] ss:$16 sps:$4 sm:$0xff]  }
  0xdd   :  { %5264 = vmatprep.subr.bf16.mxu1 %v16186_v27  ;;  %v16239_v25 = vld [vmem:[%s24836_s2 + $0x12e0] ss:$16 sps:$4 sm:$0xff]   ;;  %v833_v27 = vrot.slane %v828_v14, %v19587_v16 }
  0xdf   :  { %5224 = vmatpush1.bf16.msra.mxu0 %v16181_v28  ;;  %v16244_v28 = vld [vmem:[%s24836_s2 + $0x10c4] ss:$16 sps:$4 sm:$0xff]  }
  0xe0   :  { %5265 = vmatpush1.bf16.msra.mxu1 %v16184_v29  ;;  %5225 = vmatprep.subr.bf16.mxu0 %v16189_v30  ;;  %v16247_v29 = vld [vmem:[%s24836_s2 + $0x12c4] ss:$16 sps:$4 sm:$0xff]   ;;  %v837_v30 = vrot.slane %v828_v14, %v19596_v21 }
  0xe1   :  { %5266 = vmatprep.subr.bf16.mxu1 %v16192_v31  ;;  %v19621_v31 = vcombine.high %v19599_v39, %v19599_v39  ;;  %v16277_v14 = vld [vmem:[%s24836_s2 + $0x1224] ss:$16 sps:$4 sm:$0xff]  }
  0xe3   :  { %5226 = vmatpush2.bf16.msra.mxu0 %v16187_v33 }
  0xe4   :  { %5267 = vmatpush2.bf16.msra.mxu1 %v16190_v34  ;;  %5227 = vmatprep.subr.bf16.mxu0 %v16195_v36  ;;  %v16242_v36 = vld [vmem:[%s24836_s2 + $0x10c0] ss:$16 sps:$4 sm:$0xff]  }
  0xe5   :  { %5268 = vmatprep.subr.bf16.mxu1 %v16198_v37  ;;  %v16245_v37 = vld [vmem:[%s24836_s2 + $0x12c0] ss:$16 sps:$4 sm:$0xff]  }
  0xe7   :  { %5228 = vmatpush2.bf16.msra.mxu0 %v16193_v38 }
  0xe8   :  { %5269 = vmatpush2.bf16.msra.mxu1 %v16196_v32  ;;  %5229 = vmatprep.subr.bf16.mxu0 %v16201_v40 }
  0xe9   :  { %5270 = vmatprep.subr.bf16.mxu1 %v16204_v44  ;;  %v16250_v44 = vld [vmem:[%s24836_s2 + $0x10a4] ss:$16 sps:$4 sm:$0xff]  }
  0xeb   :  { %5230 = vmatpush2.bf16.msra.mxu0 %v16199_v45  ;;  %v16253_v45 = vld [vmem:[%s24836_s2 + $0x12a4] ss:$16 sps:$4 sm:$0xff]  }
  0xec   :  { %5271 = vmatpush2.bf16.msra.mxu1 %v16202_v46  ;;  %5231 = vmatprep.subr.bf16.mxu0 %v16207_v47 }
  0xed   :  { %5272 = vmatprep.subr.bf16.mxu1 %v16210_v48  ;;  %v16248_v48 = vld [vmem:[%s24836_s2 + $0x10a0] ss:$16 sps:$4 sm:$0xff]  }
  0xef   :  { %5232 = vmatpush2.bf16.msra.mxu0 %v16205_v51  ;;  %v16251_v51 = vld [vmem:[%s24836_s2 + $0x12a0] ss:$16 sps:$4 sm:$0xff]  }
  0xf0   :  { %5273 = vmatpush2.bf16.msra.mxu1 %v16208_v52  ;;  %5233 = vmatprep.subr.bf16.mxu0 %v16213_v53 }
  0xf1   :  { %5274 = vmatprep.subr.bf16.mxu1 %v16216_v55 }
  0xf3   :  { %5234 = vmatpush2.bf16.msra.mxu0 %v16211_v56 }
  0xf4   :  { %5275 = vmatpush2.bf16.msra.mxu1 %v16214_v57  ;;  %5235 = vmatprep.subr.bf16.mxu0 %v16219_v58  ;;  %v16256_v58 = vld [vmem:[%s24836_s2 + $0x1084] ss:$16 sps:$4 sm:$0xff]  }
  0xf5   :  { %5276 = vmatprep.subr.bf16.mxu1 %v16222_v61  ;;  %v16259_v61 = vld [vmem:[%s24836_s2 + $0x1284] ss:$16 sps:$4 sm:$0xff]  }
  0xf7   :  { %5236 = vmatpush2.bf16.msra.mxu0 %v16217_v62  ;;  %v16254_v62 = vld [vmem:[%s24836_s2 + $0x1080] ss:$16 sps:$4 sm:$0xff]  }
  0xf8   :  { %5277 = vmatpush2.bf16.msra.mxu1 %v16220_v63  ;;  %5237 = vmatprep.subr.bf16.mxu0 %v16225_v2  ;;  %v16257_v63 = vld [vmem:[%s24836_s2 + $0x1280] ss:$16 sps:$4 sm:$0xff]   ;;  %v16262_v2 = vld [vmem:[%s24836_s2 + $0x1064] ss:$16 sps:$4 sm:$0xff]  }
  0xf9   :  { %5278 = vmatprep.subr.bf16.mxu1 %v16228_v3  ;;  %v16265_v3 = vld [vmem:[%s24836_s2 + $0x1264] ss:$16 sps:$4 sm:$0xff]  }
  0xfb   :  { %5238 = vmatpush2.bf16.msra.mxu0 %v16223_v5  ;;  %v16260_v5 = vld [vmem:[%s24836_s2 + $0x1060] ss:$16 sps:$4 sm:$0xff]  }
  0xfc   :  { %5279 = vmatpush2.bf16.msra.mxu1 %v16226_v7  ;;  %5239 = vmatprep.subr.bf16.mxu0 %v16231_v8  ;;  %v16263_v7 = vld [vmem:[%s24836_s2 + $0x1260] ss:$16 sps:$4 sm:$0xff]   ;;  %v16268_v8 = vld [vmem:[%s24836_s2 + $0x1044] ss:$16 sps:$4 sm:$0xff]  }
  0xfd   :  { %5280 = vmatprep.subr.bf16.mxu1 %v16234_v9  ;;  %v16271_v9 = vld [vmem:[%s24836_s2 + $0x1244] ss:$16 sps:$4 sm:$0xff]  }
  0xff   :  { %5240 = vmatpush2.bf16.msra.mxu0 %v16229_v10  ;;  %v16266_v10 = vld [vmem:[%s24836_s2 + $0x1040] ss:$16 sps:$4 sm:$0xff]  }
 0x100   :  { %5281 = vmatpush2.bf16.msra.mxu1 %v16232_v12  ;;  %5291 = vmatprep.subr.bf16.mxu0 %v16238_v19  ;;  %v16274_v12 = vld [vmem:[%s24836_s2 + $0x1024] ss:$16 sps:$4 sm:$0xff]   ;;  %v16272_v19 = vld [vmem:[%s24836_s2 + $0x1020] ss:$16 sps:$4 sm:$0xff]  }
 0x101   :  { %5332 = vmatprep.subr.bf16.mxu1 %v16241_v20  ;;  %v16275_v20 = vld [vmem:[%s24836_s2 + $0x1220] ss:$16 sps:$4 sm:$0xff]  }
 0x102   :  { %v4997_v33 = vpop.f32.mrf.mxu0  ;;  %5242 = vmatmul.mubr.bf16.vlgmr.msra.gmra.mxu0 %v19584_v15 }
 0x103   :  { %v5038_v34 = vpop.f32.mrf.mxu1  ;;  %5283 = vmatmul.mubr.bf16.vlgmr.msra.gmra.mxu1 %v19603_v22  ;;  %v4998_v38 = vadd.f32 %v4997_v33, %v833_v27  ;;  %5292 = vmatpush1.bf16.msra.mxu0 %v16236_v24  ;;  %v16280_v24 = vld [vmem:[%s24836_s2 + $0x1004] ss:$16 sps:$4 sm:$0xff]   ;;  %v16278_v27 = vld [vmem:[%s24836_s2 + $0x1000] ss:$16 sps:$4 sm:$0xff]  }
 0x104   :  { %5333 = vmatpush1.bf16.msra.mxu1 %v16239_v25  ;;  %v4999_v32 = vpop.f32.mrf.mxu0  ;;  %5293 = vmatprep.subr.bf16.mxu0 %v16244_v28  ;;  %v16283_v25 = vld [vmem:[%s24836_s2 + $0x1204] ss:$16 sps:$4 sm:$0xff]   ;;  %v16281_v28 = vld [vmem:[%s24836_s2 + $0x1200] ss:$16 sps:$4 sm:$0xff]  }
 0x105   :  { %v5040_v40 = vpop.f32.mrf.mxu1  ;;  %5334 = vmatprep.subr.bf16.mxu1 %v16247_v29  ;;  %v19637_v46 = vadd.f32 %v5038_v34, %v4998_v38  ;;  %v5000_v47 = vadd.f32 %v4999_v32, %v837_v30  ;;  %5323 = vmatprep.mubr.bf16.mxu0 %v19599_v39  ;;  %v16286_v29 = vld [vmem:[%s24836_s2 + $0x11e4] ss:$16 sps:$4 sm:$0xff]   ;;  %v16284_v33 = vld [vmem:[%s24836_s2 + $0x11e0] ss:$16 sps:$4 sm:$0xff]  }
 0x106   :  { %5364 = vmatprep.mubr.bf16.mxu1 %v19621_v31  ;;  %v5001_v52 = vpop.f32.mrf.mxu0  ;;  %v16289_v30 = vld [vmem:[%s24836_s2 + $0x13e4] ss:$16 sps:$4 sm:$0xff]   ;;  %v16287_v34 = vld [vmem:[%s24836_s2 + $0x13e0] ss:$16 sps:$4 sm:$0xff]  }
 0x107   :  { %v5042_v53 = vpop.f32.mrf.mxu1  ;;  %v19647_v55 = vadd.f32 %v5040_v40, %v5000_v47  ;;  %5294 = vmatpush1.bf16.msra.mxu0 %v16242_v36  ;;  %v16292_v36 = vld [vmem:[%s24836_s2 + $0x11c4] ss:$16 sps:$4 sm:$0xff]   ;;  %v16290_v38 = vld [vmem:[%s24836_s2 + $0x11c0] ss:$16 sps:$4 sm:$0xff]  }
 0x108   :  { %5335 = vmatpush1.bf16.msra.mxu1 %v16245_v37  ;;  %v5002_v56 = vpop.f32.mrf.mxu0  ;;  %5295 = vmatprep.subr.bf16.mxu0 %v16250_v44  ;;  %v16295_v37 = vld [vmem:[%s24836_s2 + $0x13c4] ss:$16 sps:$4 sm:$0xff]   ;;  %v16293_v32 = vld [vmem:[%s24836_s2 + $0x13c0] ss:$16 sps:$4 sm:$0xff]  }
 0x109   :  { %v5043_v57 = vpop.f32.mrf.mxu1  ;;  %5336 = vmatprep.subr.bf16.mxu1 %v16253_v45  ;;  %v16298_v40 = vld [vmem:[%s24836_s2 + $0x11a4] ss:$16 sps:$4 sm:$0xff]   ;;  %v16296_v45 = vld [vmem:[%s24836_s2 + $0x11a0] ss:$16 sps:$4 sm:$0xff]  }
 0x10a   :  { %v16301_v44 = vld [vmem:[%s24836_s2 + $0x13a4] ss:$16 sps:$4 sm:$0xff]   ;;  %v16299_v47 = vld [vmem:[%s24836_s2 + $0x13a0] ss:$16 sps:$4 sm:$0xff]  }
 0x10b   :  { %5296 = vmatpush1.bf16.msra.mxu0 %v16248_v48  ;;  %v16304_v48 = vld [vmem:[%s24836_s2 + $0x1184] ss:$16 sps:$4 sm:$0xff]   ;;  %v16302_v52 = vld [vmem:[%s24836_s2 + $0x1180] ss:$16 sps:$4 sm:$0xff]  }
 0x10c   :  { %5337 = vmatpush1.bf16.msra.mxu1 %v16251_v51  ;;  %5297 = vmatprep.subr.bf16.mxu0 %v16256_v58  ;;  %v16307_v51 = vld [vmem:[%s24836_s2 + $0x1384] ss:$16 sps:$4 sm:$0xff]   ;;  %v16305_v53 = vld [vmem:[%s24836_s2 + $0x1380] ss:$16 sps:$4 sm:$0xff]  }
 0x10d   :  { %5338 = vmatprep.subr.bf16.mxu1 %v16259_v61  ;;  %v16310_v56 = vld [vmem:[%s24836_s2 + $0x1164] ss:$16 sps:$4 sm:$0xff]   ;;  %v16308_v58 = vld [vmem:[%s24836_s2 + $0x1160] ss:$16 sps:$4 sm:$0xff]  }
 0x10e   :  { %v16313_v57 = vld [vmem:[%s24836_s2 + $0x1364] ss:$16 sps:$4 sm:$0xff]   ;;  %v16311_v61 = vld [vmem:[%s24836_s2 + $0x1360] ss:$16 sps:$4 sm:$0xff]  }
 0x10f   :  { %5298 = vmatpush1.bf16.msra.mxu0 %v16254_v62  ;;  %v16316_v62 = vld [vmem:[%s24836_s2 + $0x1144] ss:$16 sps:$4 sm:$0xff]  }
 0x110   :  { %5339 = vmatpush1.bf16.msra.mxu1 %v16257_v63  ;;  %5299 = vmatprep.subr.bf16.mxu0 %v16262_v2  ;;  %v16319_v63 = vld [vmem:[%s24836_s2 + $0x1344] ss:$16 sps:$4 sm:$0xff]   ;;  %v952_v2 = vcombine.high %v19547_v1, %v19547_v1 }
 0x111   :  { %5340 = vmatprep.subr.bf16.mxu1 %v16265_v3  ;;  %v16314_v3 = vld [vmem:[%s24836_s2 + $0x1140] ss:$16 sps:$4 sm:$0xff]   ;;  %v16325_v1 = vld [vmem:[%s24836_s2 + $0x1324] ss:$16 sps:$4 sm:$0xff]  }
 0x113   :  { %5300 = vmatpush1.bf16.msra.mxu0 %v16260_v5  ;;  %v16317_v5 = vld [vmem:[%s24836_s2 + $0x1340] ss:$16 sps:$4 sm:$0xff]  }
 0x114   :  { %5341 = vmatpush1.bf16.msra.mxu1 %v16263_v7  ;;  %5301 = vmatprep.subr.bf16.mxu0 %v16268_v8  ;;  %v16322_v7 = vld [vmem:[%s24836_s2 + $0x1124] ss:$16 sps:$4 sm:$0xff]   ;;  %v19790_v8 = vrot.slane %v952_v2, %v18838_v49 }
 0x115   :  { %5342 = vmatprep.subr.bf16.mxu1 %v16271_v9  ;;  %v16320_v9 = vld [vmem:[%s24836_s2 + $0x1120] ss:$16 sps:$4 sm:$0xff]   ;;  %v16355_v2 = vld [vmem:[%s24836_s2 + $0x1684] ss:$16 sps:$4 sm:$0xff]  }
 0x117   :  { %5302 = vmatpush1.bf16.msra.mxu0 %v16266_v10  ;;  %v16323_v10 = vld [vmem:[%s24836_s2 + $0x1320] ss:$16 sps:$4 sm:$0xff]  }
 0x118   :  { %5343 = vmatpush1.bf16.msra.mxu1 %v16269_v11  ;;  %5303 = vmatprep.subr.bf16.mxu0 %v16274_v12  ;;  %v16328_v11 = vld [vmem:[%s24836_s2 + $0x1104] ss:$16 sps:$4 sm:$0xff]  }
 0x119   :  { %5344 = vmatprep.subr.bf16.mxu1 %v16277_v14  ;;  %v16331_v12 = vld [vmem:[%s24836_s2 + $0x1304] ss:$16 sps:$4 sm:$0xff]   ;;  %v968_v14 = vcombine.high %v19790_v8, %v19790_v8 }
 0x11b   :  { %5304 = vmatpush1.bf16.msra.mxu0 %v16272_v19  ;;  %v19808_v19 = vrot.slane %v19557_v4, %v18838_v49  ;;  %v16337_v4 = vld [vmem:[%s24836_s2 + $0x16e4] ss:$16 sps:$4 sm:$0xff]  }
 0x11c   :  { %5345 = vmatpush1.bf16.msra.mxu1 %v16275_v20  ;;  %5305 = vmatprep.subr.bf16.mxu0 %v16280_v24  ;;  %v16326_v20 = vld [vmem:[%s24836_s2 + $0x1100] ss:$16 sps:$4 sm:$0xff]  }
 0x11d   :  { %5346 = vmatprep.subr.bf16.mxu1 %v16283_v25  ;;  %v16329_v24 = vld [vmem:[%s24836_s2 + $0x1300] ss:$16 sps:$4 sm:$0xff]   ;;  %v16334_v25 = vld [vmem:[%s24836_s2 + $0x14e4] ss:$16 sps:$4 sm:$0xff]  }
 0x11f   :  { %5306 = vmatpush1.bf16.msra.mxu0 %v16278_v27  ;;  %v16332_v27 = vld [vmem:[%s24836_s2 + $0x14e0] ss:$16 sps:$4 sm:$0xff]  }
 0x120   :  { %5347 = vmatpush1.bf16.msra.mxu1 %v16281_v28  ;;  %5307 = vmatprep.subr.bf16.mxu0 %v16286_v29  ;;  %v16335_v28 = vld [vmem:[%s24836_s2 + $0x16e0] ss:$16 sps:$4 sm:$0xff]   ;;  %v19829_v29 = vrot.slane %v968_v14, %v18838_v49 }
 0x121   :  { %5348 = vmatprep.subr.bf16.mxu1 %v16289_v30  ;;  %v19833_v30 = vcombine.high %v19808_v19, %v19808_v19  ;;  %v16362_v14 = vld [vmem:[%s24836_s2 + $0x1440] ss:$16 sps:$4 sm:$0xff]  }
 0x123   :  { %5308 = vmatpush2.bf16.msra.mxu0 %v16284_v33  ;;  %v16340_v33 = vld [vmem:[%s24836_s2 + $0x14c4] ss:$16 sps:$4 sm:$0xff]  }
 0x124   :  { %5349 = vmatpush2.bf16.msra.mxu1 %v16287_v34  ;;  %5309 = vmatprep.subr.bf16.mxu0 %v16292_v36  ;;  %v16343_v34 = vld [vmem:[%s24836_s2 + $0x16c4] ss:$16 sps:$4 sm:$0xff]   ;;  %v16338_v36 = vld [vmem:[%s24836_s2 + $0x14c0] ss:$16 sps:$4 sm:$0xff]  }
 0x125   :  { %5350 = vmatprep.subr.bf16.mxu1 %v16295_v37  ;;  %v16341_v37 = vld [vmem:[%s24836_s2 + $0x16c0] ss:$16 sps:$4 sm:$0xff]  }
 0x127   :  { %5310 = vmatpush2.bf16.msra.mxu0 %v16290_v38  ;;  %v19849_v38 = vcombine.high %v19829_v29, %v19829_v29 }
 0x128   :  { %5351 = vmatpush2.bf16.msra.mxu1 %v16293_v32  ;;  %5311 = vmatprep.subr.bf16.mxu0 %v16298_v40 }
 0x129   :  { %5352 = vmatprep.subr.bf16.mxu1 %v16301_v44 }
 0x12b   :  { %5312 = vmatpush2.bf16.msra.mxu0 %v16296_v45 }
 0x12c   :  { %5353 = vmatpush2.bf16.msra.mxu1 %v16299_v47  ;;  %5313 = vmatprep.subr.bf16.mxu0 %v16304_v48  ;;  %v16346_v48 = vld [vmem:[%s24836_s2 + $0x14a4] ss:$16 sps:$4 sm:$0xff]  }
 0x12d   :  { %5354 = vmatprep.subr.bf16.mxu1 %v16307_v51  ;;  %v16349_v51 = vld [vmem:[%s24836_s2 + $0x16a4] ss:$16 sps:$4 sm:$0xff]  }
 0x12f   :  { %5314 = vmatpush2.bf16.msra.mxu0 %v16302_v52 }
 0x130   :  { %5355 = vmatpush2.bf16.msra.mxu1 %v16305_v53  ;;  %5315 = vmatprep.subr.bf16.mxu0 %v16310_v56  ;;  %v16347_v56 = vld [vmem:[%s24836_s2 + $0x16a0] ss:$16 sps:$4 sm:$0xff]  }
 0x131   :  { %5356 = vmatprep.subr.bf16.mxu1 %v16313_v57 }
 0x133   :  { %5316 = vmatpush2.bf16.msra.mxu0 %v16308_v58 }
 0x134   :  { %5357 = vmatpush2.bf16.msra.mxu1 %v16311_v61  ;;  %5317 = vmatprep.subr.bf16.mxu0 %v16316_v62 }
 0x135   :  { %5358 = vmatprep.subr.bf16.mxu1 %v16319_v63  ;;  %v16352_v63 = vld [vmem:[%s24836_s2 + $0x1484] ss:$16 sps:$4 sm:$0xff]  }
 0x137   :  { %5318 = vmatpush2.bf16.msra.mxu0 %v16314_v3  ;;  %v16350_v3 = vld [vmem:[%s24836_s2 + $0x1480] ss:$16 sps:$4 sm:$0xff]  }
 0x138   :  { %5359 = vmatpush2.bf16.msra.mxu1 %v16317_v5  ;;  %5319 = vmatprep.subr.bf16.mxu0 %v16322_v7  ;;  %v16353_v5 = vld [vmem:[%s24836_s2 + $0x1680] ss:$16 sps:$4 sm:$0xff]   ;;  %v16358_v7 = vld [vmem:[%s24836_s2 + $0x1464] ss:$16 sps:$4 sm:$0xff]  }
 0x139   :  { %5360 = vmatprep.subr.bf16.mxu1 %v16325_v1  ;;  %v16361_v1 = vld [vmem:[%s24836_s2 + $0x1664] ss:$16 sps:$4 sm:$0xff]  }
 0x13b   :  { %5320 = vmatpush2.bf16.msra.mxu0 %v16320_v9  ;;  %v16356_v9 = vld [vmem:[%s24836_s2 + $0x1460] ss:$16 sps:$4 sm:$0xff]  }
 0x13c   :  { %5361 = vmatpush2.bf16.msra.mxu1 %v16323_v10  ;;  %5321 = vmatprep.subr.bf16.mxu0 %v16328_v11  ;;  %v16359_v10 = vld [vmem:[%s24836_s2 + $0x1660] ss:$16 sps:$4 sm:$0xff]   ;;  %v16364_v11 = vld [vmem:[%s24836_s2 + $0x1444] ss:$16 sps:$4 sm:$0xff]  }
 0x13d   :  { %5362 = vmatprep.subr.bf16.mxu1 %v16331_v12  ;;  %v16367_v12 = vld [vmem:[%s24836_s2 + $0x1644] ss:$16 sps:$4 sm:$0xff]  }
 0x13f   :  { %5322 = vmatpush2.bf16.msra.mxu0 %v16326_v20  ;;  %v16365_v20 = vld [vmem:[%s24836_s2 + $0x1640] ss:$16 sps:$4 sm:$0xff]  }
 0x140   :  { %5363 = vmatpush2.bf16.msra.mxu1 %v16329_v24  ;;  %5373 = vmatprep.subr.bf16.mxu0 %v16334_v25  ;;  %v16370_v24 = vld [vmem:[%s24836_s2 + $0x1424] ss:$16 sps:$4 sm:$0xff]  }
 0x141   :  { %5414 = vmatprep.subr.bf16.mxu1 %v16337_v4  ;;  %v16373_v25 = vld [vmem:[%s24836_s2 + $0x1624] ss:$16 sps:$4 sm:$0xff]   ;;  %v16368_v4 = vld [vmem:[%s24836_s2 + $0x1420] ss:$16 sps:$4 sm:$0xff]  }
 0x142   :  { %v5079_v32 = vpop.f32.mrf.mxu0  ;;  %5324 = vmatmul.mubr.bf16.vlgmr.msra.gmra.mxu0 %v19808_v19 }
 0x143   :  { %v5120_v40 = vpop.f32.mrf.mxu1  ;;  %5365 = vmatmul.mubr.bf16.vlgmr.msra.gmra.mxu1 %v19833_v30  ;;  %v5080_v44 = vadd.f32 %v5079_v32, %v19637_v46  ;;  %5374 = vmatpush1.bf16.msra.mxu0 %v16332_v27  ;;  %v16344_v46 = vld [vmem:[%s24836_s2 + $0x14a0] ss:$16 sps:$4 sm:$0xff]   ;;  %v16385_v32 = vld [vmem:[%s24836_s2 + $0x17e4] ss:$16 sps:$4 sm:$0xff]  }
 0x144   :  { %5415 = vmatpush1.bf16.msra.mxu1 %v16335_v28  ;;  %v5081_v45 = vpop.f32.mrf.mxu0  ;;  %5375 = vmatprep.subr.bf16.mxu0 %v16340_v33  ;;  %v16371_v27 = vld [vmem:[%s24836_s2 + $0x1620] ss:$16 sps:$4 sm:$0xff]   ;;  %v16376_v28 = vld [vmem:[%s24836_s2 + $0x1404] ss:$16 sps:$4 sm:$0xff]  }
 0x145   :  { %v5122_v47 = vpop.f32.mrf.mxu1  ;;  %5416 = vmatprep.subr.bf16.mxu1 %v16343_v34  ;;  %v19860_v52 = vadd.f32 %v5120_v40, %v5080_v44  ;;  %v5082_v53 = vadd.f32 %v5081_v45, %v19647_v55  ;;  %5405 = vmatprep.mubr.bf16.mxu0 %v19829_v29  ;;  %v16379_v33 = vld [vmem:[%s24836_s2 + $0x1604] ss:$16 sps:$4 sm:$0xff]   ;;  %v16374_v34 = vld [vmem:[%s24836_s2 + $0x1400] ss:$16 sps:$4 sm:$0xff]  }
 0x146   :  { %5446 = vmatprep.mubr.bf16.mxu1 %v19849_v38  ;;  %v5083_v57 = vpop.f32.mrf.mxu0  ;;  %v16380_v40 = vld [vmem:[%s24836_s2 + $0x15e0] ss:$16 sps:$4 sm:$0xff]   ;;  %v16388_v45 = vld [vmem:[%s24836_s2 + $0x15c4] ss:$16 sps:$4 sm:$0xff]  }
 0x147   :  { %v5124_v58 = vpop.f32.mrf.mxu1  ;;  %v19871_v61 = vadd.f32 %v5122_v47, %v5082_v53  ;;  %5376 = vmatpush1.bf16.msra.mxu0 %v16338_v36  ;;  %v16377_v36 = vld [vmem:[%s24836_s2 + $0x1600] ss:$16 sps:$4 sm:$0xff]   ;;  %v16391_v47 = vld [vmem:[%s24836_s2 + $0x17c4] ss:$16 sps:$4 sm:$0xff]  }
 0x148   :  { %5417 = vmatpush1.bf16.msra.mxu1 %v16341_v37  ;;  %v5084_v62 = vpop.f32.mrf.mxu0  ;;  %5377 = vmatprep.subr.bf16.mxu0 %v16346_v48  ;;  %v16382_v37 = vld [vmem:[%s24836_s2 + $0x15e4] ss:$16 sps:$4 sm:$0xff]   ;;  %v16383_v44 = vld [vmem:[%s24836_s2 + $0x17e0] ss:$16 sps:$4 sm:$0xff]  }
 0x149   :  { %v5125_v55 = vpop.f32.mrf.mxu1  ;;  %5418 = vmatprep.subr.bf16.mxu1 %v16349_v51  ;;  %v16386_v48 = vld [vmem:[%s24836_s2 + $0x15c0] ss:$16 sps:$4 sm:$0xff]   ;;  %v16394_v53 = vld [vmem:[%s24836_s2 + $0x15a4] ss:$16 sps:$4 sm:$0xff]  }
 0x14a   :  { %v16389_v51 = vld [vmem:[%s24836_s2 + $0x17c0] ss:$16 sps:$4 sm:$0xff]   ;;  %v16400_v58 = vld [vmem:[%s24836_s2 + $0x1584] ss:$16 sps:$4 sm:$0xff]  }
 0x14b   :  { %5378 = vmatpush1.bf16.msra.mxu0 %v16344_v46  ;;  %v16397_v46 = vld [vmem:[%s24836_s2 + $0x17a4] ss:$16 sps:$4 sm:$0xff]   ;;  %v16395_v57 = vld [vmem:[%s24836_s2 + $0x17a0] ss:$16 sps:$4 sm:$0xff]  }
 0x14c   :  { %5419 = vmatpush1.bf16.msra.mxu1 %v16347_v56  ;;  %5379 = vmatprep.subr.bf16.mxu0 %v16352_v63  ;;  %v16392_v56 = vld [vmem:[%s24836_s2 + $0x15a0] ss:$16 sps:$4 sm:$0xff]   ;;  %v16403_v62 = vld [vmem:[%s24836_s2 + $0x1784] ss:$16 sps:$4 sm:$0xff]  }
 0x14d   :  { %5420 = vmatprep.subr.bf16.mxu1 %v16355_v2  ;;  %v16398_v55 = vld [vmem:[%s24836_s2 + $0x1580] ss:$16 sps:$4 sm:$0xff]   ;;  %v16406_v2 = vld [vmem:[%s24836_s2 + $0x1564] ss:$16 sps:$4 sm:$0xff]  }
 0x14e   :  { %v16401_v63 = vld [vmem:[%s24836_s2 + $0x1780] ss:$16 sps:$4 sm:$0xff]  }
 0x14f   :  { %5380 = vmatpush1.bf16.msra.mxu0 %v16350_v3  ;;  %v16409_v3 = vld [vmem:[%s24836_s2 + $0x1764] ss:$16 sps:$4 sm:$0xff]  }
 0x150   :  { %5421 = vmatpush1.bf16.msra.mxu1 %v16353_v5  ;;  %5381 = vmatprep.subr.bf16.mxu0 %v16358_v7  ;;  %v16404_v5 = vld [vmem:[%s24836_s2 + $0x1560] ss:$16 sps:$4 sm:$0xff]  }
 0x151   :  { %5422 = vmatprep.subr.bf16.mxu1 %v16361_v1  ;;  %v16407_v7 = vld [vmem:[%s24836_s2 + $0x1760] ss:$16 sps:$4 sm:$0xff]   ;;  %v16412_v1 = vld [vmem:[%s24836_s2 + $0x1544] ss:$16 sps:$4 sm:$0xff]  }
 0x153   :  { %5382 = vmatpush1.bf16.msra.mxu0 %v16356_v9  ;;  %v16415_v9 = vld [vmem:[%s24836_s2 + $0x1744] ss:$16 sps:$4 sm:$0xff]  }
 0x154   :  { %5423 = vmatpush1.bf16.msra.mxu1 %v16359_v10  ;;  %5383 = vmatprep.subr.bf16.mxu0 %v16364_v11  ;;  %v16410_v10 = vld [vmem:[%s24836_s2 + $0x1540] ss:$16 sps:$4 sm:$0xff]  }
 0x155   :  { %5424 = vmatprep.subr.bf16.mxu1 %v16367_v12  ;;  %v16413_v11 = vld [vmem:[%s24836_s2 + $0x1740] ss:$16 sps:$4 sm:$0xff]   ;;  %v16418_v12 = vld [vmem:[%s24836_s2 + $0x1524] ss:$16 sps:$4 sm:$0xff]  }
 0x157   :  { %5384 = vmatpush1.bf16.msra.mxu0 %v16362_v14  ;;  %v16421_v14 = vld [vmem:[%s24836_s2 + $0x1724] ss:$16 sps:$4 sm:$0xff]  }
 0x158   :  { %5425 = vmatpush1.bf16.msra.mxu1 %v16365_v20  ;;  %5385 = vmatprep.subr.bf16.mxu0 %v16370_v24  ;;  %v16416_v20 = vld [vmem:[%s24836_s2 + $0x1520] ss:$16 sps:$4 sm:$0xff]  }
 0x159   :  { %5426 = vmatprep.subr.bf16.mxu1 %v16373_v25  ;;  %v16419_v24 = vld [vmem:[%s24836_s2 + $0x1720] ss:$16 sps:$4 sm:$0xff]   ;;  %v16424_v25 = vld [vmem:[%s24836_s2 + $0x1504] ss:$16 sps:$4 sm:$0xff]  }
 0x15b   :  { %5386 = vmatpush1.bf16.msra.mxu0 %v16368_v4  ;;  %v16427_v4 = vld [vmem:[%s24836_s2 + $0x1704] ss:$16 sps:$4 sm:$0xff]  }
 0x15c   :  { %5427 = vmatpush1.bf16.msra.mxu1 %v16371_v27  ;;  %5387 = vmatprep.subr.bf16.mxu0 %v16376_v28  ;;  %v20025_v27 = vrot.slane %v19790_v8, %v18838_v49  ;;  %v16422_v28 = vld [vmem:[%s24836_s2 + $0x1500] ss:$16 sps:$4 sm:$0xff]   ;;  %v16434_v8 = vld [vmem:[%s24836_s2 + $0xec] ss:$16 sps:$4 sm:$0xff]  }
 0x15d   :  { %5428 = vmatprep.subr.bf16.mxu1 %v16379_v33  ;;  %v16425_v33 = vld [vmem:[%s24836_s2 + $0x1700] ss:$16 sps:$4 sm:$0xff]  }
 0x15f   :  { %5388 = vmatpush1.bf16.msra.mxu0 %v16374_v34  ;;  %v16431_v34 = vld [vmem:[%s24836_s2 + $0x1864] ss:$16 sps:$4 sm:$0xff]  }
 0x160   :  { %5429 = vmatpush1.bf16.msra.mxu1 %v16377_v36  ;;  %5389 = vmatprep.subr.bf16.mxu0 %v16382_v37  ;;  %v16429_v36 = vld [vmem:[%s24836_s2 + $0x1860] ss:$16 sps:$4 sm:$0xff]   ;;  %v16432_v37 = vld [vmem:[%s24836_s2 + $0xe8] ss:$16 sps:$4 sm:$0xff]  }
 0x161   :  { %5430 = vmatprep.subr.bf16.mxu1 %v16385_v32  ;;  %v20047_v32 = vcombine.high %v20025_v27, %v20025_v27 }
 0x163   :  { %5390 = vmatpush2.bf16.msra.mxu0 %v16380_v40  ;;  %v16437_v40 = vld [vmem:[%s24836_s2 + $0x1844] ss:$16 sps:$4 sm:$0xff]  }
 0x164   :  { %5431 = vmatpush2.bf16.msra.mxu1 %v16383_v44  ;;  %5391 = vmatprep.subr.bf16.mxu0 %v16388_v45  ;;  %v16440_v44 = vld [vmem:[%s24836_s2 + $0xcc] ss:$16 sps:$4 sm:$0xff]   ;;  %v16435_v45 = vld [vmem:[%s24836_s2 + $0x1840] ss:$16 sps:$4 sm:$0xff]  }
 0x165   :  { %5432 = vmatprep.subr.bf16.mxu1 %v16391_v47  ;;  %v16438_v47 = vld [vmem:[%s24836_s2 + $0xc8] ss:$16 sps:$4 sm:$0xff]  }
 0x167   :  { %5392 = vmatpush2.bf16.msra.mxu0 %v16386_v48 }
 0x168   :  { %5433 = vmatpush2.bf16.msra.mxu1 %v16389_v51  ;;  %5393 = vmatprep.subr.bf16.mxu0 %v16394_v53 }
 0x169   :  { %5434 = vmatprep.subr.bf16.mxu1 %v16397_v46 }
 0x16b   :  { %5394 = vmatpush2.bf16.msra.mxu0 %v16392_v56 }
 0x16c   :  { %5435 = vmatpush2.bf16.msra.mxu1 %v16395_v57  ;;  %5395 = vmatprep.subr.bf16.mxu0 %v16400_v58  ;;  %v16443_v57 = vld [vmem:[%s24836_s2 + $0x1824] ss:$16 sps:$4 sm:$0xff]   ;;  %v16446_v58 = vld [vmem:[%s24836_s2 + $0xac] ss:$16 sps:$4 sm:$0xff]  }
 0x16d   :  { %5436 = vmatprep.subr.bf16.mxu1 %v16403_v62 }
 0x16f   :  { %5396 = vmatpush2.bf16.msra.mxu0 %v16398_v55 }
 0x170   :  { %5437 = vmatpush2.bf16.msra.mxu1 %v16401_v63  ;;  %5397 = vmatprep.subr.bf16.mxu0 %v16406_v2  ;;  %v16444_v63 = vld [vmem:[%s24836_s2 + $0xa8] ss:$16 sps:$4 sm:$0xff]   ;;  %v18639_v2 = vmov 0  }
 0x171   :  { %5438 = vmatprep.subr.bf16.mxu1 %v16409_v3 }
 0x173   :  { %5398 = vmatpush2.bf16.msra.mxu0 %v16404_v5 }
 0x174   :  { %5439 = vmatpush2.bf16.msra.mxu1 %v16407_v7  ;;  %5399 = vmatprep.subr.bf16.mxu0 %v16412_v1 }
 0x175   :  { %5440 = vmatprep.subr.bf16.mxu1 %v16415_v9  ;;  %v16449_v9 = vld [vmem:[%s24836_s2 + $0x1804] ss:$16 sps:$4 sm:$0xff]  }
 0x177   :  { %5400 = vmatpush2.bf16.msra.mxu0 %v16410_v10  ;;  %v16452_v10 = vld [vmem:[%s24836_s2 + $0x8c] ss:$16 sps:$4 sm:$0xff]  }
 0x178   :  { %5441 = vmatpush2.bf16.msra.mxu1 %v16413_v11  ;;  %5401 = vmatprep.subr.bf16.mxu0 %v16418_v12  ;;  %v16450_v11 = vld [vmem:[%s24836_s2 + $0x88] ss:$16 sps:$4 sm:$0xff]  }
 0x179   :  { %5442 = vmatprep.subr.bf16.mxu1 %v16421_v14  ;;  %v14015_v12 = vld.sshfl [vmem:[%s24834_s0 + $0x18] sm:$0x1 pattern:$0x75316420]  ;;  %v16455_v14 = vld [vmem:[%s24836_s2 + $0x6c] ss:$16 sps:$4 sm:$0xff]  }
 0x17b   :  { %5402 = vmatpush2.bf16.msra.mxu0 %v16416_v20  ;;  %v16458_v20 = vld [vmem:[%s24836_s2 + $0x2ec] ss:$16 sps:$4 sm:$0xff]  }
 0x17c   :  { %5443 = vmatpush2.bf16.msra.mxu1 %v16419_v24  ;;  %5403 = vmatprep.subr.bf16.mxu0 %v16424_v25  ;;  %v16453_v24 = vld [vmem:[%s24836_s2 + $0x68] ss:$16 sps:$4 sm:$0xff]  }
 0x17d   :  { %5444 = vmatprep.subr.bf16.mxu1 %v16427_v4  ;;  %v16456_v25 = vld [vmem:[%s24836_s2 + $0x2e8] ss:$16 sps:$4 sm:$0xff]   ;;  %v20111_v4 = vrot.slane %v14015_v12, %v18838_v49  ;;  %v16506_v12 = vld [vmem:[%s24836_s2 + $0x3ec] ss:$16 sps:$4 sm:$0xff]  }
 0x17f   :  { %5404 = vmatpush2.bf16.msra.mxu0 %v16422_v28  ;;  %v16461_v28 = vld [vmem:[%s24836_s2 + $0x4c] ss:$16 sps:$4 sm:$0xff]  }
 0x180   :  { %5445 = vmatpush2.bf16.msra.mxu1 %v16425_v33  ;;  %5463 = vmatprep.subr.bf16.mxu0 %v16431_v34  ;;  %v16464_v33 = vld [vmem:[%s24836_s2 + $0x2cc] ss:$16 sps:$4 sm:$0xff]   ;;  %v16459_v34 = vld [vmem:[%s24836_s2 + $0x48] ss:$16 sps:$4 sm:$0xff]  }
 0x181   :  { %5496 = vmatprep.subr.bf16.mxu1 %v16434_v8  ;;  %v16462_v8 = vld [vmem:[%s24836_s2 + $0x2c8] ss:$16 sps:$4 sm:$0xff]  }
 0x182   :  { %v5161_v48 = vpop.f32.mrf.mxu0  ;;  %5406 = vmatmul.mubr.bf16.vlgmr.msra.gmra.mxu0 %v20025_v27 }
 0x183   :  { %v5202_v51 = vpop.f32.mrf.mxu1  ;;  %5447 = vmatmul.mubr.bf16.vlgmr.msra.gmra.mxu1 %v20047_v32  ;;  %v5162_v53 = vadd.f32 %v5161_v48, %v19860_v52  ;;  %5464 = vmatpush1.bf16.msra.mxu0 %v16429_v36  ;;  %v16441_v52 = vld [vmem:[%s24836_s2 + $0x1820] ss:$16 sps:$4 sm:$0xff]   ;;  %v16467_v36 = vld [vmem:[%s24836_s2 + $0x2c] ss:$16 sps:$4 sm:$0xff]   ;;  %v16474_v48 = vld [vmem:[%s24836_s2 + $0x288] ss:$16 sps:$4 sm:$0xff]  }
 0x184   :  { %5497 = vmatpush1.bf16.msra.mxu1 %v16432_v37  ;;  %v5163_v46 = vpop.f32.mrf.mxu0  ;;  %5465 = vmatprep.subr.bf16.mxu0 %v16437_v40  ;;  %v16470_v37 = vld [vmem:[%s24836_s2 + $0x2ac] ss:$16 sps:$4 sm:$0xff]   ;;  %v16465_v40 = vld [vmem:[%s24836_s2 + $0x28] ss:$16 sps:$4 sm:$0xff]  }
 0x185   :  { %v5204_v56 = vpop.f32.mrf.mxu1  ;;  %5498 = vmatprep.subr.bf16.mxu1 %v16440_v44  ;;  %v20070_v62 = vadd.f32 %v5202_v51, %v5162_v53  ;;  %v5164_v55 = vadd.f32 %v5163_v46, %v19871_v61  ;;  %5487 = vmatprep.mubr.bf16.mxu0 %v18639_v2  ;;  %v16468_v44 = vld [vmem:[%s24836_s2 + $0x2a8] ss:$16 sps:$4 sm:$0xff]   ;;  %v16479_v51 = vld [vmem:[%s24836_s2 + $0x1ec] ss:$16 sps:$4 sm:$0xff]  }
 0x186   :  { %5528 = vmatprep.mubr.bf16.mxu1 %v18866_v60  ;;  %v5165_v3 = vpop.f32.mrf.mxu0  ;;  %v16447_v60 = vld [vmem:[%s24836_s2 + $0x1800] ss:$16 sps:$4 sm:$0xff]   ;;  %v16482_v53 = vld [vmem:[%s24836_s2 + $0x26c] ss:$16 sps:$4 sm:$0xff]   ;;  %v16477_v46 = vld [vmem:[%s24836_s2 + $0x1e8] ss:$16 sps:$4 sm:$0xff]  }
 0x187   :  { %v5206_v5 = vpop.f32.mrf.mxu1  ;;  %v20081_v7 = vadd.f32 %v5204_v56, %v5164_v55  ;;  %5466 = vmatpush1.bf16.msra.mxu0 %v16435_v45  ;;  %v16473_v45 = vld [vmem:[%s24836_s2 + $0xc] ss:$16 sps:$4 sm:$0xff]   ;;  %v16480_v56 = vld [vmem:[%s24836_s2 + $0x268] ss:$16 sps:$4 sm:$0xff]  }
 0x188   :  { %5499 = vmatpush1.bf16.msra.mxu1 %v16438_v47  ;;  %v5166_v61 = vpop.f32.mrf.mxu0  ;;  %5467 = vmatprep.subr.bf16.mxu0 %v16443_v57  ;;  %v16471_v47 = vld [vmem:[%s24836_s2 + $0x8] ss:$16 sps:$4 sm:$0xff]   ;;  %v16485_v57 = vld [vmem:[%s24836_s2 + $0x1cc] ss:$16 sps:$4 sm:$0xff]  }
 0x189   :  { %v5207_v1 = vpop.f32.mrf.mxu1  ;;  %5500 = vmatprep.subr.bf16.mxu1 %v16446_v58  ;;  %v16488_v58 = vld [vmem:[%s24836_s2 + $0x24c] ss:$16 sps:$4 sm:$0xff]   ;;  %v16483_v55 = vld [vmem:[%s24836_s2 + $0x1c8] ss:$16 sps:$4 sm:$0xff]  }
 0x18a   :  { %v16494_v3 = vld [vmem:[%s24836_s2 + $0x22c] ss:$16 sps:$4 sm:$0xff]   ;;  %v16489_v5 = vld [vmem:[%s24836_s2 + $0x1a8] ss:$16 sps:$4 sm:$0xff]  }
 0x18b   :  { %5468 = vmatpush1.bf16.msra.mxu0 %v16441_v52  ;;  %v16486_v52 = vld [vmem:[%s24836_s2 + $0x248] ss:$16 sps:$4 sm:$0xff]   ;;  %v16497_v1 = vld [vmem:[%s24836_s2 + $0x18c] ss:$16 sps:$4 sm:$0xff]  }
 0x18c   :  { %5501 = vmatpush1.bf16.msra.mxu1 %v16444_v63  ;;  %5469 = vmatprep.subr.bf16.mxu0 %v16449_v9  ;;  %v16491_v63 = vld [vmem:[%s24836_s2 + $0x1ac] ss:$16 sps:$4 sm:$0xff]   ;;  %v16492_v61 = vld [vmem:[%s24836_s2 + $0x228] ss:$16 sps:$4 sm:$0xff]  }
 0x18d   :  { %5502 = vmatprep.subr.bf16.mxu1 %v16452_v10  ;;  %v16500_v9 = vld [vmem:[%s24836_s2 + $0x20c] ss:$16 sps:$4 sm:$0xff]   ;;  %v16495_v10 = vld [vmem:[%s24836_s2 + $0x188] ss:$16 sps:$4 sm:$0xff]  }
 0x18f   :  { %5470 = vmatpush1.bf16.msra.mxu0 %v16447_v60  ;;  %v16498_v60 = vld [vmem:[%s24836_s2 + $0x208] ss:$16 sps:$4 sm:$0xff]  }
 0x190   :  { %5503 = vmatpush1.bf16.msra.mxu1 %v16450_v11  ;;  %5537 = vmatprep.subr.bf16.mxu0 %v16458_v20  ;;  %v16503_v11 = vld [vmem:[%s24836_s2 + $0x16c] ss:$16 sps:$4 sm:$0xff]   ;;  %v16504_v20 = vld [vmem:[%s24836_s2 + $0x3e8] ss:$16 sps:$4 sm:$0xff]  }
 0x191   :  { %5504 = vmatprep.subr.bf16.mxu1 %v16455_v14  ;;  %v16501_v14 = vld [vmem:[%s24836_s2 + $0x168] ss:$16 sps:$4 sm:$0xff]  }
 0x192   :  { %14800 = vmatmul.mubr.msk.bf16.vlgmr.msra.gmra.mxu0 %vm4959_vm0, %v20111_v4 }
 0x193   :  { %5538 = vmatpush1.bf16.msra.mxu0 %v16456_v25  ;;  %5569 = vmatprep.mubr.bf16.mxu0 %v18879_v0  ;;  %v16476_v0 = vld [vmem:[%s24836_s2 + $0x28c] ss:$16 sps:$4 sm:$0xff]  }
 0x194   :  { %5505 = vmatpush1.bf16.msra.mxu1 %v16453_v24  ;;  %5539 = vmatprep.subr.bf16.mxu0 %v16464_v33  ;;  %v16509_v24 = vld [vmem:[%s24836_s2 + $0x14c] ss:$16 sps:$4 sm:$0xff]   ;;  %v16510_v33 = vld [vmem:[%s24836_s2 + $0x3c8] ss:$16 sps:$4 sm:$0xff]  }
 0x195   :  { %5506 = vmatprep.subr.bf16.mxu1 %v16461_v28  ;;  %v16512_v25 = vld [vmem:[%s24836_s2 + $0x3cc] ss:$16 sps:$4 sm:$0xff]   ;;  %v16507_v28 = vld [vmem:[%s24836_s2 + $0x148] ss:$16 sps:$4 sm:$0xff]  }
 0x197   :  { %5540 = vmatpush1.bf16.msra.mxu0 %v16462_v8  ;;  %v16518_v8 = vld [vmem:[%s24836_s2 + $0x3ac] ss:$16 sps:$4 sm:$0xff]  }
 0x198   :  { %5507 = vmatpush1.bf16.msra.mxu1 %v16459_v34  ;;  %5541 = vmatprep.subr.bf16.mxu0 %v16470_v37  ;;  %v16515_v34 = vld [vmem:[%s24836_s2 + $0x12c] ss:$16 sps:$4 sm:$0xff]   ;;  %v16516_v37 = vld [vmem:[%s24836_s2 + $0x3a8] ss:$16 sps:$4 sm:$0xff]  }
 0x199   :  { %5508 = vmatprep.subr.bf16.mxu1 %v16467_v36  ;;  %v16513_v36 = vld [vmem:[%s24836_s2 + $0x128] ss:$16 sps:$4 sm:$0xff]  }
 0x19b   :  { %5542 = vmatpush1.bf16.msra.mxu0 %v16468_v44  ;;  %v16524_v44 = vld [vmem:[%s24836_s2 + $0x38c] ss:$16 sps:$4 sm:$0xff]  }
 0x19c   :  { %5509 = vmatpush1.bf16.msra.mxu1 %v16465_v40  ;;  %5543 = vmatprep.subr.bf16.mxu0 %v16476_v0  ;;  %v16521_v40 = vld [vmem:[%s24836_s2 + $0x10c] ss:$16 sps:$4 sm:$0xff]   ;;  %v16522_v0 = vld [vmem:[%s24836_s2 + $0x388] ss:$16 sps:$4 sm:$0xff]  }
 0x19d   :  { %5510 = vmatprep.subr.bf16.mxu1 %v16473_v45  ;;  %v16519_v45 = vld [vmem:[%s24836_s2 + $0x108] ss:$16 sps:$4 sm:$0xff]  }
 0x19f   :  { %5544 = vmatpush1.bf16.msra.mxu0 %v16474_v48  ;;  %v16530_v48 = vld [vmem:[%s24836_s2 + $0x4ec] ss:$16 sps:$4 sm:$0xff]  }
 0x1a0   :  { %5511 = vmatpush1.bf16.msra.mxu1 %v16471_v47  ;;  %5545 = vmatprep.subr.bf16.mxu0 %v16482_v53  ;;  %v16527_v47 = vld [vmem:[%s24836_s2 + $0x36c] ss:$16 sps:$4 sm:$0xff]   ;;  %v16528_v53 = vld [vmem:[%s24836_s2 + $0x4e8] ss:$16 sps:$4 sm:$0xff]  }
 0x1a1   :  { %5512 = vmatprep.subr.bf16.mxu1 %v16479_v51  ;;  %v16525_v51 = vld [vmem:[%s24836_s2 + $0x368] ss:$16 sps:$4 sm:$0xff]  }
 0x1a3   :  { %5546 = vmatpush1.bf16.msra.mxu0 %v16480_v56  ;;  %v16536_v56 = vld [vmem:[%s24836_s2 + $0x4cc] ss:$16 sps:$4 sm:$0xff]  }
 0x1a4   :  { %5513 = vmatpush2.bf16.msra.mxu1 %v16477_v46  ;;  %5547 = vmatprep.subr.bf16.mxu0 %v16488_v58  ;;  %v16533_v46 = vld [vmem:[%s24836_s2 + $0x34c] ss:$16 sps:$4 sm:$0xff]   ;;  %v16534_v58 = vld [vmem:[%s24836_s2 + $0x4c8] ss:$16 sps:$4 sm:$0xff]  }
 0x1a5   :  { %5514 = vmatprep.subr.bf16.mxu1 %v16485_v57  ;;  %v16531_v57 = vld [vmem:[%s24836_s2 + $0x348] ss:$16 sps:$4 sm:$0xff]  }
 0x1a7   :  { %5548 = vmatpush1.bf16.msra.mxu0 %v16486_v52 }
 0x1a8   :  { %5515 = vmatpush2.bf16.msra.mxu1 %v16483_v55  ;;  %5549 = vmatprep.subr.bf16.mxu0 %v16494_v3 }
 0x1a9   :  { %5516 = vmatprep.subr.bf16.mxu1 %v16491_v63 }
 0x1ab   :  { %5550 = vmatpush1.bf16.msra.mxu0 %v16492_v61  ;;  %v16539_v61 = vld [vmem:[%s24836_s2 + $0x32c] ss:$16 sps:$4 sm:$0xff]  }
 0x1ac   :  { %5517 = vmatpush2.bf16.msra.mxu1 %v16489_v5  ;;  %5551 = vmatprep.subr.bf16.mxu0 %v16500_v9 }
 0x1ad   :  { %5518 = vmatprep.subr.bf16.mxu1 %v16497_v1  ;;  %v16542_v1 = vld [vmem:[%s24836_s2 + $0x4ac] ss:$16 sps:$4 sm:$0xff]  }
 0x1af   :  { %5552 = vmatpush1.bf16.msra.mxu0 %v16498_v60 }
 0x1b0   :  { %5519 = vmatpush2.bf16.msra.mxu1 %v16495_v10  ;;  %5553 = vmatprep.subr.bf16.mxu0 %v16506_v12  ;;  %v16540_v10 = vld [vmem:[%s24836_s2 + $0x4a8] ss:$16 sps:$4 sm:$0xff]  }
 0x1b1   :  { %5520 = vmatprep.subr.bf16.mxu1 %v16503_v11 }
 0x1b3   :  { %5554 = vmatpush2.bf16.msra.mxu0 %v16504_v20 }
 0x1b4   :  { %5521 = vmatpush2.bf16.msra.mxu1 %v16501_v14  ;;  %5555 = vmatprep.subr.bf16.mxu0 %v16512_v25  ;;  %v16546_v25 = vld [vmem:[%s24836_s2 + $0x488] ss:$16 sps:$4 sm:$0xff]  }
 0x1b5   :  { %5522 = vmatprep.subr.bf16.mxu1 %v16509_v24  ;;  %v16548_v24 = vld [vmem:[%s24836_s2 + $0x48c] ss:$16 sps:$4 sm:$0xff]  }
 0x1b7   :  { %5556 = vmatpush2.bf16.msra.mxu0 %v16510_v33  ;;  %v16554_v33 = vld [vmem:[%s24836_s2 + $0x6ec] ss:$16 sps:$4 sm:$0xff]  }
 0x1b8   :  { %5523 = vmatpush2.bf16.msra.mxu1 %v16507_v28  ;;  %5557 = vmatprep.subr.bf16.mxu0 %v16518_v8  ;;  %v16551_v28 = vld [vmem:[%s24836_s2 + $0x46c] ss:$16 sps:$4 sm:$0xff]   ;;  %v16552_v8 = vld [vmem:[%s24836_s2 + $0x6e8] ss:$16 sps:$4 sm:$0xff]  }
 0x1b9   :  { %5524 = vmatprep.subr.bf16.mxu1 %v16515_v34  ;;  %v16549_v34 = vld [vmem:[%s24836_s2 + $0x468] ss:$16 sps:$4 sm:$0xff]  }
 0x1bb   :  { %5558 = vmatpush2.bf16.msra.mxu0 %v16516_v37  ;;  %v16560_v37 = vld [vmem:[%s24836_s2 + $0x6cc] ss:$16 sps:$4 sm:$0xff]  }
 0x1bc   :  { %5525 = vmatpush2.bf16.msra.mxu1 %v16513_v36  ;;  %5559 = vmatprep.subr.bf16.mxu0 %v16524_v44  ;;  %v16557_v36 = vld [vmem:[%s24836_s2 + $0x44c] ss:$16 sps:$4 sm:$0xff]   ;;  %v16558_v44 = vld [vmem:[%s24836_s2 + $0x6c8] ss:$16 sps:$4 sm:$0xff]  }
 0x1bd   :  { %5526 = vmatprep.subr.bf16.mxu1 %v16521_v40  ;;  %v16555_v40 = vld [vmem:[%s24836_s2 + $0x448] ss:$16 sps:$4 sm:$0xff]  }
 0x1bf   :  { %5560 = vmatpush2.bf16.msra.mxu0 %v16522_v0  ;;  %v16566_v0 = vld [vmem:[%s24836_s2 + $0x6ac] ss:$16 sps:$4 sm:$0xff]  }
 0x1c0   :  { %5527 = vmatpush2.bf16.msra.mxu1 %v16519_v45  ;;  %5561 = vmatprep.subr.bf16.mxu0 %v16527_v47  ;;  %v16563_v45 = vld [vmem:[%s24836_s2 + $0x42c] ss:$16 sps:$4 sm:$0xff]   ;;  %v16561_v47 = vld [vmem:[%s24836_s2 + $0x428] ss:$16 sps:$4 sm:$0xff]  }
 0x1c1   :  { %5578 = vmatprep.subr.bf16.mxu1 %v16530_v48  ;;  %v16569_v48 = vld [vmem:[%s24836_s2 + $0x40c] ss:$16 sps:$4 sm:$0xff]  }
 0x1c2   :  { %v5243_v55 = vpop.f32.mrf.mxu0 }
 0x1c3   :  { %v5284_v52 = vpop.f32.mrf.mxu1  ;;  %5529 = vmatmul.mubr.bf16.vlgmr.msra.gmra.mxu1 %v18916_v13  ;;  %v5244_v63 = vadd.f32 %v5243_v55, %v20070_v62  ;;  %5562 = vmatpush2.bf16.msra.mxu0 %v16525_v51  ;;  %v16537_v62 = vld [vmem:[%s24836_s2 + $0x328] ss:$16 sps:$4 sm:$0xff]   ;;  %v16572_v51 = vld [vmem:[%s24836_s2 + $0x68c] ss:$16 sps:$4 sm:$0xff]  }
 0x1c4   :  { %5579 = vmatpush1.bf16.msra.mxu1 %v16528_v53  ;;  %v5245_v3 = vpop.f32.mrf.mxu0  ;;  %5563 = vmatprep.subr.bf16.mxu0 %v16533_v46  ;;  %v16567_v53 = vld [vmem:[%s24836_s2 + $0x408] ss:$16 sps:$4 sm:$0xff]   ;;  %v16575_v46 = vld [vmem:[%s24836_s2 + $0x5ec] ss:$16 sps:$4 sm:$0xff]  }
 0x1c5   :  { %v5286_v5 = vpop.f32.mrf.mxu1  ;;  %5580 = vmatprep.subr.bf16.mxu1 %v16536_v56  ;;  %v20280_v9 = vadd.f32 %v5284_v52, %v5244_v63  ;;  %v5246_v13 = vadd.f32 %v5245_v3, %v20081_v7  ;;  %5610 = vmatprep.mubr.bf16.mxu1 %v18928_v17  ;;  %v16545_v7 = vld [vmem:[%s24836_s2 + $0x30c] ss:$16 sps:$4 sm:$0xff]   ;;  %v16543_v17 = vld [vmem:[%s24836_s2 + $0x308] ss:$16 sps:$4 sm:$0xff]  }
 0x1c6   :  { %v5247_v60 = vpop.f32.mrf.mxu0  ;;  %v16578_v56 = vld [vmem:[%s24836_s2 + $0x66c] ss:$16 sps:$4 sm:$0xff]   ;;  %v16579_v63 = vld [vmem:[%s24836_s2 + $0x5c8] ss:$16 sps:$4 sm:$0xff]  }
 0x1c7   :  { %v5288_v11 = vpop.f32.mrf.mxu1  ;;  %v20290_v12 = vadd.f32 %v5286_v5, %v5246_v13  ;;  %5564 = vmatpush2.bf16.msra.mxu0 %v16531_v57  ;;  %v16573_v57 = vld [vmem:[%s24836_s2 + $0x5e8] ss:$16 sps:$4 sm:$0xff]   ;;  %v16581_v55 = vld [vmem:[%s24836_s2 + $0x5cc] ss:$16 sps:$4 sm:$0xff]  }
 0x1c8   :  { %5581 = vmatpush1.bf16.msra.mxu1 %v16534_v58  ;;  %v5248_v14 = vpop.f32.mrf.mxu0  ;;  %5565 = vmatprep.subr.bf16.mxu0 %v16539_v61  ;;  %v16576_v58 = vld [vmem:[%s24836_s2 + $0x668] ss:$16 sps:$4 sm:$0xff]   ;;  %v16584_v52 = vld [vmem:[%s24836_s2 + $0x64c] ss:$16 sps:$4 sm:$0xff]  }
 0x1c9   :  { %v5289_v20 = vpop.f32.mrf.mxu1  ;;  %5582 = vmatprep.subr.bf16.mxu1 %v16542_v1  ;;  %v16582_v3 = vld [vmem:[%s24836_s2 + $0x648] ss:$16 sps:$4 sm:$0xff]   ;;  %v16587_v5 = vld [vmem:[%s24836_s2 + $0x5ac] ss:$16 sps:$4 sm:$0xff]  }
 0x1ca   :  { %v16590_v61 = vld [vmem:[%s24836_s2 + $0x62c] ss:$16 sps:$4 sm:$0xff]   ;;  %v16585_v1 = vld [vmem:[%s24836_s2 + $0x5a8] ss:$16 sps:$4 sm:$0xff]  }
 0x1cb   :  { %5566 = vmatpush2.bf16.msra.mxu0 %v16537_v62  ;;  %v16588_v13 = vld [vmem:[%s24836_s2 + $0x628] ss:$16 sps:$4 sm:$0xff]   ;;  %v16593_v62 = vld [vmem:[%s24836_s2 + $0x58c] ss:$16 sps:$4 sm:$0xff]  }
 0x1cc   :  { %5583 = vmatpush1.bf16.msra.mxu1 %v16540_v10  ;;  %5567 = vmatprep.subr.bf16.mxu0 %v16545_v7  ;;  %v16596_v10 = vld [vmem:[%s24836_s2 + $0x60c] ss:$16 sps:$4 sm:$0xff]   ;;  %v16591_v60 = vld [vmem:[%s24836_s2 + $0x588] ss:$16 sps:$4 sm:$0xff]  }
 0x1cd   :  { %5584 = vmatprep.subr.bf16.mxu1 %v16548_v24  ;;  %v16594_v11 = vld [vmem:[%s24836_s2 + $0x608] ss:$16 sps:$4 sm:$0xff]   ;;  %v16599_v14 = vld [vmem:[%s24836_s2 + $0x56c] ss:$16 sps:$4 sm:$0xff]  }
 0x1ce   :  { %v16602_v20 = vld [vmem:[%s24836_s2 + $0x7ec] ss:$16 sps:$4 sm:$0xff]   ;;  %v16597_v7 = vld [vmem:[%s24836_s2 + $0x568] ss:$16 sps:$4 sm:$0xff]  }
 0x1cf   :  { %5568 = vmatpush2.bf16.msra.mxu0 %v16543_v17  ;;  %v16600_v24 = vld [vmem:[%s24836_s2 + $0x7e8] ss:$16 sps:$4 sm:$0xff]   ;;  %v16605_v17 = vld [vmem:[%s24836_s2 + $0x54c] ss:$16 sps:$4 sm:$0xff]  }
 0x1d0   :  { %5585 = vmatpush1.bf16.msra.mxu1 %v16546_v25  ;;  %5619 = vmatprep.subr.bf16.mxu0 %v16554_v33  ;;  %v16608_v25 = vld [vmem:[%s24836_s2 + $0x7cc] ss:$16 sps:$4 sm:$0xff]   ;;  %v16606_v33 = vld [vmem:[%s24836_s2 + $0x7c8] ss:$16 sps:$4 sm:$0xff]  }
 0x1d1   :  { %5586 = vmatprep.subr.bf16.mxu1 %v16551_v28  ;;  %v16603_v28 = vld [vmem:[%s24836_s2 + $0x548] ss:$16 sps:$4 sm:$0xff]  }
 0x1d2   :  { %5570 = vmatmul.mubr.bf16.vlgmr.msra.gmra.mxu0 %v18932_v18  ;;  %v16564_v18 = vld [vmem:[%s24836_s2 + $0x6a8] ss:$16 sps:$4 sm:$0xff]  }
 0x1d3   :  { %5620 = vmatpush1.bf16.msra.mxu0 %v16552_v8  ;;  %5651 = vmatprep.mubr.bf16.mxu0 %v18948_v23  ;;  %v16570_v23 = vld [vmem:[%s24836_s2 + $0x688] ss:$16 sps:$4 sm:$0xff]   ;;  %v16614_v8 = vld [vmem:[%s24836_s2 + $0x7ac] ss:$16 sps:$4 sm:$0xff]  }
 0x1d4   :  { %5587 = vmatpush1.bf16.msra.mxu1 %v16549_v34  ;;  %5621 = vmatprep.subr.bf16.mxu0 %v16560_v37  ;;  %v16611_v34 = vld [vmem:[%s24836_s2 + $0x52c] ss:$16 sps:$4 sm:$0xff]   ;;  %v16612_v37 = vld [vmem:[%s24836_s2 + $0x7a8] ss:$16 sps:$4 sm:$0xff]  }
 0x1d5   :  { %5588 = vmatprep.subr.bf16.mxu1 %v16557_v36  ;;  %v16609_v36 = vld [vmem:[%s24836_s2 + $0x528] ss:$16 sps:$4 sm:$0xff]  }
 0x1d7   :  { %5622 = vmatpush1.bf16.msra.mxu0 %v16558_v44  ;;  %v16620_v44 = vld [vmem:[%s24836_s2 + $0x78c] ss:$16 sps:$4 sm:$0xff]  }
 0x1d8   :  { %5589 = vmatpush1.bf16.msra.mxu1 %v16555_v40  ;;  %5623 = vmatprep.subr.bf16.mxu0 %v16566_v0  ;;  %v16617_v40 = vld [vmem:[%s24836_s2 + $0x50c] ss:$16 sps:$4 sm:$0xff]   ;;  %v16618_v0 = vld [vmem:[%s24836_s2 + $0x788] ss:$16 sps:$4 sm:$0xff]  }
 0x1d9   :  { %5590 = vmatprep.subr.bf16.mxu1 %v16563_v45  ;;  %v16615_v45 = vld [vmem:[%s24836_s2 + $0x508] ss:$16 sps:$4 sm:$0xff]  }
 0x1db   :  { %5624 = vmatpush1.bf16.msra.mxu0 %v16564_v18  ;;  %v16626_v18 = vld [vmem:[%s24836_s2 + $0x8ec] ss:$16 sps:$4 sm:$0xff]  }
 0x1dc   :  { %5591 = vmatpush1.bf16.msra.mxu1 %v16561_v47  ;;  %5625 = vmatprep.subr.bf16.mxu0 %v16572_v51  ;;  %v16623_v47 = vld [vmem:[%s24836_s2 + $0x76c] ss:$16 sps:$4 sm:$0xff]   ;;  %v16624_v51 = vld [vmem:[%s24836_s2 + $0x8e8] ss:$16 sps:$4 sm:$0xff]  }
 0x1dd   :  { %5592 = vmatprep.subr.bf16.mxu1 %v16569_v48  ;;  %v16621_v48 = vld [vmem:[%s24836_s2 + $0x768] ss:$16 sps:$4 sm:$0xff]  }
 0x1df   :  { %5626 = vmatpush1.bf16.msra.mxu0 %v16570_v23  ;;  %v16632_v23 = vld [vmem:[%s24836_s2 + $0x8cc] ss:$16 sps:$4 sm:$0xff]  }
 0x1e0   :  { %5593 = vmatpush1.bf16.msra.mxu1 %v16567_v53  ;;  %5627 = vmatprep.subr.bf16.mxu0 %v16578_v56  ;;  %v16629_v53 = vld [vmem:[%s24836_s2 + $0x74c] ss:$16 sps:$4 sm:$0xff]   ;;  %v16630_v56 = vld [vmem:[%s24836_s2 + $0x8c8] ss:$16 sps:$4 sm:$0xff]  }
 0x1e1   :  { %5594 = vmatprep.subr.bf16.mxu1 %v16575_v46  ;;  %v16627_v46 = vld [vmem:[%s24836_s2 + $0x748] ss:$16 sps:$4 sm:$0xff]  }
 0x1e3   :  { %5628 = vmatpush1.bf16.msra.mxu0 %v16576_v58 }
 0x1e4   :  { %5595 = vmatpush2.bf16.msra.mxu1 %v16573_v57  ;;  %5629 = vmatprep.subr.bf16.mxu0 %v16584_v52 }
 0x1e5   :  { %5596 = vmatprep.subr.bf16.mxu1 %v16581_v55 }
 0x1e7   :  { %5630 = vmatpush1.bf16.msra.mxu0 %v16582_v3  ;;  %v16635_v3 = vld [vmem:[%s24836_s2 + $0x72c] ss:$16 sps:$4 sm:$0xff]  }
 0x1e8   :  { %5597 = vmatpush2.bf16.msra.mxu1 %v16579_v63  ;;  %5631 = vmatprep.subr.bf16.mxu0 %v16590_v61 }
 0x1e9   :  { %5598 = vmatprep.subr.bf16.mxu1 %v16587_v5  ;;  %v16638_v5 = vld [vmem:[%s24836_s2 + $0x8ac] ss:$16 sps:$4 sm:$0xff]  }
 0x1eb   :  { %5632 = vmatpush1.bf16.msra.mxu0 %v16588_v13 }
 0x1ec   :  { %5599 = vmatpush2.bf16.msra.mxu1 %v16585_v1  ;;  %5633 = vmatprep.subr.bf16.mxu0 %v16596_v10  ;;  %v16636_v1 = vld [vmem:[%s24836_s2 + $0x8a8] ss:$16 sps:$4 sm:$0xff]  }
 0x1ed   :  { %5600 = vmatprep.subr.bf16.mxu1 %v16593_v62 }
 0x1ef   :  { %5634 = vmatpush1.bf16.msra.mxu0 %v16594_v11 }
 0x1f0   :  { %5601 = vmatpush2.bf16.msra.mxu1 %v16591_v60  ;;  %5635 = vmatprep.subr.bf16.mxu0 %v16602_v20  ;;  %v16642_v20 = vld [vmem:[%s24836_s2 + $0x888] ss:$16 sps:$4 sm:$0xff]  }
 0x1f1   :  { %5602 = vmatprep.subr.bf16.mxu1 %v16599_v14  ;;  %v16644_v14 = vld [vmem:[%s24836_s2 + $0x88c] ss:$16 sps:$4 sm:$0xff]  }
 0x1f3   :  { %5636 = vmatpush2.bf16.msra.mxu0 %v16600_v24  ;;  %v16650_v24 = vld [vmem:[%s24836_s2 + $0xaec] ss:$16 sps:$4 sm:$0xff]  }
 0x1f4   :  { %5603 = vmatpush2.bf16.msra.mxu1 %v16597_v7  ;;  %5637 = vmatprep.subr.bf16.mxu0 %v16608_v25  ;;  %v16647_v7 = vld [vmem:[%s24836_s2 + $0x86c] ss:$16 sps:$4 sm:$0xff]   ;;  %v16648_v25 = vld [vmem:[%s24836_s2 + $0xae8] ss:$16 sps:$4 sm:$0xff]  }
 0x1f5   :  { %5604 = vmatprep.subr.bf16.mxu1 %v16605_v17  ;;  %v16645_v17 = vld [vmem:[%s24836_s2 + $0x868] ss:$16 sps:$4 sm:$0xff]  }
 0x1f7   :  { %5638 = vmatpush2.bf16.msra.mxu0 %v16606_v33  ;;  %v16656_v33 = vld [vmem:[%s24836_s2 + $0xacc] ss:$16 sps:$4 sm:$0xff]  }
 0x1f8   :  { %5605 = vmatpush2.bf16.msra.mxu1 %v16603_v28  ;;  %5639 = vmatprep.subr.bf16.mxu0 %v16614_v8  ;;  %v16653_v28 = vld [vmem:[%s24836_s2 + $0x84c] ss:$16 sps:$4 sm:$0xff]   ;;  %v16654_v8 = vld [vmem:[%s24836_s2 + $0xac8] ss:$16 sps:$4 sm:$0xff]  }
 0x1f9   :  { %5606 = vmatprep.subr.bf16.mxu1 %v16611_v34  ;;  %v16651_v34 = vld [vmem:[%s24836_s2 + $0x848] ss:$16 sps:$4 sm:$0xff]  }
 0x1fb   :  { %5640 = vmatpush2.bf16.msra.mxu0 %v16612_v37  ;;  %v16662_v37 = vld [vmem:[%s24836_s2 + $0xaac] ss:$16 sps:$4 sm:$0xff]  }
 0x1fc   :  { %5607 = vmatpush2.bf16.msra.mxu1 %v16609_v36  ;;  %5641 = vmatprep.subr.bf16.mxu0 %v16620_v44  ;;  %v16659_v36 = vld [vmem:[%s24836_s2 + $0x82c] ss:$16 sps:$4 sm:$0xff]  }
 0x1fd   :  { %5608 = vmatprep.subr.bf16.mxu1 %v16617_v40  ;;  %v16657_v40 = vld [vmem:[%s24836_s2 + $0x828] ss:$16 sps:$4 sm:$0xff]   ;;  %v16665_v44 = vld [vmem:[%s24836_s2 + $0x80c] ss:$16 sps:$4 sm:$0xff]  }
 0x1ff   :  { %5642 = vmatpush2.bf16.msra.mxu0 %v16618_v0  ;;  %v16663_v0 = vld [vmem:[%s24836_s2 + $0x808] ss:$16 sps:$4 sm:$0xff]  }
 0x200   :  { %5609 = vmatpush2.bf16.msra.mxu1 %v16615_v45  ;;  %5643 = vmatprep.subr.bf16.mxu0 %v16623_v47  ;;  %v16668_v45 = vld [vmem:[%s24836_s2 + $0xa8c] ss:$16 sps:$4 sm:$0xff]  }
 0x201   :  { %5660 = vmatprep.subr.bf16.mxu1 %v16626_v18  ;;  %v16671_v47 = vld [vmem:[%s24836_s2 + $0x9ec] ss:$16 sps:$4 sm:$0xff]  }
 0x202   :  { %v5325_v57 = vpop.f32.mrf.mxu0  ;;  %v16674_v18 = vld [vmem:[%s24836_s2 + $0xa6c] ss:$16 sps:$4 sm:$0xff]  }
 0x203   :  { %v5366_v58 = vpop.f32.mrf.mxu1  ;;  %5611 = vmatmul.mubr.bf16.vlgmr.msra.gmra.mxu1 %v19127_v26  ;;  %v5326_v55 = vadd.f32 %v5325_v57, %v20280_v9  ;;  %5644 = vmatpush2.bf16.msra.mxu0 %v16621_v48  ;;  %v16633_v9 = vld [vmem:[%s24836_s2 + $0x728] ss:$16 sps:$4 sm:$0xff]   ;;  %v16683_v57 = vld [vmem:[%s24836_s2 + $0x9ac] ss:$16 sps:$4 sm:$0xff]  }
 0x204   :  { %5661 = vmatpush1.bf16.msra.mxu1 %v16624_v51  ;;  %v5327_v52 = vpop.f32.mrf.mxu0  ;;  %5645 = vmatprep.subr.bf16.mxu0 %v16629_v53  ;;  %v16669_v48 = vld [vmem:[%s24836_s2 + $0x9e8] ss:$16 sps:$4 sm:$0xff]   ;;  %v16677_v53 = vld [vmem:[%s24836_s2 + $0x9cc] ss:$16 sps:$4 sm:$0xff]  }
 0x205   :  { %v5368_v63 = vpop.f32.mrf.mxu1  ;;  %5662 = vmatprep.subr.bf16.mxu1 %v16632_v23  ;;  %v20482_v61 = vadd.f32 %v5366_v58, %v5326_v55  ;;  %v5328_v26 = vadd.f32 %v5327_v52, %v20290_v12  ;;  %5692 = vmatprep.mubr.bf16.mxu1 %v19180_v41  ;;  %v16641_v12 = vld [vmem:[%s24836_s2 + $0x70c] ss:$16 sps:$4 sm:$0xff]   ;;  %v16639_v41 = vld [vmem:[%s24836_s2 + $0x708] ss:$16 sps:$4 sm:$0xff]  }
 0x206   :  { %v5329_v13 = vpop.f32.mrf.mxu0  ;;  %v16672_v51 = vld [vmem:[%s24836_s2 + $0xa68] ss:$16 sps:$4 sm:$0xff]   ;;  %v16680_v23 = vld [vmem:[%s24836_s2 + $0xa4c] ss:$16 sps:$4 sm:$0xff]  }
 0x207   :  { %v5370_v62 = vpop.f32.mrf.mxu1  ;;  %v20492_v10 = vadd.f32 %v5368_v63, %v5328_v26  ;;  %5646 = vmatpush2.bf16.msra.mxu0 %v16627_v46  ;;  %v16675_v46 = vld [vmem:[%s24836_s2 + $0x9c8] ss:$16 sps:$4 sm:$0xff]   ;;  %v16686_v58 = vld [vmem:[%s24836_s2 + $0xa2c] ss:$16 sps:$4 sm:$0xff]  }
 0x208   :  { %5663 = vmatpush1.bf16.msra.mxu1 %v16630_v56  ;;  %v5330_v60 = vpop.f32.mrf.mxu0  ;;  %5647 = vmatprep.subr.bf16.mxu0 %v16635_v3  ;;  %v16678_v56 = vld [vmem:[%s24836_s2 + $0xa48] ss:$16 sps:$4 sm:$0xff]   ;;  %v16689_v63 = vld [vmem:[%s24836_s2 + $0x98c] ss:$16 sps:$4 sm:$0xff]  }
 0x209   :  { %v5371_v11 = vpop.f32.mrf.mxu1  ;;  %5664 = vmatprep.subr.bf16.mxu1 %v16638_v5  ;;  %v16681_v55 = vld [vmem:[%s24836_s2 + $0x9a8] ss:$16 sps:$4 sm:$0xff]   ;;  %v16692_v3 = vld [vmem:[%s24836_s2 + $0xa0c] ss:$16 sps:$4 sm:$0xff]  }
 0x20a   :  { %v16684_v52 = vld [vmem:[%s24836_s2 + $0xa28] ss:$16 sps:$4 sm:$0xff]   ;;  %v16701_v60 = vld [vmem:[%s24836_s2 + $0x94c] ss:$16 sps:$4 sm:$0xff]  }
 0x20b   :  { %5648 = vmatpush2.bf16.msra.mxu0 %v16633_v9  ;;  %v16687_v5 = vld [vmem:[%s24836_s2 + $0x988] ss:$16 sps:$4 sm:$0xff]   ;;  %v16695_v9 = vld [vmem:[%s24836_s2 + $0x96c] ss:$16 sps:$4 sm:$0xff]  }
 0x20c   :  { %5665 = vmatpush1.bf16.msra.mxu1 %v16636_v1  ;;  %5649 = vmatprep.subr.bf16.mxu0 %v16641_v12  ;;  %v16690_v26 = vld [vmem:[%s24836_s2 + $0xa08] ss:$16 sps:$4 sm:$0xff]   ;;  %v16698_v1 = vld [vmem:[%s24836_s2 + $0xbec] ss:$16 sps:$4 sm:$0xff]  }
 0x20d   :  { %5666 = vmatprep.subr.bf16.mxu1 %v16644_v14  ;;  %v16693_v13 = vld [vmem:[%s24836_s2 + $0x968] ss:$16 sps:$4 sm:$0xff]   ;;  %v16704_v11 = vld [vmem:[%s24836_s2 + $0xbcc] ss:$16 sps:$4 sm:$0xff]  }
 0x20e   :  { %v16696_v62 = vld [vmem:[%s24836_s2 + $0xbe8] ss:$16 sps:$4 sm:$0xff]  }
 0x20f   :  { %5650 = vmatpush2.bf16.msra.mxu0 %v16639_v41  ;;  %v16699_v12 = vld [vmem:[%s24836_s2 + $0x948] ss:$16 sps:$4 sm:$0xff]   ;;  %v16707_v41 = vld [vmem:[%s24836_s2 + $0x92c] ss:$16 sps:$4 sm:$0xff]  }
 0x210   :  { %5667 = vmatpush1.bf16.msra.mxu1 %v16642_v20  ;;  %5701 = vmatprep.subr.bf16.mxu0 %v16650_v24  ;;  %v16702_v14 = vld [vmem:[%s24836_s2 + $0xbc8] ss:$16 sps:$4 sm:$0xff]   ;;  %v16710_v20 = vld [vmem:[%s24836_s2 + $0xbac] ss:$16 sps:$4 sm:$0xff]  }
 0x211   :  { %5668 = vmatprep.subr.bf16.mxu1 %v16647_v7  ;;  %v16705_v7 = vld [vmem:[%s24836_s2 + $0x928] ss:$16 sps:$4 sm:$0xff]  }
 0x212   :  { %5652 = vmatmul.mubr.bf16.vlgmr.msra.gmra.mxu0 %v19140_v6  ;;  %v16660_v6 = vld [vmem:[%s24836_s2 + $0xaa8] ss:$16 sps:$4 sm:$0xff]  }
 0x213   :  { %5702 = vmatpush1.bf16.msra.mxu0 %v16648_v25  ;;  %5733 = vmatprep.mubr.bf16.mxu0 %v19185_v43  ;;  %v16666_v43 = vld [vmem:[%s24836_s2 + $0xa88] ss:$16 sps:$4 sm:$0xff]   ;;  %v16716_v25 = vld [vmem:[%s24836_s2 + $0xb8c] ss:$16 sps:$4 sm:$0xff]  }
 0x214   :  { %5669 = vmatpush1.bf16.msra.mxu1 %v16645_v17  ;;  %5703 = vmatprep.subr.bf16.mxu0 %v16656_v33  ;;  %v16708_v24 = vld [vmem:[%s24836_s2 + $0xba8] ss:$16 sps:$4 sm:$0xff]   ;;  %v16713_v17 = vld [vmem:[%s24836_s2 + $0x90c] ss:$16 sps:$4 sm:$0xff]  }
 0x215   :  { %5670 = vmatprep.subr.bf16.mxu1 %v16653_v28  ;;  %v16711_v28 = vld [vmem:[%s24836_s2 + $0x908] ss:$16 sps:$4 sm:$0xff]  }
 0x216   :  { %v16714_v33 = vld [vmem:[%s24836_s2 + $0xb88] ss:$16 sps:$4 sm:$0xff]  }
 0x217   :  { %5704 = vmatpush1.bf16.msra.mxu0 %v16654_v8  ;;  %v16722_v8 = vld [vmem:[%s24836_s2 + $0xcec] ss:$16 sps:$4 sm:$0xff]  }
 0x218   :  { %5671 = vmatpush1.bf16.msra.mxu1 %v16651_v34  ;;  %5705 = vmatprep.subr.bf16.mxu0 %v16662_v37  ;;  %v16719_v34 = vld [vmem:[%s24836_s2 + $0xb6c] ss:$16 sps:$4 sm:$0xff]   ;;  %v16720_v37 = vld [vmem:[%s24836_s2 + $0xce8] ss:$16 sps:$4 sm:$0xff]  }
 0x219   :  { %5672 = vmatprep.subr.bf16.mxu1 %v16659_v36  ;;  %v16717_v36 = vld [vmem:[%s24836_s2 + $0xb68] ss:$16 sps:$4 sm:$0xff]  }
 0x21b   :  { %5706 = vmatpush1.bf16.msra.mxu0 %v16660_v6  ;;  %v16728_v6 = vld [vmem:[%s24836_s2 + $0xccc] ss:$16 sps:$4 sm:$0xff]  }
 0x21c   :  { %5673 = vmatpush1.bf16.msra.mxu1 %v16657_v40  ;;  %5707 = vmatprep.subr.bf16.mxu0 %v16668_v45  ;;  %v16725_v40 = vld [vmem:[%s24836_s2 + $0xb4c] ss:$16 sps:$4 sm:$0xff]   ;;  %v16726_v45 = vld [vmem:[%s24836_s2 + $0xcc8] ss:$16 sps:$4 sm:$0xff]  }
 0x21d   :  { %5674 = vmatprep.subr.bf16.mxu1 %v16665_v44  ;;  %v16723_v44 = vld [vmem:[%s24836_s2 + $0xb48] ss:$16 sps:$4 sm:$0xff]  }
 0x21f   :  { %5708 = vmatpush1.bf16.msra.mxu0 %v16666_v43 }
 0x220   :  { %5675 = vmatpush1.bf16.msra.mxu1 %v16663_v0  ;;  %5709 = vmatprep.subr.bf16.mxu0 %v16674_v18 }
 0x221   :  { %5676 = vmatprep.subr.bf16.mxu1 %v16671_v47 }
 0x223   :  { %5710 = vmatpush1.bf16.msra.mxu0 %v16672_v51  ;;  %v16731_v51 = vld [vmem:[%s24836_s2 + $0xb2c] ss:$16 sps:$4 sm:$0xff]  }
 0x224   :  { %5677 = vmatpush2.bf16.msra.mxu1 %v16669_v48  ;;  %5711 = vmatprep.subr.bf16.mxu0 %v16680_v23 }
 0x225   :  { %5678 = vmatprep.subr.bf16.mxu1 %v16677_v53  ;;  %v16734_v53 = vld [vmem:[%s24836_s2 + $0xcac] ss:$16 sps:$4 sm:$0xff]  }
 0x227   :  { %5712 = vmatpush1.bf16.msra.mxu0 %v16678_v56 }
 0x228   :  { %5679 = vmatpush2.bf16.msra.mxu1 %v16675_v46  ;;  %5713 = vmatprep.subr.bf16.mxu0 %v16686_v58 }
 0x229   :  { %5680 = vmatprep.subr.bf16.mxu1 %v16683_v57 }
 0x22b   :  { %5714 = vmatpush1.bf16.msra.mxu0 %v16684_v52 }
 0x22c   :  { %5681 = vmatpush2.bf16.msra.mxu1 %v16681_v55  ;;  %5715 = vmatprep.subr.bf16.mxu0 %v16692_v3  ;;  %v16738_v3 = vld [vmem:[%s24836_s2 + $0xc88] ss:$16 sps:$4 sm:$0xff]  }
 0x22d   :  { %5682 = vmatprep.subr.bf16.mxu1 %v16689_v63  ;;  %v16740_v63 = vld [vmem:[%s24836_s2 + $0xc8c] ss:$16 sps:$4 sm:$0xff]  }
 0x22f   :  { %5716 = vmatpush1.bf16.msra.mxu0 %v16690_v26  ;;  %v16746_v26 = vld [vmem:[%s24836_s2 + $0xeec] ss:$16 sps:$4 sm:$0xff]  }
 0x230   :  { %5683 = vmatpush2.bf16.msra.mxu1 %v16687_v5  ;;  %5717 = vmatprep.subr.bf16.mxu0 %v16698_v1  ;;  %v16743_v5 = vld [vmem:[%s24836_s2 + $0xc6c] ss:$16 sps:$4 sm:$0xff]   ;;  %v16744_v1 = vld [vmem:[%s24836_s2 + $0xee8] ss:$16 sps:$4 sm:$0xff]  }
 0x231   :  { %5684 = vmatprep.subr.bf16.mxu1 %v16695_v9  ;;  %v16741_v9 = vld [vmem:[%s24836_s2 + $0xc68] ss:$16 sps:$4 sm:$0xff]  }
 0x233   :  { %5718 = vmatpush2.bf16.msra.mxu0 %v16696_v62  ;;  %v16752_v62 = vld [vmem:[%s24836_s2 + $0xecc] ss:$16 sps:$4 sm:$0xff]  }
 0x234   :  { %5685 = vmatpush2.bf16.msra.mxu1 %v16693_v13  ;;  %5719 = vmatprep.subr.bf16.mxu0 %v16704_v11  ;;  %v16749_v13 = vld [vmem:[%s24836_s2 + $0xc4c] ss:$16 sps:$4 sm:$0xff]   ;;  %v16750_v11 = vld [vmem:[%s24836_s2 + $0xec8] ss:$16 sps:$4 sm:$0xff]  }
 0x235   :  { %5686 = vmatprep.subr.bf16.mxu1 %v16701_v60  ;;  %v16747_v60 = vld [vmem:[%s24836_s2 + $0xc48] ss:$16 sps:$4 sm:$0xff]  }
 0x237   :  { %5720 = vmatpush2.bf16.msra.mxu0 %v16702_v14 }
 0x238   :  { %5687 = vmatpush2.bf16.msra.mxu1 %v16699_v12  ;;  %5721 = vmatprep.subr.bf16.mxu0 %v16710_v20  ;;  %v16755_v20 = vld [vmem:[%s24836_s2 + $0xc2c] ss:$16 sps:$4 sm:$0xff]  }
 0x239   :  { %5688 = vmatprep.subr.bf16.mxu1 %v16707_v41 }
 0x23b   :  { %5722 = vmatpush2.bf16.msra.mxu0 %v16708_v24 }
 0x23c   :  { %5689 = vmatpush2.bf16.msra.mxu1 %v16705_v7  ;;  %5723 = vmatprep.subr.bf16.mxu0 %v16716_v25  ;;  %v16758_v7 = vld [vmem:[%s24836_s2 + $0xeac] ss:$16 sps:$4 sm:$0xff]  }
 0x23d   :  { %5690 = vmatprep.subr.bf16.mxu1 %v16713_v17  ;;  %v16756_v17 = vld [vmem:[%s24836_s2 + $0xea8] ss:$16 sps:$4 sm:$0xff]  }
 0x23f   :  { %5724 = vmatpush2.bf16.msra.mxu0 %v16714_v33  ;;  %v16761_v33 = vld [vmem:[%s24836_s2 + $0xc0c] ss:$16 sps:$4 sm:$0xff]  }
 0x240   :  { %5691 = vmatpush2.bf16.msra.mxu1 %v16711_v28  ;;  %5725 = vmatprep.subr.bf16.mxu0 %v16719_v34  ;;  %v16764_v34 = vld [vmem:[%s24836_s2 + $0xe8c] ss:$16 sps:$4 sm:$0xff]  }
 0x241   :  { %5742 = vmatprep.subr.bf16.mxu1 %v16722_v8  ;;  %v16762_v8 = vld [vmem:[%s24836_s2 + $0xe88] ss:$16 sps:$4 sm:$0xff]  }
 0x242   :  { %v5407_v0 = vpop.f32.mrf.mxu0 }
 0x243   :  { %v5448_v43 = vpop.f32.mrf.mxu1  ;;  %5693 = vmatmul.mubr.bf16.vlgmr.msra.gmra.mxu1 %v19356_v50  ;;  %v5408_v47 = vadd.f32 %v5407_v0, %v20482_v61  ;;  %5726 = vmatpush2.bf16.msra.mxu0 %v16717_v36  ;;  %v16729_v50 = vld [vmem:[%s24836_s2 + $0xb28] ss:$16 sps:$4 sm:$0xff]   ;;  %v16767_v36 = vld [vmem:[%s24836_s2 + $0xdec] ss:$16 sps:$4 sm:$0xff]  }
 0x244   :  { %5743 = vmatpush1.bf16.msra.mxu1 %v16720_v37  ;;  %v5409_v18 = vpop.f32.mrf.mxu0  ;;  %5727 = vmatprep.subr.bf16.mxu0 %v16725_v40  ;;  %v16732_v61 = vld [vmem:[%s24836_s2 + $0xca8] ss:$16 sps:$4 sm:$0xff]   ;;  %v16770_v37 = vld [vmem:[%s24836_s2 + $0xe6c] ss:$16 sps:$4 sm:$0xff]  }
 0x245   :  { %v5450_v48 = vpop.f32.mrf.mxu1  ;;  %5744 = vmatprep.subr.bf16.mxu1 %v16728_v6  ;;  %v5449_v23 = vadd.f32 %v5448_v43, %v5408_v47  ;;  %v5410_v46 = vadd.f32 %v5409_v18, %v20492_v10  ;;  %5774 = vmatprep.mubr.bf16.mxu1 %v19368_v54  ;;  %v16737_v10 = vld [vmem:[%s24836_s2 + $0xb0c] ss:$16 sps:$4 sm:$0xff]   ;;  %v16735_v54 = vld [vmem:[%s24836_s2 + $0xb08] ss:$16 sps:$4 sm:$0xff]  }
 0x246   :  { %v5411_v56 = vpop.f32.mrf.mxu0  ;;  %v16765_v40 = vld [vmem:[%s24836_s2 + $0xde8] ss:$16 sps:$4 sm:$0xff]   ;;  %v16779_v47 = vld [vmem:[%s24836_s2 + $0xdac] ss:$16 sps:$4 sm:$0xff]  }
 0x247   :  { %v5452_v57 = vpop.f32.mrf.mxu1  ;;  %v5451_v58 = vadd.f32 %v5450_v48, %v5410_v46  ;;  %5728 = vmatpush2.bf16.msra.mxu0 %v16723_v44  ;;  %v16768_v6 = vld [vmem:[%s24836_s2 + $0xe68] ss:$16 sps:$4 sm:$0xff]   ;;  %v16773_v44 = vld [vmem:[%s24836_s2 + $0xdcc] ss:$16 sps:$4 sm:$0xff]  }
 0x248   :  { %5745 = vmatpush1.bf16.msra.mxu1 %v16726_v45  ;;  %v5412_v55 = vpop.f32.mrf.mxu0  ;;  %5729 = vmatprep.subr.bf16.mxu0 %v16731_v51  ;;  %v16776_v45 = vld [vmem:[%s24836_s2 + $0xe4c] ss:$16 sps:$4 sm:$0xff]   ;;  %v16771_v0 = vld [vmem:[%s24836_s2 + $0xdc8] ss:$16 sps:$4 sm:$0xff]  }
 0x249   :  { %v5453_v52 = vpop.f32.mrf.mxu1  ;;  %5746 = vmatprep.subr.bf16.mxu1 %v16734_v53  ;;  %v16774_v43 = vld [vmem:[%s24836_s2 + $0xe48] ss:$16 sps:$4 sm:$0xff]   ;;  %v16782_v18 = vld [vmem:[%s24836_s2 + $0xe2c] ss:$16 sps:$4 sm:$0xff]  }
 0x24a   :  { %v16777_v48 = vld [vmem:[%s24836_s2 + $0xda8] ss:$16 sps:$4 sm:$0xff]   ;;  %v16785_v53 = vld [vmem:[%s24836_s2 + $0xd8c] ss:$16 sps:$4 sm:$0xff]  }
 0x24b   :  { %5730 = vmatpush2.bf16.msra.mxu0 %v16729_v50  ;;  %v16780_v51 = vld [vmem:[%s24836_s2 + $0xe28] ss:$16 sps:$4 sm:$0xff]   ;;  %v16794_v56 = vld [vmem:[%s24836_s2 + $0xfec] ss:$16 sps:$4 sm:$0xff]  }
 0x24c   :  { %5747 = vmatpush1.bf16.msra.mxu1 %v16732_v61  ;;  %5731 = vmatprep.subr.bf16.mxu0 %v16737_v10  ;;  %v16783_v46 = vld [vmem:[%s24836_s2 + $0xd88] ss:$16 sps:$4 sm:$0xff]   ;;  %v16791_v61 = vld [vmem:[%s24836_s2 + $0xd6c] ss:$16 sps:$4 sm:$0xff]  }
 0x24d   :  { %5748 = vmatprep.subr.bf16.mxu1 %v16740_v63  ;;  %v16786_v50 = vld [vmem:[%s24836_s2 + $0xe08] ss:$16 sps:$4 sm:$0xff]   ;;  %v16797_v55 = vld [vmem:[%s24836_s2 + $0xd4c] ss:$16 sps:$4 sm:$0xff]  }
 0x24e   :  { %v16789_v57 = vld [vmem:[%s24836_s2 + $0xd68] ss:$16 sps:$4 sm:$0xff]   ;;  %v16800_v52 = vld [vmem:[%s24836_s2 + $0xfcc] ss:$16 sps:$4 sm:$0xff]  }
 0x24f   :  { %5732 = vmatpush2.bf16.msra.mxu0 %v16735_v54  ;;  %v16795_v10 = vld [vmem:[%s24836_s2 + $0xd48] ss:$16 sps:$4 sm:$0xff]   ;;  %v16803_v54 = vld [vmem:[%s24836_s2 + $0xd2c] ss:$16 sps:$4 sm:$0xff]  }
 0x250   :  { %5749 = vmatpush1.bf16.msra.mxu1 %v16738_v3  ;;  %5783 = vmatprep.subr.bf16.mxu0 %v16746_v26  ;;  %v16798_v63 = vld [vmem:[%s24836_s2 + $0xfc8] ss:$16 sps:$4 sm:$0xff]   ;;  %v16806_v3 = vld [vmem:[%s24836_s2 + $0xfac] ss:$16 sps:$4 sm:$0xff]  }
 0x251   :  { %5750 = vmatprep.subr.bf16.mxu1 %v16743_v5  ;;  %v16801_v5 = vld [vmem:[%s24836_s2 + $0xd28] ss:$16 sps:$4 sm:$0xff]  }
 0x252   :  { %v5489_v12 = vpop.f32.mrf.mxu0  ;;  %5734 = vmatmul.mubr.bf16.vlgmr.msra.gmra.mxu0 %v19372_v35  ;;  %v16753_v35 = vld [vmem:[%s24836_s2 + $0xc28] ss:$16 sps:$4 sm:$0xff]  }
 0x253   :  { %v20729_v14 = vadd.f32 %v5489_v12, %v5449_v23  ;;  %5784 = vmatpush1.bf16.msra.mxu0 %v16744_v1  ;;  %5815 = vmatprep.mubr.bf16.mxu0 %v19388_v59  ;;  %v16759_v59 = vld [vmem:[%s24836_s2 + $0xc08] ss:$16 sps:$4 sm:$0xff]   ;;  %v16788_v23 = vld [vmem:[%s24836_s2 + $0xe0c] ss:$16 sps:$4 sm:$0xff]  }
 0x254   :  { %5751 = vmatpush1.bf16.msra.mxu1 %v16741_v9  ;;  %v5491_v41 = vpop.f32.mrf.mxu0  ;;  %5785 = vmatprep.subr.bf16.mxu0 %v16752_v62  ;;  %v16804_v26 = vld [vmem:[%s24836_s2 + $0xfa8] ss:$16 sps:$4 sm:$0xff]   ;;  %v16809_v9 = vld [vmem:[%s24836_s2 + $0xd0c] ss:$16 sps:$4 sm:$0xff]  }
 0x255   :  { %5752 = vmatprep.subr.bf16.mxu1 %v16749_v13  ;;  %v20737_v24 = vadd.f32 %v5491_v41, %v5451_v58  ;;  %v16792_v58 = vld [vmem:[%s24836_s2 + $0xfe8] ss:$16 sps:$4 sm:$0xff]   ;;  %v16812_v1 = vld [vmem:[%s24836_s2 + $0xf8c] ss:$16 sps:$4 sm:$0xff]  }
 0x256   :  { %v5493_v25 = vpop.f32.mrf.mxu0  ;;  %v16807_v13 = vld [vmem:[%s24836_s2 + $0xd08] ss:$16 sps:$4 sm:$0xff]  }
 0x257   :  { %5786 = vmatpush1.bf16.msra.mxu0 %v16750_v11  ;;  %v16810_v62 = vld [vmem:[%s24836_s2 + $0xf88] ss:$16 sps:$4 sm:$0xff]   ;;  %v16818_v11 = vld [vmem:[%s24836_s2 + $0x10ec] ss:$16 sps:$4 sm:$0xff]  }
 0x258   :  { %5753 = vmatpush1.bf16.msra.mxu1 %v16747_v60  ;;  %v5494_v28 = vpop.f32.mrf.mxu0  ;;  %5787 = vmatprep.subr.bf16.mxu0 %v16758_v7  ;;  %v16815_v60 = vld [vmem:[%s24836_s2 + $0xf6c] ss:$16 sps:$4 sm:$0xff]   ;;  %v16813_v12 = vld [vmem:[%s24836_s2 + $0xf68] ss:$16 sps:$4 sm:$0xff]  }
 0x259   :  { %5754 = vmatprep.subr.bf16.mxu1 %v16755_v20  ;;  %v16816_v41 = vld [vmem:[%s24836_s2 + $0x10e8] ss:$16 sps:$4 sm:$0xff]   ;;  %v16821_v20 = vld [vmem:[%s24836_s2 + $0xf4c] ss:$16 sps:$4 sm:$0xff]  }
 0x25a   :  { %v16824_v7 = vld [vmem:[%s24836_s2 + $0x10cc] ss:$16 sps:$4 sm:$0xff]  }
 0x25b   :  { %5788 = vmatpush1.bf16.msra.mxu0 %v16756_v17  ;;  %v16822_v17 = vld [vmem:[%s24836_s2 + $0x10c8] ss:$16 sps:$4 sm:$0xff]  }
 0x25c   :  { %5755 = vmatpush1.bf16.msra.mxu1 %v16753_v35  ;;  %5789 = vmatprep.subr.bf16.mxu0 %v16764_v34  ;;  %v16819_v35 = vld [vmem:[%s24836_s2 + $0xf48] ss:$16 sps:$4 sm:$0xff]   ;;  %v16830_v34 = vld [vmem:[%s24836_s2 + $0x10ac] ss:$16 sps:$4 sm:$0xff]  }
 0x25d   :  { %5756 = vmatprep.subr.bf16.mxu1 %v16761_v33  ;;  %v16827_v33 = vld [vmem:[%s24836_s2 + $0xf2c] ss:$16 sps:$4 sm:$0xff]  }
 0x25f   :  { %5790 = vmatpush1.bf16.msra.mxu0 %v16762_v8 }
 0x260   :  { %5757 = vmatpush1.bf16.msra.mxu1 %v16759_v59  ;;  %5791 = vmatprep.subr.bf16.mxu0 %v16770_v37  ;;  %v16825_v59 = vld [vmem:[%s24836_s2 + $0xf28] ss:$16 sps:$4 sm:$0xff]   ;;  %v16833_v37 = vld [vmem:[%s24836_s2 + $0xf0c] ss:$16 sps:$4 sm:$0xff]  }
 0x261   :  { %5758 = vmatprep.subr.bf16.mxu1 %v16767_v36 }
 0x263   :  { %5792 = vmatpush1.bf16.msra.mxu0 %v16768_v6  ;;  %v20899_v6 = vsub.s32 2, %v18820_v42 }
 0x264   :  { %5759 = vmatpush2.bf16.msra.mxu1 %v16765_v40  ;;  %5793 = vmatprep.subr.bf16.mxu0 %v16776_v45  ;;  %v16836_v40 = vld [vmem:[%s24836_s2 + $0x108c] ss:$16 sps:$4 sm:$0xff]   ;;  %v16834_v45 = vld [vmem:[%s24836_s2 + $0x1088] ss:$16 sps:$4 sm:$0xff]  }
 0x265   :  { %5760 = vmatprep.subr.bf16.mxu1 %v16773_v44  ;;  %v20902_v44 = vsub.s32 3, %v18820_v42 }
 0x267   :  { %5794 = vmatpush1.bf16.msra.mxu0 %v16774_v43  ;;  %v16842_v43 = vld [vmem:[%s24836_s2 + $0x12ec] ss:$16 sps:$4 sm:$0xff]  }
 0x268   :  { %5761 = vmatpush2.bf16.msra.mxu1 %v16771_v0  ;;  %5795 = vmatprep.subr.bf16.mxu0 %v16782_v18  ;;  %v16839_v0 = vld [vmem:[%s24836_s2 + $0x106c] ss:$16 sps:$4 sm:$0xff]  }
 0x269   :  { %5762 = vmatprep.subr.bf16.mxu1 %v16779_v47  ;;  %v18592_v47 = vld [vmem:[%s24837_s3] sm:$0xf] }
 0x26a   :  { %v841_v18 = vrot.slane %v18592_v47, %v20899_v6 }
 0x26b   :  { %5796 = vmatpush1.bf16.msra.mxu0 %v16780_v51  ;;  %v16840_v51 = vld [vmem:[%s24836_s2 + $0x12e8] ss:$16 sps:$4 sm:$0xff]  }
 0x26c   :  { %5763 = vmatpush2.bf16.msra.mxu1 %v16777_v48  ;;  %5797 = vmatprep.subr.bf16.mxu0 %v16788_v23  ;;  %v16837_v48 = vld [vmem:[%s24836_s2 + $0x1068] ss:$16 sps:$4 sm:$0xff]   ;;  %v845_v23 = vrot.slane %v18592_v47, %v20902_v44 }
 0x26d   :  { %5764 = vmatprep.subr.bf16.mxu1 %v16785_v53  ;;  %v16845_v53 = vld [vmem:[%s24836_s2 + $0x104c] ss:$16 sps:$4 sm:$0xff]   ;;  %v16894_v47 = vld [vmem:[%s24836_s2 + $0x13c8] ss:$16 sps:$4 sm:$0xff]  }
 0x26f   :  { %5798 = vmatpush1.bf16.msra.mxu0 %v16786_v50 }
 0x270   :  { %5765 = vmatpush2.bf16.msra.mxu1 %v16783_v46  ;;  %5799 = vmatprep.subr.bf16.mxu0 %v16794_v56  ;;  %v16848_v46 = vld [vmem:[%s24836_s2 + $0x12cc] ss:$16 sps:$4 sm:$0xff]   ;;  %v16846_v56 = vld [vmem:[%s24836_s2 + $0x12c8] ss:$16 sps:$4 sm:$0xff]  }
 0x271   :  { %5766 = vmatprep.subr.bf16.mxu1 %v16791_v61  ;;  %v16843_v61 = vld [vmem:[%s24836_s2 + $0x1048] ss:$16 sps:$4 sm:$0xff]  }
 0x273   :  { %5800 = vmatpush2.bf16.msra.mxu0 %v16792_v58  ;;  %v16851_v58 = vld [vmem:[%s24836_s2 + $0x102c] ss:$16 sps:$4 sm:$0xff]  }
 0x274   :  { %5767 = vmatpush2.bf16.msra.mxu1 %v16789_v57  ;;  %5801 = vmatprep.subr.bf16.mxu0 %v16800_v52 }
 0x275   :  { %5768 = vmatprep.subr.bf16.mxu1 %v16797_v55 }
 0x277   :  { %5802 = vmatpush2.bf16.msra.mxu0 %v16798_v63  ;;  %v16854_v63 = vld [vmem:[%s24836_s2 + $0x12ac] ss:$16 sps:$4 sm:$0xff]  }
 0x278   :  { %5769 = vmatpush2.bf16.msra.mxu1 %v16795_v10  ;;  %5803 = vmatprep.subr.bf16.mxu0 %v16806_v3  ;;  %v16852_v3 = vld [vmem:[%s24836_s2 + $0x12a8] ss:$16 sps:$4 sm:$0xff]  }
 0x279   :  { %5770 = vmatprep.subr.bf16.mxu1 %v16803_v54 }
 0x27b   :  { %5804 = vmatpush2.bf16.msra.mxu0 %v16804_v26 }
 0x27c   :  { %5771 = vmatpush2.bf16.msra.mxu1 %v16801_v5  ;;  %5805 = vmatprep.subr.bf16.mxu0 %v16812_v1  ;;  %v16860_v1 = vld [vmem:[%s24836_s2 + $0x128c] ss:$16 sps:$4 sm:$0xff]  }
 0x27d   :  { %5772 = vmatprep.subr.bf16.mxu1 %v16809_v9  ;;  %v16857_v9 = vld [vmem:[%s24836_s2 + $0x100c] ss:$16 sps:$4 sm:$0xff]  }
 0x27f   :  { %5806 = vmatpush2.bf16.msra.mxu0 %v16810_v62  ;;  %v16863_v62 = vld [vmem:[%s24836_s2 + $0x11ec] ss:$16 sps:$4 sm:$0xff]  }
 0x280   :  { %5773 = vmatpush2.bf16.msra.mxu1 %v16807_v13  ;;  %5807 = vmatprep.subr.bf16.mxu0 %v16815_v60  ;;  %v16855_v13 = vld [vmem:[%s24836_s2 + $0x1008] ss:$16 sps:$4 sm:$0xff]   ;;  %v16866_v60 = vld [vmem:[%s24836_s2 + $0x126c] ss:$16 sps:$4 sm:$0xff]  }
 0x281   :  { %5824 = vmatprep.subr.bf16.mxu1 %v16818_v11  ;;  %v16861_v11 = vld [vmem:[%s24836_s2 + $0x11e8] ss:$16 sps:$4 sm:$0xff]  }
 0x283   :  { %v5530_v25 = vpop.f32.mrf.mxu1  ;;  %5775 = vmatmul.mubr.bf16.vlgmr.msra.gmra.mxu1 %v19584_v15  ;;  %5808 = vmatpush2.bf16.msra.mxu0 %v16813_v12  ;;  %v16828_v15 = vld [vmem:[%s24836_s2 + $0x10a8] ss:$16 sps:$4 sm:$0xff]  }
 0x284   :  { %5825 = vmatpush1.bf16.msra.mxu1 %v16816_v41  ;;  %5809 = vmatprep.subr.bf16.mxu0 %v16821_v20  ;;  %v5531_v50 = vadd.f32 %v5530_v25, %v841_v18  ;;  %v16864_v12 = vld [vmem:[%s24836_s2 + $0x1268] ss:$16 sps:$4 sm:$0xff]   ;;  %v16869_v41 = vld [vmem:[%s24836_s2 + $0x11cc] ss:$16 sps:$4 sm:$0xff]  }
 0x285   :  { %v5532_v28 = vpop.f32.mrf.mxu1  ;;  %5826 = vmatprep.subr.bf16.mxu1 %v16824_v7  ;;  %5856 = vmatprep.mubr.bf16.mxu1 %v19599_v39  ;;  %v16831_v39 = vld [vmem:[%s24836_s2 + $0xf08] ss:$16 sps:$4 sm:$0xff]   ;;  %v16872_v20 = vld [vmem:[%s24836_s2 + $0x124c] ss:$16 sps:$4 sm:$0xff]  }
 0x286   :  { %v5533_v55 = vadd.f32 %v5532_v28, %v845_v23  ;;  %v16867_v7 = vld [vmem:[%s24836_s2 + $0x11c8] ss:$16 sps:$4 sm:$0xff]   ;;  %v16878_v25 = vld [vmem:[%s24836_s2 + $0x122c] ss:$16 sps:$4 sm:$0xff]  }
 0x287   :  { %v5534_v8 = vpop.f32.mrf.mxu1  ;;  %5810 = vmatpush2.bf16.msra.mxu0 %v16819_v35  ;;  %v16870_v35 = vld [vmem:[%s24836_s2 + $0x1248] ss:$16 sps:$4 sm:$0xff]   ;;  %v16899_v18 = vld [vmem:[%s24836_s2 + $0x112c] ss:$16 sps:$4 sm:$0xff]  }
 0x288   :  { %5827 = vmatpush1.bf16.msra.mxu1 %v16822_v17  ;;  %5811 = vmatprep.subr.bf16.mxu0 %v16827_v33  ;;  %v16875_v17 = vld [vmem:[%s24836_s2 + $0x11ac] ss:$16 sps:$4 sm:$0xff]   ;;  %v16873_v28 = vld [vmem:[%s24836_s2 + $0x11a8] ss:$16 sps:$4 sm:$0xff]  }
 0x289   :  { %v5535_v36 = vpop.f32.mrf.mxu1  ;;  %5828 = vmatprep.subr.bf16.mxu1 %v16830_v34  ;;  %v16876_v33 = vld [vmem:[%s24836_s2 + $0x1228] ss:$16 sps:$4 sm:$0xff]   ;;  %v16881_v34 = vld [vmem:[%s24836_s2 + $0x118c] ss:$16 sps:$4 sm:$0xff]  }
 0x28a   :  { %v16882_v8 = vld [vmem:[%s24836_s2 + $0x1208] ss:$16 sps:$4 sm:$0xff]   ;;  %v16887_v36 = vld [vmem:[%s24836_s2 + $0x116c] ss:$16 sps:$4 sm:$0xff]  }
 0x28b   :  { %5812 = vmatpush2.bf16.msra.mxu0 %v16825_v59  ;;  %v16884_v59 = vld [vmem:[%s24836_s2 + $0x120c] ss:$16 sps:$4 sm:$0xff]  }
 0x28c   :  { %5829 = vmatpush1.bf16.msra.mxu1 %v16828_v15  ;;  %5813 = vmatprep.subr.bf16.mxu0 %v16833_v37  ;;  %v16879_v15 = vld [vmem:[%s24836_s2 + $0x1188] ss:$16 sps:$4 sm:$0xff]   ;;  %v16890_v37 = vld [vmem:[%s24836_s2 + $0x13ec] ss:$16 sps:$4 sm:$0xff]  }
 0x28d   :  { %5830 = vmatprep.subr.bf16.mxu1 %v16836_v40  ;;  %v16885_v40 = vld [vmem:[%s24836_s2 + $0x1168] ss:$16 sps:$4 sm:$0xff]   ;;  %v16905_v23 = vld [vmem:[%s24836_s2 + $0x110c] ss:$16 sps:$4 sm:$0xff]  }
 0x28f   :  { %5814 = vmatpush2.bf16.msra.mxu0 %v16831_v39  ;;  %v16888_v39 = vld [vmem:[%s24836_s2 + $0x13e8] ss:$16 sps:$4 sm:$0xff]  }
 0x290   :  { %5831 = vmatpush1.bf16.msra.mxu1 %v16834_v45  ;;  %5865 = vmatprep.subr.bf16.mxu0 %v16842_v43  ;;  %v16893_v45 = vld [vmem:[%s24836_s2 + $0x114c] ss:$16 sps:$4 sm:$0xff]   ;;  %v16891_v43 = vld [vmem:[%s24836_s2 + $0x1148] ss:$16 sps:$4 sm:$0xff]  }
 0x291   :  { %5832 = vmatprep.subr.bf16.mxu1 %v16839_v0  ;;  %v16896_v0 = vld [vmem:[%s24836_s2 + $0x13cc] ss:$16 sps:$4 sm:$0xff]  }
 0x292   :  { %v5571_v57 = vpop.f32.mrf.mxu0  ;;  %5816 = vmatmul.mubr.bf16.vlgmr.msra.gmra.mxu0 %v19603_v22  ;;  %v16849_v22 = vld [vmem:[%s24836_s2 + $0x1028] ss:$16 sps:$4 sm:$0xff]  }
 0x293   :  { %v20943_v52 = vadd.f32 %v5571_v57, %v5531_v50  ;;  %5866 = vmatpush1.bf16.msra.mxu0 %v16840_v51  ;;  %5897 = vmatprep.mubr.bf16.mxu0 %v19621_v31  ;;  %v16858_v31 = vld [vmem:[%s24836_s2 + $0x1288] ss:$16 sps:$4 sm:$0xff]   ;;  %v16914_v57 = vld [vmem:[%s24836_s2 + $0x14ec] ss:$16 sps:$4 sm:$0xff]  }
 0x294   :  { %5833 = vmatpush1.bf16.msra.mxu1 %v16837_v48  ;;  %v5573_v10 = vpop.f32.mrf.mxu0  ;;  %5867 = vmatprep.subr.bf16.mxu0 %v16848_v46  ;;  %v16902_v48 = vld [vmem:[%s24836_s2 + $0x13ac] ss:$16 sps:$4 sm:$0xff]   ;;  %v16897_v51 = vld [vmem:[%s24836_s2 + $0x1128] ss:$16 sps:$4 sm:$0xff]  }
 0x295   :  { %5834 = vmatprep.subr.bf16.mxu1 %v16845_v53  ;;  %v20948_v54 = vadd.f32 %v5573_v10, %v5533_v55  ;;  %v16900_v53 = vld [vmem:[%s24836_s2 + $0x13a8] ss:$16 sps:$4 sm:$0xff]   ;;  %v16908_v46 = vld [vmem:[%s24836_s2 + $0x138c] ss:$16 sps:$4 sm:$0xff]  }
 0x296   :  { %v5575_v5 = vpop.f32.mrf.mxu0  ;;  %v16903_v50 = vld [vmem:[%s24836_s2 + $0x1108] ss:$16 sps:$4 sm:$0xff]   ;;  %v16917_v10 = vld [vmem:[%s24836_s2 + $0x134c] ss:$16 sps:$4 sm:$0xff]  }
 0x297   :  { %5868 = vmatpush1.bf16.msra.mxu0 %v16846_v56  ;;  %v16911_v56 = vld [vmem:[%s24836_s2 + $0x136c] ss:$16 sps:$4 sm:$0xff]   ;;  %v16912_v55 = vld [vmem:[%s24836_s2 + $0x14e8] ss:$16 sps:$4 sm:$0xff]  }
 0x298   :  { %5835 = vmatpush1.bf16.msra.mxu1 %v16843_v61  ;;  %v5576_v26 = vpop.f32.mrf.mxu0  ;;  %5869 = vmatprep.subr.bf16.mxu0 %v16854_v63  ;;  %v16906_v61 = vld [vmem:[%s24836_s2 + $0x1388] ss:$16 sps:$4 sm:$0xff]   ;;  %v16920_v63 = vld [vmem:[%s24836_s2 + $0x14cc] ss:$16 sps:$4 sm:$0xff]  }
 0x299   :  { %5836 = vmatprep.subr.bf16.mxu1 %v16851_v58  ;;  %v16909_v58 = vld [vmem:[%s24836_s2 + $0x1368] ss:$16 sps:$4 sm:$0xff]   ;;  %v16923_v26 = vld [vmem:[%s24836_s2 + $0x132c] ss:$16 sps:$4 sm:$0xff]  }
 0x29b   :  { %5870 = vmatpush1.bf16.msra.mxu0 %v16852_v3  ;;  %v16918_v3 = vld [vmem:[%s24836_s2 + $0x14c8] ss:$16 sps:$4 sm:$0xff]  }
 0x29c   :  { %5837 = vmatpush1.bf16.msra.mxu1 %v16849_v22  ;;  %5871 = vmatprep.subr.bf16.mxu0 %v16860_v1  ;;  %v16915_v22 = vld [vmem:[%s24836_s2 + $0x1348] ss:$16 sps:$4 sm:$0xff]  }
 0x29d   :  { %5838 = vmatprep.subr.bf16.mxu1 %v16857_v9 }
 0x29f   :  { %5872 = vmatpush1.bf16.msra.mxu0 %v16858_v31 }
 0x2a0   :  { %5839 = vmatpush1.bf16.msra.mxu1 %v16855_v13  ;;  %5873 = vmatprep.subr.bf16.mxu0 %v16866_v60  ;;  %v16926_v13 = vld [vmem:[%s24836_s2 + $0x14ac] ss:$16 sps:$4 sm:$0xff]  }
 0x2a1   :  { %5840 = vmatprep.subr.bf16.mxu1 %v16863_v62  ;;  %v16924_v62 = vld [vmem:[%s24836_s2 + $0x14a8] ss:$16 sps:$4 sm:$0xff]  }
 0x2a3   :  { %5874 = vmatpush1.bf16.msra.mxu0 %v16864_v12  ;;  %v16927_v12 = vld [vmem:[%s24836_s2 + $0x1308] ss:$16 sps:$4 sm:$0xff]  }
 0x2a4   :  { %5841 = vmatpush2.bf16.msra.mxu1 %v16861_v11  ;;  %5875 = vmatprep.subr.bf16.mxu0 %v16872_v20  ;;  %v16932_v11 = vld [vmem:[%s24836_s2 + $0x148c] ss:$16 sps:$4 sm:$0xff]  }
 0x2a5   :  { %5842 = vmatprep.subr.bf16.mxu1 %v16869_v41  ;;  %v16935_v41 = vld [vmem:[%s24836_s2 + $0x146c] ss:$16 sps:$4 sm:$0xff]  }
 0x2a6   :  { %v16938_v20 = vld [vmem:[%s24836_s2 + $0x16ec] ss:$16 sps:$4 sm:$0xff]  }
 0x2a7   :  { %5876 = vmatpush1.bf16.msra.mxu0 %v16870_v35  ;;  %v16936_v35 = vld [vmem:[%s24836_s2 + $0x16e8] ss:$16 sps:$4 sm:$0xff]  }
 0x2a8   :  { %5843 = vmatpush2.bf16.msra.mxu1 %v16867_v7  ;;  %5877 = vmatprep.subr.bf16.mxu0 %v16878_v25  ;;  %v16933_v7 = vld [vmem:[%s24836_s2 + $0x1468] ss:$16 sps:$4 sm:$0xff]   ;;  %v16944_v25 = vld [vmem:[%s24836_s2 + $0x16cc] ss:$16 sps:$4 sm:$0xff]  }
 0x2a9   :  { %5844 = vmatprep.subr.bf16.mxu1 %v16875_v17  ;;  %v16941_v17 = vld [vmem:[%s24836_s2 + $0x144c] ss:$16 sps:$4 sm:$0xff]  }
 0x2ab   :  { %5878 = vmatpush1.bf16.msra.mxu0 %v16876_v33  ;;  %v16942_v33 = vld [vmem:[%s24836_s2 + $0x16c8] ss:$16 sps:$4 sm:$0xff]  }
 0x2ac   :  { %5845 = vmatpush2.bf16.msra.mxu1 %v16873_v28  ;;  %5879 = vmatprep.subr.bf16.mxu0 %v16884_v59  ;;  %v16939_v28 = vld [vmem:[%s24836_s2 + $0x1448] ss:$16 sps:$4 sm:$0xff]   ;;  %v16947_v59 = vld [vmem:[%s24836_s2 + $0x142c] ss:$16 sps:$4 sm:$0xff]  }
 0x2ad   :  { %5846 = vmatprep.subr.bf16.mxu1 %v16881_v34 }
 0x2af   :  { %5880 = vmatpush1.bf16.msra.mxu0 %v16882_v8 }
 0x2b0   :  { %5847 = vmatpush2.bf16.msra.mxu1 %v16879_v15  ;;  %5881 = vmatprep.subr.bf16.mxu0 %v16890_v37 }
 0x2b1   :  { %5848 = vmatprep.subr.bf16.mxu1 %v16887_v36  ;;  %v16950_v36 = vld [vmem:[%s24836_s2 + $0x16ac] ss:$16 sps:$4 sm:$0xff]  }
 0x2b3   :  { %5882 = vmatpush2.bf16.msra.mxu0 %v16888_v39 }
 0x2b4   :  { %5849 = vmatpush2.bf16.msra.mxu1 %v16885_v40  ;;  %5883 = vmatprep.subr.bf16.mxu0 %v16896_v0  ;;  %v16948_v40 = vld [vmem:[%s24836_s2 + $0x16a8] ss:$16 sps:$4 sm:$0xff]   ;;  %v16953_v0 = vld [vmem:[%s24836_s2 + $0x140c] ss:$16 sps:$4 sm:$0xff]  }
 0x2b5   :  { %5850 = vmatprep.subr.bf16.mxu1 %v16893_v45 }
 0x2b7   :  { %5884 = vmatpush2.bf16.msra.mxu0 %v16894_v47  ;;  %v16951_v47 = vld [vmem:[%s24836_s2 + $0x1408] ss:$16 sps:$4 sm:$0xff]  }
 0x2b8   :  { %5851 = vmatpush2.bf16.msra.mxu1 %v16891_v43  ;;  %5885 = vmatprep.subr.bf16.mxu0 %v16902_v48  ;;  %v16956_v43 = vld [vmem:[%s24836_s2 + $0x168c] ss:$16 sps:$4 sm:$0xff]  }
 0x2b9   :  { %5852 = vmatprep.subr.bf16.mxu1 %v16899_v18  ;;  %v16959_v18 = vld [vmem:[%s24836_s2 + $0x15ec] ss:$16 sps:$4 sm:$0xff]  }
 0x2ba   :  { %v16962_v48 = vld [vmem:[%s24836_s2 + $0x166c] ss:$16 sps:$4 sm:$0xff]  }
 0x2bb   :  { %5886 = vmatpush2.bf16.msra.mxu0 %v16900_v53  ;;  %v16960_v53 = vld [vmem:[%s24836_s2 + $0x1668] ss:$16 sps:$4 sm:$0xff]  }
 0x2bc   :  { %5853 = vmatpush2.bf16.msra.mxu1 %v16897_v51  ;;  %5887 = vmatprep.subr.bf16.mxu0 %v16908_v46  ;;  %v16957_v51 = vld [vmem:[%s24836_s2 + $0x15e8] ss:$16 sps:$4 sm:$0xff]   ;;  %v16968_v46 = vld [vmem:[%s24836_s2 + $0x164c] ss:$16 sps:$4 sm:$0xff]  }
 0x2bd   :  { %5854 = vmatprep.subr.bf16.mxu1 %v16905_v23  ;;  %v16965_v23 = vld [vmem:[%s24836_s2 + $0x15cc] ss:$16 sps:$4 sm:$0xff]  }
 0x2bf   :  { %5888 = vmatpush2.bf16.msra.mxu0 %v16906_v61  ;;  %v16966_v61 = vld [vmem:[%s24836_s2 + $0x1648] ss:$16 sps:$4 sm:$0xff]  }
 0x2c0   :  { %5855 = vmatpush2.bf16.msra.mxu1 %v16903_v50  ;;  %5889 = vmatprep.subr.bf16.mxu0 %v16911_v56  ;;  %v16963_v50 = vld [vmem:[%s24836_s2 + $0x15c8] ss:$16 sps:$4 sm:$0xff]   ;;  %v16971_v56 = vld [vmem:[%s24836_s2 + $0x15ac] ss:$16 sps:$4 sm:$0xff]  }
 0x2c1   :  { %5906 = vmatprep.subr.bf16.mxu1 %v16914_v57  ;;  %v16974_v57 = vld [vmem:[%s24836_s2 + $0x162c] ss:$16 sps:$4 sm:$0xff]  }
 0x2c3   :  { %v5612_v5 = vpop.f32.mrf.mxu1  ;;  %5857 = vmatmul.mubr.bf16.vlgmr.msra.gmra.mxu1 %v19808_v19  ;;  %5890 = vmatpush2.bf16.msra.mxu0 %v16909_v58  ;;  %v16921_v19 = vld [vmem:[%s24836_s2 + $0x1328] ss:$16 sps:$4 sm:$0xff]  }
 0x2c4   :  { %v5613_v9 = vadd.f32 %v5612_v5, %v20943_v52  ;;  %5907 = vmatpush1.bf16.msra.mxu1 %v16912_v55  ;;  %5891 = vmatprep.subr.bf16.mxu0 %v16917_v10  ;;  %v16969_v58 = vld [vmem:[%s24836_s2 + $0x15a8] ss:$16 sps:$4 sm:$0xff]   ;;  %v16977_v10 = vld [vmem:[%s24836_s2 + $0x158c] ss:$16 sps:$4 sm:$0xff]  }
 0x2c5   :  { %v5614_v1 = vpop.f32.mrf.mxu1  ;;  %5908 = vmatprep.subr.bf16.mxu1 %v16920_v63  ;;  %5938 = vmatprep.mubr.bf16.mxu1 %v19829_v29  ;;  %v16930_v29 = vld [vmem:[%s24836_s2 + $0x1488] ss:$16 sps:$4 sm:$0xff]   ;;  %v16980_v63 = vld [vmem:[%s24836_s2 + $0x160c] ss:$16 sps:$4 sm:$0xff]  }
 0x2c6   :  { %v5615_v31 = vadd.f32 %v5614_v1, %v20948_v54  ;;  %v16929_v54 = vld [vmem:[%s24836_s2 + $0x130c] ss:$16 sps:$4 sm:$0xff]   ;;  %v16972_v55 = vld [vmem:[%s24836_s2 + $0x1628] ss:$16 sps:$4 sm:$0xff]  }
 0x2c7   :  { %v5616_v52 = vpop.f32.mrf.mxu1  ;;  %5892 = vmatpush2.bf16.msra.mxu0 %v16915_v22  ;;  %v16975_v22 = vld [vmem:[%s24836_s2 + $0x1588] ss:$16 sps:$4 sm:$0xff]   ;;  %v16983_v5 = vld [vmem:[%s24836_s2 + $0x156c] ss:$16 sps:$4 sm:$0xff]  }
 0x2c8   :  { %5909 = vmatpush1.bf16.msra.mxu1 %v16918_v3  ;;  %5893 = vmatprep.subr.bf16.mxu0 %v16923_v26  ;;  %v16978_v3 = vld [vmem:[%s24836_s2 + $0x1608] ss:$16 sps:$4 sm:$0xff]   ;;  %v16986_v26 = vld [vmem:[%s24836_s2 + $0x17ec] ss:$16 sps:$4 sm:$0xff]  }
 0x2c9   :  { %v5617_v60 = vpop.f32.mrf.mxu1  ;;  %5910 = vmatprep.subr.bf16.mxu1 %v16926_v13  ;;  %v16984_v1 = vld [vmem:[%s24836_s2 + $0x17e8] ss:$16 sps:$4 sm:$0xff]   ;;  %v16989_v13 = vld [vmem:[%s24836_s2 + $0x154c] ss:$16 sps:$4 sm:$0xff]  }
 0x2ca   :  { %v16995_v52 = vld [vmem:[%s24836_s2 + $0x152c] ss:$16 sps:$4 sm:$0xff]  }
 0x2cb   :  { %5894 = vmatpush2.bf16.msra.mxu0 %v16921_v19  ;;  %v16987_v19 = vld [vmem:[%s24836_s2 + $0x1548] ss:$16 sps:$4 sm:$0xff]   ;;  %v16998_v60 = vld [vmem:[%s24836_s2 + $0x17ac] ss:$16 sps:$4 sm:$0xff]  }
 0x2cc   :  { %5911 = vmatpush1.bf16.msra.mxu1 %v16924_v62  ;;  %5895 = vmatprep.subr.bf16.mxu0 %v16929_v54  ;;  %v16990_v62 = vld [vmem:[%s24836_s2 + $0x17c8] ss:$16 sps:$4 sm:$0xff]  }
 0x2cd   :  { %5912 = vmatprep.subr.bf16.mxu1 %v16932_v11  ;;  %v16993_v54 = vld [vmem:[%s24836_s2 + $0x1528] ss:$16 sps:$4 sm:$0xff]  }
 0x2ce   :  { %v16996_v11 = vld [vmem:[%s24836_s2 + $0x17a8] ss:$16 sps:$4 sm:$0xff]  }
 0x2cf   :  { %5896 = vmatpush2.bf16.msra.mxu0 %v16927_v12  ;;  %v17001_v12 = vld [vmem:[%s24836_s2 + $0x150c] ss:$16 sps:$4 sm:$0xff]  }
 0x2d0   :  { %5913 = vmatpush1.bf16.msra.mxu1 %v16930_v29  ;;  %5947 = vmatprep.subr.bf16.mxu0 %v16938_v20  ;;  %v17004_v29 = vld [vmem:[%s24836_s2 + $0x178c] ss:$16 sps:$4 sm:$0xff]   ;;  %v17002_v20 = vld [vmem:[%s24836_s2 + $0x1788] ss:$16 sps:$4 sm:$0xff]  }
 0x2d1   :  { %5914 = vmatprep.subr.bf16.mxu1 %v16935_v41  ;;  %v16999_v41 = vld [vmem:[%s24836_s2 + $0x1508] ss:$16 sps:$4 sm:$0xff]  }
 0x2d2   :  { %v5653_v34 = vpop.f32.mrf.mxu0  ;;  %5898 = vmatmul.mubr.bf16.vlgmr.msra.gmra.mxu0 %v19833_v30  ;;  %v16945_v30 = vld [vmem:[%s24836_s2 + $0x1428] ss:$16 sps:$4 sm:$0xff]  }
 0x2d3   :  { %v21145_v15 = vadd.f32 %v5653_v34, %v5613_v9  ;;  %5948 = vmatpush1.bf16.msra.mxu0 %v16936_v35  ;;  %5979 = vmatprep.mubr.bf16.mxu0 %v19849_v38  ;;  %v16954_v38 = vld [vmem:[%s24836_s2 + $0x1688] ss:$16 sps:$4 sm:$0xff]   ;;  %v17010_v35 = vld [vmem:[%s24836_s2 + $0x186c] ss:$16 sps:$4 sm:$0xff]  }
 0x2d4   :  { %5915 = vmatpush1.bf16.msra.mxu1 %v16933_v7  ;;  %v5655_v8 = vpop.f32.mrf.mxu0  ;;  %5949 = vmatprep.subr.bf16.mxu0 %v16944_v25  ;;  %v16981_v9 = vld [vmem:[%s24836_s2 + $0x1568] ss:$16 sps:$4 sm:$0xff]   ;;  %v17007_v7 = vld [vmem:[%s24836_s2 + $0x176c] ss:$16 sps:$4 sm:$0xff]  }
 0x2d5   :  { %5916 = vmatprep.subr.bf16.mxu1 %v16941_v17  ;;  %v21150_v37 = vadd.f32 %v5655_v8, %v5615_v31  ;;  %v16992_v31 = vld [vmem:[%s24836_s2 + $0x17cc] ss:$16 sps:$4 sm:$0xff]   ;;  %v17005_v17 = vld [vmem:[%s24836_s2 + $0x1768] ss:$16 sps:$4 sm:$0xff]  }
 0x2d6   :  { %v5657_v39 = vpop.f32.mrf.mxu0  ;;  %v17008_v25 = vld [vmem:[%s24836_s2 + $0x1868] ss:$16 sps:$4 sm:$0xff]  }
 0x2d7   :  { %5950 = vmatpush1.bf16.msra.mxu0 %v16942_v33  ;;  %v17016_v33 = vld [vmem:[%s24836_s2 + $0x184c] ss:$16 sps:$4 sm:$0xff]   ;;  %v17011_v34 = vld [vmem:[%s24836_s2 + $0x1748] ss:$16 sps:$4 sm:$0xff]  }
 0x2d8   :  { %5917 = vmatpush1.bf16.msra.mxu1 %v16939_v28  ;;  %v5658_v45 = vpop.f32.mrf.mxu0  ;;  %5951 = vmatprep.subr.bf16.mxu0 %v16950_v36  ;;  %v17013_v28 = vld [vmem:[%s24836_s2 + $0x174c] ss:$16 sps:$4 sm:$0xff]  }
 0x2d9   :  { %5918 = vmatprep.subr.bf16.mxu1 %v16947_v59  ;;  %v17014_v59 = vld [vmem:[%s24836_s2 + $0x1848] ss:$16 sps:$4 sm:$0xff]   ;;  %v17019_v36 = vld [vmem:[%s24836_s2 + $0x172c] ss:$16 sps:$4 sm:$0xff]  }
 0x2da   :  { %v17022_v39 = vld [vmem:[%s24836_s2 + $0x182c] ss:$16 sps:$4 sm:$0xff]  }
 0x2db   :  { %5952 = vmatpush1.bf16.msra.mxu0 %v16948_v40 }
 0x2dc   :  { %5919 = vmatpush1.bf16.msra.mxu1 %v16945_v30  ;;  %5953 = vmatprep.subr.bf16.mxu0 %v16956_v43 }
 0x2dd   :  { %5920 = vmatprep.subr.bf16.mxu1 %v16953_v0  ;;  %v17020_v0 = vld [vmem:[%s24836_s2 + $0x1828] ss:$16 sps:$4 sm:$0xff]  }
 0x2df   :  { %5954 = vmatpush1.bf16.msra.mxu0 %v16954_v38  ;;  %v17023_v38 = vld [vmem:[%s24836_s2 + $0x1708] ss:$16 sps:$4 sm:$0xff]  }
 0x2e0   :  { %5921 = vmatpush1.bf16.msra.mxu1 %v16951_v47  ;;  %5955 = vmatprep.subr.bf16.mxu0 %v16962_v48  ;;  %v17028_v47 = vld [vmem:[%s24836_s2 + $0x180c] ss:$16 sps:$4 sm:$0xff]   ;;  %v17031_v48 = vld [vmem:[%s24838_s4 + $0xe4] ss:$16 sps:$4 sm:$0xff]  }
 0x2e1   :  { %5922 = vmatprep.subr.bf16.mxu1 %v16959_v18  ;;  %v17026_v18 = vld [vmem:[%s24836_s2 + $0x1808] ss:$16 sps:$4 sm:$0xff]  }
 0x2e3   :  { %5956 = vmatpush1.bf16.msra.mxu0 %v16960_v53  ;;  %v17029_v53 = vld [vmem:[%s24838_s4 + $0xe0] ss:$16 sps:$4 sm:$0xff]  }
 0x2e4   :  { %5923 = vmatpush2.bf16.msra.mxu1 %v16957_v51  ;;  %5957 = vmatprep.subr.bf16.mxu0 %v16968_v46  ;;  %v6030_v51 = vmax.f32 %v20737_v24, 0.0  ;;  %v17037_v24 = vld [vmem:[%s24838_s4 + $0xa4] ss:$16 sps:$4 sm:$0xff]  }
 0x2e5   :  { %5924 = vmatprep.subr.bf16.mxu1 %v16965_v23  ;;  %v17034_v23 = vld [vmem:[%s24838_s4 + $0xc4] ss:$16 sps:$4 sm:$0xff]  }
 0x2e6   :  { %v21329_v46 = vpack.c.bf16 %v6030_v51, %v6030_v51  ;;  %v17073_v51 = vld [vmem:[%s24838_s4 + $0x124] ss:$16 sps:$4 sm:$0xff]  }
 0x2e7   :  { %5958 = vmatpush1.bf16.msra.mxu0 %v16966_v61 }
 0x2e8   :  { %5925 = vmatpush2.bf16.msra.mxu1 %v16963_v50  ;;  %5959 = vmatprep.subr.bf16.mxu0 %v16974_v57  ;;  %v17032_v50 = vld [vmem:[%s24838_s4 + $0xc0] ss:$16 sps:$4 sm:$0xff]  }
 0x2e9   :  { %5926 = vmatprep.subr.bf16.mxu1 %v16971_v56 }
 0x2eb   :  { %5960 = vmatpush1.bf16.msra.mxu0 %v16972_v55 }
 0x2ec   :  { %5927 = vmatpush2.bf16.msra.mxu1 %v16969_v58  ;;  %5961 = vmatprep.subr.bf16.mxu0 %v16980_v63  ;;  %v17125_v63 = vld [vmem:[%s24838_s4 + $0x2e0] ss:$16 sps:$4 sm:$0xff]  }
 0x2ed   :  { %5928 = vmatprep.subr.bf16.mxu1 %v16977_v10  ;;  %v17040_v10 = vld [vmem:[%s24838_s4 + $0x84] ss:$16 sps:$4 sm:$0xff]  }
 0x2ef   :  { %5962 = vmatpush1.bf16.msra.mxu0 %v16978_v3  ;;  %v17130_v3 = vld [vmem:[%s24838_s4 + $0x2c4] ss:$16 sps:$4 sm:$0xff]  }
 0x2f0   :  { %5929 = vmatpush2.bf16.msra.mxu1 %v16975_v22  ;;  %5963 = vmatprep.subr.bf16.mxu0 %v16986_v26  ;;  %v17127_v22 = vld [vmem:[%s24838_s4 + $0x2e4] ss:$16 sps:$4 sm:$0xff]   ;;  %v17128_v26 = vld [vmem:[%s24838_s4 + $0x2c0] ss:$16 sps:$4 sm:$0xff]  }
 0x2f1   :  { %5930 = vmatprep.subr.bf16.mxu1 %v16983_v5  ;;  %v17038_v5 = vld [vmem:[%s24838_s4 + $0x80] ss:$16 sps:$4 sm:$0xff]  }
 0x2f3   :  { %5964 = vmatpush2.bf16.msra.mxu0 %v16984_v1  ;;  %v17133_v1 = vld [vmem:[%s24838_s4 + $0x2a4] ss:$16 sps:$4 sm:$0xff]  }
 0x2f4   :  { %5931 = vmatpush2.bf16.msra.mxu1 %v16981_v9  ;;  %5965 = vmatprep.subr.bf16.mxu0 %v16992_v31  ;;  %v17043_v9 = vld [vmem:[%s24838_s4 + $0x64] ss:$16 sps:$4 sm:$0xff]  }
 0x2f5   :  { %5932 = vmatprep.subr.bf16.mxu1 %v16989_v13  ;;  %v17041_v13 = vld [vmem:[%s24838_s4 + $0x60] ss:$16 sps:$4 sm:$0xff]   ;;  %v17046_v31 = vld [vmem:[%s24838_s4 + $0x44] ss:$16 sps:$4 sm:$0xff]  }
 0x2f7   :  { %5966 = vmatpush2.bf16.msra.mxu0 %v16990_v62  ;;  %v17136_v62 = vld [vmem:[%s24838_s4 + $0x284] ss:$16 sps:$4 sm:$0xff]  }
 0x2f8   :  { %5933 = vmatpush2.bf16.msra.mxu1 %v16987_v19  ;;  %5967 = vmatprep.subr.bf16.mxu0 %v16998_v60  ;;  %v17131_v19 = vld [vmem:[%s24838_s4 + $0x2a0] ss:$16 sps:$4 sm:$0xff]  }
 0x2f9   :  { %5934 = vmatprep.subr.bf16.mxu1 %v16995_v52  ;;  %v17044_v52 = vld [vmem:[%s24838_s4 + $0x40] ss:$16 sps:$4 sm:$0xff]  }
 0x2fa   :  { %v17134_v60 = vld [vmem:[%s24838_s4 + $0x280] ss:$16 sps:$4 sm:$0xff]  }
 0x2fb   :  { %5968 = vmatpush2.bf16.msra.mxu0 %v16996_v11  ;;  %v17139_v11 = vld [vmem:[%s24838_s4 + $0x264] ss:$16 sps:$4 sm:$0xff]  }
 0x2fc   :  { %5935 = vmatpush2.bf16.msra.mxu1 %v16993_v54  ;;  %5969 = vmatprep.subr.bf16.mxu0 %v17004_v29  ;;  %v17049_v54 = vld [vmem:[%s24838_s4 + $0x24] ss:$16 sps:$4 sm:$0xff]   ;;  %v17137_v29 = vld [vmem:[%s24838_s4 + $0x260] ss:$16 sps:$4 sm:$0xff]  }
 0x2fd   :  { %5936 = vmatprep.subr.bf16.mxu1 %v17001_v12  ;;  %v17047_v12 = vld [vmem:[%s24838_s4 + $0x20] ss:$16 sps:$4 sm:$0xff]  }
 0x2ff   :  { %5970 = vmatpush2.bf16.msra.mxu0 %v17002_v20  ;;  %v17142_v20 = vld [vmem:[%s24838_s4 + $0x244] ss:$16 sps:$4 sm:$0xff]  }
 0x300   :  { %5937 = vmatpush2.bf16.msra.mxu1 %v16999_v41  ;;  %5971 = vmatprep.subr.bf16.mxu0 %v17007_v7  ;;  %v17052_v41 = vld [vmem:[%s24838_s4 + $0x4] ss:$16 sps:$4 sm:$0xff]   ;;  %v17050_v7 = vld [vmem:[%s24838_s4] ss:$16 sps:$4 sm:$0xff]  }
 0x301   :  { %5996 = vmatprep.subr.bf16.mxu1 %v17010_v35  ;;  %v17140_v35 = vld [vmem:[%s24838_s4 + $0x240] ss:$16 sps:$4 sm:$0xff]  }
 0x303   :  { %v5694_v8 = vpop.f32.mrf.mxu1  ;;  %5939 = vmatmul.mubr.bf16.vlgmr.msra.gmra.mxu1 %v20025_v27  ;;  %5972 = vmatpush2.bf16.msra.mxu0 %v17005_v17  ;;  %v17017_v27 = vld [vmem:[%s24836_s2 + $0x1728] ss:$16 sps:$4 sm:$0xff]   ;;  %v17055_v17 = vld [vmem:[%s24838_s4 + $0x1e4] ss:$16 sps:$4 sm:$0xff]  }
 0x304   :  { %v5695_v30 = vadd.f32 %v5694_v8, %v21145_v15  ;;  %5997 = vmatpush1.bf16.msra.mxu1 %v17008_v25  ;;  %5973 = vmatprep.subr.bf16.mxu0 %v17013_v28  ;;  %v17145_v25 = vld [vmem:[%s24838_s4 + $0x224] ss:$16 sps:$4 sm:$0xff]   ;;  %v17053_v28 = vld [vmem:[%s24838_s4 + $0x1e0] ss:$16 sps:$4 sm:$0xff]  }
 0x305   :  { %v5696_v40 = vpop.f32.mrf.mxu1  ;;  %5998 = vmatprep.subr.bf16.mxu1 %v17016_v33  ;;  %6020 = vmatprep.mubr.bf16.mxu1 %v18639_v2  ;;  %v17143_v33 = vld [vmem:[%s24838_s4 + $0x220] ss:$16 sps:$4 sm:$0xff]  }
 0x306   :  { %v5697_v45 = vadd.f32 %v5696_v40, %v21150_v37  ;;  %v17025_v37 = vld [vmem:[%s24836_s2 + $0x170c] ss:$16 sps:$4 sm:$0xff]   ;;  %v17056_v8 = vld [vmem:[%s24838_s4 + $0x1c0] ss:$16 sps:$4 sm:$0xff]   ;;  %v17151_v40 = vld [vmem:[%s24838_s4 + $0x3e4] ss:$16 sps:$4 sm:$0xff]  }
 0x307   :  { %v5698_v15 = vpop.f32.mrf.mxu1  ;;  %5974 = vmatpush2.bf16.msra.mxu0 %v17011_v34  ;;  %v17058_v34 = vld [vmem:[%s24838_s4 + $0x1c4] ss:$16 sps:$4 sm:$0xff]  }
 0x308   :  { %5999 = vmatpush1.bf16.msra.mxu1 %v17014_v59  ;;  %5975 = vmatprep.subr.bf16.mxu0 %v17019_v36  ;;  %v17148_v59 = vld [vmem:[%s24838_s4 + $0x204] ss:$16 sps:$4 sm:$0xff]   ;;  %v17146_v36 = vld [vmem:[%s24838_s4 + $0x200] ss:$16 sps:$4 sm:$0xff]  }
 0x309   :  { %v5699_v43 = vpop.f32.mrf.mxu1  ;;  %6000 = vmatprep.subr.bf16.mxu1 %v17022_v39  ;;  %v17059_v39 = vld [vmem:[%s24838_s4 + $0x1a0] ss:$16 sps:$4 sm:$0xff]  }
 0x30a   :  { %v17062_v15 = vld [vmem:[%s24838_s4 + $0x180] ss:$16 sps:$4 sm:$0xff]  }
 0x30b   :  { %5976 = vmatpush2.bf16.msra.mxu0 %v17017_v27  ;;  %v17064_v27 = vld [vmem:[%s24838_s4 + $0x184] ss:$16 sps:$4 sm:$0xff]   ;;  %v17152_v43 = vld [vmem:[%s24838_s4 + $0x3c0] ss:$16 sps:$4 sm:$0xff]  }
 0x30c   :  { %6001 = vmatpush1.bf16.msra.mxu1 %v17020_v0  ;;  %5977 = vmatprep.subr.bf16.mxu0 %v17025_v37  ;;  %v17154_v0 = vld [vmem:[%s24838_s4 + $0x3c4] ss:$16 sps:$4 sm:$0xff]  }
 0x30d   :  { %6002 = vmatprep.subr.bf16.mxu1 %v17028_v47  ;;  %v17067_v37 = vld [vmem:[%s24838_s4 + $0x164] ss:$16 sps:$4 sm:$0xff]   ;;  %v17065_v47 = vld [vmem:[%s24838_s4 + $0x160] ss:$16 sps:$4 sm:$0xff]  }
 0x30f   :  { %5978 = vmatpush2.bf16.msra.mxu0 %v17023_v38  ;;  %v17070_v38 = vld [vmem:[%s24838_s4 + $0x144] ss:$16 sps:$4 sm:$0xff]  }
 0x310   :  { %6003 = vmatpush1.bf16.msra.mxu1 %v17026_v18  ;;  %6827 = vmatprep.subr.bf16.mxu0 %v17031_v48  ;;  %v17068_v18 = vld [vmem:[%s24838_s4 + $0x140] ss:$16 sps:$4 sm:$0xff]  }
 0x311   :  { %6868 = vmatprep.subr.bf16.mxu1 %v17127_v22  ;;  %v17161_v22 = vld [vmem:[%s24838_s4 + $0x360] ss:$16 sps:$4 sm:$0xff]  }
 0x312   :  { %v5735_v61 = vpop.f32.mrf.mxu0  ;;  %5980 = vmatmul.mubr.bf16.vlgmr.msra.gmra.mxu0 %v20047_v32  ;;  %v17035_v32 = vld [vmem:[%s24838_s4 + $0xa0] ss:$16 sps:$4 sm:$0xff]  }
 0x313   :  { %14801 = vmatmul.mubr.msk.bf16.vlgmr.msra.gmra.mxu1 %vm4959_vm0, %v20111_v4  ;;  %v21340_v56 = vadd.f32 %v5735_v61, %v5695_v30  ;;  %6828 = vmatpush1.bf16.msra.mxu0 %v17029_v53  ;;  %v17061_v30 = vld [vmem:[%s24838_s4 + $0x1a4] ss:$16 sps:$4 sm:$0xff]   ;;  %v17155_v61 = vld [vmem:[%s24838_s4 + $0x3a0] ss:$16 sps:$4 sm:$0xff]  }
 0x314   :  { %6859 = vmatprep.mubr.bf16.mxu0 %v21329_v46  ;;  %v5737_v57 = vpop.f32.mrf.mxu0  ;;  %6829 = vmatprep.subr.bf16.mxu0 %v17034_v23  ;;  %v17157_v23 = vld [vmem:[%s24838_s4 + $0x3a4] ss:$16 sps:$4 sm:$0xff]  }
 0x315   :  { %v21343_v58 = vadd.f32 %v5737_v57, %v5697_v45  ;;  %6869 = vmatpush1.bf16.msra.mxu1 %v17125_v63  ;;  %v17149_v45 = vld [vmem:[%s24838_s4 + $0x3e0] ss:$16 sps:$4 sm:$0xff]  }
 0x316   :  { %v5739_v55 = vpop.f32.mrf.mxu0  ;;  %6870 = vmatprep.subr.bf16.mxu1 %v17130_v3  ;;  %v17071_v57 = vld [vmem:[%s24838_s4 + $0x120] ss:$16 sps:$4 sm:$0xff]   ;;  %v17166_v3 = vld [vmem:[%s24838_s4 + $0x344] ss:$16 sps:$4 sm:$0xff]  }
 0x317   :  { %6830 = vmatpush1.bf16.msra.mxu0 %v17032_v50  ;;  %v17074_v63 = vld [vmem:[%s24838_s4 + $0x100] ss:$16 sps:$4 sm:$0xff]  }
 0x318   :  { %v5740_v4 = vpop.f32.mrf.mxu0  ;;  %6831 = vmatprep.subr.bf16.mxu0 %v17037_v24 }
 0x319   :  { %6871 = vmatpush1.bf16.msra.mxu1 %v17128_v26  ;;  %v17076_v4 = vld [vmem:[%s24838_s4 + $0x104] ss:$16 sps:$4 sm:$0xff]   ;;  %v6029_v26 = vmax.f32 %v20729_v14, 0.0  ;;  %v17080_v14 = vld [vmem:[%s24838_s4 + $0xc8] ss:$16 sps:$4 sm:$0xff]  }
 0x31a   :  { %6872 = vmatprep.subr.bf16.mxu1 %v17133_v1  ;;  %v17077_v1 = vld [vmem:[%s24838_s4 + $0xe8] ss:$16 sps:$4 sm:$0xff]  }
 0x31b   :  { %6832 = vmatpush1.bf16.msra.mxu0 %v17035_v32 }
 0x31c   :  { %6833 = vmatprep.subr.bf16.mxu0 %v17040_v10  ;;  %v17163_v10 = vld [vmem:[%s24838_s4 + $0x364] ss:$16 sps:$4 sm:$0xff]  }
 0x31d   :  { %6873 = vmatpush1.bf16.msra.mxu1 %v17131_v19 }
 0x31e   :  { %6874 = vmatprep.subr.bf16.mxu1 %v17136_v62  ;;  %v17085_v62 = vld [vmem:[%s24838_s4 + $0xac] ss:$16 sps:$4 sm:$0xff]  }
 0x31f   :  { %6834 = vmatpush1.bf16.msra.mxu0 %v17038_v5  ;;  %v17079_v5 = vld [vmem:[%s24838_s4 + $0xec] ss:$16 sps:$4 sm:$0xff]  }
 0x320   :  { %6835 = vmatprep.subr.bf16.mxu0 %v17043_v9  ;;  %v17164_v9 = vld [vmem:[%s24838_s4 + $0x340] ss:$16 sps:$4 sm:$0xff]  }
 0x321   :  { %6875 = vmatpush1.bf16.msra.mxu1 %v17134_v60  ;;  %v17169_v60 = vld [vmem:[%s24838_s4 + $0x324] ss:$16 sps:$4 sm:$0xff]  }
 0x322   :  { %6876 = vmatprep.subr.bf16.mxu1 %v17139_v11  ;;  %v17167_v11 = vld [vmem:[%s24838_s4 + $0x320] ss:$16 sps:$4 sm:$0xff]  }
 0x323   :  { %6836 = vmatpush1.bf16.msra.mxu0 %v17041_v13  ;;  %v17082_v13 = vld [vmem:[%s24838_s4 + $0xcc] ss:$16 sps:$4 sm:$0xff]  }
 0x324   :  { %6837 = vmatprep.subr.bf16.mxu0 %v17046_v31  ;;  %v21522_v31 = vpack.c.bf16 %v6029_v26, %v6029_v26 }
 0x325   :  { %6877 = vmatpush1.bf16.msra.mxu1 %v17137_v29  ;;  %v17083_v29 = vld [vmem:[%s24838_s4 + $0xa8] ss:$16 sps:$4 sm:$0xff]  }
 0x326   :  { %6878 = vmatprep.subr.bf16.mxu1 %v17142_v20  ;;  %v17172_v20 = vld [vmem:[%s24838_s4 + $0x304] ss:$16 sps:$4 sm:$0xff]  }
 0x327   :  { %6838 = vmatpush1.bf16.msra.mxu0 %v17044_v52 }
 0x328   :  { %6839 = vmatprep.subr.bf16.mxu0 %v17049_v54 }
 0x329   :  { %6879 = vmatpush1.bf16.msra.mxu1 %v17140_v35  ;;  %v17170_v35 = vld [vmem:[%s24838_s4 + $0x300] ss:$16 sps:$4 sm:$0xff]  }
 0x32a   :  { %6880 = vmatprep.subr.bf16.mxu1 %v17145_v25  ;;  %v17175_v25 = vld [vmem:[%s24838_s4 + $0x2ec] ss:$16 sps:$4 sm:$0xff]  }
 0x32b   :  { %6840 = vmatpush1.bf16.msra.mxu0 %v17047_v12 }
 0x32c   :  { %6841 = vmatprep.subr.bf16.mxu0 %v17052_v41 }
 0x32d   :  { %6881 = vmatpush1.bf16.msra.mxu1 %v17143_v33  ;;  %v17089_v33 = vld [vmem:[%s24838_s4 + $0x68] ss:$16 sps:$4 sm:$0xff]  }
 0x32e   :  { %6882 = vmatprep.subr.bf16.mxu1 %v17148_v59  ;;  %v17092_v59 = vld [vmem:[%s24838_s4 + $0x48] ss:$16 sps:$4 sm:$0xff]  }
 0x32f   :  { %6842 = vmatpush1.bf16.msra.mxu0 %v17050_v7 }
 0x330   :  { %6843 = vmatprep.subr.bf16.mxu0 %v17055_v17  ;;  %v17086_v17 = vld [vmem:[%s24838_s4 + $0x88] ss:$16 sps:$4 sm:$0xff]  }
 0x331   :  { %6883 = vmatpush1.bf16.msra.mxu1 %v17146_v36  ;;  %v17095_v36 = vld [vmem:[%s24838_s4 + $0x28] ss:$16 sps:$4 sm:$0xff]  }
 0x332   :  { %6884 = vmatprep.subr.bf16.mxu1 %v17151_v40  ;;  %v17098_v40 = vld [vmem:[%s24838_s4 + $0x8] ss:$16 sps:$4 sm:$0xff]  }
 0x333   :  { %6844 = vmatpush2.bf16.msra.mxu0 %v17053_v28  ;;  %v17091_v28 = vld [vmem:[%s24838_s4 + $0x6c] ss:$16 sps:$4 sm:$0xff]  }
 0x334   :  { %6845 = vmatprep.subr.bf16.mxu0 %v17058_v34  ;;  %v17094_v34 = vld [vmem:[%s24838_s4 + $0x4c] ss:$16 sps:$4 sm:$0xff]  }
 0x335   :  { %6885 = vmatpush2.bf16.msra.mxu1 %v17149_v45  ;;  %v17101_v45 = vld [vmem:[%s24838_s4 + $0x1e8] ss:$16 sps:$4 sm:$0xff]  }
 0x336   :  { %6886 = vmatprep.subr.bf16.mxu1 %v17154_v0  ;;  %v17104_v0 = vld [vmem:[%s24838_s4 + $0x1c8] ss:$16 sps:$4 sm:$0xff]  }
 0x337   :  { %6846 = vmatpush2.bf16.msra.mxu0 %v17056_v8  ;;  %v17097_v8 = vld [vmem:[%s24838_s4 + $0x2c] ss:$16 sps:$4 sm:$0xff]  }
 0x338   :  { %6847 = vmatprep.subr.bf16.mxu0 %v17061_v30  ;;  %v17100_v30 = vld [vmem:[%s24838_s4 + $0xc] ss:$16 sps:$4 sm:$0xff]  }
 0x339   :  { %6887 = vmatpush2.bf16.msra.mxu1 %v17152_v43  ;;  %v17107_v43 = vld [vmem:[%s24838_s4 + $0x1a8] ss:$16 sps:$4 sm:$0xff]  }
 0x33a   :  { %6888 = vmatprep.subr.bf16.mxu1 %v17157_v23  ;;  %v17116_v23 = vld [vmem:[%s24838_s4 + $0x148] ss:$16 sps:$4 sm:$0xff]  }
 0x33b   :  { %6848 = vmatpush2.bf16.msra.mxu0 %v17059_v39  ;;  %v17103_v39 = vld [vmem:[%s24838_s4 + $0x1ec] ss:$16 sps:$4 sm:$0xff]  }
 0x33c   :  { %6849 = vmatprep.subr.bf16.mxu0 %v17064_v27  ;;  %v17106_v27 = vld [vmem:[%s24838_s4 + $0x1cc] ss:$16 sps:$4 sm:$0xff]  }
 0x33d   :  { %6889 = vmatpush2.bf16.msra.mxu1 %v17155_v61 }
 0x33f   :  { %6850 = vmatpush2.bf16.msra.mxu0 %v17062_v15  ;;  %v17109_v15 = vld [vmem:[%s24838_s4 + $0x1ac] ss:$16 sps:$4 sm:$0xff]  }
 0x340   :  { %6851 = vmatprep.subr.bf16.mxu0 %v17067_v37  ;;  %v17112_v37 = vld [vmem:[%s24838_s4 + $0x18c] ss:$16 sps:$4 sm:$0xff]  }
 0x343   :  { %v5776_v48 = vpop.f32.mrf.mxu1  ;;  %6852 = vmatpush2.bf16.msra.mxu0 %v17065_v47  ;;  %v17110_v47 = vld [vmem:[%s24838_s4 + $0x188] ss:$16 sps:$4 sm:$0xff]  }
 0x344   :  { %v5777_v53 = vadd.f32 %v5776_v48, %v21340_v56  ;;  %6853 = vmatprep.subr.bf16.mxu0 %v17070_v38  ;;  %v17160_v56 = vld [vmem:[%s24838_s4 + $0x384] ss:$16 sps:$4 sm:$0xff]   ;;  %v17115_v38 = vld [vmem:[%s24838_s4 + $0x16c] ss:$16 sps:$4 sm:$0xff]  }
 0x345   :  { %v5778_v50 = vpop.f32.mrf.mxu1  ;;  %6890 = vmatprep.subr.bf16.mxu1 %v17160_v56  ;;  %v17118_v48 = vld [vmem:[%s24838_s4 + $0x14c] ss:$16 sps:$4 sm:$0xff]  }
 0x346   :  { %v5779_v24 = vadd.f32 %v5778_v50, %v21343_v58  ;;  %v17158_v58 = vld [vmem:[%s24838_s4 + $0x380] ss:$16 sps:$4 sm:$0xff]   ;;  %v17121_v50 = vld [vmem:[%s24838_s4 + $0x12c] ss:$16 sps:$4 sm:$0xff]  }
 0x347   :  { %v5780_v32 = vpop.f32.mrf.mxu1  ;;  %6854 = vmatpush2.bf16.msra.mxu0 %v17068_v18  ;;  %6891 = vmatpush2.bf16.msra.mxu1 %v17158_v58  ;;  %v17113_v18 = vld [vmem:[%s24838_s4 + $0x168] ss:$16 sps:$4 sm:$0xff]   ;;  %v17124_v56 = vld [vmem:[%s24838_s4 + $0x10c] ss:$16 sps:$4 sm:$0xff]  }
 0x348   :  { %6855 = vmatprep.subr.bf16.mxu0 %v17073_v51  ;;  %6892 = vmatprep.subr.bf16.mxu1 %v17163_v10  ;;  %v17119_v32 = vld [vmem:[%s24838_s4 + $0x128] ss:$16 sps:$4 sm:$0xff]  }
 0x349   :  { %v5781_v55 = vpop.f32.mrf.mxu1 }
 0x34b   :  { %6856 = vmatpush2.bf16.msra.mxu0 %v17071_v57  ;;  %6893 = vmatpush2.bf16.msra.mxu1 %v17161_v22 }
 0x34c   :  { %6857 = vmatprep.subr.bf16.mxu0 %v17076_v4  ;;  %6894 = vmatprep.subr.bf16.mxu1 %v17166_v3  ;;  %v17122_v4 = vld [vmem:[%s24838_s4 + $0x108] ss:$16 sps:$4 sm:$0xff]  }
 0x34f   :  { %6858 = vmatpush2.bf16.msra.mxu0 %v17074_v63  ;;  %6895 = vmatpush2.bf16.msra.mxu1 %v17164_v9 }
 0x350   :  { %6909 = vmatprep.subr.bf16.mxu0 %v17079_v5  ;;  %6896 = vmatprep.subr.bf16.mxu1 %v17169_v60 }
 0x352   :  { %v5817_v19 = vpop.f32.mrf.mxu0  ;;  %6860 = vmatmul.mubr.bf16.vlgmr.msra.gmra.mxu0 %v21522_v31 }
 0x353   :  { %v21531_v52 = vadd.f32 %v5817_v19, %v5777_v53  ;;  %6910 = vmatpush1.bf16.msra.mxu0 %v17077_v1  ;;  %6941 = vmatprep.mubr.bf16.mxu0 %v21329_v46  ;;  %v17088_v46 = vld [vmem:[%s24838_s4 + $0x8c] ss:$16 sps:$4 sm:$0xff]  }
 0x354   :  { %v5819_v54 = vpop.f32.mrf.mxu0  ;;  %6911 = vmatprep.subr.bf16.mxu0 %v17082_v13  ;;  %6897 = vmatpush2.bf16.msra.mxu1 %v17167_v11 }
 0x355   :  { %v5820_v12 = vadd.f32 %v5819_v54, %v5779_v24  ;;  %6898 = vmatprep.subr.bf16.mxu1 %v17172_v20 }
 0x356   :  { %v5821_v41 = vpop.f32.mrf.mxu0 }
 0x357   :  { %6912 = vmatpush1.bf16.msra.mxu0 %v17080_v14 }
 0x358   :  { %v5822_v7 = vpop.f32.mrf.mxu0  ;;  %6913 = vmatprep.subr.bf16.mxu0 %v17085_v62  ;;  %6899 = vmatpush2.bf16.msra.mxu1 %v17170_v35 }
 0x359   :  { %6950 = vmatprep.subr.bf16.mxu1 %v17175_v25 }
 0x35b   :  { %6914 = vmatpush1.bf16.msra.mxu0 %v17083_v29 }
 0x35c   :  { %6915 = vmatprep.subr.bf16.mxu0 %v17088_v46 }
 0x35f   :  { %6916 = vmatpush1.bf16.msra.mxu0 %v17086_v17 }
 0x360   :  { %6917 = vmatprep.subr.bf16.mxu0 %v17091_v28 }
 0x363   :  { %6918 = vmatpush1.bf16.msra.mxu0 %v17089_v33 }
 0x364   :  { %6919 = vmatprep.subr.bf16.mxu0 %v17094_v34 }
 0x367   :  { %6920 = vmatpush1.bf16.msra.mxu0 %v17092_v59 }
 0x368   :  { %6921 = vmatprep.subr.bf16.mxu0 %v17097_v8 }
 0x36b   :  { %6922 = vmatpush1.bf16.msra.mxu0 %v17095_v36 }
 0x36c   :  { %6923 = vmatprep.subr.bf16.mxu0 %v17100_v30 }
 0x36f   :  { %6924 = vmatpush1.bf16.msra.mxu0 %v17098_v40 }
 0x370   :  { %6925 = vmatprep.subr.bf16.mxu0 %v17103_v39 }
 0x373   :  { %6926 = vmatpush2.bf16.msra.mxu0 %v17101_v45 }
 0x374   :  { %6927 = vmatprep.subr.bf16.mxu0 %v17106_v27 }
 0x377   :  { %6928 = vmatpush2.bf16.msra.mxu0 %v17104_v0 }
 0x378   :  { %6929 = vmatprep.subr.bf16.mxu0 %v17109_v15 }
 0x37b   :  { %6930 = vmatpush2.bf16.msra.mxu0 %v17107_v43 }
 0x37c   :  { %6931 = vmatprep.subr.bf16.mxu0 %v17112_v37 }
 0x37f   :  { %6932 = vmatpush2.bf16.msra.mxu0 %v17110_v47 }
 0x380   :  { %6933 = vmatprep.subr.bf16.mxu0 %v17115_v38 }
 0x383   :  { %v5858_v51 = vpop.f32.mrf.mxu1  ;;  %6934 = vmatpush2.bf16.msra.mxu0 %v17113_v18 }
 0x384   :  { %v5859_v53 = vadd.f32 %v5858_v51, %v21531_v52  ;;  %6935 = vmatprep.subr.bf16.mxu0 %v17118_v48 }
 0x385   :  { %v5860_v61 = vpop.f32.mrf.mxu1 }
 0x386   :  { %v5861_v24 = vadd.f32 %v5860_v61, %v5820_v12 }
 0x387   :  { %v5862_v57 = vpop.f32.mrf.mxu1  ;;  %6936 = vmatpush2.bf16.msra.mxu0 %v17116_v23 }
 0x388   :  { %6937 = vmatprep.subr.bf16.mxu0 %v17121_v50 }
 0x389   :  { %v5863_v55 = vpop.f32.mrf.mxu1 }
 0x38b   :  { %6938 = vmatpush2.bf16.msra.mxu0 %v17119_v32 }
 0x38c   :  { %6939 = vmatprep.subr.bf16.mxu0 %v17124_v56 }
 0x38f   :  { %6940 = vmatpush2.bf16.msra.mxu0 %v17122_v4 }
 0x390   :  { %18 = vsyncpa [#allocation5], 0  ;;  %v17221_v17 = vld [vmem:[%s24840_s6 + $0xe0] ss:$16 sps:$4 sm:$0xff]   ;;  %v17223_v25 = vld [vmem:[%s24840_s6 + $0xe4] ss:$16 sps:$4 sm:$0xff]  }
 0x391   :  { %v17226_v33 = vld [vmem:[%s24840_s6 + $0xc4] ss:$16 sps:$4 sm:$0xff]   ;;  %7789 = vmatprep.subr.bf16.mxu0 %v17223_v25  ;;  %v17173_v59 = vld [vmem:[%s24838_s4 + $0x2e8] ss:$16 sps:$4 sm:$0xff]   ;;  %v17178_v36 = vld [vmem:[%s24838_s4 + $0x2cc] ss:$16 sps:$4 sm:$0xff]  }
 0x392   :  { %v5899_v58 = vpop.f32.mrf.mxu0  ;;  %6942 = vmatmul.mubr.bf16.vlgmr.msra.gmra.mxu0 %v21522_v31  ;;  %v17224_v30 = vld [vmem:[%s24840_s6 + $0xc0] ss:$16 sps:$4 sm:$0xff]   ;;  %v17229_v40 = vld [vmem:[%s24840_s6 + $0xa4] ss:$16 sps:$4 sm:$0xff]   ;;  %v17176_v39 = vld [vmem:[%s24838_s4 + $0x2c8] ss:$16 sps:$4 sm:$0xff]  }
 0x393   :  { %v5900_v1 = vadd.f32 %v5899_v58, %v5859_v53  ;;  %7790 = vmatpush1.bf16.msra.mxu0 %v17221_v17  ;;  %v17181_v45 = vld [vmem:[%s24838_s4 + $0x2ac] ss:$16 sps:$4 sm:$0xff]   ;;  %v17227_v27 = vld [vmem:[%s24840_s6 + $0xa0] ss:$16 sps:$4 sm:$0xff]   ;;  %v17232_v0 = vld [vmem:[%s24840_s6 + $0x84] ss:$16 sps:$4 sm:$0xff]  }
 0x394   :  { %v5901_v10 = vpop.f32.mrf.mxu0  ;;  %7791 = vmatprep.subr.bf16.mxu0 %v17226_v33  ;;  %v17179_v15 = vld [vmem:[%s24838_s4 + $0x2a8] ss:$16 sps:$4 sm:$0xff]   ;;  %v17184_v43 = vld [vmem:[%s24838_s4 + $0x28c] ss:$16 sps:$4 sm:$0xff]   ;;  %v17230_v37 = vld [vmem:[%s24840_s6 + $0x80] ss:$16 sps:$4 sm:$0xff]  }
 0x395   :  { %v5902_v13 = vadd.f32 %v5901_v10, %v5861_v24  ;;  %v17235_v47 = vld [vmem:[%s24840_s6 + $0x64] ss:$16 sps:$4 sm:$0xff]   ;;  %v17182_v38 = vld [vmem:[%s24838_s4 + $0x288] ss:$16 sps:$4 sm:$0xff]   ;;  %v17187_v18 = vld [vmem:[%s24838_s4 + $0x26c] ss:$16 sps:$4 sm:$0xff]  }
 0x396   :  { %v5903_v63 = vpop.f32.mrf.mxu0  ;;  %v17233_v48 = vld [vmem:[%s24840_s6 + $0x60] ss:$16 sps:$4 sm:$0xff]   ;;  %v17238_v51 = vld [vmem:[%s24840_s6 + $0x44] ss:$16 sps:$4 sm:$0xff]   ;;  %v17185_v53 = vld [vmem:[%s24838_s4 + $0x268] ss:$16 sps:$4 sm:$0xff]  }
 0x397   :  { %7792 = vmatpush1.bf16.msra.mxu0 %v17224_v30  ;;  %v17190_v23 = vld [vmem:[%s24838_s4 + $0x24c] ss:$16 sps:$4 sm:$0xff]   ;;  %v17236_v50 = vld [vmem:[%s24840_s6 + $0x40] ss:$16 sps:$4 sm:$0xff]   ;;  %v17241_v61 = vld [vmem:[%s24840_s6 + $0x24] ss:$16 sps:$4 sm:$0xff]  }
 0x398   :  { %v5904_v22 = vpop.f32.mrf.mxu0  ;;  %7793 = vmatprep.subr.bf16.mxu0 %v17229_v40  ;;  %v17188_v24 = vld [vmem:[%s24838_s4 + $0x248] ss:$16 sps:$4 sm:$0xff]   ;;  %v17193_v57 = vld [vmem:[%s24838_s4 + $0x22c] ss:$16 sps:$4 sm:$0xff]   ;;  %v17239_v32 = vld [vmem:[%s24840_s6 + $0x20] ss:$16 sps:$4 sm:$0xff]  }
 0x399   :  { %v17244_v56 = vld [vmem:[%s24840_s6 + $0x4] ss:$16 sps:$4 sm:$0xff]   ;;  %v17191_v55 = vld [vmem:[%s24838_s4 + $0x228] ss:$16 sps:$4 sm:$0xff]   ;;  %v17196_v4 = vld [vmem:[%s24838_s4 + $0x20c] ss:$16 sps:$4 sm:$0xff]  }
 0x39a   :  { %v17242_v58 = vld [vmem:[%s24840_s6] ss:$16 sps:$4 sm:$0xff]   ;;  %v17247_v10 = vld [vmem:[%s24840_s6 + $0x1e4] ss:$16 sps:$4 sm:$0xff]   ;;  %v17194_v63 = vld [vmem:[%s24838_s4 + $0x208] ss:$16 sps:$4 sm:$0xff]  }
 0x39b   :  { %7794 = vmatpush1.bf16.msra.mxu0 %v17227_v27  ;;  %v17199_v22 = vld [vmem:[%s24838_s4 + $0x3ec] ss:$16 sps:$4 sm:$0xff]   ;;  %v17212_v17 = vld [vmem:[%s24838_s4 + $0x348] ss:$16 sps:$4 sm:$0xff]   ;;  %v17268_v27 = vld [vmem:[%s24840_s6 + $0x104] ss:$16 sps:$4 sm:$0xff]  }
 0x39c   :  { %7795 = vmatprep.subr.bf16.mxu0 %v17232_v0  ;;  %v17217_v25 = vld [vmem:[%s24838_s4 + $0x32c] ss:$16 sps:$4 sm:$0xff]   ;;  %v17215_v33 = vld [vmem:[%s24838_s4 + $0x328] ss:$16 sps:$4 sm:$0xff]   ;;  %v17266_v0 = vld [vmem:[%s24840_s6 + $0x100] ss:$16 sps:$4 sm:$0xff]  }
 0x39d   :  { %v17218_v30 = vld [vmem:[%s24838_s4 + $0x308] ss:$16 sps:$4 sm:$0xff]  }
 0x39f   :  { %7796 = vmatpush1.bf16.msra.mxu0 %v17230_v37  ;;  %v17275_v37 = vld [vmem:[%s24840_s6 + $0x2c0] ss:$16 sps:$4 sm:$0xff]  }
 0x3a0   :  { %7797 = vmatprep.subr.bf16.mxu0 %v17235_v47  ;;  %v17277_v47 = vld [vmem:[%s24840_s6 + $0x2c4] ss:$16 sps:$4 sm:$0xff]  }
 0x3a3   :  { %7798 = vmatpush1.bf16.msra.mxu0 %v17233_v48  ;;  %v17287_v48 = vld [vmem:[%s24840_s6 + $0x280] ss:$16 sps:$4 sm:$0xff]  }
 0x3a4   :  { %7799 = vmatprep.subr.bf16.mxu0 %v17238_v51  ;;  %v17289_v51 = vld [vmem:[%s24840_s6 + $0x284] ss:$16 sps:$4 sm:$0xff]  }
 0x3a7   :  { %7800 = vmatpush1.bf16.msra.mxu0 %v17236_v50  ;;  %v17299_v50 = vld [vmem:[%s24840_s6 + $0x240] ss:$16 sps:$4 sm:$0xff]  }
 0x3a8   :  { %7801 = vmatprep.subr.bf16.mxu0 %v17241_v61  ;;  %v17301_v61 = vld [vmem:[%s24840_s6 + $0x244] ss:$16 sps:$4 sm:$0xff]  }
 0x3ab   :  { %7802 = vmatpush1.bf16.msra.mxu0 %v17239_v32  ;;  %v17311_v32 = vld [vmem:[%s24840_s6 + $0x200] ss:$16 sps:$4 sm:$0xff]  }
 0x3ac   :  { %7803 = vmatprep.subr.bf16.mxu0 %v17244_v56  ;;  %v17313_v56 = vld [vmem:[%s24840_s6 + $0x204] ss:$16 sps:$4 sm:$0xff]  }
 0x3af   :  { %7804 = vmatpush1.bf16.msra.mxu0 %v17242_v58  ;;  %v17323_v58 = vld [vmem:[%s24840_s6 + $0x3c0] ss:$16 sps:$4 sm:$0xff]  }
 0x3b0   :  { %7805 = vmatprep.subr.bf16.mxu0 %v17247_v10  ;;  %v17325_v10 = vld [vmem:[%s24840_s6 + $0x3c4] ss:$16 sps:$4 sm:$0xff]  }
 0x3c3   :  { %v5940_v3 = vpop.f32.mrf.mxu1 }
 0x3c4   :  { %v5941_v14 = vadd.f32 %v5940_v3, %v5900_v1  ;;  %v17245_v3 = vld [vmem:[%s24840_s6 + $0x1e0] ss:$16 sps:$4 sm:$0xff]  }
 0x3c5   :  { %v5942_v5 = vpop.f32.mrf.mxu1  ;;  %7806 = vmatpush2.bf16.msra.mxu0 %v17245_v3  ;;  %v17248_v1 = vld [vmem:[%s24840_s6 + $0x1c0] ss:$16 sps:$4 sm:$0xff]  }
 0x3c6   :  { %v5943_v52 = vadd.f32 %v5942_v5, %v5902_v13  ;;  %v17250_v5 = vld [vmem:[%s24840_s6 + $0x1c4] ss:$16 sps:$4 sm:$0xff]   ;;  %v17335_v3 = vld [vmem:[%s24840_s6 + $0x380] ss:$16 sps:$4 sm:$0xff]  }
 0x3c7   :  { %v5944_v26 = vpop.f32.mrf.mxu1  ;;  %7807 = vmatprep.subr.bf16.mxu0 %v17250_v5  ;;  %v17253_v13 = vld [vmem:[%s24840_s6 + $0x1a4] ss:$16 sps:$4 sm:$0xff]  }
 0x3c8   :  { %v17197_v26 = vld [vmem:[%s24838_s4 + $0x3e8] ss:$16 sps:$4 sm:$0xff]   ;;  %v17337_v5 = vld [vmem:[%s24840_s6 + $0x384] ss:$16 sps:$4 sm:$0xff]  }
 0x3c9   :  { %v5945_v9 = vpop.f32.mrf.mxu1  ;;  %7808 = vmatpush2.bf16.msra.mxu0 %v17248_v1  ;;  %v17341_v1 = vld [vmem:[%s24840_s6 + $0x360] ss:$16 sps:$4 sm:$0xff]  }
 0x3ca   :  { %v17202_v9 = vld [vmem:[%s24838_s4 + $0x3cc] ss:$16 sps:$4 sm:$0xff]   ;;  %7809 = vmatprep.subr.bf16.mxu0 %v17253_v13  ;;  %v17343_v13 = vld [vmem:[%s24840_s6 + $0x364] ss:$16 sps:$4 sm:$0xff]  }
 0x3d2   :  { %v5981_v19 = vpop.f32.mrf.mxu0 }
 0x3d3   :  { %v6022_v62 = vpop.f32.mrf.mxu1  ;;  %v5982_v60 = vadd.f32 %v5981_v19, %v5941_v14  ;;  %v17200_v14 = vld [vmem:[%s24838_s4 + $0x3c8] ss:$16 sps:$4 sm:$0xff]   ;;  %v17205_v19 = vld [vmem:[%s24838_s4 + $0x3ac] ss:$16 sps:$4 sm:$0xff]  }
 0x3d4   :  { %v5983_v54 = vpop.f32.mrf.mxu0 }
 0x3d5   :  { %v6024_v11 = vpop.f32.mrf.mxu1  ;;  %v6023_v12 = vadd.f32 %v6022_v62, %v5982_v60  ;;  %v5984_v29 = vadd.f32 %v5983_v54, %v5943_v52  ;;  %v17251_v62 = vld [vmem:[%s24840_s6 + $0x1a0] ss:$16 sps:$4 sm:$0xff]   ;;  %v17256_v52 = vld [vmem:[%s24840_s6 + $0x184] ss:$16 sps:$4 sm:$0xff]   ;;  %v17203_v60 = vld [vmem:[%s24838_s4 + $0x3a8] ss:$16 sps:$4 sm:$0xff]  }
 0x3d6   :  { %v5985_v41 = vpop.f32.mrf.mxu0  ;;  %v17208_v54 = vld [vmem:[%s24838_s4 + $0x38c] ss:$16 sps:$4 sm:$0xff]   ;;  %7810 = vmatpush2.bf16.msra.mxu0 %v17251_v62  ;;  %v17347_v62 = vld [vmem:[%s24840_s6 + $0x340] ss:$16 sps:$4 sm:$0xff]  }
 0x3d7   :  { %v6026_v31 = vpop.f32.mrf.mxu1  ;;  %v6025_v46 = vadd.f32 %v6024_v11, %v5984_v29  ;;  %v6031_v20 = vmax.f32 %v6023_v12, 0.0  ;;  %v17254_v11 = vld [vmem:[%s24840_s6 + $0x180] ss:$16 sps:$4 sm:$0xff]   ;;  %7811 = vmatprep.subr.bf16.mxu0 %v17256_v52  ;;  %v17259_v12 = vld [vmem:[%s24840_s6 + $0x164] ss:$16 sps:$4 sm:$0xff]  }
 0x3d8   :  { %v5986_v7 = vpop.f32.mrf.mxu0  ;;  %v17206_v29 = vld [vmem:[%s24838_s4 + $0x388] ss:$16 sps:$4 sm:$0xff]   ;;  %v17211_v41 = vld [vmem:[%s24838_s4 + $0x36c] ss:$16 sps:$4 sm:$0xff]   ;;  %v17257_v31 = vld [vmem:[%s24840_s6 + $0x160] ss:$16 sps:$4 sm:$0xff]  }
 0x3d9   :  { %v6027_v35 = vpop.f32.mrf.mxu1  ;;  %v6032_v28 = vmax.f32 %v6025_v46, 0.0  ;;  %v21644_v8 = vpack.c.bf16 %v6031_v20, %v6031_v20  ;;  %v17262_v46 = vld [vmem:[%s24840_s6 + $0x144] ss:$16 sps:$4 sm:$0xff]   ;;  %v17209_v20 = vld [vmem:[%s24838_s4 + $0x368] ss:$16 sps:$4 sm:$0xff]  }
 0x3da   :  { %7812 = vmatpush2.bf16.msra.mxu0 %v17254_v11  ;;  %v17214_v7 = vld [vmem:[%s24838_s4 + $0x34c] ss:$16 sps:$4 sm:$0xff]   ;;  %v17260_v35 = vld [vmem:[%s24840_s6 + $0x140] ss:$16 sps:$4 sm:$0xff]   ;;  %v17349_v52 = vld [vmem:[%s24840_s6 + $0x344] ss:$16 sps:$4 sm:$0xff]  }
 0x3db   :  { %v6036_v34 = vpack.c.bf16 %v6032_v28, %v6032_v28  ;;  %7813 = vmatprep.subr.bf16.mxu0 %v17259_v12  ;;  %v17361_v11 = vld [vmem:[%s24840_s6 + $0x304] ss:$16 sps:$4 sm:$0xff]   ;;  %v17359_v12 = vld [vmem:[%s24840_s6 + $0x300] ss:$16 sps:$4 sm:$0xff]  }
 0x3dd   :  { %6900 = vmatprep.mubr.bf16.mxu1 %v6036_v34 }
 0x3de   :  { %6901 = vmatmul.mubr.bf16.vlgmr.msra.gmra.mxu1 %v21644_v8  ;;  %7814 = vmatpush2.bf16.msra.mxu0 %v17257_v31 }
 0x3df   :  { %6951 = vmatpush1.bf16.msra.mxu1 %v17173_v59  ;;  %6982 = vmatprep.mubr.bf16.mxu1 %v6036_v34  ;;  %v17220_v59 = vld [vmem:[%s24838_s4 + $0x30c] ss:$16 sps:$4 sm:$0xff]  }
 0x3e0   :  { %6952 = vmatprep.subr.bf16.mxu1 %v17178_v36  ;;  %7815 = vmatprep.subr.bf16.mxu0 %v17262_v46 }
 0x3e2   :  { %7816 = vmatpush2.bf16.msra.mxu0 %v17260_v35 }
 0x3e3   :  { %6953 = vmatpush1.bf16.msra.mxu1 %v17176_v39  ;;  %v17265_v39 = vld [vmem:[%s24840_s6 + $0x124] ss:$16 sps:$4 sm:$0xff]  }
 0x3e4   :  { %6954 = vmatprep.subr.bf16.mxu1 %v17181_v45  ;;  %v17263_v45 = vld [vmem:[%s24840_s6 + $0x120] ss:$16 sps:$4 sm:$0xff]   ;;  %7817 = vmatprep.subr.bf16.mxu0 %v17265_v39 }
 0x3e6   :  { %7818 = vmatpush2.bf16.msra.mxu0 %v17263_v45  ;;  %v17272_v45 = vld [vmem:[%s24840_s6 + $0xe8] ss:$16 sps:$4 sm:$0xff]  }
 0x3e7   :  { %6955 = vmatpush1.bf16.msra.mxu1 %v17179_v15  ;;  %7819 = vmatprep.subr.bf16.mxu0 %v17268_v27  ;;  %v17271_v15 = vld [vmem:[%s24840_s6 + $0x2e4] ss:$16 sps:$4 sm:$0xff]  }
 0x3e8   :  { %6956 = vmatprep.subr.bf16.mxu1 %v17184_v43  ;;  %v17274_v43 = vld [vmem:[%s24840_s6 + $0xec] ss:$16 sps:$4 sm:$0xff]  }
 0x3ea   :  { %7820 = vmatpush2.bf16.msra.mxu0 %v17266_v0  ;;  %v17286_v0 = vld [vmem:[%s24840_s6 + $0xac] ss:$16 sps:$4 sm:$0xff]  }
 0x3eb   :  { %6957 = vmatpush1.bf16.msra.mxu1 %v17182_v38  ;;  %7871 = vmatprep.subr.bf16.mxu0 %v17274_v43  ;;  %v17281_v38 = vld [vmem:[%s24840_s6 + $0x2a0] ss:$16 sps:$4 sm:$0xff]   ;;  %v17290_v43 = vld [vmem:[%s24840_s6 + $0x88] ss:$16 sps:$4 sm:$0xff]  }
 0x3ec   :  { %6958 = vmatprep.subr.bf16.mxu1 %v17187_v18  ;;  %v17283_v18 = vld [vmem:[%s24840_s6 + $0x2a4] ss:$16 sps:$4 sm:$0xff]  }
 0x3ef   :  { %6959 = vmatpush1.bf16.msra.mxu1 %v17185_v53  ;;  %v17293_v53 = vld [vmem:[%s24840_s6 + $0x260] ss:$16 sps:$4 sm:$0xff]  }
 0x3f0   :  { %6960 = vmatprep.subr.bf16.mxu1 %v17190_v23  ;;  %v17295_v23 = vld [vmem:[%s24840_s6 + $0x264] ss:$16 sps:$4 sm:$0xff]  }
 0x3f3   :  { %6961 = vmatpush1.bf16.msra.mxu1 %v17188_v24  ;;  %v17305_v24 = vld [vmem:[%s24840_s6 + $0x220] ss:$16 sps:$4 sm:$0xff]  }
 0x3f4   :  { %6962 = vmatprep.subr.bf16.mxu1 %v17193_v57  ;;  %v17307_v57 = vld [vmem:[%s24840_s6 + $0x224] ss:$16 sps:$4 sm:$0xff]  }
 0x3f7   :  { %6963 = vmatpush1.bf16.msra.mxu1 %v17191_v55  ;;  %v17317_v55 = vld [vmem:[%s24840_s6 + $0x3e0] ss:$16 sps:$4 sm:$0xff]  }
 0x3f8   :  { %6964 = vmatprep.subr.bf16.mxu1 %v17196_v4  ;;  %v17319_v4 = vld [vmem:[%s24840_s6 + $0x3e4] ss:$16 sps:$4 sm:$0xff]  }
 0x3fb   :  { %6965 = vmatpush1.bf16.msra.mxu1 %v17194_v63  ;;  %v17329_v63 = vld [vmem:[%s24840_s6 + $0x3a0] ss:$16 sps:$4 sm:$0xff]  }
 0x3fc   :  { %6966 = vmatprep.subr.bf16.mxu1 %v17199_v22  ;;  %v17331_v22 = vld [vmem:[%s24840_s6 + $0x3a4] ss:$16 sps:$4 sm:$0xff]  }
 0x3ff   :  { %6967 = vmatpush2.bf16.msra.mxu1 %v17197_v26 }
 0x400   :  { %6968 = vmatprep.subr.bf16.mxu1 %v17202_v9 }
 0x403   :  { %6969 = vmatpush2.bf16.msra.mxu1 %v17200_v14 }
 0x404   :  { %6970 = vmatprep.subr.bf16.mxu1 %v17205_v19 }
 0x407   :  { %6971 = vmatpush2.bf16.msra.mxu1 %v17203_v60  ;;  %v17355_v60 = vld [vmem:[%s24840_s6 + $0x324] ss:$16 sps:$4 sm:$0xff]  }
 0x408   :  { %6972 = vmatprep.subr.bf16.mxu1 %v17208_v54  ;;  %v17353_v54 = vld [vmem:[%s24840_s6 + $0x320] ss:$16 sps:$4 sm:$0xff]  }
 0x40b   :  { %6973 = vmatpush2.bf16.msra.mxu1 %v17206_v29  ;;  %v17367_v29 = vld [vmem:[%s24840_s6 + $0x2ec] ss:$16 sps:$4 sm:$0xff]  }
 0x40c   :  { %6974 = vmatprep.subr.bf16.mxu1 %v17211_v41  ;;  %v21938_v41 = vld [vmem:[%s24839_s5] sm:$0xf] }
 0x40d   :  { %v6170_v31 = vrot.slane %v21938_v41, %v19587_v16  ;;  %v6174_v46 = vrot.slane %v21938_v41, %v19596_v21 }
 0x40f   :  { %6975 = vmatpush2.bf16.msra.mxu1 %v17209_v20 }
 0x410   :  { %6976 = vmatprep.subr.bf16.mxu1 %v17214_v7 }
 0x412   :  { %v21803_v28 = vpop.f32.mrf.mxu0 }
 0x413   :  { %6977 = vmatpush2.bf16.msra.mxu1 %v17212_v17  ;;  %v6862_v20 = vadd.f32 %v21803_v28, %v6170_v31  ;;  %v17280_v28 = vld [vmem:[%s24840_s6 + $0xcc] ss:$16 sps:$4 sm:$0xff]  }
 0x414   :  { %v21808_v34 = vpop.f32.mrf.mxu0  ;;  %6978 = vmatprep.subr.bf16.mxu1 %v17217_v25 }
 0x415   :  { %v6864_v35 = vadd.f32 %v21808_v34, %v6174_v46  ;;  %v17278_v34 = vld [vmem:[%s24840_s6 + $0xc8] ss:$16 sps:$4 sm:$0xff]   ;;  %v17370_v46 = vld [vmem:[%s24842_s8 + $0xe4] ss:$16 sps:$4 sm:$0xff]  }
 0x416   :  { %v6865_v36 = vpop.f32.mrf.mxu0 }
 0x417   :  { %6979 = vmatpush2.bf16.msra.mxu1 %v17215_v33 }
 0x418   :  { %v6866_v40 = vpop.f32.mrf.mxu0  ;;  %6980 = vmatprep.subr.bf16.mxu1 %v17220_v59 }
 0x41b   :  { %6981 = vmatpush2.bf16.msra.mxu1 %v17218_v30 }
 0x41c   :  { %7830 = vmatprep.subr.bf16.mxu1 %v17271_v15  ;;  %v17292_v15 = vld [vmem:[%s24840_s6 + $0x8c] ss:$16 sps:$4 sm:$0xff]  }
 0x41e   :  { %6983 = vmatmul.mubr.bf16.vlgmr.msra.gmra.mxu1 %v21644_v8  ;;  %v17269_v8 = vld [vmem:[%s24840_s6 + $0x2e0] ss:$16 sps:$4 sm:$0xff]  }
 0x41f   :  { %7831 = vmatpush1.bf16.msra.mxu1 %v17269_v8  ;;  %v17284_v8 = vld [vmem:[%s24840_s6 + $0xa8] ss:$16 sps:$4 sm:$0xff]  }
 0x420   :  { %7832 = vmatprep.subr.bf16.mxu1 %v17277_v47  ;;  %v17296_v47 = vld [vmem:[%s24840_s6 + $0x68] ss:$16 sps:$4 sm:$0xff]  }
 0x423   :  { %7833 = vmatpush1.bf16.msra.mxu1 %v17275_v37  ;;  %v17298_v37 = vld [vmem:[%s24840_s6 + $0x6c] ss:$16 sps:$4 sm:$0xff]  }
 0x424   :  { %7834 = vmatprep.subr.bf16.mxu1 %v17283_v18  ;;  %v17302_v18 = vld [vmem:[%s24840_s6 + $0x48] ss:$16 sps:$4 sm:$0xff]  }
 0x427   :  { %7835 = vmatpush1.bf16.msra.mxu1 %v17281_v38  ;;  %v17304_v38 = vld [vmem:[%s24840_s6 + $0x4c] ss:$16 sps:$4 sm:$0xff]  }
 0x428   :  { %7836 = vmatprep.subr.bf16.mxu1 %v17289_v51  ;;  %v17308_v51 = vld [vmem:[%s24840_s6 + $0x28] ss:$16 sps:$4 sm:$0xff]  }
 0x42b   :  { %7837 = vmatpush1.bf16.msra.mxu1 %v17287_v48  ;;  %v17310_v48 = vld [vmem:[%s24840_s6 + $0x2c] ss:$16 sps:$4 sm:$0xff]  }
 0x42c   :  { %7838 = vmatprep.subr.bf16.mxu1 %v17295_v23  ;;  %v17314_v23 = vld [vmem:[%s24840_s6 + $0x8] ss:$16 sps:$4 sm:$0xff]  }
 0x42f   :  { %7839 = vmatpush1.bf16.msra.mxu1 %v17293_v53  ;;  %v17316_v53 = vld [vmem:[%s24840_s6 + $0xc] ss:$16 sps:$4 sm:$0xff]  }
 0x430   :  { %7840 = vmatprep.subr.bf16.mxu1 %v17301_v61  ;;  %v17320_v61 = vld [vmem:[%s24840_s6 + $0x1e8] ss:$16 sps:$4 sm:$0xff]  }
 0x433   :  { %7841 = vmatpush1.bf16.msra.mxu1 %v17299_v50  ;;  %v17322_v50 = vld [vmem:[%s24840_s6 + $0x1ec] ss:$16 sps:$4 sm:$0xff]  }
 0x434   :  { %7842 = vmatprep.subr.bf16.mxu1 %v17307_v57  ;;  %v17326_v57 = vld [vmem:[%s24840_s6 + $0x1c8] ss:$16 sps:$4 sm:$0xff]  }
 0x437   :  { %7843 = vmatpush1.bf16.msra.mxu1 %v17305_v24  ;;  %v17328_v24 = vld [vmem:[%s24840_s6 + $0x1cc] ss:$16 sps:$4 sm:$0xff]  }
 0x438   :  { %7844 = vmatprep.subr.bf16.mxu1 %v17313_v56  ;;  %v17332_v56 = vld [vmem:[%s24840_s6 + $0x1a8] ss:$16 sps:$4 sm:$0xff]  }
 0x43b   :  { %7845 = vmatpush1.bf16.msra.mxu1 %v17311_v32  ;;  %v17334_v32 = vld [vmem:[%s24840_s6 + $0x1ac] ss:$16 sps:$4 sm:$0xff]  }
 0x43c   :  { %7846 = vmatprep.subr.bf16.mxu1 %v17319_v4  ;;  %v17338_v4 = vld [vmem:[%s24840_s6 + $0x188] ss:$16 sps:$4 sm:$0xff]  }
 0x43f   :  { %7847 = vmatpush2.bf16.msra.mxu1 %v17317_v55  ;;  %v17340_v55 = vld [vmem:[%s24840_s6 + $0x18c] ss:$16 sps:$4 sm:$0xff]  }
 0x440   :  { %7848 = vmatprep.subr.bf16.mxu1 %v17325_v10  ;;  %v17344_v10 = vld [vmem:[%s24840_s6 + $0x168] ss:$16 sps:$4 sm:$0xff]  }
 0x443   :  { %7849 = vmatpush2.bf16.msra.mxu1 %v17323_v58  ;;  %v17346_v58 = vld [vmem:[%s24840_s6 + $0x16c] ss:$16 sps:$4 sm:$0xff]  }
 0x444   :  { %7850 = vmatprep.subr.bf16.mxu1 %v17331_v22  ;;  %v6178_v22 = vrot.slane %v21938_v41, %v20899_v6 }
 0x447   :  { %7851 = vmatpush2.bf16.msra.mxu1 %v17329_v63  ;;  %v17352_v63 = vld [vmem:[%s24840_s6 + $0x14c] ss:$16 sps:$4 sm:$0xff]  }
 0x448   :  { %7852 = vmatprep.subr.bf16.mxu1 %v17337_v5  ;;  %v17358_v5 = vld [vmem:[%s24840_s6 + $0x12c] ss:$16 sps:$4 sm:$0xff]  }
 0x44b   :  { %7853 = vmatpush2.bf16.msra.mxu1 %v17335_v3  ;;  %v17350_v3 = vld [vmem:[%s24840_s6 + $0x148] ss:$16 sps:$4 sm:$0xff]  }
 0x44c   :  { %7854 = vmatprep.subr.bf16.mxu1 %v17343_v13  ;;  %v22040_v13 = vld [vmem:[%s24835_s1] sm:$0xff] }
 0x44f   :  { %7855 = vmatpush2.bf16.msra.mxu1 %v17341_v1  ;;  %v6182_v1 = vrot.slane %v21938_v41, %v20902_v44 }
 0x450   :  { %7856 = vmatprep.subr.bf16.mxu1 %v17349_v52  ;;  %v17364_v52 = vld [vmem:[%s24840_s6 + $0x10c] ss:$16 sps:$4 sm:$0xff]  }
 0x452   :  { %v21904_v26 = vpop.f32.mrf.mxu0 }
 0x453   :  { %7857 = vmatpush2.bf16.msra.mxu1 %v17347_v62 }
 0x454   :  { %v21906_v9 = vpop.f32.mrf.mxu0  ;;  %7858 = vmatprep.subr.bf16.mxu1 %v17355_v60 }
 0x455   :  { %v6946_v60 = vadd.f32 %v21906_v9, %v6182_v1  ;;  %v17419_v1 = vld [vmem:[%s24840_s6 + $0x3c8] ss:$16 sps:$4 sm:$0xff]  }
 0x456   :  { %v6947_v14 = vpop.f32.mrf.mxu0 }
 0x457   :  { %7859 = vmatpush2.bf16.msra.mxu1 %v17353_v54  ;;  %v6944_v14 = vadd.f32 %v21904_v26, %v6178_v22  ;;  %v17416_v22 = vld [vmem:[%s24842_s8 + $0x1e0] ss:$16 sps:$4 sm:$0xff]  }
 0x458   :  { %v6948_v19 = vpop.f32.mrf.mxu0  ;;  %7860 = vmatprep.subr.bf16.mxu1 %v17361_v11  ;;  %v22052_v11 = vrot.slane %v22040_v13, %v18838_v49 }
 0x459   :  { %v17356_v19 = vld [vmem:[%s24840_s6 + $0x128] ss:$16 sps:$4 sm:$0xff]  }
 0x45b   :  { %7861 = vmatpush2.bf16.msra.mxu1 %v17359_v12 }
 0x45c   :  { %7912 = vmatprep.subr.bf16.mxu1 %v17367_v29  ;;  %v17362_v29 = vld [vmem:[%s24840_s6 + $0x108] ss:$16 sps:$4 sm:$0xff]  }
 0x49e   :  { %v6902_v7 = vpop.f32.mrf.mxu1 }
 0x49f   :  { %v6903_v17 = vadd.f32 %v6902_v7, %v6862_v20  ;;  %v8805_v20 = vcombine.high %v22052_v11, %v22052_v11 }
 0x4a0   :  { %v6904_v25 = vpop.f32.mrf.mxu1 }
 0x4a1   :  { %v6905_v33 = vadd.f32 %v6904_v25, %v6864_v35  ;;  %v6991_v59 = vmax.f32 %v6903_v17, 0.0  ;;  %v17365_v17 = vld [vmem:[%s24840_s6 + $0x2e8] ss:$16 sps:$4 sm:$0xff]  }
 0x4a2   :  { %v6906_v36 = vpop.f32.mrf.mxu1 }
 0x4a3   :  { %v6992_v30 = vmax.f32 %v6905_v33, 0.0  ;;  %v21949_v27 = vpack.c.bf16 %v6991_v59, %v6991_v59  ;;  %v17368_v33 = vld [vmem:[%s24842_s8 + $0xe0] ss:$16 sps:$4 sm:$0xff]   ;;  %v17373_v59 = vld [vmem:[%s24840_s6 + $0x2cc] ss:$16 sps:$4 sm:$0xff]  }
 0x4a4   :  { %v6907_v40 = vpop.f32.mrf.mxu1  ;;  %v17376_v36 = vld [vmem:[%s24842_s8 + $0xc4] ss:$16 sps:$4 sm:$0xff]  }
 0x4a5   :  { %v6996_v39 = vpack.c.bf16 %v6992_v30, %v6992_v30  ;;  %v22077_v30 = vrot.slane %v8805_v20, %v18838_v49  ;;  %v17371_v40 = vld [vmem:[%s24840_s6 + $0x2c8] ss:$16 sps:$4 sm:$0xff]   ;;  %v17445_v20 = vld [vmem:[%s24840_s6 + $0x34c] ss:$16 sps:$4 sm:$0xff]  }
 0x4a7   :  { %7821 = vmatprep.mubr.bf16.mxu0 %v6996_v39 }
 0x4a8   :  { %7822 = vmatmul.mubr.bf16.vlgmr.msra.gmra.mxu0 %v21949_v27 }
 0x4a9   :  { %7872 = vmatpush1.bf16.msra.mxu0 %v17272_v45  ;;  %7903 = vmatprep.mubr.bf16.mxu0 %v6996_v39  ;;  %v17374_v39 = vld [vmem:[%s24842_s8 + $0xc0] ss:$16 sps:$4 sm:$0xff]   ;;  %v17379_v45 = vld [vmem:[%s24840_s6 + $0x2ac] ss:$16 sps:$4 sm:$0xff]  }
 0x4aa   :  { %7873 = vmatprep.subr.bf16.mxu0 %v17280_v28  ;;  %v17377_v28 = vld [vmem:[%s24840_s6 + $0x2a8] ss:$16 sps:$4 sm:$0xff]  }
 0x4ad   :  { %7874 = vmatpush1.bf16.msra.mxu0 %v17278_v34  ;;  %v17380_v34 = vld [vmem:[%s24842_s8 + $0xa0] ss:$16 sps:$4 sm:$0xff]  }
 0x4ae   :  { %7875 = vmatprep.subr.bf16.mxu0 %v17286_v0  ;;  %v17385_v0 = vld [vmem:[%s24840_s6 + $0x28c] ss:$16 sps:$4 sm:$0xff]  }
 0x4b1   :  { %7876 = vmatpush1.bf16.msra.mxu0 %v17284_v8  ;;  %v17388_v8 = vld [vmem:[%s24842_s8 + $0x84] ss:$16 sps:$4 sm:$0xff]  }
 0x4b2   :  { %7877 = vmatprep.subr.bf16.mxu0 %v17292_v15  ;;  %v17383_v15 = vld [vmem:[%s24840_s6 + $0x288] ss:$16 sps:$4 sm:$0xff]  }
 0x4b5   :  { %7878 = vmatpush1.bf16.msra.mxu0 %v17290_v43  ;;  %v17386_v43 = vld [vmem:[%s24842_s8 + $0x80] ss:$16 sps:$4 sm:$0xff]  }
 0x4b6   :  { %7879 = vmatprep.subr.bf16.mxu0 %v17298_v37  ;;  %v17391_v37 = vld [vmem:[%s24840_s6 + $0x26c] ss:$16 sps:$4 sm:$0xff]  }
 0x4b9   :  { %7880 = vmatpush1.bf16.msra.mxu0 %v17296_v47  ;;  %v17394_v47 = vld [vmem:[%s24842_s8 + $0x64] ss:$16 sps:$4 sm:$0xff]  }
 0x4ba   :  { %7881 = vmatprep.subr.bf16.mxu0 %v17304_v38  ;;  %v17389_v38 = vld [vmem:[%s24840_s6 + $0x268] ss:$16 sps:$4 sm:$0xff]  }
 0x4bd   :  { %7882 = vmatpush1.bf16.msra.mxu0 %v17302_v18  ;;  %v17392_v18 = vld [vmem:[%s24842_s8 + $0x60] ss:$16 sps:$4 sm:$0xff]  }
 0x4be   :  { %7883 = vmatprep.subr.bf16.mxu0 %v17310_v48  ;;  %v17397_v48 = vld [vmem:[%s24840_s6 + $0x24c] ss:$16 sps:$4 sm:$0xff]  }
 0x4c1   :  { %7884 = vmatpush1.bf16.msra.mxu0 %v17308_v51  ;;  %v17400_v51 = vld [vmem:[%s24842_s8 + $0x44] ss:$16 sps:$4 sm:$0xff]  }
 0x4c2   :  { %7885 = vmatprep.subr.bf16.mxu0 %v17316_v53  ;;  %v17395_v53 = vld [vmem:[%s24840_s6 + $0x248] ss:$16 sps:$4 sm:$0xff]  }
 0x4c5   :  { %7886 = vmatpush1.bf16.msra.mxu0 %v17314_v23  ;;  %v17398_v23 = vld [vmem:[%s24842_s8 + $0x40] ss:$16 sps:$4 sm:$0xff]  }
 0x4c6   :  { %7887 = vmatprep.subr.bf16.mxu0 %v17322_v50  ;;  %v17403_v50 = vld [vmem:[%s24840_s6 + $0x22c] ss:$16 sps:$4 sm:$0xff]  }
 0x4c9   :  { %7888 = vmatpush2.bf16.msra.mxu0 %v17320_v61  ;;  %v17406_v61 = vld [vmem:[%s24842_s8 + $0x24] ss:$16 sps:$4 sm:$0xff]  }
 0x4ca   :  { %7889 = vmatprep.subr.bf16.mxu0 %v17328_v24  ;;  %v17401_v24 = vld [vmem:[%s24840_s6 + $0x228] ss:$16 sps:$4 sm:$0xff]  }
 0x4cd   :  { %7890 = vmatpush2.bf16.msra.mxu0 %v17326_v57  ;;  %v17404_v57 = vld [vmem:[%s24842_s8 + $0x20] ss:$16 sps:$4 sm:$0xff]  }
 0x4ce   :  { %7891 = vmatprep.subr.bf16.mxu0 %v17334_v32  ;;  %v17409_v32 = vld [vmem:[%s24840_s6 + $0x20c] ss:$16 sps:$4 sm:$0xff]  }
 0x4d1   :  { %7892 = vmatpush2.bf16.msra.mxu0 %v17332_v56  ;;  %v17412_v56 = vld [vmem:[%s24842_s8 + $0x4] ss:$16 sps:$4 sm:$0xff]  }
 0x4d2   :  { %7893 = vmatprep.subr.bf16.mxu0 %v17340_v55  ;;  %v17407_v55 = vld [vmem:[%s24840_s6 + $0x208] ss:$16 sps:$4 sm:$0xff]  }
 0x4d5   :  { %7894 = vmatpush2.bf16.msra.mxu0 %v17338_v4  ;;  %v17410_v4 = vld [vmem:[%s24842_s8] ss:$16 sps:$4 sm:$0xff]  }
 0x4d6   :  { %7895 = vmatprep.subr.bf16.mxu0 %v17346_v58  ;;  %v17415_v58 = vld [vmem:[%s24840_s6 + $0x3ec] ss:$16 sps:$4 sm:$0xff]  }
 0x4d9   :  { %7896 = vmatpush2.bf16.msra.mxu0 %v17344_v10  ;;  %v17418_v10 = vld [vmem:[%s24842_s8 + $0x1e4] ss:$16 sps:$4 sm:$0xff]  }
 0x4da   :  { %7897 = vmatprep.subr.bf16.mxu0 %v17352_v63  ;;  %v17413_v63 = vld [vmem:[%s24840_s6 + $0x3e8] ss:$16 sps:$4 sm:$0xff]  }
 0x4dd   :  { %7898 = vmatpush2.bf16.msra.mxu0 %v17350_v3  ;;  %v17421_v3 = vld [vmem:[%s24840_s6 + $0x3cc] ss:$16 sps:$4 sm:$0xff]  }
 0x4de   :  { %v6984_v62 = vpop.f32.mrf.mxu1  ;;  %7899 = vmatprep.subr.bf16.mxu0 %v17358_v5  ;;  %v17424_v5 = vld [vmem:[%s24842_s8 + $0x1c4] ss:$16 sps:$4 sm:$0xff]  }
 0x4df   :  { %v6985_v54 = vadd.f32 %v6984_v62, %v6944_v14  ;;  %v17422_v14 = vld [vmem:[%s24842_s8 + $0x1c0] ss:$16 sps:$4 sm:$0xff]   ;;  %v17430_v62 = vld [vmem:[%s24842_s8 + $0x1a4] ss:$16 sps:$4 sm:$0xff]  }
 0x4e0   :  { %v6986_v12 = vpop.f32.mrf.mxu1 }
 0x4e1   :  { %v6987_v26 = vadd.f32 %v6986_v12, %v6946_v60  ;;  %7900 = vmatpush2.bf16.msra.mxu0 %v17356_v19  ;;  %v6993_v41 = vmax.f32 %v6985_v54, 0.0  ;;  %v17427_v19 = vld [vmem:[%s24840_s6 + $0x3ac] ss:$16 sps:$4 sm:$0xff]   ;;  %v17428_v60 = vld [vmem:[%s24842_s8 + $0x1a0] ss:$16 sps:$4 sm:$0xff]  }
 0x4e2   :  { %v6988_v31 = vpop.f32.mrf.mxu1  ;;  %7901 = vmatprep.subr.bf16.mxu0 %v17364_v52  ;;  %v17425_v52 = vld [vmem:[%s24840_s6 + $0x3a8] ss:$16 sps:$4 sm:$0xff]   ;;  %v17433_v54 = vld [vmem:[%s24840_s6 + $0x38c] ss:$16 sps:$4 sm:$0xff]   ;;  %v17436_v12 = vld [vmem:[%s24842_s8 + $0x184] ss:$16 sps:$4 sm:$0xff]  }
 0x4e3   :  { %v6994_v9 = vmax.f32 %v6987_v26, 0.0  ;;  %v22065_v25 = vpack.c.bf16 %v6993_v41, %v6993_v41  ;;  %v17431_v26 = vld [vmem:[%s24840_s6 + $0x388] ss:$16 sps:$4 sm:$0xff]   ;;  %v17439_v41 = vld [vmem:[%s24840_s6 + $0x36c] ss:$16 sps:$4 sm:$0xff]  }
 0x4e4   :  { %v6989_v7 = vpop.f32.mrf.mxu1  ;;  %v17442_v31 = vld [vmem:[%s24842_s8 + $0x164] ss:$16 sps:$4 sm:$0xff]  }
 0x4e5   :  { %v6998_v35 = vpack.c.bf16 %v6994_v9, %v6994_v9  ;;  %7902 = vmatpush2.bf16.msra.mxu0 %v17362_v29  ;;  %v17434_v29 = vld [vmem:[%s24842_s8 + $0x180] ss:$16 sps:$4 sm:$0xff]   ;;  %v17448_v7 = vld [vmem:[%s24842_s8 + $0x144] ss:$16 sps:$4 sm:$0xff]  }
 0x4e6   :  { %12898 = vmatprep.subr.bf16.mxu0 %v17370_v46  ;;  %v17437_v46 = vld [vmem:[%s24840_s6 + $0x368] ss:$16 sps:$4 sm:$0xff]   ;;  %v17440_v9 = vld [vmem:[%s24842_s8 + $0x160] ss:$16 sps:$4 sm:$0xff]  }
 0x4e7   :  { %7862 = vmatprep.mubr.bf16.mxu1 %v6998_v35 }
 0x4e8   :  { %7863 = vmatmul.mubr.bf16.vlgmr.msra.gmra.mxu1 %v22065_v25  ;;  %7904 = vmatmul.mubr.bf16.vlgmr.msra.gmra.mxu0 %v21949_v27  ;;  %v17382_v27 = vld [vmem:[%s24842_s8 + $0xa4] ss:$16 sps:$4 sm:$0xff]  }
 0x4e9   :  { %7913 = vmatpush1.bf16.msra.mxu1 %v17365_v17  ;;  %7944 = vmatprep.mubr.bf16.mxu1 %v6998_v35  ;;  %v17443_v35 = vld [vmem:[%s24840_s6 + $0x348] ss:$16 sps:$4 sm:$0xff]   ;;  %v17446_v17 = vld [vmem:[%s24842_s8 + $0x140] ss:$16 sps:$4 sm:$0xff]  }
 0x4ea   :  { %12899 = vmatpush1.bf16.msra.mxu0 %v17368_v33  ;;  %7914 = vmatprep.subr.bf16.mxu1 %v17373_v59  ;;  %v17451_v33 = vld [vmem:[%s24840_s6 + $0x32c] ss:$16 sps:$4 sm:$0xff]   ;;  %v17454_v59 = vld [vmem:[%s24842_s8 + $0x124] ss:$16 sps:$4 sm:$0xff]  }
 0x4eb   :  { %12900 = vmatprep.subr.bf16.mxu0 %v17376_v36  ;;  %12930 = vmatprep.mubr.bf16.mxu0 %v22077_v30  ;;  %v8790_v36 = vcombine.high %v22040_v13, %v22040_v13  ;;  %v17460_v13 = vld [vmem:[%s24842_s8 + $0x104] ss:$16 sps:$4 sm:$0xff]  }
 0x4ed   :  { %7915 = vmatpush1.bf16.msra.mxu1 %v17371_v40  ;;  %v17449_v40 = vld [vmem:[%s24840_s6 + $0x328] ss:$16 sps:$4 sm:$0xff]  }
 0x4ee   :  { %12901 = vmatpush1.bf16.msra.mxu0 %v17374_v39  ;;  %7916 = vmatprep.subr.bf16.mxu1 %v17379_v45  ;;  %v17452_v39 = vld [vmem:[%s24842_s8 + $0x120] ss:$16 sps:$4 sm:$0xff]   ;;  %v17457_v45 = vld [vmem:[%s24840_s6 + $0x30c] ss:$16 sps:$4 sm:$0xff]  }
 0x4ef   :  { %12902 = vmatprep.subr.bf16.mxu0 %v17382_v27  ;;  %v22253_v27 = vrot.slane %v8790_v36, %v18838_v49  ;;  %v17529_v36 = vld [vmem:[%s24842_s8 + $0x384] ss:$16 sps:$4 sm:$0xff]  }
 0x4f1   :  { %7917 = vmatpush1.bf16.msra.mxu1 %v17377_v28  ;;  %v17455_v28 = vld [vmem:[%s24840_s6 + $0x308] ss:$16 sps:$4 sm:$0xff]  }
 0x4f2   :  { %12903 = vmatpush1.bf16.msra.mxu0 %v17380_v34  ;;  %7918 = vmatprep.subr.bf16.mxu1 %v17385_v0  ;;  %v17458_v34 = vld [vmem:[%s24842_s8 + $0x100] ss:$16 sps:$4 sm:$0xff]   ;;  %v17463_v0 = vld [vmem:[%s24842_s8 + $0x2e4] ss:$16 sps:$4 sm:$0xff]  }
 0x4f3   :  { %12904 = vmatprep.subr.bf16.mxu0 %v17388_v8  ;;  %v17466_v8 = vld [vmem:[%s24842_s8 + $0x4e4] ss:$16 sps:$4 sm:$0xff]  }
 0x4f5   :  { %7919 = vmatpush1.bf16.msra.mxu1 %v17383_v15  ;;  %v8806_v15 = vcombine.high %v22253_v27, %v22253_v27 }
 0x4f6   :  { %12905 = vmatpush1.bf16.msra.mxu0 %v17386_v43  ;;  %7920 = vmatprep.subr.bf16.mxu1 %v17391_v37  ;;  %v17461_v43 = vld [vmem:[%s24842_s8 + $0x2e0] ss:$16 sps:$4 sm:$0xff]   ;;  %v22274_v37 = vrot.slane %v22052_v11, %v18838_v49 }
 0x4f7   :  { %12906 = vmatprep.subr.bf16.mxu0 %v17394_v47  ;;  %v17464_v47 = vld [vmem:[%s24842_s8 + $0x4e0] ss:$16 sps:$4 sm:$0xff]   ;;  %v22291_v11 = vrot.slane %v8806_v15, %v18838_v49  ;;  %v17544_v15 = vld [vmem:[%s24842_s8 + $0x544] ss:$16 sps:$4 sm:$0xff]  }
 0x4f9   :  { %7921 = vmatpush1.bf16.msra.mxu1 %v17389_v38  ;;  %v17469_v38 = vld [vmem:[%s24842_s8 + $0x2c4] ss:$16 sps:$4 sm:$0xff]  }
 0x4fa   :  { %12907 = vmatpush1.bf16.msra.mxu0 %v17392_v18  ;;  %7922 = vmatprep.subr.bf16.mxu1 %v17397_v48  ;;  %v17472_v18 = vld [vmem:[%s24842_s8 + $0x4c4] ss:$16 sps:$4 sm:$0xff]   ;;  %v22287_v48 = vcombine.high %v22077_v30, %v22077_v30 }
 0x4fb   :  { %12908 = vmatprep.subr.bf16.mxu0 %v17400_v51  ;;  %v17467_v51 = vld [vmem:[%s24842_s8 + $0x2c0] ss:$16 sps:$4 sm:$0xff]  }
 0x4fd   :  { %7923 = vmatpush1.bf16.msra.mxu1 %v17395_v53  ;;  %v17470_v53 = vld [vmem:[%s24842_s8 + $0x4c0] ss:$16 sps:$4 sm:$0xff]  }
 0x4fe   :  { %12909 = vmatpush1.bf16.msra.mxu0 %v17398_v23  ;;  %7924 = vmatprep.subr.bf16.mxu1 %v17403_v50  ;;  %v17478_v23 = vld [vmem:[%s24842_s8 + $0x4a4] ss:$16 sps:$4 sm:$0xff]   ;;  %v17473_v50 = vld [vmem:[%s24842_s8 + $0x2a0] ss:$16 sps:$4 sm:$0xff]  }
 0x4ff   :  { %12910 = vmatprep.subr.bf16.mxu0 %v17406_v61  ;;  %v17476_v61 = vld [vmem:[%s24842_s8 + $0x4a0] ss:$16 sps:$4 sm:$0xff]  }
 0x501   :  { %7925 = vmatpush1.bf16.msra.mxu1 %v17401_v24  ;;  %v17481_v24 = vld [vmem:[%s24842_s8 + $0x284] ss:$16 sps:$4 sm:$0xff]  }
 0x502   :  { %12911 = vmatpush1.bf16.msra.mxu0 %v17404_v57  ;;  %7926 = vmatprep.subr.bf16.mxu1 %v17409_v32  ;;  %v17484_v57 = vld [vmem:[%s24842_s8 + $0x484] ss:$16 sps:$4 sm:$0xff]   ;;  %v17479_v32 = vld [vmem:[%s24842_s8 + $0x280] ss:$16 sps:$4 sm:$0xff]  }
 0x503   :  { %12912 = vmatprep.subr.bf16.mxu0 %v17412_v56  ;;  %v17482_v56 = vld [vmem:[%s24842_s8 + $0x480] ss:$16 sps:$4 sm:$0xff]  }
 0x505   :  { %7927 = vmatpush1.bf16.msra.mxu1 %v17407_v55  ;;  %v17487_v55 = vld [vmem:[%s24842_s8 + $0x264] ss:$16 sps:$4 sm:$0xff]  }
 0x506   :  { %12913 = vmatpush1.bf16.msra.mxu0 %v17410_v4  ;;  %7928 = vmatprep.subr.bf16.mxu1 %v17415_v58  ;;  %v17490_v4 = vld [vmem:[%s24842_s8 + $0x464] ss:$16 sps:$4 sm:$0xff]   ;;  %v17485_v58 = vld [vmem:[%s24842_s8 + $0x260] ss:$16 sps:$4 sm:$0xff]  }
 0x507   :  { %12914 = vmatprep.subr.bf16.mxu0 %v17418_v10  ;;  %v17488_v10 = vld [vmem:[%s24842_s8 + $0x460] ss:$16 sps:$4 sm:$0xff]  }
 0x509   :  { %7929 = vmatpush2.bf16.msra.mxu1 %v17413_v63  ;;  %v17493_v63 = vld [vmem:[%s24842_s8 + $0x244] ss:$16 sps:$4 sm:$0xff]  }
 0x50a   :  { %12915 = vmatpush2.bf16.msra.mxu0 %v17416_v22  ;;  %7930 = vmatprep.subr.bf16.mxu1 %v17421_v3  ;;  %v17496_v22 = vld [vmem:[%s24842_s8 + $0x444] ss:$16 sps:$4 sm:$0xff]   ;;  %v17491_v3 = vld [vmem:[%s24842_s8 + $0x240] ss:$16 sps:$4 sm:$0xff]  }
 0x50b   :  { %12916 = vmatprep.subr.bf16.mxu0 %v17424_v5  ;;  %v17494_v5 = vld [vmem:[%s24842_s8 + $0x440] ss:$16 sps:$4 sm:$0xff]  }
 0x50d   :  { %7931 = vmatpush2.bf16.msra.mxu1 %v17419_v1  ;;  %v17499_v1 = vld [vmem:[%s24842_s8 + $0x224] ss:$16 sps:$4 sm:$0xff]  }
 0x50e   :  { %12917 = vmatpush2.bf16.msra.mxu0 %v17422_v14  ;;  %7932 = vmatprep.subr.bf16.mxu1 %v17427_v19  ;;  %v17502_v14 = vld [vmem:[%s24842_s8 + $0x424] ss:$16 sps:$4 sm:$0xff]   ;;  %v17497_v19 = vld [vmem:[%s24842_s8 + $0x220] ss:$16 sps:$4 sm:$0xff]  }
 0x50f   :  { %12918 = vmatprep.subr.bf16.mxu0 %v17430_v62  ;;  %v17500_v62 = vld [vmem:[%s24842_s8 + $0x420] ss:$16 sps:$4 sm:$0xff]  }
 0x511   :  { %7933 = vmatpush2.bf16.msra.mxu1 %v17425_v52  ;;  %v17505_v52 = vld [vmem:[%s24842_s8 + $0x204] ss:$16 sps:$4 sm:$0xff]  }
 0x512   :  { %12919 = vmatpush2.bf16.msra.mxu0 %v17428_v60  ;;  %7934 = vmatprep.subr.bf16.mxu1 %v17433_v54  ;;  %v17508_v60 = vld [vmem:[%s24842_s8 + $0x404] ss:$16 sps:$4 sm:$0xff]   ;;  %v17503_v54 = vld [vmem:[%s24842_s8 + $0x200] ss:$16 sps:$4 sm:$0xff]  }
 0x513   :  { %12920 = vmatprep.subr.bf16.mxu0 %v17436_v12  ;;  %v17506_v12 = vld [vmem:[%s24842_s8 + $0x400] ss:$16 sps:$4 sm:$0xff]  }
 0x515   :  { %7935 = vmatpush2.bf16.msra.mxu1 %v17431_v26  ;;  %v17511_v26 = vld [vmem:[%s24842_s8 + $0x3e4] ss:$16 sps:$4 sm:$0xff]  }
 0x516   :  { %12921 = vmatpush2.bf16.msra.mxu0 %v17434_v29  ;;  %7936 = vmatprep.subr.bf16.mxu1 %v17439_v41  ;;  %v17514_v29 = vld [vmem:[%s24842_s8 + $0x5e4] ss:$16 sps:$4 sm:$0xff]   ;;  %v17509_v41 = vld [vmem:[%s24842_s8 + $0x3e0] ss:$16 sps:$4 sm:$0xff]  }
 0x517   :  { %12922 = vmatprep.subr.bf16.mxu0 %v17442_v31  ;;  %v17512_v31 = vld [vmem:[%s24842_s8 + $0x5e0] ss:$16 sps:$4 sm:$0xff]  }
 0x519   :  { %7937 = vmatpush2.bf16.msra.mxu1 %v17437_v46  ;;  %v17517_v46 = vld [vmem:[%s24842_s8 + $0x3c4] ss:$16 sps:$4 sm:$0xff]  }
 0x51a   :  { %12923 = vmatpush2.bf16.msra.mxu0 %v17440_v9  ;;  %7938 = vmatprep.subr.bf16.mxu1 %v17445_v20  ;;  %v17520_v9 = vld [vmem:[%s24842_s8 + $0x5c4] ss:$16 sps:$4 sm:$0xff]   ;;  %v17515_v20 = vld [vmem:[%s24842_s8 + $0x3c0] ss:$16 sps:$4 sm:$0xff]  }
 0x51b   :  { %12924 = vmatprep.subr.bf16.mxu0 %v17448_v7  ;;  %v17518_v7 = vld [vmem:[%s24842_s8 + $0x5c0] ss:$16 sps:$4 sm:$0xff]  }
 0x51d   :  { %7939 = vmatpush2.bf16.msra.mxu1 %v17443_v35  ;;  %v17523_v35 = vld [vmem:[%s24842_s8 + $0x3a4] ss:$16 sps:$4 sm:$0xff]  }
 0x51e   :  { %12925 = vmatpush2.bf16.msra.mxu0 %v17446_v17  ;;  %7940 = vmatprep.subr.bf16.mxu1 %v17451_v33  ;;  %v17526_v17 = vld [vmem:[%s24842_s8 + $0x5a4] ss:$16 sps:$4 sm:$0xff]   ;;  %v17521_v33 = vld [vmem:[%s24842_s8 + $0x3a0] ss:$16 sps:$4 sm:$0xff]  }
 0x51f   :  { %12926 = vmatprep.subr.bf16.mxu0 %v17454_v59  ;;  %v17524_v59 = vld [vmem:[%s24842_s8 + $0x5a0] ss:$16 sps:$4 sm:$0xff]  }
 0x521   :  { %7941 = vmatpush2.bf16.msra.mxu1 %v17449_v40  ;;  %v17532_v40 = vld [vmem:[%s24842_s8 + $0x584] ss:$16 sps:$4 sm:$0xff]  }
 0x522   :  { %12927 = vmatpush2.bf16.msra.mxu0 %v17452_v39  ;;  %7942 = vmatprep.subr.bf16.mxu1 %v17457_v45  ;;  %v17527_v39 = vld [vmem:[%s24842_s8 + $0x380] ss:$16 sps:$4 sm:$0xff]  }
 0x523   :  { %12928 = vmatprep.subr.bf16.mxu0 %v17460_v13  ;;  %v17530_v45 = vld [vmem:[%s24842_s8 + $0x580] ss:$16 sps:$4 sm:$0xff]   ;;  %v17535_v13 = vld [vmem:[%s24842_s8 + $0x364] ss:$16 sps:$4 sm:$0xff]  }
 0x525   :  { %7943 = vmatpush2.bf16.msra.mxu1 %v17455_v28  ;;  %v17538_v28 = vld [vmem:[%s24842_s8 + $0x564] ss:$16 sps:$4 sm:$0xff]  }
 0x526   :  { %12929 = vmatpush2.bf16.msra.mxu0 %v17458_v34  ;;  %12939 = vmatprep.subr.bf16.mxu1 %v17463_v0  ;;  %v17533_v34 = vld [vmem:[%s24842_s8 + $0x360] ss:$16 sps:$4 sm:$0xff]  }
 0x527   :  { %12980 = vmatprep.subr.bf16.mxu0 %v17466_v8  ;;  %v17536_v0 = vld [vmem:[%s24842_s8 + $0x560] ss:$16 sps:$4 sm:$0xff]   ;;  %v17541_v8 = vld [vmem:[%s24842_s8 + $0x344] ss:$16 sps:$4 sm:$0xff]  }
 0x528   :  { %7945 = vmatmul.mubr.bf16.vlgmr.msra.gmra.mxu1 %v22065_v25  ;;  %v17475_v25 = vld [vmem:[%s24842_s8 + $0x2a4] ss:$16 sps:$4 sm:$0xff]  }
 0x529   :  { %12940 = vmatpush1.bf16.msra.mxu1 %v17461_v43  ;;  %12931 = vmatmul.mubr.bf16.vlgmr.msra.gmra.mxu0 %v22274_v37  ;;  %v17539_v43 = vld [vmem:[%s24842_s8 + $0x340] ss:$16 sps:$4 sm:$0xff]  }
 0x52a   :  { %12981 = vmatpush1.bf16.msra.mxu0 %v17464_v47  ;;  %12941 = vmatprep.subr.bf16.mxu1 %v17469_v38  ;;  %v17542_v47 = vld [vmem:[%s24842_s8 + $0x540] ss:$16 sps:$4 sm:$0xff]   ;;  %v17547_v38 = vld [vmem:[%s24842_s8 + $0x324] ss:$16 sps:$4 sm:$0xff]  }
 0x52b   :  { %12982 = vmatprep.subr.bf16.mxu0 %v17472_v18  ;;  %12971 = vmatprep.mubr.bf16.mxu1 %v22287_v48  ;;  %v17550_v18 = vld [vmem:[%s24842_s8 + $0x524] ss:$16 sps:$4 sm:$0xff]  }
 0x52c   :  { %13012 = vmatprep.mubr.bf16.mxu0 %v22291_v11 }
 0x52d   :  { %12942 = vmatpush1.bf16.msra.mxu1 %v17467_v51  ;;  %v17545_v51 = vld [vmem:[%s24842_s8 + $0x320] ss:$16 sps:$4 sm:$0xff]  }
 0x52e   :  { %12983 = vmatpush1.bf16.msra.mxu0 %v17470_v53  ;;  %12943 = vmatprep.subr.bf16.mxu1 %v17475_v25  ;;  %v22458_v53 = vld [vmem:[%s24835_s1 + $0x8] sm:$0xff]  ;;  %v17548_v25 = vld [vmem:[%s24842_s8 + $0x520] ss:$16 sps:$4 sm:$0xff]  }
 0x52f   :  { %12984 = vmatprep.subr.bf16.mxu0 %v17478_v23  ;;  %v17553_v23 = vld [vmem:[%s24842_s8 + $0x304] ss:$16 sps:$4 sm:$0xff]  }
 0x531   :  { %12944 = vmatpush1.bf16.msra.mxu1 %v17473_v50  ;;  %v17556_v50 = vld [vmem:[%s24842_s8 + $0x504] ss:$16 sps:$4 sm:$0xff]  }
 0x532   :  { %12985 = vmatpush1.bf16.msra.mxu0 %v17476_v61  ;;  %12945 = vmatprep.subr.bf16.mxu1 %v17481_v24  ;;  %v22471_v61 = vrot.slane %v22458_v53, %v18838_v49  ;;  %v17551_v24 = vld [vmem:[%s24842_s8 + $0x300] ss:$16 sps:$4 sm:$0xff]  }
 0x533   :  { %12986 = vmatprep.subr.bf16.mxu0 %v17484_v57  ;;  %v17554_v57 = vld [vmem:[%s24842_s8 + $0x500] ss:$16 sps:$4 sm:$0xff]  }
 0x535   :  { %12946 = vmatpush1.bf16.msra.mxu1 %v17479_v32  ;;  %v17559_v32 = vld [vmem:[%s24842_s8 + $0x6e4] ss:$16 sps:$4 sm:$0xff]  }
 0x536   :  { %12987 = vmatpush1.bf16.msra.mxu0 %v17482_v56  ;;  %12947 = vmatprep.subr.bf16.mxu1 %v17487_v55  ;;  %v17563_v56 = vld [vmem:[%s24842_s8 + $0x8e4] ss:$16 sps:$4 sm:$0xff]   ;;  %v22487_v55 = vcombine.high %v22274_v37, %v22274_v37 }
 0x537   :  { %12988 = vmatprep.subr.bf16.mxu0 %v17490_v4  ;;  %v8854_v4 = vcombine.high %v22471_v61, %v22471_v61 }
 0x539   :  { %12948 = vmatpush1.bf16.msra.mxu1 %v17485_v58  ;;  %v17557_v58 = vld [vmem:[%s24842_s8 + $0x6e0] ss:$16 sps:$4 sm:$0xff]  }
 0x53a   :  { %12989 = vmatpush1.bf16.msra.mxu0 %v17488_v10  ;;  %12949 = vmatprep.subr.bf16.mxu1 %v17493_v63  ;;  %v22496_v10 = vrot.slane %v22253_v27, %v18838_v49  ;;  %v17561_v63 = vld [vmem:[%s24842_s8 + $0x8e0] ss:$16 sps:$4 sm:$0xff]  }
 0x53b   :  { %12990 = vmatprep.subr.bf16.mxu0 %v17496_v22  ;;  %v17566_v22 = vld [vmem:[%s24842_s8 + $0x6c4] ss:$16 sps:$4 sm:$0xff]  }
 0x53d   :  { %12950 = vmatpush1.bf16.msra.mxu1 %v17491_v3  ;;  %v17569_v3 = vld [vmem:[%s24842_s8 + $0x8c4] ss:$16 sps:$4 sm:$0xff]  }
 0x53e   :  { %12991 = vmatpush1.bf16.msra.mxu0 %v17494_v5  ;;  %12951 = vmatprep.subr.bf16.mxu1 %v17499_v1  ;;  %v22509_v5 = vcombine.high %v22291_v11, %v22291_v11  ;;  %v22515_v1 = vrot.slane %v8854_v4, %v18838_v49  ;;  %v17626_v4 = vld [vmem:[%s24842_s8 + $0x784] ss:$16 sps:$4 sm:$0xff]  }
 0x53f   :  { %12992 = vmatprep.subr.bf16.mxu0 %v17502_v14  ;;  %v17564_v14 = vld [vmem:[%s24842_s8 + $0x6c0] ss:$16 sps:$4 sm:$0xff]  }
 0x541   :  { %12952 = vmatpush1.bf16.msra.mxu1 %v17497_v19 }
 0x542   :  { %12993 = vmatpush1.bf16.msra.mxu0 %v17500_v62  ;;  %12953 = vmatprep.subr.bf16.mxu1 %v17505_v52  ;;  %v17567_v62 = vld [vmem:[%s24842_s8 + $0x8c0] ss:$16 sps:$4 sm:$0xff]   ;;  %v17572_v52 = vld [vmem:[%s24842_s8 + $0x6a4] ss:$16 sps:$4 sm:$0xff]  }
 0x543   :  { %12994 = vmatprep.subr.bf16.mxu0 %v17508_v60  ;;  %v17575_v60 = vld [vmem:[%s24842_s8 + $0x8a4] ss:$16 sps:$4 sm:$0xff]  }
 0x545   :  { %12954 = vmatpush1.bf16.msra.mxu1 %v17503_v54 }
 0x546   :  { %12995 = vmatpush1.bf16.msra.mxu0 %v17506_v12  ;;  %12955 = vmatprep.subr.bf16.mxu1 %v17511_v26  ;;  %v17570_v12 = vld [vmem:[%s24842_s8 + $0x6a0] ss:$16 sps:$4 sm:$0xff]  }
 0x547   :  { %12996 = vmatprep.subr.bf16.mxu0 %v17514_v29  ;;  %v17573_v29 = vld [vmem:[%s24842_s8 + $0x8a0] ss:$16 sps:$4 sm:$0xff]  }
 0x549   :  { %12956 = vmatpush2.bf16.msra.mxu1 %v17509_v41  ;;  %v17578_v41 = vld [vmem:[%s24842_s8 + $0x684] ss:$16 sps:$4 sm:$0xff]  }
 0x54a   :  { %12997 = vmatpush2.bf16.msra.mxu0 %v17512_v31  ;;  %12957 = vmatprep.subr.bf16.mxu1 %v17517_v46  ;;  %v17581_v31 = vld [vmem:[%s24842_s8 + $0x884] ss:$16 sps:$4 sm:$0xff]   ;;  %v17576_v46 = vld [vmem:[%s24842_s8 + $0x680] ss:$16 sps:$4 sm:$0xff]  }
 0x54b   :  { %12998 = vmatprep.subr.bf16.mxu0 %v17520_v9  ;;  %v17579_v9 = vld [vmem:[%s24842_s8 + $0x880] ss:$16 sps:$4 sm:$0xff]  }
 0x54d   :  { %12958 = vmatpush2.bf16.msra.mxu1 %v17515_v20  ;;  %v17584_v20 = vld [vmem:[%s24842_s8 + $0x664] ss:$16 sps:$4 sm:$0xff]  }
 0x54e   :  { %12999 = vmatpush2.bf16.msra.mxu0 %v17518_v7  ;;  %12959 = vmatprep.subr.bf16.mxu1 %v17523_v35  ;;  %v17587_v7 = vld [vmem:[%s24842_s8 + $0x864] ss:$16 sps:$4 sm:$0xff]   ;;  %v17582_v35 = vld [vmem:[%s24842_s8 + $0x660] ss:$16 sps:$4 sm:$0xff]  }
 0x54f   :  { %13000 = vmatprep.subr.bf16.mxu0 %v17526_v17  ;;  %v17585_v17 = vld [vmem:[%s24842_s8 + $0x860] ss:$16 sps:$4 sm:$0xff]  }
 0x551   :  { %12960 = vmatpush2.bf16.msra.mxu1 %v17521_v33  ;;  %v17590_v33 = vld [vmem:[%s24842_s8 + $0x644] ss:$16 sps:$4 sm:$0xff]  }
 0x552   :  { %13001 = vmatpush2.bf16.msra.mxu0 %v17524_v59  ;;  %12961 = vmatprep.subr.bf16.mxu1 %v17529_v36  ;;  %v17593_v59 = vld [vmem:[%s24842_s8 + $0x844] ss:$16 sps:$4 sm:$0xff]   ;;  %v17588_v36 = vld [vmem:[%s24842_s8 + $0x640] ss:$16 sps:$4 sm:$0xff]  }
 0x553   :  { %13002 = vmatprep.subr.bf16.mxu0 %v17532_v40  ;;  %v17591_v40 = vld [vmem:[%s24842_s8 + $0x840] ss:$16 sps:$4 sm:$0xff]  }
 0x555   :  { %12962 = vmatpush2.bf16.msra.mxu1 %v17527_v39  ;;  %v17596_v39 = vld [vmem:[%s24842_s8 + $0x624] ss:$16 sps:$4 sm:$0xff]  }
 0x556   :  { %13003 = vmatpush2.bf16.msra.mxu0 %v17530_v45  ;;  %12963 = vmatprep.subr.bf16.mxu1 %v17535_v13  ;;  %v17599_v45 = vld [vmem:[%s24842_s8 + $0x824] ss:$16 sps:$4 sm:$0xff]   ;;  %v17594_v13 = vld [vmem:[%s24842_s8 + $0x620] ss:$16 sps:$4 sm:$0xff]  }
 0x557   :  { %13004 = vmatprep.subr.bf16.mxu0 %v17538_v28  ;;  %v17597_v28 = vld [vmem:[%s24842_s8 + $0x820] ss:$16 sps:$4 sm:$0xff]  }
 0x559   :  { %12964 = vmatpush2.bf16.msra.mxu1 %v17533_v34  ;;  %v17602_v34 = vld [vmem:[%s24842_s8 + $0x604] ss:$16 sps:$4 sm:$0xff]  }
 0x55a   :  { %13005 = vmatpush2.bf16.msra.mxu0 %v17536_v0  ;;  %12965 = vmatprep.subr.bf16.mxu1 %v17541_v8  ;;  %v17605_v0 = vld [vmem:[%s24842_s8 + $0x804] ss:$16 sps:$4 sm:$0xff]   ;;  %v17600_v8 = vld [vmem:[%s24842_s8 + $0x600] ss:$16 sps:$4 sm:$0xff]  }
 0x55b   :  { %13006 = vmatprep.subr.bf16.mxu0 %v17544_v15  ;;  %v17603_v15 = vld [vmem:[%s24842_s8 + $0x800] ss:$16 sps:$4 sm:$0xff]  }
 0x55d   :  { %12966 = vmatpush2.bf16.msra.mxu1 %v17539_v43  ;;  %v17608_v43 = vld [vmem:[%s24842_s8 + $0x7e4] ss:$16 sps:$4 sm:$0xff]  }
 0x55e   :  { %13007 = vmatpush2.bf16.msra.mxu0 %v17542_v47  ;;  %12967 = vmatprep.subr.bf16.mxu1 %v17547_v38  ;;  %v17611_v47 = vld [vmem:[%s24842_s8 + $0x9e4] ss:$16 sps:$4 sm:$0xff]   ;;  %v17606_v38 = vld [vmem:[%s24842_s8 + $0x7e0] ss:$16 sps:$4 sm:$0xff]  }
 0x55f   :  { %13008 = vmatprep.subr.bf16.mxu0 %v17550_v18  ;;  %v17609_v18 = vld [vmem:[%s24842_s8 + $0x9e0] ss:$16 sps:$4 sm:$0xff]  }
 0x561   :  { %12968 = vmatpush2.bf16.msra.mxu1 %v17545_v51  ;;  %v17614_v51 = vld [vmem:[%s24842_s8 + $0x7c4] ss:$16 sps:$4 sm:$0xff]  }
 0x562   :  { %13009 = vmatpush2.bf16.msra.mxu0 %v17548_v25  ;;  %12969 = vmatprep.subr.bf16.mxu1 %v17553_v23  ;;  %v17617_v25 = vld [vmem:[%s24842_s8 + $0x9c4] ss:$16 sps:$4 sm:$0xff]   ;;  %v17612_v23 = vld [vmem:[%s24842_s8 + $0x7c0] ss:$16 sps:$4 sm:$0xff]  }
 0x563   :  { %13010 = vmatprep.subr.bf16.mxu0 %v17556_v50  ;;  %v17615_v50 = vld [vmem:[%s24842_s8 + $0x9c0] ss:$16 sps:$4 sm:$0xff]  }
 0x565   :  { %12970 = vmatpush2.bf16.msra.mxu1 %v17551_v24  ;;  %v17620_v24 = vld [vmem:[%s24842_s8 + $0x7a4] ss:$16 sps:$4 sm:$0xff]  }
 0x566   :  { %13011 = vmatpush2.bf16.msra.mxu0 %v17554_v57  ;;  %13021 = vmatprep.subr.bf16.mxu1 %v17559_v32  ;;  %v17623_v57 = vld [vmem:[%s24842_s8 + $0x9a4] ss:$16 sps:$4 sm:$0xff]   ;;  %v17618_v32 = vld [vmem:[%s24842_s8 + $0x7a0] ss:$16 sps:$4 sm:$0xff]  }
 0x567   :  { %13062 = vmatprep.subr.bf16.mxu0 %v17563_v56  ;;  %v17621_v56 = vld [vmem:[%s24842_s8 + $0x9a0] ss:$16 sps:$4 sm:$0xff]  }
 0x568   :  { %12972 = vmatmul.mubr.bf16.vlgmr.msra.gmra.mxu1 %v22487_v55  ;;  %v22512_v27 = vpop.f32.mrf.mxu0 }
 0x569   :  { %13022 = vmatpush1.bf16.msra.mxu1 %v17557_v58  ;;  %13013 = vmatmul.mubr.bf16.vlgmr.msra.gmra.mxu0 %v22496_v10  ;;  %v17629_v58 = vld [vmem:[%s24842_s8 + $0x984] ss:$16 sps:$4 sm:$0xff]  }
 0x56a   :  { %13063 = vmatpush1.bf16.msra.mxu0 %v17561_v63  ;;  %v22521_v19 = vpop.f32.mrf.mxu0  ;;  %13023 = vmatprep.subr.bf16.mxu1 %v17566_v22  ;;  %v17624_v63 = vld [vmem:[%s24842_s8 + $0x780] ss:$16 sps:$4 sm:$0xff]  }
 0x56b   :  { %13064 = vmatprep.subr.bf16.mxu0 %v17569_v3  ;;  %13053 = vmatprep.mubr.bf16.mxu1 %v22509_v5  ;;  %v17627_v22 = vld [vmem:[%s24842_s8 + $0x980] ss:$16 sps:$4 sm:$0xff]   ;;  %v17632_v3 = vld [vmem:[%s24842_s8 + $0x764] ss:$16 sps:$4 sm:$0xff]  }
 0x56c   :  { %v7827_v54 = vpop.f32.mrf.mxu0  ;;  %13094 = vmatprep.mubr.bf16.mxu0 %v22515_v1 }
 0x56d   :  { %13024 = vmatpush1.bf16.msra.mxu1 %v17564_v14  ;;  %v17635_v14 = vld [vmem:[%s24842_s8 + $0x964] ss:$16 sps:$4 sm:$0xff]  }
 0x56e   :  { %13065 = vmatpush1.bf16.msra.mxu0 %v17567_v62  ;;  %v7828_v26 = vpop.f32.mrf.mxu0  ;;  %13025 = vmatprep.subr.bf16.mxu1 %v17572_v52  ;;  %v17630_v62 = vld [vmem:[%s24842_s8 + $0x760] ss:$16 sps:$4 sm:$0xff]   ;;  %v17641_v54 = vld [vmem:[%s24842_s8 + $0x944] ss:$16 sps:$4 sm:$0xff]  }
 0x56f   :  { %13066 = vmatprep.subr.bf16.mxu0 %v17575_v60  ;;  %v17633_v52 = vld [vmem:[%s24842_s8 + $0x960] ss:$16 sps:$4 sm:$0xff]   ;;  %v17638_v60 = vld [vmem:[%s24842_s8 + $0x744] ss:$16 sps:$4 sm:$0xff]  }
 0x570   :  { %v17639_v26 = vld [vmem:[%s24842_s8 + $0x940] ss:$16 sps:$4 sm:$0xff]  }
 0x571   :  { %13026 = vmatpush1.bf16.msra.mxu1 %v17570_v12  ;;  %v17636_v12 = vld [vmem:[%s24842_s8 + $0x740] ss:$16 sps:$4 sm:$0xff]  }
 0x572   :  { %13067 = vmatpush1.bf16.msra.mxu0 %v17573_v29  ;;  %13027 = vmatprep.subr.bf16.mxu1 %v17578_v41  ;;  %v17644_v29 = vld [vmem:[%s24842_s8 + $0x724] ss:$16 sps:$4 sm:$0xff]  }
 0x573   :  { %13068 = vmatprep.subr.bf16.mxu0 %v17581_v31  ;;  %v17647_v41 = vld [vmem:[%s24842_s8 + $0x924] ss:$16 sps:$4 sm:$0xff]   ;;  %v8839_v31 = vcombine.high %v22458_v53, %v22458_v53 }
 0x574   :  { %v17653_v53 = vld [vmem:[%s24842_s8 + $0x904] ss:$16 sps:$4 sm:$0xff]  }
 0x575   :  { %13028 = vmatpush1.bf16.msra.mxu1 %v17576_v46  ;;  %v17642_v46 = vld [vmem:[%s24842_s8 + $0x720] ss:$16 sps:$4 sm:$0xff]  }
 0x576   :  { %13069 = vmatpush1.bf16.msra.mxu0 %v17579_v9  ;;  %13029 = vmatprep.subr.bf16.mxu1 %v17584_v20  ;;  %v17645_v9 = vld [vmem:[%s24842_s8 + $0x920] ss:$16 sps:$4 sm:$0xff]   ;;  %v17650_v20 = vld [vmem:[%s24842_s8 + $0x704] ss:$16 sps:$4 sm:$0xff]  }
 0x577   :  { %13070 = vmatprep.subr.bf16.mxu0 %v17587_v7  ;;  %v22695_v7 = vld [vmem:[%s24841_s7] sm:$0xf] }
 0x579   :  { %13030 = vmatpush1.bf16.msra.mxu1 %v17582_v35  ;;  %v22698_v35 = vrot.slane %v8839_v31, %v18838_v49  ;;  %v17686_v31 = vld [vmem:[%s24842_s8 + $0xa44] ss:$16 sps:$4 sm:$0xff]  }
 0x57a   :  { %13071 = vmatpush1.bf16.msra.mxu0 %v17585_v17  ;;  %13031 = vmatprep.subr.bf16.mxu1 %v17590_v33  ;;  %v17648_v17 = vld [vmem:[%s24842_s8 + $0x700] ss:$16 sps:$4 sm:$0xff]  }
 0x57b   :  { %13072 = vmatprep.subr.bf16.mxu0 %v17593_v59  ;;  %v17651_v33 = vld [vmem:[%s24842_s8 + $0x900] ss:$16 sps:$4 sm:$0xff]   ;;  %v17656_v59 = vld [vmem:[%s24842_s8 + $0xae4] ss:$16 sps:$4 sm:$0xff]  }
 0x57d   :  { %13032 = vmatpush1.bf16.msra.mxu1 %v17588_v36  ;;  %v7132_v36 = vrot.slane %v22695_v7, %v19587_v16 }
 0x57e   :  { %13073 = vmatpush1.bf16.msra.mxu0 %v17591_v40  ;;  %13033 = vmatprep.subr.bf16.mxu1 %v17596_v39  ;;  %v17659_v40 = vld [vmem:[%s24842_s8 + $0xce4] ss:$16 sps:$4 sm:$0xff]   ;;  %v22716_v39 = vcombine.high %v22496_v10, %v22496_v10 }
 0x57f   :  { %13074 = vmatprep.subr.bf16.mxu0 %v17599_v45  ;;  %v8855_v45 = vcombine.high %v22698_v35, %v22698_v35 }
 0x581   :  { %13034 = vmatpush1.bf16.msra.mxu1 %v17594_v13  ;;  %v7136_v13 = vrot.slane %v22695_v7, %v19596_v21 }
 0x582   :  { %13075 = vmatpush1.bf16.msra.mxu0 %v17597_v28  ;;  %13035 = vmatprep.subr.bf16.mxu1 %v17602_v34  ;;  %v17654_v28 = vld [vmem:[%s24842_s8 + $0xae0] ss:$16 sps:$4 sm:$0xff]   ;;  %v22727_v34 = vrot.slane %v22471_v61, %v18838_v49  ;;  %v22741_v61 = vcombine.high %v22515_v1, %v22515_v1 }
 0x583   :  { %13076 = vmatprep.subr.bf16.mxu0 %v17605_v0  ;;  %v17657_v0 = vld [vmem:[%s24842_s8 + $0xce0] ss:$16 sps:$4 sm:$0xff]  }
 0x585   :  { %13036 = vmatpush1.bf16.msra.mxu1 %v17600_v8  ;;  %v17662_v8 = vld [vmem:[%s24842_s8 + $0xac4] ss:$16 sps:$4 sm:$0xff]  }
 0x586   :  { %13077 = vmatpush1.bf16.msra.mxu0 %v17603_v15  ;;  %13037 = vmatprep.subr.bf16.mxu1 %v17608_v43  ;;  %v7824_v15 = vadd.f32 %v22512_v27, %v7132_v36  ;;  %v17665_v43 = vld [vmem:[%s24842_s8 + $0xcc4] ss:$16 sps:$4 sm:$0xff]  }
 0x587   :  { %13078 = vmatprep.subr.bf16.mxu0 %v17611_v47  ;;  %v17698_v36 = vld [vmem:[%s24842_s8 + $0xa04] ss:$16 sps:$4 sm:$0xff]  }
 0x589   :  { %13038 = vmatpush2.bf16.msra.mxu1 %v17606_v38 }
 0x58a   :  { %13079 = vmatpush2.bf16.msra.mxu0 %v17609_v18  ;;  %13039 = vmatprep.subr.bf16.mxu1 %v17614_v51  ;;  %v22747_v18 = vrot.slane %v8855_v45, %v18838_v49  ;;  %v7826_v51 = vadd.f32 %v22521_v19, %v7136_v13  ;;  %v17668_v19 = vld [vmem:[%s24842_s8 + $0xaa4] ss:$16 sps:$4 sm:$0xff]   ;;  %v17696_v45 = vld [vmem:[%s24842_s8 + $0xa00] ss:$16 sps:$4 sm:$0xff]  }
 0x58b   :  { %13080 = vmatprep.subr.bf16.mxu0 %v17617_v25  ;;  %v17660_v25 = vld [vmem:[%s24842_s8 + $0xac0] ss:$16 sps:$4 sm:$0xff]  }
 0x58c   :  { %v17699_v13 = vld [vmem:[%s24842_s8 + $0xc00] ss:$16 sps:$4 sm:$0xff]  }
 0x58d   :  { %13040 = vmatpush2.bf16.msra.mxu1 %v17612_v23 }
 0x58e   :  { %13081 = vmatpush2.bf16.msra.mxu0 %v17615_v50  ;;  %13041 = vmatprep.subr.bf16.mxu1 %v17620_v24  ;;  %v17663_v24 = vld [vmem:[%s24842_s8 + $0xcc0] ss:$16 sps:$4 sm:$0xff]  }
 0x58f   :  { %13082 = vmatprep.subr.bf16.mxu0 %v17623_v57 }
 0x591   :  { %13042 = vmatpush2.bf16.msra.mxu1 %v17618_v32  ;;  %v17671_v32 = vld [vmem:[%s24842_s8 + $0xca4] ss:$16 sps:$4 sm:$0xff]  }
 0x592   :  { %13083 = vmatpush2.bf16.msra.mxu0 %v17621_v56  ;;  %13043 = vmatprep.subr.bf16.mxu1 %v17626_v4 }
 0x593   :  { %13084 = vmatprep.subr.bf16.mxu0 %v17629_v58 }
 0x595   :  { %13044 = vmatpush2.bf16.msra.mxu1 %v17624_v63  ;;  %v17666_v63 = vld [vmem:[%s24842_s8 + $0xaa0] ss:$16 sps:$4 sm:$0xff]  }
 0x596   :  { %13085 = vmatpush2.bf16.msra.mxu0 %v17627_v22  ;;  %13045 = vmatprep.subr.bf16.mxu1 %v17632_v3 }
 0x597   :  { %13086 = vmatprep.subr.bf16.mxu0 %v17635_v14  ;;  %v17669_v14 = vld [vmem:[%s24842_s8 + $0xca0] ss:$16 sps:$4 sm:$0xff]  }
 0x599   :  { %13046 = vmatpush2.bf16.msra.mxu1 %v17630_v62  ;;  %v17674_v62 = vld [vmem:[%s24842_s8 + $0xa84] ss:$16 sps:$4 sm:$0xff]  }
 0x59a   :  { %13087 = vmatpush2.bf16.msra.mxu0 %v17633_v52  ;;  %13047 = vmatprep.subr.bf16.mxu1 %v17638_v60  ;;  %v17677_v52 = vld [vmem:[%s24842_s8 + $0xc84] ss:$16 sps:$4 sm:$0xff]   ;;  %v17672_v60 = vld [vmem:[%s24842_s8 + $0xa80] ss:$16 sps:$4 sm:$0xff]  }
 0x59b   :  { %13088 = vmatprep.subr.bf16.mxu0 %v17641_v54  ;;  %v17675_v54 = vld [vmem:[%s24842_s8 + $0xc80] ss:$16 sps:$4 sm:$0xff]  }
 0x59d   :  { %13048 = vmatpush2.bf16.msra.mxu1 %v17636_v12  ;;  %v17680_v12 = vld [vmem:[%s24842_s8 + $0xa64] ss:$16 sps:$4 sm:$0xff]  }
 0x59e   :  { %13089 = vmatpush2.bf16.msra.mxu0 %v17639_v26  ;;  %13049 = vmatprep.subr.bf16.mxu1 %v17644_v29  ;;  %v17683_v26 = vld [vmem:[%s24842_s8 + $0xc64] ss:$16 sps:$4 sm:$0xff]   ;;  %v17678_v29 = vld [vmem:[%s24842_s8 + $0xa60] ss:$16 sps:$4 sm:$0xff]  }
 0x59f   :  { %13090 = vmatprep.subr.bf16.mxu0 %v17647_v41  ;;  %v17681_v41 = vld [vmem:[%s24842_s8 + $0xc60] ss:$16 sps:$4 sm:$0xff]  }
 0x5a1   :  { %13050 = vmatpush2.bf16.msra.mxu1 %v17642_v46  ;;  %v17689_v46 = vld [vmem:[%s24842_s8 + $0xc44] ss:$16 sps:$4 sm:$0xff]  }
 0x5a2   :  { %13091 = vmatpush2.bf16.msra.mxu0 %v17645_v9  ;;  %13051 = vmatprep.subr.bf16.mxu1 %v17650_v20  ;;  %v17684_v9 = vld [vmem:[%s24842_s8 + $0xa40] ss:$16 sps:$4 sm:$0xff]  }
 0x5a3   :  { %13092 = vmatprep.subr.bf16.mxu0 %v17653_v53  ;;  %v17687_v20 = vld [vmem:[%s24842_s8 + $0xc40] ss:$16 sps:$4 sm:$0xff]   ;;  %v17692_v53 = vld [vmem:[%s24842_s8 + $0xa24] ss:$16 sps:$4 sm:$0xff]  }
 0x5a5   :  { %13052 = vmatpush2.bf16.msra.mxu1 %v17648_v17  ;;  %v17695_v17 = vld [vmem:[%s24842_s8 + $0xc24] ss:$16 sps:$4 sm:$0xff]  }
 0x5a6   :  { %13093 = vmatpush2.bf16.msra.mxu0 %v17651_v33  ;;  %13103 = vmatprep.subr.bf16.mxu1 %v17656_v59  ;;  %v17690_v33 = vld [vmem:[%s24842_s8 + $0xa20] ss:$16 sps:$4 sm:$0xff]  }
 0x5a7   :  { %13144 = vmatprep.subr.bf16.mxu0 %v17659_v40  ;;  %v17693_v59 = vld [vmem:[%s24842_s8 + $0xc20] ss:$16 sps:$4 sm:$0xff]   ;;  %v17701_v40 = vld [vmem:[%s24842_s8 + $0xc04] ss:$16 sps:$4 sm:$0xff]  }
 0x5a8   :  { %13054 = vmatmul.mubr.bf16.vlgmr.msra.gmra.mxu1 %v22716_v39  ;;  %v7864_v47 = vpop.f32.mrf.mxu1  ;;  %v22744_v38 = vpop.f32.mrf.mxu0 }
 0x5a9   :  { %v22750_v27 = vadd.f32 %v7864_v47, %v7824_v15  ;;  %13104 = vmatpush1.bf16.msra.mxu1 %v17654_v28  ;;  %13095 = vmatmul.mubr.bf16.vlgmr.msra.gmra.mxu0 %v22727_v34  ;;  %v17704_v28 = vld [vmem:[%s24842_s8 + $0xbe4] ss:$16 sps:$4 sm:$0xff]   ;;  %v17705_v15 = vld [vmem:[%s24842_s8 + $0xde0] ss:$16 sps:$4 sm:$0xff]  }
 0x5aa   :  { %v7866_v23 = vpop.f32.mrf.mxu1  ;;  %v22756_v50 = vpop.f32.mrf.mxu0  ;;  %13145 = vmatpush1.bf16.msra.mxu0 %v17657_v0  ;;  %13105 = vmatprep.subr.bf16.mxu1 %v17662_v8  ;;  %v17707_v0 = vld [vmem:[%s24842_s8 + $0xde4] ss:$16 sps:$4 sm:$0xff]   ;;  %v17702_v8 = vld [vmem:[%s24842_s8 + $0xbe0] ss:$16 sps:$4 sm:$0xff]  }
 0x5ab   :  { %v22764_v57 = vadd.f32 %v7866_v23, %v7826_v51  ;;  %13146 = vmatprep.subr.bf16.mxu0 %v17665_v43  ;;  %13135 = vmatprep.mubr.bf16.mxu1 %v22741_v61  ;;  %v17710_v43 = vld [vmem:[%s24842_s8 + $0xbc4] ss:$16 sps:$4 sm:$0xff]   ;;  %v17708_v51 = vld [vmem:[%s24842_s8 + $0xbc0] ss:$16 sps:$4 sm:$0xff]  }
 0x5ac   :  { %v7868_v56 = vpop.f32.mrf.mxu1  ;;  %v7909_v4 = vpop.f32.mrf.mxu0  ;;  %13176 = vmatprep.mubr.bf16.mxu0 %v22747_v18  ;;  %v17713_v47 = vld [vmem:[%s24842_s8 + $0xdc4] ss:$16 sps:$4 sm:$0xff]  }
 0x5ad   :  { %v7957_v58 = vcombine.low %v22750_v27, %v22764_v57  ;;  %13106 = vmatpush1.bf16.msra.mxu1 %v17660_v25  ;;  %v17711_v25 = vld [vmem:[%s24842_s8 + $0xdc0] ss:$16 sps:$4 sm:$0xff]   ;;  %v17716_v23 = vld [vmem:[%s24842_s8 + $0xba4] ss:$16 sps:$4 sm:$0xff]  }
 0x5ae   :  { %v7869_v22 = vpop.f32.mrf.mxu1  ;;  %v7910_v3 = vpop.f32.mrf.mxu0  ;;  %13147 = vmatpush1.bf16.msra.mxu0 %v17663_v24  ;;  %13107 = vmatprep.subr.bf16.mxu1 %v17668_v19  ;;  %v17719_v24 = vld [vmem:[%s24842_s8 + $0xda4] ss:$16 sps:$4 sm:$0xff]   ;;  %v17714_v19 = vld [vmem:[%s24842_s8 + $0xba0] ss:$16 sps:$4 sm:$0xff]  }
 0x5af   :  { %13148 = vmatprep.subr.bf16.mxu0 %v17671_v32  ;;  %v17717_v32 = vld [vmem:[%s24842_s8 + $0xda0] ss:$16 sps:$4 sm:$0xff]   ;;  %v17722_v56 = vld [vmem:[%s24842_s8 + $0xb84] ss:$16 sps:$4 sm:$0xff]  }
 0x5b0   :  { %v17725_v4 = vld [vmem:[%s24842_s8 + $0xd84] ss:$16 sps:$4 sm:$0xff]   ;;  %v17723_v22 = vld [vmem:[%s24842_s8 + $0xd80] ss:$16 sps:$4 sm:$0xff]  }
 0x5b1   :  { %13108 = vmatpush1.bf16.msra.mxu1 %v17666_v63  ;;  %v17720_v63 = vld [vmem:[%s24842_s8 + $0xb80] ss:$16 sps:$4 sm:$0xff]   ;;  %v17728_v3 = vld [vmem:[%s24842_s8 + $0xb64] ss:$16 sps:$4 sm:$0xff]  }
 0x5b2   :  { %13149 = vmatpush1.bf16.msra.mxu0 %v17669_v14  ;;  %13109 = vmatprep.subr.bf16.mxu1 %v17674_v62  ;;  %v17731_v14 = vld [vmem:[%s24842_s8 + $0xd64] ss:$16 sps:$4 sm:$0xff]   ;;  %v17726_v62 = vld [vmem:[%s24842_s8 + $0xb60] ss:$16 sps:$4 sm:$0xff]  }
 0x5b3   :  { %13150 = vmatprep.subr.bf16.mxu0 %v17677_v52  ;;  %v17729_v52 = vld [vmem:[%s24842_s8 + $0xd60] ss:$16 sps:$4 sm:$0xff]   ;;  %v17780_v27 = vld [vmem:[%s24842_s8 + $0x1064] ss:$16 sps:$4 sm:$0xff]  }
 0x5b4   :  { %v17775_v57 = vld [vmem:[%s24842_s8 + $0xe60] ss:$16 sps:$4 sm:$0xff]  }
 0x5b5   :  { %13110 = vmatpush1.bf16.msra.mxu1 %v17672_v60  ;;  %v17734_v60 = vld [vmem:[%s24842_s8 + $0xb44] ss:$16 sps:$4 sm:$0xff]  }
 0x5b6   :  { %13151 = vmatpush1.bf16.msra.mxu0 %v17675_v54  ;;  %13111 = vmatprep.subr.bf16.mxu1 %v17680_v12  ;;  %v17737_v54 = vld [vmem:[%s24842_s8 + $0xd44] ss:$16 sps:$4 sm:$0xff]   ;;  %v17732_v12 = vld [vmem:[%s24842_s8 + $0xb40] ss:$16 sps:$4 sm:$0xff]  }
 0x5b7   :  { %13152 = vmatprep.subr.bf16.mxu0 %v17683_v26  ;;  %v17735_v26 = vld [vmem:[%s24842_s8 + $0xd40] ss:$16 sps:$4 sm:$0xff]  }
 0x5b9   :  { %13112 = vmatpush1.bf16.msra.mxu1 %v17678_v29  ;;  %v17740_v29 = vld [vmem:[%s24842_s8 + $0xb24] ss:$16 sps:$4 sm:$0xff]  }
 0x5ba   :  { %13153 = vmatpush1.bf16.msra.mxu0 %v17681_v41  ;;  %13113 = vmatprep.subr.bf16.mxu1 %v17686_v31  ;;  %v17743_v41 = vld [vmem:[%s24842_s8 + $0xd24] ss:$16 sps:$4 sm:$0xff]   ;;  %v17738_v31 = vld [vmem:[%s24842_s8 + $0xb20] ss:$16 sps:$4 sm:$0xff]  }
 0x5bb   :  { %13154 = vmatprep.subr.bf16.mxu0 %v17689_v46  ;;  %v22923_v46 = vld [vmem:[%s24835_s1 + $0x10] sm:$0xff] }
 0x5bd   :  { %13114 = vmatpush1.bf16.msra.mxu1 %v17684_v9  ;;  %v17741_v9 = vld [vmem:[%s24842_s8 + $0xd20] ss:$16 sps:$4 sm:$0xff]  }
 0x5be   :  { %13155 = vmatpush1.bf16.msra.mxu0 %v17687_v20  ;;  %13115 = vmatprep.subr.bf16.mxu1 %v17692_v53  ;;  %v17746_v20 = vld [vmem:[%s24842_s8 + $0xb04] ss:$16 sps:$4 sm:$0xff]  }
 0x5bf   :  { %13156 = vmatprep.subr.bf16.mxu0 %v17695_v17  ;;  %v17749_v53 = vld [vmem:[%s24842_s8 + $0xd04] ss:$16 sps:$4 sm:$0xff]   ;;  %v22936_v17 = vrot.slane %v22923_v46, %v18838_v49 }
 0x5c1   :  { %13116 = vmatpush1.bf16.msra.mxu1 %v17690_v33  ;;  %v17744_v33 = vld [vmem:[%s24842_s8 + $0xb00] ss:$16 sps:$4 sm:$0xff]  }
 0x5c2   :  { %13157 = vmatpush1.bf16.msra.mxu0 %v17693_v59  ;;  %13117 = vmatprep.subr.bf16.mxu1 %v17698_v36  ;;  %v17747_v59 = vld [vmem:[%s24842_s8 + $0xd00] ss:$16 sps:$4 sm:$0xff]   ;;  %v17752_v36 = vld [vmem:[%s24842_s8 + $0xee4] ss:$16 sps:$4 sm:$0xff]  }
 0x5c3   :  { %13158 = vmatprep.subr.bf16.mxu0 %v17701_v40  ;;  %v17756_v40 = vld [vmem:[%s24842_s8 + $0x10e4] ss:$16 sps:$4 sm:$0xff]  }
 0x5c5   :  { %13118 = vmatpush1.bf16.msra.mxu1 %v17696_v45  ;;  %v18640_v45 = vmov 1983009808  }
 0x5c6   :  { %13159 = vmatpush1.bf16.msra.mxu0 %v17699_v13  ;;  %13119 = vmatprep.subr.bf16.mxu1 %v17704_v28  ;;  %v7960_v13 = vunpack.c.l.s4 %v18640_v45  ;;  %v22952_v28 = vcombine.high %v22727_v34, %v22727_v34  ;;  %v17777_v45 = vld [vmem:[%s24842_s8 + $0xe64] ss:$16 sps:$4 sm:$0xff]  }
 0x5c7   :  { %13160 = vmatprep.subr.bf16.mxu0 %v17707_v0  ;;  %v8903_v0 = vcombine.high %v22936_v17, %v22936_v17 }
 0x5c9   :  { %13120 = vmatpush2.bf16.msra.mxu1 %v17702_v8  ;;  %v7140_v8 = vrot.slane %v22695_v7, %v20899_v6 }
 0x5ca   :  { %13161 = vmatpush2.bf16.msra.mxu0 %v17705_v15  ;;  %13121 = vmatprep.subr.bf16.mxu1 %v17710_v43  ;;  %v7144_v15 = vrot.slane %v22695_v7, %v20902_v44  ;;  %v17750_v43 = vld [vmem:[%s24842_s8 + $0xee0] ss:$16 sps:$4 sm:$0xff]   ;;  %v17762_v7 = vld [vmem:[%s24842_s8 + $0x10c4] ss:$16 sps:$4 sm:$0xff]  }
 0x5cb   :  { %13162 = vmatprep.subr.bf16.mxu0 %v17713_v47  ;;  %v22965_v47 = vrot.slane %v22698_v35, %v18838_v49  ;;  %v7961_v35 = vunpack.c.0.s8 %v7960_v13  ;;  %v17783_v13 = vld [vmem:[%s24842_s8 + $0xe44] ss:$16 sps:$4 sm:$0xff]  }
 0x5cd   :  { %13122 = vmatpush2.bf16.msra.mxu1 %v17708_v51  ;;  %v17754_v51 = vld [vmem:[%s24842_s8 + $0x10e0] ss:$16 sps:$4 sm:$0xff]  }
 0x5ce   :  { %13163 = vmatpush2.bf16.msra.mxu0 %v17711_v25  ;;  %13123 = vmatprep.subr.bf16.mxu1 %v17716_v23  ;;  %v17759_v25 = vld [vmem:[%s24842_s8 + $0xec4] ss:$16 sps:$4 sm:$0xff]   ;;  %v22978_v23 = vcombine.high %v22747_v18, %v22747_v18 }
 0x5cf   :  { %13164 = vmatprep.subr.bf16.mxu0 %v17719_v24 }
 0x5d1   :  { %13124 = vmatpush2.bf16.msra.mxu1 %v17714_v19  ;;  %v22982_v19 = vrot.slane %v8903_v0, %v18838_v49  ;;  %v17786_v0 = vld [vmem:[%s24842_s8 + $0x1044] ss:$16 sps:$4 sm:$0xff]  }
 0x5d2   :  { %13165 = vmatpush2.bf16.msra.mxu0 %v17717_v32  ;;  %13125 = vmatprep.subr.bf16.mxu1 %v17722_v56  ;;  %v7906_v32 = vadd.f32 %v22744_v38, %v7140_v8  ;;  %v7908_v56 = vadd.f32 %v22756_v50, %v7144_v15  ;;  %v17765_v38 = vld [vmem:[%s24842_s8 + $0xea4] ss:$16 sps:$4 sm:$0xff]   ;;  %v17781_v8 = vld [vmem:[%s24842_s8 + $0xe40] ss:$16 sps:$4 sm:$0xff]  }
 0x5d3   :  { %13166 = vmatprep.subr.bf16.mxu0 %v17725_v4  ;;  %v17757_v4 = vld [vmem:[%s24842_s8 + $0xec0] ss:$16 sps:$4 sm:$0xff]  }
 0x5d4   :  { %v17784_v15 = vld [vmem:[%s24842_s8 + $0x1040] ss:$16 sps:$4 sm:$0xff]  }
 0x5d5   :  { %13126 = vmatpush2.bf16.msra.mxu1 %v17720_v63 }
 0x5d6   :  { %13167 = vmatpush2.bf16.msra.mxu0 %v17723_v22  ;;  %13127 = vmatprep.subr.bf16.mxu1 %v17728_v3  ;;  %v17760_v3 = vld [vmem:[%s24842_s8 + $0x10c0] ss:$16 sps:$4 sm:$0xff]  }
 0x5d7   :  { %13168 = vmatprep.subr.bf16.mxu0 %v17731_v14 }
 0x5d9   :  { %13128 = vmatpush2.bf16.msra.mxu1 %v17726_v62  ;;  %v17768_v62 = vld [vmem:[%s24842_s8 + $0x10a4] ss:$16 sps:$4 sm:$0xff]  }
 0x5da   :  { %13169 = vmatpush2.bf16.msra.mxu0 %v17729_v52  ;;  %13129 = vmatprep.subr.bf16.mxu1 %v17734_v60  ;;  %v23005_v60 = vsub.s32 %v7961_v35, %v18820_v42  ;;  %v17771_v42 = vld [vmem:[%s24842_s8 + $0xe84] ss:$16 sps:$4 sm:$0xff]  }
 0x5db   :  { %13170 = vmatprep.subr.bf16.mxu0 %v17737_v54  ;;  %v17795_v35 = vld [vmem:[%s24842_s8 + $0xe04] ss:$16 sps:$4 sm:$0xff]  }
 0x5dd   :  { %13130 = vmatpush2.bf16.msra.mxu1 %v17732_v12 }
 0x5de   :  { %13171 = vmatpush2.bf16.msra.mxu0 %v17735_v26  ;;  %13131 = vmatprep.subr.bf16.mxu1 %v17740_v29  ;;  %v17763_v26 = vld [vmem:[%s24842_s8 + $0xea0] ss:$16 sps:$4 sm:$0xff]  }
 0x5df   :  { %13172 = vmatprep.subr.bf16.mxu0 %v17743_v41 }
 0x5e1   :  { %13132 = vmatpush2.bf16.msra.mxu1 %v17738_v31  ;;  %v17766_v31 = vld [vmem:[%s24842_s8 + $0x10a0] ss:$16 sps:$4 sm:$0xff]  }
 0x5e2   :  { %13173 = vmatpush2.bf16.msra.mxu0 %v17741_v9  ;;  %13133 = vmatprep.subr.bf16.mxu1 %v17746_v20  ;;  %v17774_v9 = vld [vmem:[%s24842_s8 + $0x1084] ss:$16 sps:$4 sm:$0xff]  }
 0x5e3   :  { %13174 = vmatprep.subr.bf16.mxu0 %v17749_v53  ;;  %v7965_v53 = vrot.slane %v7957_v58, %v23005_v60  ;;  %v17778_v58 = vld [vmem:[%s24842_s8 + $0x1060] ss:$16 sps:$4 sm:$0xff]  }
 0x5e5   :  { %13134 = vmatpush2.bf16.msra.mxu1 %v17744_v33 }
 0x5e6   :  { %13175 = vmatpush2.bf16.msra.mxu0 %v17747_v59  ;;  %13185 = vmatprep.subr.bf16.mxu1 %v17752_v36  ;;  %v17769_v59 = vld [vmem:[%s24842_s8 + $0xe80] ss:$16 sps:$4 sm:$0xff]  }
 0x5e7   :  { %13226 = vmatprep.subr.bf16.mxu0 %v17756_v40  ;;  %v17772_v40 = vld [vmem:[%s24842_s8 + $0x1080] ss:$16 sps:$4 sm:$0xff]  }
 0x5e8   :  { %v7946_v24 = vpop.f32.mrf.mxu1  ;;  %13136 = vmatmul.mubr.bf16.vlgmr.msra.gmra.mxu1 %v22952_v28 }
 0x5e9   :  { %13186 = vmatpush1.bf16.msra.mxu1 %v17750_v43  ;;  %13177 = vmatmul.mubr.bf16.vlgmr.msra.gmra.mxu0 %v22965_v47  ;;  %v22990_v63 = vpop.f32.mrf.mxu0  ;;  %v7947_v50 = vadd.f32 %v7946_v24, %v7906_v32  ;;  %v17789_v43 = vld [vmem:[%s24842_s8 + $0xe24] ss:$16 sps:$4 sm:$0xff]   ;;  %v17793_v32 = vld [vmem:[%s24842_s8 + $0xe00] ss:$16 sps:$4 sm:$0xff]  }
 0x5ea   :  { %v7948_v22 = vpop.f32.mrf.mxu1  ;;  %13227 = vmatpush1.bf16.msra.mxu0 %v17754_v51  ;;  %13187 = vmatprep.subr.bf16.mxu1 %v17759_v25  ;;  %v17792_v51 = vld [vmem:[%s24842_s8 + $0x1024] ss:$16 sps:$4 sm:$0xff]   ;;  %v17787_v25 = vld [vmem:[%s24842_s8 + $0xe20] ss:$16 sps:$4 sm:$0xff]  }
 0x5eb   :  { %v7949_v14 = vadd.f32 %v7948_v22, %v7908_v56  ;;  %13228 = vmatprep.subr.bf16.mxu0 %v17762_v7  ;;  %v23001_v52 = vpop.f32.mrf.mxu0  ;;  %13217 = vmatprep.mubr.bf16.mxu1 %v22978_v23  ;;  %v17790_v7 = vld [vmem:[%s24842_s8 + $0x1020] ss:$16 sps:$4 sm:$0xff]   ;;  %v17798_v24 = vld [vmem:[%s24842_s8 + $0x1004] ss:$16 sps:$4 sm:$0xff]  }
 0x5ec   :  { %v7950_v54 = vpop.f32.mrf.mxu1  ;;  %13258 = vmatprep.mubr.bf16.mxu0 %v22982_v19  ;;  %v17796_v56 = vld [vmem:[%s24842_s8 + $0x1000] ss:$16 sps:$4 sm:$0xff]   ;;  %v17804_v22 = vld [vmem:[%s24842_s8 + $0x11e4] ss:$16 sps:$4 sm:$0xff]  }
 0x5ed   :  { %v7958_v12 = vcombine.low %v7947_v50, %v7949_v14  ;;  %13188 = vmatpush1.bf16.msra.mxu1 %v17757_v4  ;;  %v12936_v29 = vpop.f32.mrf.mxu0  ;;  %v17801_v4 = vld [vmem:[%s24842_s8 + $0xfe4] ss:$16 sps:$4 sm:$0xff]   ;;  %v17808_v54 = vld [vmem:[%s24842_s8 + $0x11c0] ss:$16 sps:$4 sm:$0xff]  }
 0x5ee   :  { %v7951_v41 = vpop.f32.mrf.mxu1  ;;  %13229 = vmatpush1.bf16.msra.mxu0 %v17760_v3  ;;  %13189 = vmatprep.subr.bf16.mxu1 %v17765_v38  ;;  %v17799_v3 = vld [vmem:[%s24842_s8 + $0xfe0] ss:$16 sps:$4 sm:$0xff]   ;;  %v17807_v50 = vld [vmem:[%s24842_s8 + $0xfc4] ss:$16 sps:$4 sm:$0xff]  }
 0x5ef   :  { %13230 = vmatprep.subr.bf16.mxu0 %v17768_v62  ;;  %v12937_v20 = vpop.f32.mrf.mxu0  ;;  %v7972_v33 = vrot.slane %v7958_v12, %v23005_v60  ;;  %v17802_v38 = vld [vmem:[%s24842_s8 + $0x11e0] ss:$16 sps:$4 sm:$0xff]   ;;  %v17810_v14 = vld [vmem:[%s24842_s8 + $0x11c4] ss:$16 sps:$4 sm:$0xff]  }
 0x5f0   :  { %v17805_v62 = vld [vmem:[%s24842_s8 + $0xfc0] ss:$16 sps:$4 sm:$0xff]   ;;  %v17813_v12 = vld [vmem:[%s24842_s8 + $0xfa4] ss:$16 sps:$4 sm:$0xff]  }
 0x5f1   :  { %13190 = vmatpush1.bf16.msra.mxu1 %v17763_v26  ;;  %v7973_v36 = vcombine.low %v7965_v53, %v7972_v33  ;;  %v17816_v26 = vld [vmem:[%s24842_s8 + $0x11a4] ss:$16 sps:$4 sm:$0xff]   ;;  %v17811_v29 = vld [vmem:[%s24842_s8 + $0xfa0] ss:$16 sps:$4 sm:$0xff]  }
 0x5f2   :  { %13231 = vmatpush1.bf16.msra.mxu0 %v17766_v31  ;;  %13191 = vmatprep.subr.bf16.mxu1 %v17771_v42  ;;  %v17814_v41 = vld [vmem:[%s24842_s8 + $0x11a0] ss:$16 sps:$4 sm:$0xff]   ;;  %v17819_v31 = vld [vmem:[%s24842_s8 + $0xf84] ss:$16 sps:$4 sm:$0xff]  }
 0x5f3   :  { %13232 = vmatprep.subr.bf16.mxu0 %v17774_v9  ;;  %7975 = vst [vmem:[#allocation2] sm:$0xff] %v7973_v36  ;;  %v17822_v42 = vld [vmem:[%s24842_s8 + $0x1184] ss:$16 sps:$4 sm:$0xff]   ;;  %v17817_v9 = vld [vmem:[%s24842_s8 + $0xf80] ss:$16 sps:$4 sm:$0xff]  }
 0x5f4   :  { %v17820_v20 = vld [vmem:[%s24842_s8 + $0x1180] ss:$16 sps:$4 sm:$0xff]   ;;  %v17825_v53 = vld [vmem:[%s24842_s8 + $0xf64] ss:$16 sps:$4 sm:$0xff]  }
 0x5f5   :  { %13192 = vmatpush1.bf16.msra.mxu1 %v17769_v59  ;;  %v17828_v33 = vld [vmem:[%s24842_s8 + $0x1164] ss:$16 sps:$4 sm:$0xff]   ;;  %v17823_v59 = vld [vmem:[%s24842_s8 + $0xf60] ss:$16 sps:$4 sm:$0xff]  }
 0x5f6   :  { %13233 = vmatpush1.bf16.msra.mxu0 %v17772_v40  ;;  %13193 = vmatprep.subr.bf16.mxu1 %v17777_v45  ;;  %v17826_v36 = vld [vmem:[%s24842_s8 + $0x1160] ss:$16 sps:$4 sm:$0xff]   ;;  %v17831_v40 = vld [vmem:[%s24842_s8 + $0xf44] ss:$16 sps:$4 sm:$0xff]  }
 0x5f7   :  { %13234 = vmatprep.subr.bf16.mxu0 %v17780_v27  ;;  %v17834_v45 = vld [vmem:[%s24842_s8 + $0x1144] ss:$16 sps:$4 sm:$0xff]   ;;  %v17829_v27 = vld [vmem:[%s24842_s8 + $0xf40] ss:$16 sps:$4 sm:$0xff]  }
 0x5f9   :  { %13194 = vmatpush1.bf16.msra.mxu1 %v17775_v57  ;;  %v17832_v57 = vld [vmem:[%s24842_s8 + $0x1140] ss:$16 sps:$4 sm:$0xff]  }
 0x5fa   :  { %13235 = vmatpush1.bf16.msra.mxu0 %v17778_v58  ;;  %13195 = vmatprep.subr.bf16.mxu1 %v17783_v13  ;;  %v17837_v58 = vld [vmem:[%s24842_s8 + $0xf24] ss:$16 sps:$4 sm:$0xff]  }
 0x5fb   :  { %13236 = vmatprep.subr.bf16.mxu0 %v17786_v0  ;;  %v17840_v13 = vld [vmem:[%s24842_s8 + $0x1124] ss:$16 sps:$4 sm:$0xff]   ;;  %v8888_v0 = vcombine.high %v22923_v46, %v22923_v46 }
 0x5fc   :  { %v17846_v46 = vld [vmem:[%s24842_s8 + $0x1104] ss:$16 sps:$4 sm:$0xff]  }
 0x5fd   :  { %13196 = vmatpush1.bf16.msra.mxu1 %v17781_v8  ;;  %v17835_v8 = vld [vmem:[%s24842_s8 + $0xf20] ss:$16 sps:$4 sm:$0xff]  }
 0x5fe   :  { %13237 = vmatpush1.bf16.msra.mxu0 %v17784_v15  ;;  %13197 = vmatprep.subr.bf16.mxu1 %v17789_v43  ;;  %v8764_v15 = vld [vmem:[%s24843_s9] sm:$0xf] }
 0x5ff   :  { %13238 = vmatprep.subr.bf16.mxu0 %v17792_v51  ;;  %v17838_v43 = vld [vmem:[%s24842_s8 + $0x1120] ss:$16 sps:$4 sm:$0xff]   ;;  %v17843_v51 = vld [vmem:[%s24842_s8 + $0xf04] ss:$16 sps:$4 sm:$0xff]  }
 0x601   :  { %13198 = vmatpush1.bf16.msra.mxu1 %v17787_v25  ;;  %v23175_v25 = vrot.slane %v8888_v0, %v18838_v49 }
 0x602   :  { %13239 = vmatpush1.bf16.msra.mxu0 %v17790_v7  ;;  %13199 = vmatprep.subr.bf16.mxu1 %v17795_v35  ;;  %v8769_v7 = vrot.slane %v8764_v15, %v19587_v16  ;;  %v17841_v35 = vld [vmem:[%s24842_s8 + $0xf00] ss:$16 sps:$4 sm:$0xff]   ;;  %v17852_v16 = vld [vmem:[%s24842_s8 + $0x14e4] ss:$16 sps:$4 sm:$0xff]  }
 0x603   :  { %13240 = vmatprep.subr.bf16.mxu0 %v17798_v24  ;;  %v17844_v24 = vld [vmem:[%s24842_s8 + $0x1100] ss:$16 sps:$4 sm:$0xff]  }
 0x605   :  { %13200 = vmatpush1.bf16.msra.mxu1 %v17793_v32  ;;  %v17849_v32 = vld [vmem:[%s24842_s8 + $0x12e4] ss:$16 sps:$4 sm:$0xff]  }
 0x606   :  { %13241 = vmatpush1.bf16.msra.mxu0 %v17796_v56  ;;  %13201 = vmatprep.subr.bf16.mxu1 %v17801_v4  ;;  %v8773_v56 = vrot.slane %v8764_v15, %v19596_v21  ;;  %v23193_v4 = vcombine.high %v22965_v47, %v22965_v47  ;;  %v23203_v21 = vrot.slane %v22936_v17, %v18838_v49  ;;  %v17868_v15 = vld [vmem:[%s24842_s8 + $0x1480] ss:$16 sps:$4 sm:$0xff]  }
 0x607   :  { %13242 = vmatprep.subr.bf16.mxu0 %v17804_v22  ;;  %v8904_v22 = vcombine.high %v23175_v25, %v23175_v25  ;;  %v23217_v17 = vcombine.high %v22982_v19, %v22982_v19 }
 0x609   :  { %13202 = vmatpush2.bf16.msra.mxu1 %v17799_v3  ;;  %v12933_v3 = vadd.f32 %v22990_v63, %v8769_v7  ;;  %v12935_v63 = vadd.f32 %v23001_v52, %v8773_v56  ;;  %v17853_v52 = vld [vmem:[%s24842_s8 + $0x12c0] ss:$16 sps:$4 sm:$0xff]  }
 0x60a   :  { %13243 = vmatpush2.bf16.msra.mxu0 %v17802_v38  ;;  %13203 = vmatprep.subr.bf16.mxu1 %v17807_v50  ;;  %v17847_v38 = vld [vmem:[%s24842_s8 + $0x12e0] ss:$16 sps:$4 sm:$0xff]  }
 0x60b   :  { %13244 = vmatprep.subr.bf16.mxu0 %v17810_v14  ;;  %v17850_v50 = vld [vmem:[%s24842_s8 + $0x14e0] ss:$16 sps:$4 sm:$0xff]   ;;  %v17855_v14 = vld [vmem:[%s24842_s8 + $0x12c4] ss:$16 sps:$4 sm:$0xff]  }
 0x60c   :  { %v17874_v7 = vld [vmem:[%s24842_s8 + $0x1460] ss:$16 sps:$4 sm:$0xff]  }
 0x60d   :  { %13204 = vmatpush2.bf16.msra.mxu1 %v17805_v62  ;;  %v17858_v62 = vld [vmem:[%s24842_s8 + $0x14c4] ss:$16 sps:$4 sm:$0xff]   ;;  %v17880_v56 = vld [vmem:[%s24842_s8 + $0x1440] ss:$16 sps:$4 sm:$0xff]  }
 0x60e   :  { %13245 = vmatpush2.bf16.msra.mxu0 %v17808_v54  ;;  %13205 = vmatprep.subr.bf16.mxu1 %v17813_v12  ;;  %v23221_v12 = vrot.slane %v8904_v22, %v18838_v49  ;;  %v17888_v22 = vld [vmem:[%s24842_s8 + $0x1424] ss:$16 sps:$4 sm:$0xff]  }
 0x60f   :  { %13246 = vmatprep.subr.bf16.mxu0 %v17816_v26 }
 0x611   :  { %13206 = vmatpush2.bf16.msra.mxu1 %v17811_v29 }
 0x612   :  { %13247 = vmatpush2.bf16.msra.mxu0 %v17814_v41  ;;  %13207 = vmatprep.subr.bf16.mxu1 %v17819_v31  ;;  %v17856_v31 = vld [vmem:[%s24842_s8 + $0x14c0] ss:$16 sps:$4 sm:$0xff]  }
 0x613   :  { %13248 = vmatprep.subr.bf16.mxu0 %v17822_v42  ;;  %v17861_v42 = vld [vmem:[%s24842_s8 + $0x12a4] ss:$16 sps:$4 sm:$0xff]  }
 0x615   :  { %13208 = vmatpush2.bf16.msra.mxu1 %v17817_v9 }
 0x616   :  { %13249 = vmatpush2.bf16.msra.mxu0 %v17820_v20  ;;  %13209 = vmatprep.subr.bf16.mxu1 %v17825_v53 }
 0x617   :  { %13250 = vmatprep.subr.bf16.mxu0 %v17828_v33  ;;  %v17864_v33 = vld [vmem:[%s24842_s8 + $0x14a4] ss:$16 sps:$4 sm:$0xff]  }
 0x619   :  { %13210 = vmatpush2.bf16.msra.mxu1 %v17823_v59 }
 0x61a   :  { %13251 = vmatpush2.bf16.msra.mxu0 %v17826_v36  ;;  %13211 = vmatprep.subr.bf16.mxu1 %v17831_v40  ;;  %v17859_v40 = vld [vmem:[%s24842_s8 + $0x12a0] ss:$16 sps:$4 sm:$0xff]  }
 0x61b   :  { %13252 = vmatprep.subr.bf16.mxu0 %v17834_v45 }
 0x61d   :  { %13212 = vmatpush2.bf16.msra.mxu1 %v17829_v27 }
 0x61e   :  { %13253 = vmatpush2.bf16.msra.mxu0 %v17832_v57  ;;  %13213 = vmatprep.subr.bf16.mxu1 %v17837_v58  ;;  %v17862_v57 = vld [vmem:[%s24842_s8 + $0x14a0] ss:$16 sps:$4 sm:$0xff]   ;;  %v17867_v58 = vld [vmem:[%s24842_s8 + $0x1284] ss:$16 sps:$4 sm:$0xff]  }
 0x61f   :  { %13254 = vmatprep.subr.bf16.mxu0 %v17840_v13  ;;  %v17870_v13 = vld [vmem:[%s24842_s8 + $0x1484] ss:$16 sps:$4 sm:$0xff]  }
 0x621   :  { %13214 = vmatpush2.bf16.msra.mxu1 %v17835_v8  ;;  %v17865_v8 = vld [vmem:[%s24842_s8 + $0x1280] ss:$16 sps:$4 sm:$0xff]  }
 0x622   :  { %13255 = vmatpush2.bf16.msra.mxu0 %v17838_v43  ;;  %13215 = vmatprep.subr.bf16.mxu1 %v17843_v51  ;;  %v17873_v43 = vld [vmem:[%s24842_s8 + $0x1264] ss:$16 sps:$4 sm:$0xff]  }
 0x623   :  { %13256 = vmatprep.subr.bf16.mxu0 %v17846_v46  ;;  %v17876_v51 = vld [vmem:[%s24842_s8 + $0x1464] ss:$16 sps:$4 sm:$0xff]   ;;  %v17871_v46 = vld [vmem:[%s24842_s8 + $0x1260] ss:$16 sps:$4 sm:$0xff]  }
 0x625   :  { %13216 = vmatpush2.bf16.msra.mxu1 %v17841_v35  ;;  %v17879_v35 = vld [vmem:[%s24842_s8 + $0x1244] ss:$16 sps:$4 sm:$0xff]  }
 0x626   :  { %13257 = vmatpush2.bf16.msra.mxu0 %v17844_v24  ;;  %13267 = vmatprep.subr.bf16.mxu1 %v17849_v32  ;;  %v17882_v24 = vld [vmem:[%s24842_s8 + $0x1444] ss:$16 sps:$4 sm:$0xff]   ;;  %v17877_v32 = vld [vmem:[%s24842_s8 + $0x1240] ss:$16 sps:$4 sm:$0xff]  }
 0x627   :  { %13308 = vmatprep.subr.bf16.mxu0 %v17852_v16  ;;  %v17885_v16 = vld [vmem:[%s24842_s8 + $0x1224] ss:$16 sps:$4 sm:$0xff]  }
 0x628   :  { %v12973_v54 = vpop.f32.mrf.mxu1  ;;  %13218 = vmatmul.mubr.bf16.vlgmr.msra.gmra.mxu1 %v23193_v4 }
 0x629   :  { %v12974_v26 = vadd.f32 %v12973_v54, %v12933_v3  ;;  %13268 = vmatpush1.bf16.msra.mxu1 %v17847_v38  ;;  %v13014_v29 = vpop.f32.mrf.mxu0  ;;  %13259 = vmatmul.mubr.bf16.vlgmr.msra.gmra.mxu0 %v23203_v21  ;;  %v17883_v3 = vld [vmem:[%s24842_s8 + $0x1220] ss:$16 sps:$4 sm:$0xff]   ;;  %v17897_v54 = vld [vmem:[%s24842_s8 + $0x13e4] ss:$16 sps:$4 sm:$0xff]  }
 0x62a   :  { %v12975_v41 = vpop.f32.mrf.mxu1  ;;  %13309 = vmatpush1.bf16.msra.mxu0 %v17850_v50  ;;  %13269 = vmatprep.subr.bf16.mxu1 %v17855_v14  ;;  %v17886_v38 = vld [vmem:[%s24842_s8 + $0x1420] ss:$16 sps:$4 sm:$0xff]   ;;  %v17891_v50 = vld [vmem:[%s24842_s8 + $0x1204] ss:$16 sps:$4 sm:$0xff]  }
 0x62b   :  { %v12976_v9 = vadd.f32 %v12975_v41, %v12935_v63  ;;  %v23233_v20 = vadd.f32 %v13014_v29, %v12974_v26  ;;  %v13016_v53 = vpop.f32.mrf.mxu0  ;;  %13310 = vmatprep.subr.bf16.mxu0 %v17858_v62  ;;  %13299 = vmatprep.mubr.bf16.mxu1 %v23217_v17  ;;  %v17894_v14 = vld [vmem:[%s24842_s8 + $0x1404] ss:$16 sps:$4 sm:$0xff]   ;;  %v17889_v63 = vld [vmem:[%s24842_s8 + $0x1200] ss:$16 sps:$4 sm:$0xff]  }
 0x62c   :  { %v12977_v59 = vpop.f32.mrf.mxu1  ;;  %13340 = vmatprep.mubr.bf16.mxu0 %v23221_v12  ;;  %v17892_v62 = vld [vmem:[%s24842_s8 + $0x1400] ss:$16 sps:$4 sm:$0xff]   ;;  %v17900_v26 = vld [vmem:[%s24842_s8 + $0x15e4] ss:$16 sps:$4 sm:$0xff]  }
 0x62d   :  { %v23240_v36 = vadd.f32 %v13016_v53, %v12976_v9  ;;  %13270 = vmatpush1.bf16.msra.mxu1 %v17853_v52  ;;  %v13018_v45 = vpop.f32.mrf.mxu0  ;;  %v17895_v29 = vld [vmem:[%s24842_s8 + $0x13e0] ss:$16 sps:$4 sm:$0xff]   ;;  %v17903_v41 = vld [vmem:[%s24842_s8 + $0x13c4] ss:$16 sps:$4 sm:$0xff]  }
 0x62e   :  { %v12978_v27 = vpop.f32.mrf.mxu1  ;;  %13311 = vmatpush1.bf16.msra.mxu0 %v17856_v31  ;;  %13271 = vmatprep.subr.bf16.mxu1 %v17861_v42  ;;  %v17898_v52 = vld [vmem:[%s24842_s8 + $0x15e0] ss:$16 sps:$4 sm:$0xff]   ;;  %v17906_v31 = vld [vmem:[%s24842_s8 + $0x15c4] ss:$16 sps:$4 sm:$0xff]  }
 0x62f   :  { %13312 = vmatprep.subr.bf16.mxu0 %v17864_v33  ;;  %v13019_v0 = vpop.f32.mrf.mxu0  ;;  %v17901_v42 = vld [vmem:[%s24842_s8 + $0x13c0] ss:$16 sps:$4 sm:$0xff]   ;;  %v17909_v53 = vld [vmem:[%s24842_s8 + $0x13a4] ss:$16 sps:$4 sm:$0xff]  }
 0x630   :  { %v17904_v9 = vld [vmem:[%s24842_s8 + $0x15c0] ss:$16 sps:$4 sm:$0xff]   ;;  %v17912_v33 = vld [vmem:[%s24842_s8 + $0x15a4] ss:$16 sps:$4 sm:$0xff]  }
 0x631   :  { %13272 = vmatpush1.bf16.msra.mxu1 %v17859_v40  ;;  %v17907_v59 = vld [vmem:[%s24842_s8 + $0x13a0] ss:$16 sps:$4 sm:$0xff]   ;;  %v17915_v45 = vld [vmem:[%s24842_s8 + $0x1384] ss:$16 sps:$4 sm:$0xff]  }
 0x632   :  { %13313 = vmatpush1.bf16.msra.mxu0 %v17862_v57  ;;  %13273 = vmatprep.subr.bf16.mxu1 %v17867_v58  ;;  %v17910_v40 = vld [vmem:[%s24842_s8 + $0x15a0] ss:$16 sps:$4 sm:$0xff]   ;;  %v17918_v27 = vld [vmem:[%s24842_s8 + $0x1584] ss:$16 sps:$4 sm:$0xff]  }
 0x633   :  { %13314 = vmatprep.subr.bf16.mxu0 %v17870_v13  ;;  %v17913_v57 = vld [vmem:[%s24842_s8 + $0x1380] ss:$16 sps:$4 sm:$0xff]   ;;  %v17921_v13 = vld [vmem:[%s24842_s8 + $0x1364] ss:$16 sps:$4 sm:$0xff]  }
 0x634   :  { %v17916_v58 = vld [vmem:[%s24842_s8 + $0x1580] ss:$16 sps:$4 sm:$0xff]   ;;  %v17924_v0 = vld [vmem:[%s24842_s8 + $0x1564] ss:$16 sps:$4 sm:$0xff]  }
 0x635   :  { %13274 = vmatpush1.bf16.msra.mxu1 %v17865_v8  ;;  %v17919_v8 = vld [vmem:[%s24842_s8 + $0x1360] ss:$16 sps:$4 sm:$0xff]  }
 0x636   :  { %13315 = vmatpush1.bf16.msra.mxu0 %v17868_v15  ;;  %13275 = vmatprep.subr.bf16.mxu1 %v17873_v43  ;;  %v17922_v15 = vld [vmem:[%s24842_s8 + $0x1560] ss:$16 sps:$4 sm:$0xff]   ;;  %v17927_v43 = vld [vmem:[%s24842_s8 + $0x1344] ss:$16 sps:$4 sm:$0xff]  }
 0x637   :  { %13316 = vmatprep.subr.bf16.mxu0 %v17876_v51  ;;  %v17930_v51 = vld [vmem:[%s24842_s8 + $0x1544] ss:$16 sps:$4 sm:$0xff]  }
 0x639   :  { %13276 = vmatpush1.bf16.msra.mxu1 %v17871_v46  ;;  %v17925_v46 = vld [vmem:[%s24842_s8 + $0x1340] ss:$16 sps:$4 sm:$0xff]  }
 0x63a   :  { %13317 = vmatpush1.bf16.msra.mxu0 %v17874_v7  ;;  %13277 = vmatprep.subr.bf16.mxu1 %v17879_v35  ;;  %v17928_v7 = vld [vmem:[%s24842_s8 + $0x1540] ss:$16 sps:$4 sm:$0xff]   ;;  %v17933_v35 = vld [vmem:[%s24842_s8 + $0x1324] ss:$16 sps:$4 sm:$0xff]  }
 0x63b   :  { %13318 = vmatprep.subr.bf16.mxu0 %v17882_v24  ;;  %v17936_v24 = vld [vmem:[%s24842_s8 + $0x1524] ss:$16 sps:$4 sm:$0xff]  }
 0x63d   :  { %13278 = vmatpush1.bf16.msra.mxu1 %v17877_v32  ;;  %v17931_v32 = vld [vmem:[%s24842_s8 + $0x1320] ss:$16 sps:$4 sm:$0xff]  }
 0x63e   :  { %13319 = vmatpush1.bf16.msra.mxu0 %v17880_v56  ;;  %13279 = vmatprep.subr.bf16.mxu1 %v17885_v16  ;;  %v17934_v56 = vld [vmem:[%s24842_s8 + $0x1520] ss:$16 sps:$4 sm:$0xff]   ;;  %v17939_v16 = vld [vmem:[%s24842_s8 + $0x1304] ss:$16 sps:$4 sm:$0xff]  }
 0x63f   :  { %13320 = vmatprep.subr.bf16.mxu0 %v17888_v22  ;;  %v17942_v22 = vld [vmem:[%s24842_s8 + $0x1504] ss:$16 sps:$4 sm:$0xff]  }
 0x641   :  { %13280 = vmatpush1.bf16.msra.mxu1 %v17883_v3  ;;  %v17937_v3 = vld [vmem:[%s24842_s8 + $0x1300] ss:$16 sps:$4 sm:$0xff]  }
 0x642   :  { %13321 = vmatpush1.bf16.msra.mxu0 %v17886_v38  ;;  %13281 = vmatprep.subr.bf16.mxu1 %v17891_v50  ;;  %v17940_v38 = vld [vmem:[%s24842_s8 + $0x1500] ss:$16 sps:$4 sm:$0xff]   ;;  %v17945_v50 = vld [vmem:[%s24842_s8 + $0x16e4] ss:$16 sps:$4 sm:$0xff]  }
 0x643   :  { %13322 = vmatprep.subr.bf16.mxu0 %v17894_v14  ;;  %v17985_v14 = vld [vmem:[%s24842_s8 + $0x1864] ss:$16 sps:$4 sm:$0xff]  }
 0x645   :  { %13282 = vmatpush1.bf16.msra.mxu1 %v17889_v63  ;;  %v23412_v63 = vcombine.high %v23203_v21, %v23203_v21 }
 0x646   :  { %13323 = vmatpush1.bf16.msra.mxu0 %v17892_v62  ;;  %13283 = vmatprep.subr.bf16.mxu1 %v17897_v54  ;;  %v17943_v62 = vld [vmem:[%s24842_s8 + $0x16e0] ss:$16 sps:$4 sm:$0xff]   ;;  %v23419_v54 = vrot.slane %v23175_v25, %v18838_v49 }
 0x647   :  { %13324 = vmatprep.subr.bf16.mxu0 %v17900_v26  ;;  %v17949_v26 = vld [vmem:[%s24842_s8 + $0x16c4] ss:$16 sps:$4 sm:$0xff]  }
 0x649   :  { %13284 = vmatpush2.bf16.msra.mxu1 %v17895_v29  ;;  %v17983_v29 = vld [vmem:[%s24842_s8 + $0x1860] ss:$16 sps:$4 sm:$0xff]  }
 0x64a   :  { %13325 = vmatpush2.bf16.msra.mxu0 %v17898_v52  ;;  %13285 = vmatprep.subr.bf16.mxu1 %v17903_v41  ;;  %v17991_v52 = vld [vmem:[%s24842_s8 + $0x1844] ss:$16 sps:$4 sm:$0xff]   ;;  %v23432_v41 = vcombine.high %v23221_v12, %v23221_v12 }
 0x64b   :  { %13326 = vmatprep.subr.bf16.mxu0 %v17906_v31 }
 0x64d   :  { %13286 = vmatpush2.bf16.msra.mxu1 %v17901_v42 }
 0x64e   :  { %13327 = vmatpush2.bf16.msra.mxu0 %v17904_v9  ;;  %13287 = vmatprep.subr.bf16.mxu1 %v17909_v53  ;;  %v17947_v9 = vld [vmem:[%s24842_s8 + $0x16c0] ss:$16 sps:$4 sm:$0xff]  }
 0x64f   :  { %13328 = vmatprep.subr.bf16.mxu0 %v17912_v33  ;;  %v17952_v33 = vld [vmem:[%s24842_s8 + $0x16a4] ss:$16 sps:$4 sm:$0xff]  }
 0x651   :  { %13288 = vmatpush2.bf16.msra.mxu1 %v17907_v59  ;;  %v17989_v59 = vld [vmem:[%s24842_s8 + $0x1840] ss:$16 sps:$4 sm:$0xff]  }
 0x652   :  { %13329 = vmatpush2.bf16.msra.mxu0 %v17910_v40  ;;  %13289 = vmatprep.subr.bf16.mxu1 %v17915_v45 }
 0x653   :  { %13330 = vmatprep.subr.bf16.mxu0 %v17918_v27  ;;  %v17997_v27 = vld [vmem:[%s24842_s8 + $0x1824] ss:$16 sps:$4 sm:$0xff]  }
 0x655   :  { %13290 = vmatpush2.bf16.msra.mxu1 %v17913_v57 }
 0x656   :  { %13331 = vmatpush2.bf16.msra.mxu0 %v17916_v58  ;;  %13291 = vmatprep.subr.bf16.mxu1 %v17921_v13 }
 0x657   :  { %13332 = vmatprep.subr.bf16.mxu0 %v17924_v0 }
 0x659   :  { %13292 = vmatpush2.bf16.msra.mxu1 %v17919_v8  ;;  %v17955_v8 = vld [vmem:[%s24842_s8 + $0x1684] ss:$16 sps:$4 sm:$0xff]  }
 0x65a   :  { %13333 = vmatpush2.bf16.msra.mxu0 %v17922_v15  ;;  %13293 = vmatprep.subr.bf16.mxu1 %v17927_v43  ;;  %v17995_v15 = vld [vmem:[%s24842_s8 + $0x1820] ss:$16 sps:$4 sm:$0xff]   ;;  %v18003_v43 = vld [vmem:[%s24842_s8 + $0x1804] ss:$16 sps:$4 sm:$0xff]  }
 0x65b   :  { %13334 = vmatprep.subr.bf16.mxu0 %v17930_v51 }
 0x65d   :  { %13294 = vmatpush2.bf16.msra.mxu1 %v17925_v46  ;;  %v17953_v46 = vld [vmem:[%s24842_s8 + $0x1680] ss:$16 sps:$4 sm:$0xff]  }
 0x65e   :  { %13335 = vmatpush2.bf16.msra.mxu0 %v17928_v7  ;;  %13295 = vmatprep.subr.bf16.mxu1 %v17933_v35  ;;  %v17958_v7 = vld [vmem:[%s24842_s8 + $0x1664] ss:$16 sps:$4 sm:$0xff]   ;;  %v18001_v35 = vld [vmem:[%s24842_s8 + $0x1800] ss:$16 sps:$4 sm:$0xff]  }
 0x65f   :  { %13336 = vmatprep.subr.bf16.mxu0 %v17936_v24  ;;  %v15058_v24 = vld.sshfl [vmem:[%s24835_s1 + $0x18] sm:$0x1 pattern:$0x75316420] }
 0x661   :  { %13296 = vmatpush2.bf16.msra.mxu1 %v17931_v32  ;;  %v18009_v32 = vld [vmem:[%s24842_s8 + $0x2ec] ss:$16 sps:$4 sm:$0xff]  }
 0x662   :  { %13337 = vmatpush2.bf16.msra.mxu0 %v17934_v56  ;;  %13297 = vmatprep.subr.bf16.mxu1 %v17939_v16  ;;  %v17956_v56 = vld [vmem:[%s24842_s8 + $0x1660] ss:$16 sps:$4 sm:$0xff]   ;;  %v23487_v16 = vrot.slane %v15058_v24, %v18838_v49  ;;  %v17988_v24 = vld [vmem:[%s24842_s8 + $0x1744] ss:$16 sps:$4 sm:$0xff]  }
 0x663   :  { %13338 = vmatprep.subr.bf16.mxu0 %v17942_v22  ;;  %v17961_v22 = vld [vmem:[%s24842_s8 + $0x1644] ss:$16 sps:$4 sm:$0xff]   ;;  %v17959_v49 = vld [vmem:[%s24842_s8 + $0x1640] ss:$16 sps:$4 sm:$0xff]  }
 0x665   :  { %13298 = vmatpush2.bf16.msra.mxu1 %v17937_v3  ;;  %v18007_v3 = vld [vmem:[%s24842_s8 + $0x2e8] ss:$16 sps:$4 sm:$0xff]  }
 0x666   :  { %13339 = vmatpush2.bf16.msra.mxu0 %v17940_v38  ;;  %13349 = vmatprep.subr.bf16.mxu1 %v17945_v50  ;;  %v18015_v38 = vld [vmem:[%s24842_s8 + $0x2cc] ss:$16 sps:$4 sm:$0xff]   ;;  %v17964_v50 = vld [vmem:[%s24842_s8 + $0x1624] ss:$16 sps:$4 sm:$0xff]  }
 0x667   :  { %13398 = vmatprep.subr.bf16.mxu0 %v17985_v14  ;;  %v18013_v14 = vld [vmem:[%s24842_s8 + $0x2c8] ss:$16 sps:$4 sm:$0xff]  }
 0x668   :  { %v13055_v25 = vpop.f32.mrf.mxu1  ;;  %13300 = vmatmul.mubr.bf16.vlgmr.msra.gmra.mxu1 %v23412_v63 }
 0x669   :  { %v13056_v31 = vadd.f32 %v13055_v25, %v23233_v20  ;;  %13350 = vmatpush1.bf16.msra.mxu1 %v17943_v62  ;;  %v13096_v42 = vpop.f32.mrf.mxu0  ;;  %13341 = vmatmul.mubr.bf16.vlgmr.msra.gmra.mxu0 %v23419_v54  ;;  %v18021_v62 = vld [vmem:[%s24842_s8 + $0x2ac] ss:$16 sps:$4 sm:$0xff]   ;;  %v17965_v25 = vld [vmem:[%s24842_s8 + $0x1600] ss:$16 sps:$4 sm:$0xff]  }
 0x66a   :  { %v13057_v53 = vpop.f32.mrf.mxu1  ;;  %13351 = vmatprep.subr.bf16.mxu1 %v17949_v26  ;;  %13399 = vmatpush1.bf16.msra.mxu0 %v17983_v29  ;;  %v17962_v26 = vld [vmem:[%s24842_s8 + $0x1620] ss:$16 sps:$4 sm:$0xff]   ;;  %v17967_v29 = vld [vmem:[%s24842_s8 + $0x1604] ss:$16 sps:$4 sm:$0xff]  }
 0x66b   :  { %v13058_v20 = vadd.f32 %v13057_v53, %v23240_v36  ;;  %v23447_v40 = vadd.f32 %v13096_v42, %v13056_v31  ;;  %v13098_v45 = vpop.f32.mrf.mxu0  ;;  %13400 = vmatprep.subr.bf16.mxu0 %v17991_v52  ;;  %13381 = vmatprep.mubr.bf16.mxu1 %v23432_v41  ;;  %v17950_v36 = vld [vmem:[%s24842_s8 + $0x16a0] ss:$16 sps:$4 sm:$0xff]   ;;  %v18019_v52 = vld [vmem:[%s24842_s8 + $0x2a8] ss:$16 sps:$4 sm:$0xff]   ;;  %v17970_v31 = vld [vmem:[%s24842_s8 + $0x17e4] ss:$16 sps:$4 sm:$0xff]  }
 0x66c   :  { %v13059_v57 = vpop.f32.mrf.mxu1  ;;  %13422 = vmatprep.mubr.bf16.mxu0 %v18639_v2  ;;  %v18025_v42 = vld [vmem:[%s24842_s8 + $0x288] ss:$16 sps:$4 sm:$0xff]   ;;  %v17968_v53 = vld [vmem:[%s24842_s8 + $0x17e0] ss:$16 sps:$4 sm:$0xff]  }
 0x66d   :  { %v23454_v58 = vadd.f32 %v13098_v45, %v13058_v20  ;;  %13352 = vmatpush1.bf16.msra.mxu1 %v17947_v9  ;;  %v13100_v13 = vpop.f32.mrf.mxu0  ;;  %v18033_v9 = vld [vmem:[%s24842_s8 + $0x26c] ss:$16 sps:$4 sm:$0xff]   ;;  %v17971_v45 = vld [vmem:[%s24842_s8 + $0x17c0] ss:$16 sps:$4 sm:$0xff]   ;;  %v18037_v57 = vld [vmem:[%s24842_s8 + $0x248] ss:$16 sps:$4 sm:$0xff]  }
 0x66e   :  { %v13060_v0 = vpop.f32.mrf.mxu1  ;;  %13353 = vmatprep.subr.bf16.mxu1 %v17952_v33  ;;  %13401 = vmatpush1.bf16.msra.mxu0 %v17989_v59  ;;  %v17973_v33 = vld [vmem:[%s24842_s8 + $0x17c4] ss:$16 sps:$4 sm:$0xff]   ;;  %v18031_v59 = vld [vmem:[%s24842_s8 + $0x268] ss:$16 sps:$4 sm:$0xff]   ;;  %v18039_v20 = vld [vmem:[%s24842_s8 + $0x24c] ss:$16 sps:$4 sm:$0xff]  }
 0x66f   :  { %13402 = vmatprep.subr.bf16.mxu0 %v17997_v27  ;;  %v13101_v51 = vpop.f32.mrf.mxu0  ;;  %v17976_v27 = vld [vmem:[%s24842_s8 + $0x17a4] ss:$16 sps:$4 sm:$0xff]   ;;  %v17974_v13 = vld [vmem:[%s24842_s8 + $0x17a0] ss:$16 sps:$4 sm:$0xff]  }
 0x670   :  { %v17979_v0 = vld [vmem:[%s24842_s8 + $0x1784] ss:$16 sps:$4 sm:$0xff]  }
 0x671   :  { %13354 = vmatpush1.bf16.msra.mxu1 %v17950_v36  ;;  %v18045_v36 = vld [vmem:[%s24842_s8 + $0x22c] ss:$16 sps:$4 sm:$0xff]   ;;  %v17982_v51 = vld [vmem:[%s24842_s8 + $0x1764] ss:$16 sps:$4 sm:$0xff]  }
 0x672   :  { %13355 = vmatprep.subr.bf16.mxu1 %v17955_v8  ;;  %13403 = vmatpush1.bf16.msra.mxu0 %v17995_v15  ;;  %v18043_v8 = vld [vmem:[%s24842_s8 + $0x228] ss:$16 sps:$4 sm:$0xff]   ;;  %v18051_v15 = vld [vmem:[%s24842_s8 + $0x20c] ss:$16 sps:$4 sm:$0xff]  }
 0x673   :  { %13404 = vmatprep.subr.bf16.mxu0 %v18003_v43  ;;  %v17977_v43 = vld [vmem:[%s24842_s8 + $0x1780] ss:$16 sps:$4 sm:$0xff]  }
 0x675   :  { %13356 = vmatpush1.bf16.msra.mxu1 %v17953_v46  ;;  %v18049_v46 = vld [vmem:[%s24842_s8 + $0x208] ss:$16 sps:$4 sm:$0xff]  }
 0x676   :  { %13357 = vmatprep.subr.bf16.mxu1 %v17958_v7  ;;  %13405 = vmatpush1.bf16.msra.mxu0 %v18001_v35  ;;  %v18057_v7 = vld [vmem:[%s24842_s8 + $0x3ec] ss:$16 sps:$4 sm:$0xff]   ;;  %v17980_v35 = vld [vmem:[%s24842_s8 + $0x1760] ss:$16 sps:$4 sm:$0xff]  }
 0x677   :  { %13472 = vmatprep.subr.bf16.mxu0 %v18009_v32  ;;  %v18055_v32 = vld [vmem:[%s24842_s8 + $0x3e8] ss:$16 sps:$4 sm:$0xff]  }
 0x679   :  { %13358 = vmatpush1.bf16.msra.mxu1 %v17956_v56  ;;  %15843 = vmatmul.mubr.msk.bf16.vlgmr.msra.gmra.mxu0 %vm4959_vm0, %v23487_v16  ;;  %v18063_v56 = vld [vmem:[%s24842_s8 + $0x3cc] ss:$16 sps:$4 sm:$0xff]  }
 0x67a   :  { %13359 = vmatprep.subr.bf16.mxu1 %v17961_v22  ;;  %13473 = vmatpush1.bf16.msra.mxu0 %v18007_v3  ;;  %v17986_v22 = vld [vmem:[%s24842_s8 + $0x1740] ss:$16 sps:$4 sm:$0xff]   ;;  %v17994_v3 = vld [vmem:[%s24842_s8 + $0x1724] ss:$16 sps:$4 sm:$0xff]  }
 0x67b   :  { %13474 = vmatprep.subr.bf16.mxu0 %v18015_v38  ;;  %13504 = vmatprep.mubr.bf16.mxu0 %v22287_v48  ;;  %v18027_v48 = vld [vmem:[%s24842_s8 + $0x28c] ss:$16 sps:$4 sm:$0xff]   ;;  %v18061_v38 = vld [vmem:[%s24842_s8 + $0x3c8] ss:$16 sps:$4 sm:$0xff]  }
 0x67d   :  { %13360 = vmatpush1.bf16.msra.mxu1 %v17959_v49  ;;  %v18069_v49 = vld [vmem:[%s24842_s8 + $0x3ac] ss:$16 sps:$4 sm:$0xff]  }
 0x67e   :  { %13361 = vmatprep.subr.bf16.mxu1 %v17964_v50  ;;  %13475 = vmatpush1.bf16.msra.mxu0 %v18013_v14  ;;  %v17992_v50 = vld [vmem:[%s24842_s8 + $0x1720] ss:$16 sps:$4 sm:$0xff]   ;;  %v18000_v14 = vld [vmem:[%s24842_s8 + $0x1704] ss:$16 sps:$4 sm:$0xff]  }
 0x67f   :  { %13476 = vmatprep.subr.bf16.mxu0 %v18021_v62  ;;  %v18067_v62 = vld [vmem:[%s24842_s8 + $0x3a8] ss:$16 sps:$4 sm:$0xff]  }
 0x681   :  { %13362 = vmatpush1.bf16.msra.mxu1 %v17962_v26  ;;  %v18075_v26 = vld [vmem:[%s24842_s8 + $0x38c] ss:$16 sps:$4 sm:$0xff]  }
 0x682   :  { %13363 = vmatprep.subr.bf16.mxu1 %v17967_v29  ;;  %13477 = vmatpush1.bf16.msra.mxu0 %v18019_v52  ;;  %v17998_v29 = vld [vmem:[%s24842_s8 + $0x1700] ss:$16 sps:$4 sm:$0xff]   ;;  %v18006_v52 = vld [vmem:[%s24842_s8 + $0xec] ss:$16 sps:$4 sm:$0xff]  }
 0x683   :  { %13478 = vmatprep.subr.bf16.mxu0 %v18027_v48  ;;  %v18073_v48 = vld [vmem:[%s24842_s8 + $0x388] ss:$16 sps:$4 sm:$0xff]  }
 0x685   :  { %13364 = vmatpush1.bf16.msra.mxu1 %v17965_v25  ;;  %v18081_v25 = vld [vmem:[%s24842_s8 + $0x36c] ss:$16 sps:$4 sm:$0xff]  }
 0x686   :  { %13365 = vmatprep.subr.bf16.mxu1 %v17970_v31  ;;  %13479 = vmatpush1.bf16.msra.mxu0 %v18025_v42  ;;  %v23635_v31 = vcombine.high %v23419_v54, %v23419_v54  ;;  %v18004_v42 = vld [vmem:[%s24842_s8 + $0xe8] ss:$16 sps:$4 sm:$0xff]  }
 0x687   :  { %13480 = vmatprep.subr.bf16.mxu0 %v18033_v9  ;;  %v18012_v9 = vld [vmem:[%s24842_s8 + $0xcc] ss:$16 sps:$4 sm:$0xff]  }
 0x689   :  { %13366 = vmatpush2.bf16.msra.mxu1 %v17968_v53  ;;  %v18079_v53 = vld [vmem:[%s24842_s8 + $0x368] ss:$16 sps:$4 sm:$0xff]  }
 0x68a   :  { %13367 = vmatprep.subr.bf16.mxu1 %v17973_v33  ;;  %13481 = vmatpush1.bf16.msra.mxu0 %v18031_v59  ;;  %v18087_v33 = vld [vmem:[%s24842_s8 + $0x34c] ss:$16 sps:$4 sm:$0xff]  }
 0x68b   :  { %13482 = vmatprep.subr.bf16.mxu0 %v18039_v20 }
 0x68d   :  { %13368 = vmatpush2.bf16.msra.mxu1 %v17971_v45 }
 0x68e   :  { %13369 = vmatprep.subr.bf16.mxu1 %v17976_v27  ;;  %13483 = vmatpush1.bf16.msra.mxu0 %v18037_v57  ;;  %v18010_v27 = vld [vmem:[%s24842_s8 + $0xc8] ss:$16 sps:$4 sm:$0xff]  }
 0x68f   :  { %13484 = vmatprep.subr.bf16.mxu0 %v18045_v36  ;;  %v18018_v36 = vld [vmem:[%s24842_s8 + $0xac] ss:$16 sps:$4 sm:$0xff]  }
 0x691   :  { %13370 = vmatpush2.bf16.msra.mxu1 %v17974_v13  ;;  %v18085_v13 = vld [vmem:[%s24842_s8 + $0x348] ss:$16 sps:$4 sm:$0xff]  }
 0x692   :  { %13371 = vmatprep.subr.bf16.mxu1 %v17979_v0  ;;  %13485 = vmatpush1.bf16.msra.mxu0 %v18043_v8 }
 0x693   :  { %13486 = vmatprep.subr.bf16.mxu0 %v18051_v15 }
 0x695   :  { %13372 = vmatpush2.bf16.msra.mxu1 %v17977_v43 }
 0x696   :  { %13373 = vmatprep.subr.bf16.mxu1 %v17982_v51  ;;  %13487 = vmatpush1.bf16.msra.mxu0 %v18049_v46  ;;  %v18016_v51 = vld [vmem:[%s24842_s8 + $0xa8] ss:$16 sps:$4 sm:$0xff]  }
 0x697   :  { %13488 = vmatprep.subr.bf16.mxu0 %v18057_v7 }
 0x699   :  { %13374 = vmatpush2.bf16.msra.mxu1 %v17980_v35  ;;  %v18091_v35 = vld [vmem:[%s24842_s8 + $0x328] ss:$16 sps:$4 sm:$0xff]  }
 0x69a   :  { %13375 = vmatprep.subr.bf16.mxu1 %v17988_v24  ;;  %13489 = vmatpush2.bf16.msra.mxu0 %v18055_v32  ;;  %v18099_v24 = vld [vmem:[%s24842_s8 + $0x30c] ss:$16 sps:$4 sm:$0xff]  }
 0x69b   :  { %13490 = vmatprep.subr.bf16.mxu0 %v18063_v56  ;;  %v18022_v56 = vld [vmem:[%s24842_s8 + $0x88] ss:$16 sps:$4 sm:$0xff]  }
 0x69d   :  { %13376 = vmatpush2.bf16.msra.mxu1 %v17986_v22  ;;  %v18030_v22 = vld [vmem:[%s24842_s8 + $0x6c] ss:$16 sps:$4 sm:$0xff]  }
 0x69e   :  { %13377 = vmatprep.subr.bf16.mxu1 %v17994_v3  ;;  %13491 = vmatpush2.bf16.msra.mxu0 %v18061_v38  ;;  %v18097_v3 = vld [vmem:[%s24842_s8 + $0x308] ss:$16 sps:$4 sm:$0xff]   ;;  %v18105_v38 = vld [vmem:[%s24842_s8 + $0x6ec] ss:$16 sps:$4 sm:$0xff]  }
 0x69f   :  { %13492 = vmatprep.subr.bf16.mxu0 %v18069_v49  ;;  %v18028_v49 = vld [vmem:[%s24842_s8 + $0x68] ss:$16 sps:$4 sm:$0xff]  }
 0x6a1   :  { %13378 = vmatpush2.bf16.msra.mxu1 %v17992_v50  ;;  %v18036_v50 = vld [vmem:[%s24842_s8 + $0x4c] ss:$16 sps:$4 sm:$0xff]  }
 0x6a2   :  { %13379 = vmatprep.subr.bf16.mxu1 %v18000_v14  ;;  %13493 = vmatpush2.bf16.msra.mxu0 %v18067_v62  ;;  %v18103_v14 = vld [vmem:[%s24842_s8 + $0x6e8] ss:$16 sps:$4 sm:$0xff]   ;;  %v18111_v62 = vld [vmem:[%s24842_s8 + $0x6cc] ss:$16 sps:$4 sm:$0xff]  }
 0x6a3   :  { %13494 = vmatprep.subr.bf16.mxu0 %v18075_v26  ;;  %v18034_v26 = vld [vmem:[%s24842_s8 + $0x48] ss:$16 sps:$4 sm:$0xff]  }
 0x6a5   :  { %13380 = vmatpush2.bf16.msra.mxu1 %v17998_v29  ;;  %v18042_v29 = vld [vmem:[%s24842_s8 + $0x2c] ss:$16 sps:$4 sm:$0xff]  }
 0x6a6   :  { %13431 = vmatprep.subr.bf16.mxu1 %v18006_v52  ;;  %13495 = vmatpush2.bf16.msra.mxu0 %v18073_v48  ;;  %v18109_v52 = vld [vmem:[%s24842_s8 + $0x6c8] ss:$16 sps:$4 sm:$0xff]   ;;  %v18117_v48 = vld [vmem:[%s24842_s8 + $0x6ac] ss:$16 sps:$4 sm:$0xff]  }
 0x6a7   :  { %13496 = vmatprep.subr.bf16.mxu0 %v18081_v25  ;;  %v18048_v25 = vld [vmem:[%s24842_s8 + $0xc] ss:$16 sps:$4 sm:$0xff]  }
 0x6a8   :  { %v13137_v59 = vpop.f32.mrf.mxu1  ;;  %13382 = vmatmul.mubr.bf16.vlgmr.msra.gmra.mxu1 %v23635_v31 }
 0x6a9   :  { %v13138_v20 = vadd.f32 %v13137_v59, %v23447_v40  ;;  %13432 = vmatpush1.bf16.msra.mxu1 %v18004_v42  ;;  %v13178_v45 = vpop.f32.mrf.mxu0  ;;  %13463 = vmatprep.mubr.bf16.mxu1 %v22077_v30  ;;  %v18093_v30 = vld [vmem:[%s24842_s8 + $0x32c] ss:$16 sps:$4 sm:$0xff]   ;;  %v18115_v42 = vld [vmem:[%s24842_s8 + $0x6a8] ss:$16 sps:$4 sm:$0xff]  }
 0x6aa   :  { %v13139_v57 = vpop.f32.mrf.mxu1  ;;  %13433 = vmatprep.subr.bf16.mxu1 %v18012_v9  ;;  %13497 = vmatpush2.bf16.msra.mxu0 %v18079_v53  ;;  %v18046_v9 = vld [vmem:[%s24842_s8 + $0x8] ss:$16 sps:$4 sm:$0xff]   ;;  %v18054_v53 = vld [vmem:[%s24842_s8 + $0x1ec] ss:$16 sps:$4 sm:$0xff]  }
 0x6ab   :  { %v13140_v40 = vadd.f32 %v13139_v57, %v23454_v58  ;;  %v23662_v0 = vadd.f32 %v13178_v45, %v13138_v20  ;;  %v13180_v8 = vpop.f32.mrf.mxu0  ;;  %13498 = vmatprep.subr.bf16.mxu0 %v18087_v33  ;;  %v18024_v58 = vld [vmem:[%s24842_s8 + $0x8c] ss:$16 sps:$4 sm:$0xff]   ;;  %v18121_v33 = vld [vmem:[%s24842_s8 + $0x688] ss:$16 sps:$4 sm:$0xff]  }
 0x6ac   :  { %v13141_v15 = vpop.f32.mrf.mxu1  ;;  %v18129_v59 = vld [vmem:[%s24842_s8 + $0x66c] ss:$16 sps:$4 sm:$0xff]   ;;  %v18052_v20 = vld [vmem:[%s24842_s8 + $0x1e8] ss:$16 sps:$4 sm:$0xff]  }
 0x6ad   :  { %v23667_v43 = vadd.f32 %v13180_v8, %v13140_v40  ;;  %13434 = vmatpush1.bf16.msra.mxu1 %v18010_v27  ;;  %v13182_v46 = vpop.f32.mrf.mxu0  ;;  %v18060_v45 = vld [vmem:[%s24842_s8 + $0x1cc] ss:$16 sps:$4 sm:$0xff]   ;;  %v18127_v27 = vld [vmem:[%s24842_s8 + $0x668] ss:$16 sps:$4 sm:$0xff]  }
 0x6ae   :  { %v13142_v7 = vpop.f32.mrf.mxu1  ;;  %13435 = vmatprep.subr.bf16.mxu1 %v18018_v36  ;;  %13499 = vmatpush2.bf16.msra.mxu0 %v18085_v13  ;;  %v18135_v57 = vld [vmem:[%s24842_s8 + $0x64c] ss:$16 sps:$4 sm:$0xff]   ;;  %v18058_v36 = vld [vmem:[%s24842_s8 + $0x1c8] ss:$16 sps:$4 sm:$0xff]  }
 0x6af   :  { %13500 = vmatprep.subr.bf16.mxu0 %v18093_v30  ;;  %v13183_v32 = vpop.f32.mrf.mxu0  ;;  %v18066_v13 = vld [vmem:[%s24842_s8 + $0x1ac] ss:$16 sps:$4 sm:$0xff]   ;;  %v18133_v40 = vld [vmem:[%s24842_s8 + $0x648] ss:$16 sps:$4 sm:$0xff]  }
 0x6b0   :  { %v18141_v8 = vld [vmem:[%s24842_s8 + $0x62c] ss:$16 sps:$4 sm:$0xff]   ;;  %v18064_v30 = vld [vmem:[%s24842_s8 + $0x1a8] ss:$16 sps:$4 sm:$0xff]  }
 0x6b1   :  { %13436 = vmatpush1.bf16.msra.mxu1 %v18016_v51  ;;  %v18072_v15 = vld [vmem:[%s24842_s8 + $0x18c] ss:$16 sps:$4 sm:$0xff]   ;;  %v18139_v51 = vld [vmem:[%s24842_s8 + $0x628] ss:$16 sps:$4 sm:$0xff]  }
 0x6b2   :  { %13437 = vmatprep.subr.bf16.mxu1 %v18024_v58  ;;  %13501 = vmatpush2.bf16.msra.mxu0 %v18091_v35  ;;  %v18147_v46 = vld [vmem:[%s24842_s8 + $0x60c] ss:$16 sps:$4 sm:$0xff]   ;;  %v18070_v7 = vld [vmem:[%s24842_s8 + $0x188] ss:$16 sps:$4 sm:$0xff]  }
 0x6b3   :  { %13502 = vmatprep.subr.bf16.mxu0 %v18099_v24  ;;  %v18078_v58 = vld [vmem:[%s24842_s8 + $0x16c] ss:$16 sps:$4 sm:$0xff]   ;;  %v18145_v35 = vld [vmem:[%s24842_s8 + $0x608] ss:$16 sps:$4 sm:$0xff]  }
 0x6b4   :  { %v18153_v24 = vld [vmem:[%s24842_s8 + $0x7ec] ss:$16 sps:$4 sm:$0xff]   ;;  %v18076_v32 = vld [vmem:[%s24842_s8 + $0x168] ss:$16 sps:$4 sm:$0xff]  }
 0x6b5   :  { %13438 = vmatpush1.bf16.msra.mxu1 %v18022_v56  ;;  %v18084_v56 = vld [vmem:[%s24842_s8 + $0x14c] ss:$16 sps:$4 sm:$0xff]  }
 0x6b6   :  { %13439 = vmatprep.subr.bf16.mxu1 %v18030_v22  ;;  %13503 = vmatpush2.bf16.msra.mxu0 %v18097_v3  ;;  %v18151_v22 = vld [vmem:[%s24842_s8 + $0x7e8] ss:$16 sps:$4 sm:$0xff]   ;;  %v18159_v3 = vld [vmem:[%s24842_s8 + $0x7cc] ss:$16 sps:$4 sm:$0xff]  }
 0x6b7   :  { %13554 = vmatprep.subr.bf16.mxu0 %v18105_v38  ;;  %v18082_v38 = vld [vmem:[%s24842_s8 + $0x148] ss:$16 sps:$4 sm:$0xff]  }
 0x6b9   :  { %13440 = vmatpush1.bf16.msra.mxu1 %v18028_v49  ;;  %13505 = vmatmul.mubr.bf16.vlgmr.msra.gmra.mxu0 %v22487_v55  ;;  %v18040_v55 = vld [vmem:[%s24842_s8 + $0x28] ss:$16 sps:$4 sm:$0xff]   ;;  %v18090_v49 = vld [vmem:[%s24842_s8 + $0x12c] ss:$16 sps:$4 sm:$0xff]  }
 0x6ba   :  { %13441 = vmatprep.subr.bf16.mxu1 %v18036_v50  ;;  %13555 = vmatpush1.bf16.msra.mxu0 %v18103_v14  ;;  %v18157_v50 = vld [vmem:[%s24842_s8 + $0x7c8] ss:$16 sps:$4 sm:$0xff]   ;;  %v18165_v14 = vld [vmem:[%s24842_s8 + $0x7ac] ss:$16 sps:$4 sm:$0xff]  }
 0x6bb   :  { %13556 = vmatprep.subr.bf16.mxu0 %v18111_v62  ;;  %13586 = vmatprep.mubr.bf16.mxu0 %v22509_v5  ;;  %v18123_v5 = vld [vmem:[%s24842_s8 + $0x68c] ss:$16 sps:$4 sm:$0xff]   ;;  %v18088_v62 = vld [vmem:[%s24842_s8 + $0x128] ss:$16 sps:$4 sm:$0xff]  }
 0x6bd   :  { %13442 = vmatpush1.bf16.msra.mxu1 %v18034_v26  ;;  %v18096_v26 = vld [vmem:[%s24842_s8 + $0x10c] ss:$16 sps:$4 sm:$0xff]  }
 0x6be   :  { %13443 = vmatprep.subr.bf16.mxu1 %v18042_v29  ;;  %13557 = vmatpush1.bf16.msra.mxu0 %v18109_v52  ;;  %v18163_v29 = vld [vmem:[%s24842_s8 + $0x7a8] ss:$16 sps:$4 sm:$0xff]   ;;  %v18171_v52 = vld [vmem:[%s24842_s8 + $0x78c] ss:$16 sps:$4 sm:$0xff]  }
 0x6bf   :  { %13558 = vmatprep.subr.bf16.mxu0 %v18117_v48  ;;  %v18094_v48 = vld [vmem:[%s24842_s8 + $0x108] ss:$16 sps:$4 sm:$0xff]  }
 0x6c1   :  { %13444 = vmatpush1.bf16.msra.mxu1 %v18040_v55  ;;  %v18102_v55 = vld [vmem:[%s24842_s8 + $0x4ec] ss:$16 sps:$4 sm:$0xff]  }
 0x6c2   :  { %13445 = vmatprep.subr.bf16.mxu1 %v18048_v25  ;;  %13559 = vmatpush1.bf16.msra.mxu0 %v18115_v42  ;;  %v18169_v25 = vld [vmem:[%s24842_s8 + $0x788] ss:$16 sps:$4 sm:$0xff]   ;;  %v18177_v42 = vld [vmem:[%s24842_s8 + $0x76c] ss:$16 sps:$4 sm:$0xff]  }
 0x6c3   :  { %13560 = vmatprep.subr.bf16.mxu0 %v18123_v5  ;;  %v18100_v5 = vld [vmem:[%s24842_s8 + $0x4e8] ss:$16 sps:$4 sm:$0xff]  }
 0x6c5   :  { %13446 = vmatpush1.bf16.msra.mxu1 %v18046_v9  ;;  %v18108_v9 = vld [vmem:[%s24842_s8 + $0x4cc] ss:$16 sps:$4 sm:$0xff]  }
 0x6c6   :  { %13447 = vmatprep.subr.bf16.mxu1 %v18054_v53  ;;  %13561 = vmatpush1.bf16.msra.mxu0 %v18121_v33  ;;  %v18175_v53 = vld [vmem:[%s24842_s8 + $0x768] ss:$16 sps:$4 sm:$0xff]   ;;  %v18183_v33 = vld [vmem:[%s24842_s8 + $0x74c] ss:$16 sps:$4 sm:$0xff]  }
 0x6c7   :  { %13562 = vmatprep.subr.bf16.mxu0 %v18129_v59 }
 0x6c9   :  { %13448 = vmatpush2.bf16.msra.mxu1 %v18052_v20 }
 0x6ca   :  { %13449 = vmatprep.subr.bf16.mxu1 %v18060_v45  ;;  %13563 = vmatpush1.bf16.msra.mxu0 %v18127_v27  ;;  %v18106_v27 = vld [vmem:[%s24842_s8 + $0x4c8] ss:$16 sps:$4 sm:$0xff]  }
 0x6cb   :  { %13564 = vmatprep.subr.bf16.mxu0 %v18135_v57 }
 0x6cd   :  { %13450 = vmatpush2.bf16.msra.mxu1 %v18058_v36  ;;  %v18114_v36 = vld [vmem:[%s24842_s8 + $0x4ac] ss:$16 sps:$4 sm:$0xff]  }
 0x6ce   :  { %13451 = vmatprep.subr.bf16.mxu1 %v18066_v13  ;;  %13565 = vmatpush1.bf16.msra.mxu0 %v18133_v40 }
 0x6cf   :  { %13566 = vmatprep.subr.bf16.mxu0 %v18141_v8 }
 0x6d1   :  { %13452 = vmatpush2.bf16.msra.mxu1 %v18064_v30 }
 0x6d2   :  { %13453 = vmatprep.subr.bf16.mxu1 %v18072_v15  ;;  %13567 = vmatpush1.bf16.msra.mxu0 %v18139_v51  ;;  %v18112_v15 = vld [vmem:[%s24842_s8 + $0x4a8] ss:$16 sps:$4 sm:$0xff]  }
 0x6d3   :  { %13568 = vmatprep.subr.bf16.mxu0 %v18147_v46 }
 0x6d5   :  { %13454 = vmatpush2.bf16.msra.mxu1 %v18070_v7  ;;  %v18187_v7 = vld [vmem:[%s24842_s8 + $0x728] ss:$16 sps:$4 sm:$0xff]  }
 0x6d6   :  { %13455 = vmatprep.subr.bf16.mxu1 %v18078_v58  ;;  %13569 = vmatpush1.bf16.msra.mxu0 %v18145_v35  ;;  %v18195_v58 = vld [vmem:[%s24842_s8 + $0x70c] ss:$16 sps:$4 sm:$0xff]  }
 0x6d7   :  { %13570 = vmatprep.subr.bf16.mxu0 %v18153_v24  ;;  %v18118_v24 = vld [vmem:[%s24842_s8 + $0x488] ss:$16 sps:$4 sm:$0xff]  }
 0x6d9   :  { %13456 = vmatpush2.bf16.msra.mxu1 %v18076_v32  ;;  %v18126_v32 = vld [vmem:[%s24842_s8 + $0x46c] ss:$16 sps:$4 sm:$0xff]  }
 0x6da   :  { %13457 = vmatprep.subr.bf16.mxu1 %v18084_v56  ;;  %13571 = vmatpush2.bf16.msra.mxu0 %v18151_v22  ;;  %v18193_v56 = vld [vmem:[%s24842_s8 + $0x708] ss:$16 sps:$4 sm:$0xff]   ;;  %v18201_v22 = vld [vmem:[%s24842_s8 + $0xaec] ss:$16 sps:$4 sm:$0xff]  }
 0x6db   :  { %13572 = vmatprep.subr.bf16.mxu0 %v18159_v3  ;;  %v18124_v3 = vld [vmem:[%s24842_s8 + $0x468] ss:$16 sps:$4 sm:$0xff]  }
 0x6dd   :  { %13458 = vmatpush2.bf16.msra.mxu1 %v18082_v38  ;;  %v18132_v38 = vld [vmem:[%s24842_s8 + $0x44c] ss:$16 sps:$4 sm:$0xff]  }
 0x6de   :  { %13459 = vmatprep.subr.bf16.mxu1 %v18090_v49  ;;  %13573 = vmatpush2.bf16.msra.mxu0 %v18157_v50  ;;  %v18199_v49 = vld [vmem:[%s24842_s8 + $0xae8] ss:$16 sps:$4 sm:$0xff]   ;;  %v18207_v50 = vld [vmem:[%s24842_s8 + $0xacc] ss:$16 sps:$4 sm:$0xff]  }
 0x6df   :  { %13574 = vmatprep.subr.bf16.mxu0 %v18165_v14  ;;  %v18130_v14 = vld [vmem:[%s24842_s8 + $0x448] ss:$16 sps:$4 sm:$0xff]  }
 0x6e1   :  { %13460 = vmatpush2.bf16.msra.mxu1 %v18088_v62  ;;  %v18138_v62 = vld [vmem:[%s24842_s8 + $0x42c] ss:$16 sps:$4 sm:$0xff]  }
 0x6e2   :  { %13461 = vmatprep.subr.bf16.mxu1 %v18096_v26  ;;  %13575 = vmatpush2.bf16.msra.mxu0 %v18163_v29  ;;  %v18205_v26 = vld [vmem:[%s24842_s8 + $0xac8] ss:$16 sps:$4 sm:$0xff]   ;;  %v18213_v29 = vld [vmem:[%s24842_s8 + $0xaac] ss:$16 sps:$4 sm:$0xff]  }
 0x6e3   :  { %13576 = vmatprep.subr.bf16.mxu0 %v18171_v52  ;;  %v18144_v52 = vld [vmem:[%s24842_s8 + $0x40c] ss:$16 sps:$4 sm:$0xff]  }
 0x6e5   :  { %13462 = vmatpush2.bf16.msra.mxu1 %v18094_v48  ;;  %v18211_v48 = vld [vmem:[%s24842_s8 + $0xaa8] ss:$16 sps:$4 sm:$0xff]  }
 0x6e6   :  { %13513 = vmatprep.subr.bf16.mxu1 %v18102_v55  ;;  %13577 = vmatpush2.bf16.msra.mxu0 %v18169_v25  ;;  %v18142_v55 = vld [vmem:[%s24842_s8 + $0x408] ss:$16 sps:$4 sm:$0xff]   ;;  %v18150_v25 = vld [vmem:[%s24842_s8 + $0x5ec] ss:$16 sps:$4 sm:$0xff]  }
 0x6e7   :  { %13578 = vmatprep.subr.bf16.mxu0 %v18177_v42  ;;  %v18217_v42 = vld [vmem:[%s24842_s8 + $0xa88] ss:$16 sps:$4 sm:$0xff]  }
 0x6e8   :  { %v13219_v59 = vpop.f32.mrf.mxu1  ;;  %13464 = vmatmul.mubr.bf16.vlgmr.msra.gmra.mxu1 %v22274_v37  ;;  %v18181_v37 = vld [vmem:[%s24842_s8 + $0x748] ss:$16 sps:$4 sm:$0xff]  }
 0x6e9   :  { %v13220_v20 = vadd.f32 %v13219_v59, %v23662_v0  ;;  %13514 = vmatpush1.bf16.msra.mxu1 %v18100_v5  ;;  %v13260_v45 = vpop.f32.mrf.mxu0  ;;  %13545 = vmatprep.mubr.bf16.mxu1 %v22291_v11  ;;  %v18189_v11 = vld [vmem:[%s24842_s8 + $0x72c] ss:$16 sps:$4 sm:$0xff]  }
 0x6ea   :  { %v13221_v57 = vpop.f32.mrf.mxu1  ;;  %13515 = vmatprep.subr.bf16.mxu1 %v18108_v9  ;;  %13579 = vmatpush2.bf16.msra.mxu0 %v18175_v53  ;;  %v18225_v5 = vld [vmem:[%s24842_s8 + $0xa6c] ss:$16 sps:$4 sm:$0xff]   ;;  %v18148_v9 = vld [vmem:[%s24842_s8 + $0x5e8] ss:$16 sps:$4 sm:$0xff]  }
 0x6eb   :  { %v13222_v0 = vadd.f32 %v13221_v57, %v23667_v43  ;;  %v23864_v13 = vadd.f32 %v13260_v45, %v13220_v20  ;;  %v13262_v40 = vpop.f32.mrf.mxu0  ;;  %13580 = vmatprep.subr.bf16.mxu0 %v18183_v33  ;;  %v18120_v43 = vld [vmem:[%s24842_s8 + $0x48c] ss:$16 sps:$4 sm:$0xff]   ;;  %v18223_v33 = vld [vmem:[%s24842_s8 + $0xa68] ss:$16 sps:$4 sm:$0xff]  }
 0x6ec   :  { %v13223_v8 = vpop.f32.mrf.mxu1  ;;  %v18156_v53 = vld [vmem:[%s24842_s8 + $0x5cc] ss:$16 sps:$4 sm:$0xff]   ;;  %v18154_v20 = vld [vmem:[%s24842_s8 + $0x5c8] ss:$16 sps:$4 sm:$0xff]  }
 0x6ed   :  { %v23869_v30 = vadd.f32 %v13262_v40, %v13222_v0  ;;  %13516 = vmatpush1.bf16.msra.mxu1 %v18106_v27  ;;  %v13264_v51 = vpop.f32.mrf.mxu0  ;;  %v18231_v59 = vld [vmem:[%s24842_s8 + $0xa4c] ss:$16 sps:$4 sm:$0xff]   ;;  %v18229_v27 = vld [vmem:[%s24842_s8 + $0xa48] ss:$16 sps:$4 sm:$0xff]  }
 0x6ee   :  { %v13224_v46 = vpop.f32.mrf.mxu1  ;;  %13517 = vmatprep.subr.bf16.mxu1 %v18114_v36  ;;  %13581 = vmatpush2.bf16.msra.mxu0 %v18181_v37  ;;  %v18162_v45 = vld [vmem:[%s24842_s8 + $0x5ac] ss:$16 sps:$4 sm:$0xff]   ;;  %v18160_v36 = vld [vmem:[%s24842_s8 + $0x5a8] ss:$16 sps:$4 sm:$0xff]  }
 0x6ef   :  { %13582 = vmatprep.subr.bf16.mxu0 %v18189_v11  ;;  %v13265_v35 = vpop.f32.mrf.mxu0  ;;  %v18237_v57 = vld [vmem:[%s24842_s8 + $0xa2c] ss:$16 sps:$4 sm:$0xff]   ;;  %v18235_v0 = vld [vmem:[%s24842_s8 + $0xa28] ss:$16 sps:$4 sm:$0xff]  }
 0x6f0   :  { %v18168_v37 = vld [vmem:[%s24842_s8 + $0x58c] ss:$16 sps:$4 sm:$0xff]   ;;  %v18166_v11 = vld [vmem:[%s24842_s8 + $0x588] ss:$16 sps:$4 sm:$0xff]  }
 0x6f1   :  { %13518 = vmatpush1.bf16.msra.mxu1 %v18112_v15  ;;  %v18243_v40 = vld [vmem:[%s24842_s8 + $0xa0c] ss:$16 sps:$4 sm:$0xff]   ;;  %v18241_v15 = vld [vmem:[%s24842_s8 + $0xa08] ss:$16 sps:$4 sm:$0xff]  }
 0x6f2   :  { %13519 = vmatprep.subr.bf16.mxu1 %v18120_v43  ;;  %13583 = vmatpush2.bf16.msra.mxu0 %v18187_v7  ;;  %v18174_v8 = vld [vmem:[%s24842_s8 + $0x56c] ss:$16 sps:$4 sm:$0xff]   ;;  %v18172_v46 = vld [vmem:[%s24842_s8 + $0x568] ss:$16 sps:$4 sm:$0xff]  }
 0x6f3   :  { %13584 = vmatprep.subr.bf16.mxu0 %v18195_v58  ;;  %v18249_v51 = vld [vmem:[%s24842_s8 + $0xbec] ss:$16 sps:$4 sm:$0xff]   ;;  %v18247_v7 = vld [vmem:[%s24842_s8 + $0xbe8] ss:$16 sps:$4 sm:$0xff]  }
 0x6f4   :  { %v18180_v43 = vld [vmem:[%s24842_s8 + $0x54c] ss:$16 sps:$4 sm:$0xff]   ;;  %v18178_v35 = vld [vmem:[%s24842_s8 + $0x548] ss:$16 sps:$4 sm:$0xff]  }
 0x6f5   :  { %13520 = vmatpush1.bf16.msra.mxu1 %v18118_v24  ;;  %v18255_v58 = vld [vmem:[%s24842_s8 + $0xbcc] ss:$16 sps:$4 sm:$0xff]  }
 0x6f6   :  { %13521 = vmatprep.subr.bf16.mxu1 %v18126_v32  ;;  %13585 = vmatpush2.bf16.msra.mxu0 %v18193_v56  ;;  %v18186_v24 = vld [vmem:[%s24842_s8 + $0x52c] ss:$16 sps:$4 sm:$0xff]   ;;  %v18253_v32 = vld [vmem:[%s24842_s8 + $0xbc8] ss:$16 sps:$4 sm:$0xff]  }
 0x6f7   :  { %13636 = vmatprep.subr.bf16.mxu0 %v18201_v22  ;;  %v18261_v56 = vld [vmem:[%s24842_s8 + $0xbac] ss:$16 sps:$4 sm:$0xff]   ;;  %v18184_v22 = vld [vmem:[%s24842_s8 + $0x528] ss:$16 sps:$4 sm:$0xff]  }
 0x6f9   :  { %13522 = vmatpush1.bf16.msra.mxu1 %v18124_v3  ;;  %13587 = vmatmul.mubr.bf16.vlgmr.msra.gmra.mxu0 %v22716_v39  ;;  %v18136_v39 = vld [vmem:[%s24842_s8 + $0x428] ss:$16 sps:$4 sm:$0xff]   ;;  %v18192_v3 = vld [vmem:[%s24842_s8 + $0x50c] ss:$16 sps:$4 sm:$0xff]  }
 0x6fa   :  { %13523 = vmatprep.subr.bf16.mxu1 %v18132_v38  ;;  %13637 = vmatpush1.bf16.msra.mxu0 %v18199_v49  ;;  %v18259_v38 = vld [vmem:[%s24842_s8 + $0xba8] ss:$16 sps:$4 sm:$0xff]   ;;  %v18267_v49 = vld [vmem:[%s24842_s8 + $0xb8c] ss:$16 sps:$4 sm:$0xff]  }
 0x6fb   :  { %13638 = vmatprep.subr.bf16.mxu0 %v18207_v50  ;;  %13668 = vmatprep.mubr.bf16.mxu0 %v22741_v61  ;;  %v18219_v61 = vld [vmem:[%s24842_s8 + $0xa8c] ss:$16 sps:$4 sm:$0xff]   ;;  %v18190_v50 = vld [vmem:[%s24842_s8 + $0x508] ss:$16 sps:$4 sm:$0xff]  }
 0x6fd   :  { %13524 = vmatpush1.bf16.msra.mxu1 %v18130_v14  ;;  %v18198_v14 = vld [vmem:[%s24842_s8 + $0x8ec] ss:$16 sps:$4 sm:$0xff]  }
 0x6fe   :  { %13525 = vmatprep.subr.bf16.mxu1 %v18138_v62  ;;  %13639 = vmatpush1.bf16.msra.mxu0 %v18205_v26  ;;  %v18265_v62 = vld [vmem:[%s24842_s8 + $0xb88] ss:$16 sps:$4 sm:$0xff]   ;;  %v18273_v26 = vld [vmem:[%s24842_s8 + $0xb6c] ss:$16 sps:$4 sm:$0xff]  }
 0x6ff   :  { %13640 = vmatprep.subr.bf16.mxu0 %v18213_v29  ;;  %v18196_v29 = vld [vmem:[%s24842_s8 + $0x8e8] ss:$16 sps:$4 sm:$0xff]  }
 0x701   :  { %13526 = vmatpush1.bf16.msra.mxu1 %v18136_v39  ;;  %v18204_v39 = vld [vmem:[%s24842_s8 + $0x8cc] ss:$16 sps:$4 sm:$0xff]  }
 0x702   :  { %13527 = vmatprep.subr.bf16.mxu1 %v18144_v52  ;;  %13641 = vmatpush1.bf16.msra.mxu0 %v18211_v48  ;;  %v18271_v52 = vld [vmem:[%s24842_s8 + $0xb68] ss:$16 sps:$4 sm:$0xff]   ;;  %v18279_v48 = vld [vmem:[%s24842_s8 + $0xb4c] ss:$16 sps:$4 sm:$0xff]  }
 0x703   :  { %13642 = vmatprep.subr.bf16.mxu0 %v18219_v61 }
 0x705   :  { %13528 = vmatpush1.bf16.msra.mxu1 %v18142_v55 }
 0x706   :  { %13529 = vmatprep.subr.bf16.mxu1 %v18150_v25  ;;  %13643 = vmatpush1.bf16.msra.mxu0 %v18217_v42  ;;  %v18202_v42 = vld [vmem:[%s24842_s8 + $0x8c8] ss:$16 sps:$4 sm:$0xff]  }
 0x707   :  { %13644 = vmatprep.subr.bf16.mxu0 %v18225_v5 }
 0x709   :  { %13530 = vmatpush2.bf16.msra.mxu1 %v18148_v9  ;;  %v18210_v9 = vld [vmem:[%s24842_s8 + $0x8ac] ss:$16 sps:$4 sm:$0xff]  }
 0x70a   :  { %13531 = vmatprep.subr.bf16.mxu1 %v18156_v53  ;;  %13645 = vmatpush1.bf16.msra.mxu0 %v18223_v33 }
 0x70b   :  { %13646 = vmatprep.subr.bf16.mxu0 %v18231_v59 }
 0x70d   :  { %13532 = vmatpush2.bf16.msra.mxu1 %v18154_v20 }
 0x70e   :  { %13533 = vmatprep.subr.bf16.mxu1 %v18162_v45  ;;  %13647 = vmatpush1.bf16.msra.mxu0 %v18229_v27  ;;  %v18208_v45 = vld [vmem:[%s24842_s8 + $0x8a8] ss:$16 sps:$4 sm:$0xff]  }
 0x70f   :  { %13648 = vmatprep.subr.bf16.mxu0 %v18237_v57 }
 0x711   :  { %13534 = vmatpush2.bf16.msra.mxu1 %v18160_v36  ;;  %v18283_v36 = vld [vmem:[%s24842_s8 + $0xb28] ss:$16 sps:$4 sm:$0xff]  }
 0x712   :  { %13535 = vmatprep.subr.bf16.mxu1 %v18168_v37  ;;  %13649 = vmatpush1.bf16.msra.mxu0 %v18235_v0  ;;  %v18291_v37 = vld [vmem:[%s24842_s8 + $0xb0c] ss:$16 sps:$4 sm:$0xff]  }
 0x713   :  { %13650 = vmatprep.subr.bf16.mxu0 %v18243_v40  ;;  %v18214_v40 = vld [vmem:[%s24842_s8 + $0x888] ss:$16 sps:$4 sm:$0xff]  }
 0x715   :  { %13536 = vmatpush2.bf16.msra.mxu1 %v18166_v11  ;;  %v18222_v11 = vld [vmem:[%s24842_s8 + $0x86c] ss:$16 sps:$4 sm:$0xff]  }
 0x716   :  { %13537 = vmatprep.subr.bf16.mxu1 %v18174_v8  ;;  %13651 = vmatpush1.bf16.msra.mxu0 %v18241_v15  ;;  %v18289_v8 = vld [vmem:[%s24842_s8 + $0xb08] ss:$16 sps:$4 sm:$0xff]   ;;  %v18297_v15 = vld [vmem:[%s24842_s8 + $0xeec] ss:$16 sps:$4 sm:$0xff]  }
 0x717   :  { %13652 = vmatprep.subr.bf16.mxu0 %v18249_v51  ;;  %v18220_v51 = vld [vmem:[%s24842_s8 + $0x868] ss:$16 sps:$4 sm:$0xff]  }
 0x719   :  { %13538 = vmatpush2.bf16.msra.mxu1 %v18172_v46  ;;  %v18228_v46 = vld [vmem:[%s24842_s8 + $0x84c] ss:$16 sps:$4 sm:$0xff]  }
 0x71a   :  { %13539 = vmatprep.subr.bf16.mxu1 %v18180_v43  ;;  %13653 = vmatpush2.bf16.msra.mxu0 %v18247_v7  ;;  %v18295_v43 = vld [vmem:[%s24842_s8 + $0xee8] ss:$16 sps:$4 sm:$0xff]   ;;  %v18303_v7 = vld [vmem:[%s24842_s8 + $0xecc] ss:$16 sps:$4 sm:$0xff]  }
 0x71b   :  { %13654 = vmatprep.subr.bf16.mxu0 %v18255_v58  ;;  %v18226_v58 = vld [vmem:[%s24842_s8 + $0x848] ss:$16 sps:$4 sm:$0xff]  }
 0x71d   :  { %13540 = vmatpush2.bf16.msra.mxu1 %v18178_v35 }
 0x71e   :  { %13541 = vmatprep.subr.bf16.mxu1 %v18186_v24  ;;  %13655 = vmatpush2.bf16.msra.mxu0 %v18253_v32  ;;  %v18234_v24 = vld [vmem:[%s24842_s8 + $0x82c] ss:$16 sps:$4 sm:$0xff]   ;;  %v18301_v32 = vld [vmem:[%s24842_s8 + $0xec8] ss:$16 sps:$4 sm:$0xff]  }
 0x71f   :  { %13656 = vmatprep.subr.bf16.mxu0 %v18261_v56 }
 0x721   :  { %13542 = vmatpush2.bf16.msra.mxu1 %v18184_v22  ;;  %v18309_v22 = vld [vmem:[%s24842_s8 + $0xeac] ss:$16 sps:$4 sm:$0xff]  }
 0x722   :  { %13543 = vmatprep.subr.bf16.mxu1 %v18192_v3  ;;  %13657 = vmatpush2.bf16.msra.mxu0 %v18259_v38  ;;  %v18240_v38 = vld [vmem:[%s24842_s8 + $0x80c] ss:$16 sps:$4 sm:$0xff]  }
 0x723   :  { %13658 = vmatprep.subr.bf16.mxu0 %v18267_v49  ;;  %v18307_v49 = vld [vmem:[%s24842_s8 + $0xea8] ss:$16 sps:$4 sm:$0xff]  }
 0x725   :  { %13544 = vmatpush2.bf16.msra.mxu1 %v18190_v50 }
 0x726   :  { %13595 = vmatprep.subr.bf16.mxu1 %v18198_v14  ;;  %13659 = vmatpush2.bf16.msra.mxu0 %v18265_v62  ;;  %v18238_v14 = vld [vmem:[%s24842_s8 + $0x808] ss:$16 sps:$4 sm:$0xff]   ;;  %v18246_v62 = vld [vmem:[%s24842_s8 + $0x9ec] ss:$16 sps:$4 sm:$0xff]  }
 0x727   :  { %13660 = vmatprep.subr.bf16.mxu0 %v18273_v26  ;;  %v18313_v26 = vld [vmem:[%s24842_s8 + $0xe88] ss:$16 sps:$4 sm:$0xff]  }
 0x728   :  { %v13301_v61 = vpop.f32.mrf.mxu1  ;;  %13546 = vmatmul.mubr.bf16.vlgmr.msra.gmra.mxu1 %v22496_v10  ;;  %v18277_v10 = vld [vmem:[%s24842_s8 + $0xb48] ss:$16 sps:$4 sm:$0xff]  }
 0x729   :  { %v13302_v55 = vadd.f32 %v13301_v61, %v23864_v13  ;;  %13596 = vmatpush1.bf16.msra.mxu1 %v18196_v29  ;;  %v13342_v25 = vpop.f32.mrf.mxu0  ;;  %13627 = vmatprep.mubr.bf16.mxu1 %v22515_v1  ;;  %v18285_v1 = vld [vmem:[%s24842_s8 + $0xb2c] ss:$16 sps:$4 sm:$0xff]  }
 0x72a   :  { %v13303_v5 = vpop.f32.mrf.mxu1  ;;  %13597 = vmatprep.subr.bf16.mxu1 %v18204_v39  ;;  %13661 = vmatpush2.bf16.msra.mxu0 %v18271_v52  ;;  %v18321_v29 = vld [vmem:[%s24842_s8 + $0xe6c] ss:$16 sps:$4 sm:$0xff]   ;;  %v18244_v39 = vld [vmem:[%s24842_s8 + $0x9e8] ss:$16 sps:$4 sm:$0xff]  }
 0x72b   :  { %v13304_v13 = vadd.f32 %v13303_v5, %v23869_v30  ;;  %v24066_v53 = vadd.f32 %v13342_v25, %v13302_v55  ;;  %v13344_v33 = vpop.f32.mrf.mxu0  ;;  %13662 = vmatprep.subr.bf16.mxu0 %v18279_v48  ;;  %v18216_v30 = vld [vmem:[%s24842_s8 + $0x88c] ss:$16 sps:$4 sm:$0xff]   ;;  %v18319_v48 = vld [vmem:[%s24842_s8 + $0xe68] ss:$16 sps:$4 sm:$0xff]  }
 0x72c   :  { %v13305_v59 = vpop.f32.mrf.mxu1  ;;  %v18252_v52 = vld [vmem:[%s24842_s8 + $0x9cc] ss:$16 sps:$4 sm:$0xff]   ;;  %v18250_v55 = vld [vmem:[%s24842_s8 + $0x9c8] ss:$16 sps:$4 sm:$0xff]  }
 0x72d   :  { %v24071_v20 = vadd.f32 %v13344_v33, %v13304_v13  ;;  %13598 = vmatpush1.bf16.msra.mxu1 %v18202_v42  ;;  %v13346_v27 = vpop.f32.mrf.mxu0  ;;  %v18327_v61 = vld [vmem:[%s24842_s8 + $0xe4c] ss:$16 sps:$4 sm:$0xff]   ;;  %v18325_v42 = vld [vmem:[%s24842_s8 + $0xe48] ss:$16 sps:$4 sm:$0xff]  }
 0x72e   :  { %v13306_v57 = vpop.f32.mrf.mxu1  ;;  %13599 = vmatprep.subr.bf16.mxu1 %v18210_v9  ;;  %13663 = vmatpush2.bf16.msra.mxu0 %v18277_v10  ;;  %v18258_v25 = vld [vmem:[%s24842_s8 + $0x9ac] ss:$16 sps:$4 sm:$0xff]   ;;  %v18256_v9 = vld [vmem:[%s24842_s8 + $0x9a8] ss:$16 sps:$4 sm:$0xff]  }
 0x72f   :  { %13664 = vmatprep.subr.bf16.mxu0 %v18285_v1  ;;  %v13347_v0 = vpop.f32.mrf.mxu0  ;;  %v18333_v5 = vld [vmem:[%s24842_s8 + $0xe2c] ss:$16 sps:$4 sm:$0xff]   ;;  %v18331_v13 = vld [vmem:[%s24842_s8 + $0xe28] ss:$16 sps:$4 sm:$0xff]  }
 0x730   :  { %v18264_v10 = vld [vmem:[%s24842_s8 + $0x98c] ss:$16 sps:$4 sm:$0xff]   ;;  %v18262_v1 = vld [vmem:[%s24842_s8 + $0x988] ss:$16 sps:$4 sm:$0xff]  }
 0x731   :  { %13600 = vmatpush1.bf16.msra.mxu1 %v18208_v45  ;;  %v18339_v33 = vld [vmem:[%s24842_s8 + $0xe0c] ss:$16 sps:$4 sm:$0xff]   ;;  %v18337_v45 = vld [vmem:[%s24842_s8 + $0xe08] ss:$16 sps:$4 sm:$0xff]  }
 0x732   :  { %13601 = vmatprep.subr.bf16.mxu1 %v18216_v30  ;;  %13665 = vmatpush2.bf16.msra.mxu0 %v18283_v36  ;;  %v18270_v59 = vld [vmem:[%s24842_s8 + $0x96c] ss:$16 sps:$4 sm:$0xff]   ;;  %v18268_v57 = vld [vmem:[%s24842_s8 + $0x968] ss:$16 sps:$4 sm:$0xff]  }
 0x733   :  { %13666 = vmatprep.subr.bf16.mxu0 %v18291_v37  ;;  %v18345_v27 = vld [vmem:[%s24842_s8 + $0xfec] ss:$16 sps:$4 sm:$0xff]   ;;  %v18343_v36 = vld [vmem:[%s24842_s8 + $0xfe8] ss:$16 sps:$4 sm:$0xff]  }
 0x734   :  { %v18276_v30 = vld [vmem:[%s24842_s8 + $0x94c] ss:$16 sps:$4 sm:$0xff]   ;;  %v18274_v0 = vld [vmem:[%s24842_s8 + $0x948] ss:$16 sps:$4 sm:$0xff]  }
 0x735   :  { %13602 = vmatpush1.bf16.msra.mxu1 %v18214_v40  ;;  %v18351_v37 = vld [vmem:[%s24842_s8 + $0xfcc] ss:$16 sps:$4 sm:$0xff]  }
 0x736   :  { %13603 = vmatprep.subr.bf16.mxu1 %v18222_v11  ;;  %13667 = vmatpush2.bf16.msra.mxu0 %v18289_v8  ;;  %v18282_v40 = vld [vmem:[%s24842_s8 + $0x92c] ss:$16 sps:$4 sm:$0xff]   ;;  %v18349_v11 = vld [vmem:[%s24842_s8 + $0xfc8] ss:$16 sps:$4 sm:$0xff]  }
 0x737   :  { %13718 = vmatprep.subr.bf16.mxu0 %v18297_v15  ;;  %v18357_v8 = vld [vmem:[%s24842_s8 + $0xfac] ss:$16 sps:$4 sm:$0xff]   ;;  %v18280_v15 = vld [vmem:[%s24842_s8 + $0x928] ss:$16 sps:$4 sm:$0xff]  }
 0x739   :  { %13604 = vmatpush1.bf16.msra.mxu1 %v18220_v51  ;;  %v24112_v35 = vpop.f32.mrf.mxu0  ;;  %13669 = vmatmul.mubr.bf16.vlgmr.msra.gmra.mxu0 %v22952_v28  ;;  %v18232_v28 = vld [vmem:[%s24842_s8 + $0x828] ss:$16 sps:$4 sm:$0xff]   ;;  %v18288_v51 = vld [vmem:[%s24842_s8 + $0x90c] ss:$16 sps:$4 sm:$0xff]  }
 0x73a   :  { %13605 = vmatprep.subr.bf16.mxu1 %v18228_v46  ;;  %13719 = vmatpush1.bf16.msra.mxu0 %v18295_v43  ;;  %v18355_v46 = vld [vmem:[%s24842_s8 + $0xfa8] ss:$16 sps:$4 sm:$0xff]   ;;  %v18363_v43 = vld [vmem:[%s24842_s8 + $0xf8c] ss:$16 sps:$4 sm:$0xff]  }
 0x73b   :  { %v24121_v56 = vpop.f32.mrf.mxu0  ;;  %13720 = vmatprep.subr.bf16.mxu0 %v18303_v7  ;;  %13750 = vmatprep.mubr.bf16.mxu0 %v22978_v23  ;;  %v18315_v23 = vld [vmem:[%s24842_s8 + $0xe8c] ss:$16 sps:$4 sm:$0xff]   ;;  %v18286_v7 = vld [vmem:[%s24842_s8 + $0x908] ss:$16 sps:$4 sm:$0xff]  }
 0x73d   :  { %13606 = vmatpush1.bf16.msra.mxu1 %v18226_v58  ;;  %v13428_v3 = vpop.f32.mrf.mxu0  ;;  %v18294_v58 = vld [vmem:[%s24842_s8 + $0xcec] ss:$16 sps:$4 sm:$0xff]  }
 0x73e   :  { %13607 = vmatprep.subr.bf16.mxu1 %v18234_v24  ;;  %13721 = vmatpush1.bf16.msra.mxu0 %v18301_v32  ;;  %v18361_v24 = vld [vmem:[%s24842_s8 + $0xf88] ss:$16 sps:$4 sm:$0xff]   ;;  %v18369_v32 = vld [vmem:[%s24842_s8 + $0xf6c] ss:$16 sps:$4 sm:$0xff]  }
 0x73f   :  { %13722 = vmatprep.subr.bf16.mxu0 %v18309_v22  ;;  %v13429_v50 = vpop.f32.mrf.mxu0  ;;  %v18292_v22 = vld [vmem:[%s24842_s8 + $0xce8] ss:$16 sps:$4 sm:$0xff]  }
 0x740   :  { %v18367_v3 = vld [vmem:[%s24842_s8 + $0xf68] ss:$16 sps:$4 sm:$0xff]  }
 0x741   :  { %13608 = vmatpush1.bf16.msra.mxu1 %v18232_v28  ;;  %v18300_v28 = vld [vmem:[%s24842_s8 + $0xccc] ss:$16 sps:$4 sm:$0xff]   ;;  %v18298_v50 = vld [vmem:[%s24842_s8 + $0xcc8] ss:$16 sps:$4 sm:$0xff]  }
 0x742   :  { %13609 = vmatprep.subr.bf16.mxu1 %v18240_v38  ;;  %13723 = vmatpush1.bf16.msra.mxu0 %v18307_v49  ;;  %v18375_v38 = vld [vmem:[%s24842_s8 + $0xf4c] ss:$16 sps:$4 sm:$0xff]  }
 0x743   :  { %13724 = vmatprep.subr.bf16.mxu0 %v18315_v23 }
 0x745   :  { %13610 = vmatpush1.bf16.msra.mxu1 %v18238_v14 }
 0x746   :  { %13611 = vmatprep.subr.bf16.mxu1 %v18246_v62  ;;  %13725 = vmatpush1.bf16.msra.mxu0 %v18313_v26  ;;  %v18306_v62 = vld [vmem:[%s24842_s8 + $0xcac] ss:$16 sps:$4 sm:$0xff]  }
 0x747   :  { %13726 = vmatprep.subr.bf16.mxu0 %v18321_v29 }
 0x749   :  { %13612 = vmatpush2.bf16.msra.mxu1 %v18244_v39 }
 0x74a   :  { %13613 = vmatprep.subr.bf16.mxu1 %v18252_v52  ;;  %13727 = vmatpush1.bf16.msra.mxu0 %v18319_v48  ;;  %v18304_v52 = vld [vmem:[%s24842_s8 + $0xca8] ss:$16 sps:$4 sm:$0xff]  }
 0x74b   :  { %13728 = vmatprep.subr.bf16.mxu0 %v18327_v61  ;;  %v18387_v61 = vld [vmem:[%s24842_s8 + $0xf0c] ss:$16 sps:$4 sm:$0xff]  }
 0x74d   :  { %13614 = vmatpush2.bf16.msra.mxu1 %v18250_v55  ;;  %v18310_v55 = vld [vmem:[%s24842_s8 + $0xc88] ss:$16 sps:$4 sm:$0xff]  }
 0x74e   :  { %13615 = vmatprep.subr.bf16.mxu1 %v18258_v25  ;;  %13729 = vmatpush1.bf16.msra.mxu0 %v18325_v42  ;;  %v18318_v25 = vld [vmem:[%s24842_s8 + $0xc6c] ss:$16 sps:$4 sm:$0xff]   ;;  %v18385_v42 = vld [vmem:[%s24842_s8 + $0xf08] ss:$16 sps:$4 sm:$0xff]  }
 0x74f   :  { %13730 = vmatprep.subr.bf16.mxu0 %v18333_v5  ;;  %v18393_v5 = vld [vmem:[%s24842_s8 + $0x12ec] ss:$16 sps:$4 sm:$0xff]  }
 0x751   :  { %13616 = vmatpush2.bf16.msra.mxu1 %v18256_v9  ;;  %v18316_v9 = vld [vmem:[%s24842_s8 + $0xc68] ss:$16 sps:$4 sm:$0xff]  }
 0x752   :  { %13617 = vmatprep.subr.bf16.mxu1 %v18264_v10  ;;  %13731 = vmatpush1.bf16.msra.mxu0 %v18331_v13  ;;  %v18324_v10 = vld [vmem:[%s24842_s8 + $0xc4c] ss:$16 sps:$4 sm:$0xff]   ;;  %v18391_v13 = vld [vmem:[%s24842_s8 + $0x12e8] ss:$16 sps:$4 sm:$0xff]  }
 0x753   :  { %13732 = vmatprep.subr.bf16.mxu0 %v18339_v33  ;;  %v18399_v33 = vld [vmem:[%s24842_s8 + $0x12cc] ss:$16 sps:$4 sm:$0xff]  }
 0x755   :  { %13618 = vmatpush2.bf16.msra.mxu1 %v18262_v1  ;;  %v18322_v1 = vld [vmem:[%s24842_s8 + $0xc48] ss:$16 sps:$4 sm:$0xff]  }
 0x756   :  { %13619 = vmatprep.subr.bf16.mxu1 %v18270_v59  ;;  %13733 = vmatpush1.bf16.msra.mxu0 %v18337_v45  ;;  %v18330_v45 = vld [vmem:[%s24842_s8 + $0xc2c] ss:$16 sps:$4 sm:$0xff]  }
 0x757   :  { %13734 = vmatprep.subr.bf16.mxu0 %v18345_v27  ;;  %v18397_v27 = vld [vmem:[%s24842_s8 + $0x12c8] ss:$16 sps:$4 sm:$0xff]  }
 0x759   :  { %13620 = vmatpush2.bf16.msra.mxu1 %v18268_v57 }
 0x75a   :  { %13621 = vmatprep.subr.bf16.mxu1 %v18276_v30  ;;  %13735 = vmatpush2.bf16.msra.mxu0 %v18343_v36  ;;  %v18405_v30 = vld [vmem:[%s24842_s8 + $0x12ac] ss:$16 sps:$4 sm:$0xff]  }
 0x75b   :  { %13736 = vmatprep.subr.bf16.mxu0 %v18351_v37  ;;  %v18336_v37 = vld [vmem:[%s24842_s8 + $0xc0c] ss:$16 sps:$4 sm:$0xff]  }
 0x75d   :  { %13622 = vmatpush2.bf16.msra.mxu1 %v18274_v0  ;;  %v18403_v0 = vld [vmem:[%s24842_s8 + $0x12a8] ss:$16 sps:$4 sm:$0xff]  }
 0x75e   :  { %13623 = vmatprep.subr.bf16.mxu1 %v18282_v40  ;;  %13737 = vmatpush2.bf16.msra.mxu0 %v18349_v11  ;;  %v18334_v11 = vld [vmem:[%s24842_s8 + $0xc08] ss:$16 sps:$4 sm:$0xff]  }
 0x75f   :  { %13738 = vmatprep.subr.bf16.mxu0 %v18357_v8  ;;  %v18342_v8 = vld [vmem:[%s24842_s8 + $0xdec] ss:$16 sps:$4 sm:$0xff]  }
 0x761   :  { %13624 = vmatpush2.bf16.msra.mxu1 %v18280_v15  ;;  %v18409_v15 = vld [vmem:[%s24842_s8 + $0x1288] ss:$16 sps:$4 sm:$0xff]  }
 0x762   :  { %13625 = vmatprep.subr.bf16.mxu1 %v18288_v51  ;;  %13739 = vmatpush2.bf16.msra.mxu0 %v18355_v46  ;;  %v18417_v51 = vld [vmem:[%s24842_s8 + $0x126c] ss:$16 sps:$4 sm:$0xff]   ;;  %v18340_v46 = vld [vmem:[%s24842_s8 + $0xde8] ss:$16 sps:$4 sm:$0xff]  }
 0x763   :  { %13740 = vmatprep.subr.bf16.mxu0 %v18363_v43  ;;  %v18348_v43 = vld [vmem:[%s24842_s8 + $0xdcc] ss:$16 sps:$4 sm:$0xff]  }
 0x765   :  { %13626 = vmatpush2.bf16.msra.mxu1 %v18286_v7  ;;  %v18415_v7 = vld [vmem:[%s24842_s8 + $0x1268] ss:$16 sps:$4 sm:$0xff]  }
 0x766   :  { %13677 = vmatprep.subr.bf16.mxu1 %v18294_v58  ;;  %13741 = vmatpush2.bf16.msra.mxu0 %v18361_v24  ;;  %v18423_v58 = vld [vmem:[%s24842_s8 + $0x124c] ss:$16 sps:$4 sm:$0xff]   ;;  %v18346_v24 = vld [vmem:[%s24842_s8 + $0xdc8] ss:$16 sps:$4 sm:$0xff]  }
 0x767   :  { %13742 = vmatprep.subr.bf16.mxu0 %v18369_v32  ;;  %v18354_v32 = vld [vmem:[%s24842_s8 + $0xdac] ss:$16 sps:$4 sm:$0xff]  }
 0x768   :  { %v13383_v49 = vpop.f32.mrf.mxu1  ;;  %13628 = vmatmul.mubr.bf16.vlgmr.msra.gmra.mxu1 %v22727_v34  ;;  %v18373_v34 = vld [vmem:[%s24842_s8 + $0xf48] ss:$16 sps:$4 sm:$0xff]  }
 0x769   :  { %v13384_v23 = vadd.f32 %v13383_v49, %v24066_v53  ;;  %13678 = vmatpush1.bf16.msra.mxu1 %v18292_v22  ;;  %13709 = vmatprep.mubr.bf16.mxu1 %v22747_v18  ;;  %v18381_v18 = vld [vmem:[%s24842_s8 + $0xf2c] ss:$16 sps:$4 sm:$0xff]   ;;  %v18421_v22 = vld [vmem:[%s24842_s8 + $0x1248] ss:$16 sps:$4 sm:$0xff]  }
 0x76a   :  { %v13385_v14 = vpop.f32.mrf.mxu1  ;;  %13679 = vmatprep.subr.bf16.mxu1 %v18300_v28  ;;  %13743 = vmatpush2.bf16.msra.mxu0 %v18367_v3  ;;  %v18429_v28 = vld [vmem:[%s24842_s8 + $0x122c] ss:$16 sps:$4 sm:$0xff]   ;;  %v18352_v3 = vld [vmem:[%s24842_s8 + $0xda8] ss:$16 sps:$4 sm:$0xff]  }
 0x76b   :  { %v13386_v53 = vadd.f32 %v13385_v14, %v24071_v20  ;;  %v24273_v26 = vadd.f32 %v24112_v35, %v13384_v23  ;;  %13744 = vmatprep.subr.bf16.mxu0 %v18375_v38  ;;  %v18312_v20 = vld [vmem:[%s24842_s8 + $0xc8c] ss:$16 sps:$4 sm:$0xff]   ;;  %v18379_v35 = vld [vmem:[%s24842_s8 + $0xf28] ss:$16 sps:$4 sm:$0xff]  }
 0x76c   :  { %v13387_v29 = vpop.f32.mrf.mxu1  ;;  %v18360_v38 = vld [vmem:[%s24842_s8 + $0xd8c] ss:$16 sps:$4 sm:$0xff]   ;;  %v18427_v49 = vld [vmem:[%s24842_s8 + $0x1228] ss:$16 sps:$4 sm:$0xff]  }
 0x76d   :  { %v24279_v39 = vadd.f32 %v24121_v56, %v13386_v53  ;;  %13680 = vmatpush1.bf16.msra.mxu1 %v18298_v50  ;;  %v18435_v23 = vld [vmem:[%s24842_s8 + $0x120c] ss:$16 sps:$4 sm:$0xff]   ;;  %v18358_v50 = vld [vmem:[%s24842_s8 + $0xd88] ss:$16 sps:$4 sm:$0xff]  }
 0x76e   :  { %v13388_v48 = vpop.f32.mrf.mxu1  ;;  %13681 = vmatprep.subr.bf16.mxu1 %v18306_v62  ;;  %13745 = vmatpush2.bf16.msra.mxu0 %v18373_v34  ;;  %v18366_v14 = vld [vmem:[%s24842_s8 + $0xd6c] ss:$16 sps:$4 sm:$0xff]   ;;  %v18433_v62 = vld [vmem:[%s24842_s8 + $0x1208] ss:$16 sps:$4 sm:$0xff]  }
 0x76f   :  { %v13968_v56 = vcombine.low %v24273_v26, %v24279_v39  ;;  %13746 = vmatprep.subr.bf16.mxu0 %v18381_v18  ;;  %v18441_v34 = vld [vmem:[%s24842_s8 + $0x13ec] ss:$16 sps:$4 sm:$0xff]   ;;  %v18364_v53 = vld [vmem:[%s24842_s8 + $0xd68] ss:$16 sps:$4 sm:$0xff]  }
 0x770   :  { %v18372_v18 = vld [vmem:[%s24842_s8 + $0xd4c] ss:$16 sps:$4 sm:$0xff]   ;;  %v18439_v29 = vld [vmem:[%s24842_s8 + $0x13e8] ss:$16 sps:$4 sm:$0xff]  }
 0x771   :  { %13682 = vmatpush1.bf16.msra.mxu1 %v18304_v52  ;;  %v18447_v52 = vld [vmem:[%s24842_s8 + $0x13cc] ss:$16 sps:$4 sm:$0xff]   ;;  %v18370_v48 = vld [vmem:[%s24842_s8 + $0xd48] ss:$16 sps:$4 sm:$0xff]  }
 0x772   :  { %13683 = vmatprep.subr.bf16.mxu1 %v18312_v20  ;;  %13747 = vmatpush2.bf16.msra.mxu0 %v18379_v35  ;;  %v18378_v20 = vld [vmem:[%s24842_s8 + $0xd2c] ss:$16 sps:$4 sm:$0xff]   ;;  %v18445_v35 = vld [vmem:[%s24842_s8 + $0x13c8] ss:$16 sps:$4 sm:$0xff]  }
 0x773   :  { %13748 = vmatprep.subr.bf16.mxu0 %v18387_v61  ;;  %v18453_v61 = vld [vmem:[%s24842_s8 + $0x13ac] ss:$16 sps:$4 sm:$0xff]  }
 0x775   :  { %13684 = vmatpush1.bf16.msra.mxu1 %v18310_v55  ;;  %v18376_v55 = vld [vmem:[%s24842_s8 + $0xd28] ss:$16 sps:$4 sm:$0xff]  }
 0x776   :  { %13685 = vmatprep.subr.bf16.mxu1 %v18318_v25  ;;  %13749 = vmatpush2.bf16.msra.mxu0 %v18385_v42  ;;  %v18384_v25 = vld [vmem:[%s24842_s8 + $0xd0c] ss:$16 sps:$4 sm:$0xff]   ;;  %v18451_v42 = vld [vmem:[%s24842_s8 + $0x13a8] ss:$16 sps:$4 sm:$0xff]  }
 0x777   :  { %13800 = vmatprep.subr.bf16.mxu0 %v18393_v5  ;;  %v18459_v5 = vld [vmem:[%s24842_s8 + $0x138c] ss:$16 sps:$4 sm:$0xff]  }
 0x779   :  { %13686 = vmatpush1.bf16.msra.mxu1 %v18316_v9  ;;  %v24322_v59 = vpop.f32.mrf.mxu0  ;;  %13751 = vmatmul.mubr.bf16.vlgmr.msra.gmra.mxu0 %v23193_v4  ;;  %v18328_v4 = vld [vmem:[%s24842_s8 + $0xc28] ss:$16 sps:$4 sm:$0xff]  }
 0x77a   :  { %13687 = vmatprep.subr.bf16.mxu1 %v18324_v10  ;;  %13801 = vmatpush1.bf16.msra.mxu0 %v18391_v13  ;;  %v18382_v9 = vld [vmem:[%s24842_s8 + $0xd08] ss:$16 sps:$4 sm:$0xff]   ;;  %v18390_v10 = vld [vmem:[%s24842_s8 + $0x10ec] ss:$16 sps:$4 sm:$0xff]  }
 0x77b   :  { %v24331_v57 = vpop.f32.mrf.mxu0  ;;  %13802 = vmatprep.subr.bf16.mxu0 %v18399_v33  ;;  %13832 = vmatprep.mubr.bf16.mxu0 %v23217_v17  ;;  %v18411_v17 = vld [vmem:[%s24842_s8 + $0x128c] ss:$16 sps:$4 sm:$0xff]   ;;  %v18457_v13 = vld [vmem:[%s24842_s8 + $0x1388] ss:$16 sps:$4 sm:$0xff]  }
 0x77c   :  { %v18465_v33 = vld [vmem:[%s24842_s8 + $0x136c] ss:$16 sps:$4 sm:$0xff]  }
 0x77d   :  { %13688 = vmatpush1.bf16.msra.mxu1 %v18322_v1  ;;  %v13510_v36 = vpop.f32.mrf.mxu0  ;;  %v18593_v1 = vld [vmem:[%s24843_s9] sm:$0xf] }
 0x77e   :  { %13689 = vmatprep.subr.bf16.mxu1 %v18330_v45  ;;  %13803 = vmatpush1.bf16.msra.mxu0 %v18397_v27  ;;  %v8777_v45 = vrot.slane %v18593_v1, %v20899_v6  ;;  %v18388_v27 = vld [vmem:[%s24842_s8 + $0x10e8] ss:$16 sps:$4 sm:$0xff]   ;;  %v8781_v36 = vrot.slane %v18593_v1, %v20902_v44  ;;  %v18471_v6 = vld [vmem:[%s24842_s8 + $0x134c] ss:$16 sps:$4 sm:$0xff]  }
 0x77f   :  { %13804 = vmatprep.subr.bf16.mxu0 %v18405_v30  ;;  %v13511_v40 = vpop.f32.mrf.mxu0  ;;  %v18396_v30 = vld [vmem:[%s24842_s8 + $0x10cc] ss:$16 sps:$4 sm:$0xff]  }
 0x780   :  { %v18402_v44 = vld [vmem:[%s24842_s8 + $0x10ac] ss:$16 sps:$4 sm:$0xff]  }
 0x781   :  { %13690 = vmatpush1.bf16.msra.mxu1 %v18328_v4  ;;  %v18463_v4 = vld [vmem:[%s24842_s8 + $0x1368] ss:$16 sps:$4 sm:$0xff]   ;;  %v18525_v1 = vld [vmem:[%s24842_s8 + $0x162c] ss:$16 sps:$4 sm:$0xff]  }
 0x782   :  { %13691 = vmatprep.subr.bf16.mxu1 %v18336_v37  ;;  %13805 = vmatpush1.bf16.msra.mxu0 %v18403_v0 }
 0x783   :  { %13806 = vmatprep.subr.bf16.mxu0 %v18411_v17  ;;  %v18394_v17 = vld [vmem:[%s24842_s8 + $0x10c8] ss:$16 sps:$4 sm:$0xff]  }
 0x785   :  { %13692 = vmatpush1.bf16.msra.mxu1 %v18334_v11  ;;  %v18469_v11 = vld [vmem:[%s24842_s8 + $0x1348] ss:$16 sps:$4 sm:$0xff]  }
 0x786   :  { %13693 = vmatprep.subr.bf16.mxu1 %v18342_v8  ;;  %13807 = vmatpush1.bf16.msra.mxu0 %v18409_v15 }
 0x787   :  { %13808 = vmatprep.subr.bf16.mxu0 %v18417_v51 }
 0x789   :  { %13694 = vmatpush2.bf16.msra.mxu1 %v18340_v46  ;;  %v18400_v46 = vld [vmem:[%s24842_s8 + $0x10a8] ss:$16 sps:$4 sm:$0xff]  }
 0x78a   :  { %13695 = vmatprep.subr.bf16.mxu1 %v18348_v43  ;;  %13809 = vmatpush1.bf16.msra.mxu0 %v18415_v7  ;;  %v18475_v7 = vld [vmem:[%s24842_s8 + $0x1328] ss:$16 sps:$4 sm:$0xff]  }
 0x78b   :  { %13810 = vmatprep.subr.bf16.mxu0 %v18423_v58  ;;  %v18406_v58 = vld [vmem:[%s24842_s8 + $0x1088] ss:$16 sps:$4 sm:$0xff]  }
 0x78d   :  { %13696 = vmatpush2.bf16.msra.mxu1 %v18346_v24  ;;  %v18414_v24 = vld [vmem:[%s24842_s8 + $0x106c] ss:$16 sps:$4 sm:$0xff]  }
 0x78e   :  { %13697 = vmatprep.subr.bf16.mxu1 %v18354_v32  ;;  %13811 = vmatpush1.bf16.msra.mxu0 %v18421_v22  ;;  %v18481_v32 = vld [vmem:[%s24842_s8 + $0x1308] ss:$16 sps:$4 sm:$0xff]   ;;  %v18489_v22 = vld [vmem:[%s24842_s8 + $0x16ec] ss:$16 sps:$4 sm:$0xff]  }
 0x78f   :  { %13812 = vmatprep.subr.bf16.mxu0 %v18429_v28  ;;  %v18412_v28 = vld [vmem:[%s24842_s8 + $0x1068] ss:$16 sps:$4 sm:$0xff]  }
 0x791   :  { %13698 = vmatpush2.bf16.msra.mxu1 %v18352_v3  ;;  %v18420_v3 = vld [vmem:[%s24842_s8 + $0x104c] ss:$16 sps:$4 sm:$0xff]  }
 0x792   :  { %13699 = vmatprep.subr.bf16.mxu1 %v18360_v38  ;;  %13813 = vmatpush1.bf16.msra.mxu0 %v18427_v49  ;;  %v18487_v38 = vld [vmem:[%s24842_s8 + $0x16e8] ss:$16 sps:$4 sm:$0xff]   ;;  %v18495_v49 = vld [vmem:[%s24842_s8 + $0x16cc] ss:$16 sps:$4 sm:$0xff]  }
 0x793   :  { %13814 = vmatprep.subr.bf16.mxu0 %v18435_v23  ;;  %v18418_v23 = vld [vmem:[%s24842_s8 + $0x1048] ss:$16 sps:$4 sm:$0xff]  }
 0x795   :  { %13700 = vmatpush2.bf16.msra.mxu1 %v18358_v50 }
 0x796   :  { %13701 = vmatprep.subr.bf16.mxu1 %v18366_v14  ;;  %13815 = vmatpush1.bf16.msra.mxu0 %v18433_v62  ;;  %v18426_v14 = vld [vmem:[%s24842_s8 + $0x102c] ss:$16 sps:$4 sm:$0xff]   ;;  %v18493_v62 = vld [vmem:[%s24842_s8 + $0x16c8] ss:$16 sps:$4 sm:$0xff]  }
 0x797   :  { %13816 = vmatprep.subr.bf16.mxu0 %v18441_v34 }
 0x799   :  { %13702 = vmatpush2.bf16.msra.mxu1 %v18364_v53  ;;  %v18501_v53 = vld [vmem:[%s24842_s8 + $0x16ac] ss:$16 sps:$4 sm:$0xff]  }
 0x79a   :  { %13703 = vmatprep.subr.bf16.mxu1 %v18372_v18  ;;  %13817 = vmatpush2.bf16.msra.mxu0 %v18439_v29  ;;  %v18432_v29 = vld [vmem:[%s24842_s8 + $0x100c] ss:$16 sps:$4 sm:$0xff]  }
 0x79b   :  { %13818 = vmatprep.subr.bf16.mxu0 %v18447_v52  ;;  %v18499_v52 = vld [vmem:[%s24842_s8 + $0x16a8] ss:$16 sps:$4 sm:$0xff]  }
 0x79d   :  { %13704 = vmatpush2.bf16.msra.mxu1 %v18370_v48 }
 0x79e   :  { %13705 = vmatprep.subr.bf16.mxu1 %v18378_v20  ;;  %13819 = vmatpush2.bf16.msra.mxu0 %v18445_v35  ;;  %v18430_v20 = vld [vmem:[%s24842_s8 + $0x1008] ss:$16 sps:$4 sm:$0xff]   ;;  %v18438_v35 = vld [vmem:[%s24842_s8 + $0x11ec] ss:$16 sps:$4 sm:$0xff]  }
 0x79f   :  { %13820 = vmatprep.subr.bf16.mxu0 %v18453_v61  ;;  %v18505_v61 = vld [vmem:[%s24842_s8 + $0x1688] ss:$16 sps:$4 sm:$0xff]  }
 0x7a1   :  { %13706 = vmatpush2.bf16.msra.mxu1 %v18376_v55  ;;  %v18513_v55 = vld [vmem:[%s24842_s8 + $0x166c] ss:$16 sps:$4 sm:$0xff]  }
 0x7a2   :  { %13707 = vmatprep.subr.bf16.mxu1 %v18384_v25  ;;  %13821 = vmatpush2.bf16.msra.mxu0 %v18451_v42  ;;  %v18436_v25 = vld [vmem:[%s24842_s8 + $0x11e8] ss:$16 sps:$4 sm:$0xff]   ;;  %v18444_v42 = vld [vmem:[%s24842_s8 + $0x11cc] ss:$16 sps:$4 sm:$0xff]  }
 0x7a3   :  { %13822 = vmatprep.subr.bf16.mxu0 %v18459_v5  ;;  %v18511_v5 = vld [vmem:[%s24842_s8 + $0x1668] ss:$16 sps:$4 sm:$0xff]  }
 0x7a5   :  { %13708 = vmatpush2.bf16.msra.mxu1 %v18382_v9  ;;  %v18519_v9 = vld [vmem:[%s24842_s8 + $0x164c] ss:$16 sps:$4 sm:$0xff]  }
 0x7a6   :  { %13759 = vmatprep.subr.bf16.mxu1 %v18390_v10  ;;  %13823 = vmatpush2.bf16.msra.mxu0 %v18457_v13  ;;  %v18442_v10 = vld [vmem:[%s24842_s8 + $0x11c8] ss:$16 sps:$4 sm:$0xff]   ;;  %v18450_v13 = vld [vmem:[%s24842_s8 + $0x11ac] ss:$16 sps:$4 sm:$0xff]  }
 0x7a7   :  { %13824 = vmatprep.subr.bf16.mxu0 %v18465_v33  ;;  %v18517_v33 = vld [vmem:[%s24842_s8 + $0x1648] ss:$16 sps:$4 sm:$0xff]  }
 0x7a8   :  { %v13465_v37 = vpop.f32.mrf.mxu1  ;;  %13710 = vmatmul.mubr.bf16.vlgmr.msra.gmra.mxu1 %v22965_v47 }
 0x7a9   :  { %v13466_v0 = vadd.f32 %v13465_v37, %v8777_v45  ;;  %13760 = vmatpush1.bf16.msra.mxu1 %v18388_v27  ;;  %13791 = vmatprep.mubr.bf16.mxu1 %v22982_v19  ;;  %v18477_v19 = vld [vmem:[%s24842_s8 + $0x132c] ss:$16 sps:$4 sm:$0xff]   ;;  %v18448_v45 = vld [vmem:[%s24842_s8 + $0x11a8] ss:$16 sps:$4 sm:$0xff]  }
 0x7aa   :  { %v13467_v40 = vpop.f32.mrf.mxu1  ;;  %13761 = vmatprep.subr.bf16.mxu1 %v18396_v30  ;;  %13825 = vmatpush2.bf16.msra.mxu0 %v18463_v4  ;;  %v18456_v27 = vld [vmem:[%s24842_s8 + $0x118c] ss:$16 sps:$4 sm:$0xff]   ;;  %v18523_v30 = vld [vmem:[%s24842_s8 + $0x1628] ss:$16 sps:$4 sm:$0xff]  }
 0x7ab   :  { %v13468_v47 = vadd.f32 %v13467_v40, %v8781_v36  ;;  %v24486_v8 = vadd.f32 %v24322_v59, %v13466_v0  ;;  %13826 = vmatprep.subr.bf16.mxu0 %v18471_v6  ;;  %v18408_v59 = vld [vmem:[%s24842_s8 + $0x108c] ss:$16 sps:$4 sm:$0xff]   ;;  %v18454_v36 = vld [vmem:[%s24842_s8 + $0x1188] ss:$16 sps:$4 sm:$0xff]  }
 0x7ac   :  { %v13469_v15 = vpop.f32.mrf.mxu1  ;;  %v18531_v4 = vld [vmem:[%s24842_s8 + $0x160c] ss:$16 sps:$4 sm:$0xff]   ;;  %v18529_v37 = vld [vmem:[%s24842_s8 + $0x1608] ss:$16 sps:$4 sm:$0xff]  }
 0x7ad   :  { %v24492_v51 = vadd.f32 %v24331_v57, %v13468_v47  ;;  %13762 = vmatpush1.bf16.msra.mxu1 %v18394_v17  ;;  %v18483_v57 = vld [vmem:[%s24842_s8 + $0x130c] ss:$16 sps:$4 sm:$0xff]   ;;  %v18460_v17 = vld [vmem:[%s24842_s8 + $0x1168] ss:$16 sps:$4 sm:$0xff]  }
 0x7ae   :  { %v13470_v43 = vpop.f32.mrf.mxu1  ;;  %13763 = vmatprep.subr.bf16.mxu1 %v18402_v44  ;;  %13827 = vmatpush2.bf16.msra.mxu0 %v18469_v11  ;;  %v18462_v6 = vld [vmem:[%s24842_s8 + $0x116c] ss:$16 sps:$4 sm:$0xff]   ;;  %v18535_v44 = vld [vmem:[%s24842_s8 + $0x17e8] ss:$16 sps:$4 sm:$0xff]  }
 0x7af   :  { %13828 = vmatprep.subr.bf16.mxu0 %v18477_v19  ;;  %v18537_v0 = vld [vmem:[%s24842_s8 + $0x17ec] ss:$16 sps:$4 sm:$0xff]   ;;  %v18466_v47 = vld [vmem:[%s24842_s8 + $0x1148] ss:$16 sps:$4 sm:$0xff]  }
 0x7b0   :  { %v18468_v40 = vld [vmem:[%s24842_s8 + $0x114c] ss:$16 sps:$4 sm:$0xff]   ;;  %v18541_v15 = vld [vmem:[%s24842_s8 + $0x17c8] ss:$16 sps:$4 sm:$0xff]  }
 0x7b1   :  { %13764 = vmatpush1.bf16.msra.mxu1 %v18400_v46  ;;  %v18543_v11 = vld [vmem:[%s24842_s8 + $0x17cc] ss:$16 sps:$4 sm:$0xff]   ;;  %v18472_v43 = vld [vmem:[%s24842_s8 + $0x1128] ss:$16 sps:$4 sm:$0xff]  }
 0x7b2   :  { %13765 = vmatprep.subr.bf16.mxu1 %v18408_v59  ;;  %13829 = vmatpush2.bf16.msra.mxu0 %v18475_v7  ;;  %v18474_v19 = vld [vmem:[%s24842_s8 + $0x112c] ss:$16 sps:$4 sm:$0xff]   ;;  %v18547_v7 = vld [vmem:[%s24842_s8 + $0x17a8] ss:$16 sps:$4 sm:$0xff]  }
 0x7b3   :  { %13830 = vmatprep.subr.bf16.mxu0 %v18483_v57  ;;  %v18549_v46 = vld [vmem:[%s24842_s8 + $0x17ac] ss:$16 sps:$4 sm:$0xff]  }
 0x7b4   :  { %v18480_v59 = vld [vmem:[%s24842_s8 + $0x110c] ss:$16 sps:$4 sm:$0xff]  }
 0x7b5   :  { %13766 = vmatpush1.bf16.msra.mxu1 %v18406_v58  ;;  %v18555_v57 = vld [vmem:[%s24842_s8 + $0x178c] ss:$16 sps:$4 sm:$0xff]   ;;  %v18478_v58 = vld [vmem:[%s24842_s8 + $0x1108] ss:$16 sps:$4 sm:$0xff]  }
 0x7b6   :  { %13767 = vmatprep.subr.bf16.mxu1 %v18414_v24  ;;  %13831 = vmatpush2.bf16.msra.mxu0 %v18481_v32  ;;  %v18486_v24 = vld [vmem:[%s24842_s8 + $0x14ec] ss:$16 sps:$4 sm:$0xff]   ;;  %v18553_v32 = vld [vmem:[%s24842_s8 + $0x1788] ss:$16 sps:$4 sm:$0xff]  }
 0x7b7   :  { %13882 = vmatprep.subr.bf16.mxu0 %v18489_v22  ;;  %v18561_v22 = vld [vmem:[%s24842_s8 + $0x176c] ss:$16 sps:$4 sm:$0xff]  }
 0x7b9   :  { %13768 = vmatpush1.bf16.msra.mxu1 %v18412_v28  ;;  %v24533_v50 = vpop.f32.mrf.mxu0  ;;  %13833 = vmatmul.mubr.bf16.vlgmr.msra.gmra.mxu0 %v23412_v63  ;;  %v18424_v63 = vld [vmem:[%s24842_s8 + $0x1028] ss:$16 sps:$4 sm:$0xff]  }
 0x7ba   :  { %13769 = vmatprep.subr.bf16.mxu1 %v18420_v3  ;;  %13883 = vmatpush1.bf16.msra.mxu0 %v18487_v38  ;;  %v18484_v28 = vld [vmem:[%s24842_s8 + $0x14e8] ss:$16 sps:$4 sm:$0xff]   ;;  %v18492_v3 = vld [vmem:[%s24842_s8 + $0x14cc] ss:$16 sps:$4 sm:$0xff]  }
 0x7bb   :  { %v24542_v34 = vpop.f32.mrf.mxu0  ;;  %13884 = vmatprep.subr.bf16.mxu0 %v18495_v49  ;;  %13914 = vmatprep.mubr.bf16.mxu0 %v23432_v41  ;;  %v18507_v41 = vld [vmem:[%s24842_s8 + $0x168c] ss:$16 sps:$4 sm:$0xff]   ;;  %v18559_v38 = vld [vmem:[%s24842_s8 + $0x1768] ss:$16 sps:$4 sm:$0xff]  }
 0x7bc   :  { %v18567_v49 = vld [vmem:[%s24842_s8 + $0x174c] ss:$16 sps:$4 sm:$0xff]  }
 0x7bd   :  { %13770 = vmatpush1.bf16.msra.mxu1 %v18418_v23  ;;  %v13592_v18 = vpop.f32.mrf.mxu0 }
 0x7be   :  { %13771 = vmatprep.subr.bf16.mxu1 %v18426_v14  ;;  %13885 = vmatpush1.bf16.msra.mxu0 %v18493_v62  ;;  %v18490_v62 = vld [vmem:[%s24842_s8 + $0x14c8] ss:$16 sps:$4 sm:$0xff]  }
 0x7bf   :  { %13886 = vmatprep.subr.bf16.mxu0 %v18501_v53  ;;  %v13593_v48 = vpop.f32.mrf.mxu0 }
 0x7c1   :  { %13772 = vmatpush1.bf16.msra.mxu1 %v18424_v63  ;;  %v18498_v63 = vld [vmem:[%s24842_s8 + $0x14ac] ss:$16 sps:$4 sm:$0xff]  }
 0x7c2   :  { %13773 = vmatprep.subr.bf16.mxu1 %v18432_v29  ;;  %13887 = vmatpush1.bf16.msra.mxu0 %v18499_v52 }
 0x7c3   :  { %13888 = vmatprep.subr.bf16.mxu0 %v18507_v41  ;;  %v18496_v41 = vld [vmem:[%s24842_s8 + $0x14a8] ss:$16 sps:$4 sm:$0xff]  }
 0x7c5   :  { %13774 = vmatpush1.bf16.msra.mxu1 %v18430_v20  ;;  %v18502_v20 = vld [vmem:[%s24842_s8 + $0x1488] ss:$16 sps:$4 sm:$0xff]  }
 0x7c6   :  { %13775 = vmatprep.subr.bf16.mxu1 %v18438_v35  ;;  %13889 = vmatpush1.bf16.msra.mxu0 %v18505_v61  ;;  %v18510_v35 = vld [vmem:[%s24842_s8 + $0x146c] ss:$16 sps:$4 sm:$0xff]   ;;  %v18577_v61 = vld [vmem:[%s24842_s8 + $0x1708] ss:$16 sps:$4 sm:$0xff]  }
 0x7c7   :  { %13890 = vmatprep.subr.bf16.mxu0 %v18513_v55  ;;  %v18508_v55 = vld [vmem:[%s24842_s8 + $0x1468] ss:$16 sps:$4 sm:$0xff]  }
 0x7c9   :  { %13776 = vmatpush2.bf16.msra.mxu1 %v18436_v25  ;;  %v18516_v25 = vld [vmem:[%s24842_s8 + $0x144c] ss:$16 sps:$4 sm:$0xff]  }
 0x7ca   :  { %13777 = vmatprep.subr.bf16.mxu1 %v18444_v42  ;;  %13891 = vmatpush1.bf16.msra.mxu0 %v18511_v5  ;;  %v18514_v42 = vld [vmem:[%s24842_s8 + $0x1448] ss:$16 sps:$4 sm:$0xff]  }
 0x7cb   :  { %13892 = vmatprep.subr.bf16.mxu0 %v18519_v9  ;;  %v18522_v9 = vld [vmem:[%s24842_s8 + $0x142c] ss:$16 sps:$4 sm:$0xff]  }
 0x7cd   :  { %13778 = vmatpush2.bf16.msra.mxu1 %v18442_v10 }
 0x7ce   :  { %13779 = vmatprep.subr.bf16.mxu1 %v18450_v13  ;;  %13893 = vmatpush1.bf16.msra.mxu0 %v18517_v33  ;;  %v18520_v13 = vld [vmem:[%s24842_s8 + $0x1428] ss:$16 sps:$4 sm:$0xff]  }
 0x7cf   :  { %13894 = vmatprep.subr.bf16.mxu0 %v18525_v1  ;;  %v18528_v1 = vld [vmem:[%s24842_s8 + $0x140c] ss:$16 sps:$4 sm:$0xff]  }
 0x7d1   :  { %13780 = vmatpush2.bf16.msra.mxu1 %v18448_v45 }
 0x7d2   :  { %13781 = vmatprep.subr.bf16.mxu1 %v18456_v27  ;;  %13895 = vmatpush1.bf16.msra.mxu0 %v18523_v30  ;;  %v18534_v27 = vld [vmem:[%s24842_s8 + $0x15ec] ss:$16 sps:$4 sm:$0xff]   ;;  %v18532_v30 = vld [vmem:[%s24842_s8 + $0x15e8] ss:$16 sps:$4 sm:$0xff]  }
 0x7d3   :  { %13896 = vmatprep.subr.bf16.mxu0 %v18531_v4  ;;  %v18540_v4 = vld [vmem:[%s24842_s8 + $0x15cc] ss:$16 sps:$4 sm:$0xff]  }
 0x7d5   :  { %13782 = vmatpush2.bf16.msra.mxu1 %v18454_v36  ;;  %v18538_v36 = vld [vmem:[%s24842_s8 + $0x15c8] ss:$16 sps:$4 sm:$0xff]  }
 0x7d6   :  { %13783 = vmatprep.subr.bf16.mxu1 %v18462_v6  ;;  %13897 = vmatpush1.bf16.msra.mxu0 %v18529_v37  ;;  %v18546_v6 = vld [vmem:[%s24842_s8 + $0x15ac] ss:$16 sps:$4 sm:$0xff]   ;;  %v18544_v37 = vld [vmem:[%s24842_s8 + $0x15a8] ss:$16 sps:$4 sm:$0xff]  }
 0x7d7   :  { %13898 = vmatprep.subr.bf16.mxu0 %v18537_v0  ;;  %v18552_v0 = vld [vmem:[%s24842_s8 + $0x158c] ss:$16 sps:$4 sm:$0xff]  }
 0x7d9   :  { %13784 = vmatpush2.bf16.msra.mxu1 %v18460_v17  ;;  %v18550_v17 = vld [vmem:[%s24842_s8 + $0x1588] ss:$16 sps:$4 sm:$0xff]  }
 0x7da   :  { %13785 = vmatprep.subr.bf16.mxu1 %v18468_v40  ;;  %13899 = vmatpush2.bf16.msra.mxu0 %v18535_v44  ;;  %v18558_v40 = vld [vmem:[%s24842_s8 + $0x156c] ss:$16 sps:$4 sm:$0xff]   ;;  %v18556_v44 = vld [vmem:[%s24842_s8 + $0x1568] ss:$16 sps:$4 sm:$0xff]  }
 0x7db   :  { %13900 = vmatprep.subr.bf16.mxu0 %v18543_v11  ;;  %v18564_v11 = vld [vmem:[%s24842_s8 + $0x154c] ss:$16 sps:$4 sm:$0xff]  }
 0x7dd   :  { %13786 = vmatpush2.bf16.msra.mxu1 %v18466_v47  ;;  %v18562_v47 = vld [vmem:[%s24842_s8 + $0x1548] ss:$16 sps:$4 sm:$0xff]  }
 0x7de   :  { %13787 = vmatprep.subr.bf16.mxu1 %v18474_v19  ;;  %13901 = vmatpush2.bf16.msra.mxu0 %v18541_v15  ;;  %v18570_v19 = vld [vmem:[%s24842_s8 + $0x152c] ss:$16 sps:$4 sm:$0xff]   ;;  %v18568_v15 = vld [vmem:[%s24842_s8 + $0x1528] ss:$16 sps:$4 sm:$0xff]  }
 0x7df   :  { %13902 = vmatprep.subr.bf16.mxu0 %v18549_v46  ;;  %v18576_v46 = vld [vmem:[%s24842_s8 + $0x150c] ss:$16 sps:$4 sm:$0xff]  }
 0x7e1   :  { %13788 = vmatpush2.bf16.msra.mxu1 %v18472_v43  ;;  %v18574_v43 = vld [vmem:[%s24842_s8 + $0x1508] ss:$16 sps:$4 sm:$0xff]  }
 0x7e2   :  { %13789 = vmatprep.subr.bf16.mxu1 %v18480_v59  ;;  %13903 = vmatpush2.bf16.msra.mxu0 %v18547_v7  ;;  %v18582_v59 = vld [vmem:[%s24842_s8 + $0x186c] ss:$16 sps:$4 sm:$0xff]   ;;  %v18580_v7 = vld [vmem:[%s24842_s8 + $0x1868] ss:$16 sps:$4 sm:$0xff]  }
 0x7e3   :  { %13904 = vmatprep.subr.bf16.mxu0 %v18555_v57  ;;  %v18585_v57 = vld [vmem:[%s24842_s8 + $0x184c] ss:$16 sps:$4 sm:$0xff]  }
 0x7e5   :  { %13790 = vmatpush2.bf16.msra.mxu1 %v18478_v58 }
 0x7e6   :  { %13841 = vmatprep.subr.bf16.mxu1 %v18486_v24  ;;  %13905 = vmatpush2.bf16.msra.mxu0 %v18553_v32  ;;  %v18583_v32 = vld [vmem:[%s24842_s8 + $0x1848] ss:$16 sps:$4 sm:$0xff]  }
 0x7e7   :  { %13906 = vmatprep.subr.bf16.mxu0 %v18561_v22 }
 0x7e8   :  { %v13547_v23 = vpop.f32.mrf.mxu1  ;;  %13792 = vmatmul.mubr.bf16.vlgmr.msra.gmra.mxu1 %v23203_v21  ;;  %v18565_v21 = vld [vmem:[%s24842_s8 + $0x1748] ss:$16 sps:$4 sm:$0xff]  }
 0x7e9   :  { %v13548_v14 = vadd.f32 %v13547_v23, %v24486_v8  ;;  %13842 = vmatpush1.bf16.msra.mxu1 %v18484_v28  ;;  %13873 = vmatprep.mubr.bf16.mxu1 %v23221_v12  ;;  %v18573_v12 = vld [vmem:[%s24842_s8 + $0x172c] ss:$16 sps:$4 sm:$0xff]   ;;  %v18586_v23 = vld [vmem:[%s24842_s8 + $0x1828] ss:$16 sps:$4 sm:$0xff]  }
 0x7ea   :  { %v13549_v53 = vpop.f32.mrf.mxu1  ;;  %13843 = vmatprep.subr.bf16.mxu1 %v18492_v3  ;;  %13907 = vmatpush2.bf16.msra.mxu0 %v18559_v38  ;;  %v18588_v28 = vld [vmem:[%s24842_s8 + $0x182c] ss:$16 sps:$4 sm:$0xff]  }
 0x7eb   :  { %v13550_v8 = vadd.f32 %v13549_v53, %v24492_v51  ;;  %v24694_v18 = vadd.f32 %v24533_v50, %v13548_v14  ;;  %13908 = vmatprep.subr.bf16.mxu0 %v18567_v49  ;;  %v18504_v51 = vld [vmem:[%s24842_s8 + $0x148c] ss:$16 sps:$4 sm:$0xff]   ;;  %v18571_v50 = vld [vmem:[%s24842_s8 + $0x1728] ss:$16 sps:$4 sm:$0xff]  }
 0x7ec   :  { %v13551_v29 = vpop.f32.mrf.mxu1 }
 0x7ed   :  { %v24700_v52 = vadd.f32 %v24542_v34, %v13550_v8  ;;  %13844 = vmatpush1.bf16.msra.mxu1 %v18490_v62  ;;  %v18579_v34 = vld [vmem:[%s24842_s8 + $0x170c] ss:$16 sps:$4 sm:$0xff]   ;;  %v18589_v62 = vld [vmem:[%s24842_s8 + $0x1808] ss:$16 sps:$4 sm:$0xff]  }
 0x7ee   :  { %v13552_v48 = vpop.f32.mrf.mxu1  ;;  %13845 = vmatprep.subr.bf16.mxu1 %v18498_v63  ;;  %13909 = vmatpush2.bf16.msra.mxu0 %v18565_v21 }
 0x7ef   :  { %13910 = vmatprep.subr.bf16.mxu0 %v18573_v12 }
 0x7f1   :  { %13846 = vmatpush1.bf16.msra.mxu1 %v18496_v41 }
 0x7f2   :  { %13847 = vmatprep.subr.bf16.mxu1 %v18504_v51  ;;  %13911 = vmatpush2.bf16.msra.mxu0 %v18571_v50 }
 0x7f3   :  { %13912 = vmatprep.subr.bf16.mxu0 %v18579_v34 }
 0x7f5   :  { %13848 = vmatpush1.bf16.msra.mxu1 %v18502_v20 }
 0x7f6   :  { %13849 = vmatprep.subr.bf16.mxu1 %v18510_v35  ;;  %13913 = vmatpush2.bf16.msra.mxu0 %v18577_v61 }
 0x7f9   :  { %13850 = vmatpush1.bf16.msra.mxu1 %v18508_v55  ;;  %v13670_v5 = vpop.f32.mrf.mxu0  ;;  %13915 = vmatmul.mubr.bf16.vlgmr.msra.gmra.mxu0 %v23635_v31  ;;  %v18526_v31 = vld [vmem:[%s24842_s8 + $0x1408] ss:$16 sps:$4 sm:$0xff]  }
 0x7fa   :  { %13851 = vmatprep.subr.bf16.mxu1 %v18516_v25 }
 0x7fb   :  { %v13672_v10 = vpop.f32.mrf.mxu0 }
 0x7fd   :  { %13852 = vmatpush1.bf16.msra.mxu1 %v18514_v42  ;;  %v13674_v33 = vpop.f32.mrf.mxu0 }
 0x7fe   :  { %13853 = vmatprep.subr.bf16.mxu1 %v18522_v9 }
 0x7ff   :  { %v13675_v45 = vpop.f32.mrf.mxu0 }
 0x801   :  { %13854 = vmatpush1.bf16.msra.mxu1 %v18520_v13 }
 0x802   :  { %13855 = vmatprep.subr.bf16.mxu1 %v18528_v1 }
 0x805   :  { %13856 = vmatpush1.bf16.msra.mxu1 %v18526_v31 }
 0x806   :  { %13857 = vmatprep.subr.bf16.mxu1 %v18534_v27 }
 0x809   :  { %13858 = vmatpush2.bf16.msra.mxu1 %v18532_v30 }
 0x80a   :  { %13859 = vmatprep.subr.bf16.mxu1 %v18540_v4 }
 0x80d   :  { %13860 = vmatpush2.bf16.msra.mxu1 %v18538_v36 }
 0x80e   :  { %13861 = vmatprep.subr.bf16.mxu1 %v18546_v6 }
 0x811   :  { %13862 = vmatpush2.bf16.msra.mxu1 %v18544_v37 }
 0x812   :  { %13863 = vmatprep.subr.bf16.mxu1 %v18552_v0 }
 0x815   :  { %13864 = vmatpush2.bf16.msra.mxu1 %v18550_v17 }
 0x816   :  { %13865 = vmatprep.subr.bf16.mxu1 %v18558_v40 }
 0x819   :  { %13866 = vmatpush2.bf16.msra.mxu1 %v18556_v44 }
 0x81a   :  { %13867 = vmatprep.subr.bf16.mxu1 %v18564_v11 }
 0x81d   :  { %13868 = vmatpush2.bf16.msra.mxu1 %v18562_v47 }
 0x81e   :  { %13869 = vmatprep.subr.bf16.mxu1 %v18570_v19 }
 0x821   :  { %13870 = vmatpush2.bf16.msra.mxu1 %v18568_v15 }
 0x822   :  { %13871 = vmatprep.subr.bf16.mxu1 %v18576_v46 }
 0x825   :  { %13872 = vmatpush2.bf16.msra.mxu1 %v18574_v43 }
 0x826   :  { %13931 = vmatprep.subr.bf16.mxu1 %v18582_v59 }
 0x828   :  { %v13629_v58 = vpop.f32.mrf.mxu1  ;;  %13874 = vmatmul.mubr.bf16.vlgmr.msra.gmra.mxu1 %v23419_v54 }
 0x829   :  { %v13630_v24 = vadd.f32 %v13629_v58, %v24694_v18  ;;  %13932 = vmatpush1.bf16.msra.mxu1 %v18580_v7  ;;  %13955 = vmatprep.mubr.bf16.mxu1 %v18639_v2  ;;  %v18591_v2 = vld [vmem:[%s24842_s8 + $0x180c] ss:$16 sps:$4 sm:$0xff]   ;;  %s18641_s8 = smov [#allocation2]  }
 0x82a   :  { %v13631_v22 = vpop.f32.mrf.mxu1  ;;  %13933 = vmatprep.subr.bf16.mxu1 %v18585_v57  ;;  %s13993_s18 = sshll.u32 %s18641_s8, 4  ;;  %s13994_s18 = int_to_ptr.vmem [resolvable:$true] %s13993_s18 }
 0x82b   :  { %v13632_v3 = vadd.f32 %v13631_v22, %v24700_v52  ;;  %v13671_v38 = vadd.f32 %v13670_v5, %v13630_v24  ;;  %s18594_s19 = scalar_lea.vmem %s13994_s18, 128  ;;  %p18599_p1 = scmp.lt.s32.totalorder %s13994_s18, %s13994_s18 }
 0x82c   :  { %v13633_v49 = vpop.f32.mrf.mxu1  ;;  %p18595_p0 = scmp.ne.s32.totalorder %s13994_s18, %s18594_s19  ;;  %p18600_p2 = scmp.lt.s32.totalorder %s18594_s19, %s18594_s19 }
 0x82d   :  { %v13673_v54 = vadd.f32 %v13672_v10, %v13632_v3  ;;  %13934 = vmatpush1.bf16.msra.mxu1 %v18583_v32 }
 0x82e   :  { %v13634_v14 = vpop.f32.mrf.mxu1  ;;  %13935 = vmatprep.subr.bf16.mxu1 %v18588_v28  ;;  %p18601_p3 = por %p18600_p2, %p18599_p1 }
 0x830   :  { %p18602_p4 = pnand %p18601_p3, %p18595_p0 }
 0x831   :  { %13936 = vmatpush1.bf16.msra.mxu1 %v18586_v23 }
 0x832   :  { %13937 = vmatprep.subr.bf16.mxu1 %v18591_v2 }
 0x835   :  { %13938 = vmatpush1.bf16.msra.mxu1 %v18589_v62 }
 0x838   :  { %15844 = vmatmul.mubr.msk.bf16.vlgmr.msra.gmra.mxu1 %vm4959_vm0, %v23487_v16 }
 0x839   :  { %v13752_v53 = vpop.f32.mrf.mxu0 }
 0x83b   :  { %v13754_v63 = vpop.f32.mrf.mxu0 }
 0x83d   :  { %v13756_v21 = vpop.f32.mrf.mxu0 }
 0x83f   :  { %v13757_v8 = vpop.f32.mrf.mxu0 }
 0x868   :  { %v13711_v18 = vpop.f32.mrf.mxu1 }
 0x869   :  { %v13712_v12 = vadd.f32 %v13711_v18, %v13671_v38 }
 0x86a   :  { %v13713_v29 = vpop.f32.mrf.mxu1 }
 0x86b   :  { %v13714_v52 = vadd.f32 %v13713_v29, %v13673_v54  ;;  %v13753_v41 = vadd.f32 %v13752_v53, %v13712_v12 }
 0x86c   :  { %v13715_v48 = vpop.f32.mrf.mxu1 }
 0x86d   :  { %v13755_v51 = vadd.f32 %v13754_v63, %v13714_v52 }
 0x86e   :  { %v13716_v50 = vpop.f32.mrf.mxu1 }
 0x879   :  { %v13834_v34 = vpop.f32.mrf.mxu0 }
 0x87b   :  { %v13836_v20 = vpop.f32.mrf.mxu0 }
 0x87d   :  { %v13838_v35 = vpop.f32.mrf.mxu0 }
 0x87f   :  { %v13839_v61 = vpop.f32.mrf.mxu0 }
 0x880   :  { %18605 = shalt.err (!%p18602_p4)
}
 0x881   :  { %13996 = dma.vmem_to_hbm [thread:$0]  %s13994_s18, 128, %s24844_s10, [#allocation3]   ;;  %v13976_v43 = vrot.slane %v13968_v56, %v23005_v60 }
 0x882   :  { %s18642_s10 = smov [#allocation4]  }
 0x883   :  { %s14003_s22 = sshll.u32 %s18642_s10, 4  ;;  %s14004_s22 = int_to_ptr.vmem [resolvable:$true] %s14003_s22 }
 0x884   :  { %s18614_s23 = scalar_lea.vmem %s14004_s22, 128  ;;  %p18619_p6 = scmp.lt.s32.totalorder %s14004_s22, %s14004_s22 }
 0x885   :  { %p18615_p5 = scmp.ne.s32.totalorder %s14004_s22, %s18614_s23  ;;  %p18620_p7 = scmp.lt.s32.totalorder %s18614_s23, %s18614_s23 }
 0x887   :  { %p18621_p8 = por %p18620_p7, %p18619_p6 }
 0x889   :  { %p18622_p9 = pnand %p18621_p8, %p18615_p5 }
 0x8a8   :  { %v13793_v16 = vpop.f32.mrf.mxu1 }
 0x8a9   :  { %v13794_v55 = vadd.f32 %v13793_v16, %v13753_v41 }
 0x8aa   :  { %v13795_v25 = vpop.f32.mrf.mxu1 }
 0x8ab   :  { %v13796_v42 = vadd.f32 %v13795_v25, %v13755_v51  ;;  %v13835_v5 = vadd.f32 %v13834_v34, %v13794_v55 }
 0x8ac   :  { %v13797_v9 = vpop.f32.mrf.mxu1 }
 0x8ad   :  { %v13837_v10 = vadd.f32 %v13836_v20, %v13796_v42 }
 0x8ae   :  { %v13798_v13 = vpop.f32.mrf.mxu1 }
 0x8b9   :  { %v13916_v33 = vpop.f32.mrf.mxu0 }
 0x8bb   :  { %v13918_v1 = vpop.f32.mrf.mxu0 }
 0x8bd   :  { %v13920_v45 = vpop.f32.mrf.mxu0 }
 0x8bf   :  { %v13921_v31 = vpop.f32.mrf.mxu0 }
 0x8e8   :  { %v13875_v27 = vpop.f32.mrf.mxu1 }
 0x8e9   :  { %v13876_v6 = vadd.f32 %v13875_v27, %v13835_v5 }
 0x8ea   :  { %v13877_v30 = vpop.f32.mrf.mxu1 }
 0x8eb   :  { %v13878_v37 = vadd.f32 %v13877_v30, %v13837_v10  ;;  %v13917_v17 = vadd.f32 %v13916_v33, %v13876_v6 }
 0x8ec   :  { %v13879_v4 = vpop.f32.mrf.mxu1 }
 0x8ed   :  { %v13919_v40 = vadd.f32 %v13918_v1, %v13878_v37 }
 0x8ee   :  { %v13880_v36 = vpop.f32.mrf.mxu1 }
 0x8f8   :  { %v13957_v0 = vpop.f32.mrf.mxu1 }
 0x8f9   :  { %v13958_v11 = vadd.f32 %v13957_v0, %v13917_v17 }
 0x8fa   :  { %v13959_v44 = vpop.f32.mrf.mxu1 }
 0x8fb   :  { %v13960_v47 = vadd.f32 %v13959_v44, %v13919_v40 }
 0x8fc   :  { %v13961_v19 = vpop.f32.mrf.mxu1 }
 0x8fd   :  { %v13969_v15 = vcombine.low %v13958_v11, %v13960_v47 }
 0x8fe   :  { %v13962_v46 = vpop.f32.mrf.mxu1 }
 0x8ff   :  { %v13983_v59 = vrot.slane %v13969_v15, %v23005_v60 }
 0x901   :  { %v13984_v7 = vcombine.low %v13976_v43, %v13983_v59 }
 0x903   :  { %13986 = vst [vmem:[#allocation4] sm:$0xff] %v13984_v7 }
 0x904   :  { %18625 = shalt.err (!%p18622_p9)
}
 0x905   :  { %14006 = dma.vmem_to_hbm [thread:$0]  %s14004_s22, 128, %s24845_s11, [#allocation5]  }
 0x906   :  { %18634 = dma.done.wait [#allocation3], 128  }
 0x907   :  { %18635 = vsyncadd [#allocation3], 4294967168 }
 0x908   :  { %18636 = dma.done.wait [#allocation5], 128  }
 0x909   :  { %18637 = vsyncadd [#allocation5], 4294967168 }
 0x90a   :  { %14013 = vsyncpa [#allocation3], 1 }
 0x90b   :  { %14014 = vsyncpa [#allocation5], 1 }

</bundles_post_ra>
